<compile_context>
chip_gen: v7x
topology: tpu7x:2x2x1
jax: 0.10.0
libtpu: 0.0.40
codegen_flags: <defaults>
</compile_context>

<pallas_src>
import jax
import jax.numpy as jnp
from jax.experimental import pallas as pl
from jax.experimental.pallas import tpu as pltpu


# ----------------------------------------------------------------------------
# Static network configuration (must stay Python ints — never traced).
# ----------------------------------------------------------------------------
_CONV_KS = ((5, 2), (3, 2), (3, 2), (3, 2))   # (kernel, stride) conv1..conv4
_CONV_COUT = (32, 48, 64, 96)                 # conv1..conv4 output channels
_C5_OUT = 128                                 # conv5 output channels
_M_TILE_CAP = 1024
_B_TILE_CAP = 128


def _round_up(x, m):
    return ((x + m - 1) // m) * m


def _num_tensorcores():
    """TensorCores per chip (v7x: 2, v5e/v6e: 1).  Defensive: falls back to 1."""
    try:
        dev = jax.devices()[0]
        if dev.platform != "tpu":
            return 1
        nc = getattr(dev, "num_cores", None)
        if isinstance(nc, int) and 1 <= nc <= 8:
            return nc
    except Exception:
        pass
    return 1


_NUM_TC = _num_tensorcores()


def _m_tile(M):
    """Row tile for the im2col matmul kernels.

    1-TC chips: one full-extent block when the layer fits (avoids doubling the
    ~0.35us per-step overhead on tail layers).  Multi-TC chips: >=2 grid steps
    per core so both cores get work and DMA/compute/writeback overlap.
    """
    if _NUM_TC == 1 and M <= _M_TILE_CAP:
        return M                               # full-extent block: always legal
    steps = max(2 * _NUM_TC, pl.cdiv(M, _M_TILE_CAP))
    tm = _round_up(pl.cdiv(M, steps), 8)
    return max(8, min(tm, _M_TILE_CAP))


def _b_tile(B):
    """Batch tile for the fused head kernel (cap keeps f32 intermediates small)."""
    if _NUM_TC > 1 and B >= 16 * _NUM_TC:
        return min(_B_TILE_CAP, _round_up(pl.cdiv(B, 2 * _NUM_TC), 8))
    return B if B <= _B_TILE_CAP else _B_TILE_CAP


# ----------------------------------------------------------------------------
# Pallas kernel: out = relu(a @ w + b); bf16 MXU matmul, f32 epilogue.
# Grid over M only; ragged last block handled by Pallas store clipping
# (safe: the epilogue is strictly row-wise).
# ----------------------------------------------------------------------------
def _matmul_bias_relu_kernel(a_ref, w_ref, b_ref, o_ref):
    acc = jnp.dot(a_ref[...], w_ref[...], preferred_element_type=jnp.float32)
    acc = jnp.maximum(acc + b_ref[...], 0.0)
    o_ref[...] = acc.astype(o_ref.dtype)


def conv_im2col_matmul(a, w_mat, b_row):
    """a: (M, K) bf16 patches; w_mat: (K, N) bf16; b_row: (1, N) f32 -> (M, N) bf16."""
    M, K = a.shape
    Kw, N = w_mat.shape
    assert K == Kw and b_row.shape == (1, N)
    tm = _m_tile(M)
    grid_m = pl.cdiv(M, tm)
    return pl.pallas_call(
        _matmul_bias_relu_kernel,
        out_shape=jax.ShapeDtypeStruct((M, N), jnp.bfloat16),
        grid_spec=pltpu.PrefetchScalarGridSpec(
            num_scalar_prefetch=0,
            grid=(grid_m,),
            in_specs=[
                pl.BlockSpec((tm, K), lambda i: (i, 0)),
                pl.BlockSpec((K, N), lambda i: (0, 0)),
                pl.BlockSpec((1, N), lambda i: (0, 0)),
            ],
            out_specs=pl.BlockSpec((tm, N), lambda i: (i, 0)),
        ),
        compiler_params=pltpu.CompilerParams(
            dimension_semantics=("parallel",),
            vmem_limit_bytes=32 * 1024 * 1024,
        ),
        cost_estimate=pl.CostEstimate(
            flops=2 * M * K * N, transcendentals=0,
            bytes_accessed=M * K * 2 + K * N * 2 + N * 4 + M * N * 2),
    )(a, w_mat, b_row)


# ----------------------------------------------------------------------------
# Fused head: conv4 (from its im2col patches) + ReLU + conv5 (dense over the
# 5x5 map, evaluated as 25 per-tap dots — no reshape) + ReLU + Linear.
# Patches arrive tap-major (25, B, 576) so in-kernel tap slicing is a pure
# leading-dim index (no sublane relayout).
# ----------------------------------------------------------------------------
def _head_kernel(a_ref, w4_ref, b4_ref, w5_ref, b5_ref, wl_ref, bl_ref, o_ref):
    taps = a_ref.shape[0]                       # 25
    tb = a_ref.shape[1]
    n5 = w5_ref.shape[2]                        # 128
    h5 = jnp.zeros((tb, n5), jnp.float32)
    for p in range(taps):                       # unrolled: 25 taps
        h4 = jnp.dot(a_ref[p], w4_ref[...], preferred_element_type=jnp.float32)
        h4 = jnp.maximum(h4 + b4_ref[...], 0.0)                 # conv4 + ReLU
        h5 = h5 + jnp.dot(h4.astype(jnp.bfloat16), w5_ref[p],
                          preferred_element_type=jnp.float32)   # conv5 tap
    h5 = jnp.maximum(h5 + b5_ref[...], 0.0)                     # conv5 bias+ReLU
    out = jnp.dot(h5.astype(jnp.bfloat16), wl_ref[...],
                  preferred_element_type=jnp.float32) + bl_ref[...]
    o_ref[...] = out


def head_fused(p4, w4, b4, w5, b5, wl, bl):
    """p4: (25, B, 576) bf16 conv4 patches (tap-major) -> (B, out_dim) f32."""
    P, B, K4 = p4.shape
    N4 = w4.shape[1]
    N5 = w5.shape[2]
    N2 = wl.shape[1]
    tb = _b_tile(B)
    grid_b = pl.cdiv(B, tb)
    return pl.pallas_call(
        _head_kernel,
        out_shape=jax.ShapeDtypeStruct((B, N2), jnp.float32),
        grid_spec=pltpu.PrefetchScalarGridSpec(
            num_scalar_prefetch=0,
            grid=(grid_b,),
            in_specs=[
                pl.BlockSpec((P, tb, K4), lambda i: (0, i, 0)),
                pl.BlockSpec((K4, N4), lambda i: (0, 0)),
                pl.BlockSpec((1, N4), lambda i: (0, 0)),
                pl.BlockSpec((P, N4, N5), lambda i: (0, 0, 0)),
                pl.BlockSpec((1, N5), lambda i: (0, 0)),
                pl.BlockSpec((N5, N2), lambda i: (0, 0)),
                pl.BlockSpec((1, N2), lambda i: (0, 0)),
            ],
            out_specs=pl.BlockSpec((tb, N2), lambda i: (i, 0)),
        ),
        compiler_params=pltpu.CompilerParams(
            dimension_semantics=("parallel",),
            vmem_limit_bytes=32 * 1024 * 1024,
        ),
        cost_estimate=pl.CostEstimate(
            flops=2 * B * P * (K4 * N4 + N4 * N5) + 2 * B * N5 * N2,
            transcendentals=0,
            bytes_accessed=(P * B * K4 * 2 + K4 * N4 * 2 + P * N4 * N5 * 2
                            + N5 * N2 * 2 + B * N2 * 4)),
    )(p4, w4, b4, w5, b5, wl, bl)


# ----------------------------------------------------------------------------
# Lazy im2col: one XLA patches op (feature order is channel-major: cin, kh, kw
# — matching PyTorch's Conv2d weight flatten).
# ----------------------------------------------------------------------------
def _extract_patches(x, k, stride):
    B, H, W, C = x.shape
    patches = jax.lax.conv_general_dilated_patches(
        x, filter_shape=(k, k), window_strides=(stride, stride),
        padding="VALID", dimension_numbers=("NHWC", "HWIO", "NHWC"))
    Ho = (H - k) // stride + 1
    Wo = (W - k) // stride + 1
    return patches.reshape(B * Ho * Wo, k * k * C), (B, Ho, Wo)


# ----------------------------------------------------------------------------
# Parameters (deterministic PyTorch-default-like uniform init), stored in
# matmul layout: bf16 weights, f32 (1, N) biases.
# ----------------------------------------------------------------------------
def _uniform(key, shape, fan_in):
    bound = 1.0 / jnp.sqrt(float(fan_in))
    return jax.random.uniform(key, shape, jnp.float32, -bound, bound)


def init_convnet_params(key, inp_dim, out_dim):
    """image_size == 112 branch of ConvNet."""
    conv_w, conv_b = [], []
    cin = inp_dim
    for li in range(4):
        k, _ = _CONV_KS[li]
        cout = _CONV_COUT[li]
        key, kw_, kb_ = jax.random.split(key, 3)
        fan_in = cin * k * k
        w = _uniform(kw_, (cout, cin, k, k), fan_in)          # PyTorch OIHW
        if li == 0:
            # conv1 has bias=False; fold `x/128 - 1` into it:
            #   conv(x/128 - 1, W) = conv(x, W/128) - sum_{cin,kh,kw} W
            b = -jnp.sum(w, axis=(1, 2, 3))
            w = w * (1.0 / 128.0)
        else:
            b = _uniform(kb_, (cout,), fan_in)
        conv_w.append(w.reshape(cout, cin * k * k).T.astype(jnp.bfloat16))
        conv_b.append(b.reshape(1, cout).astype(jnp.float32))
        cin = cout
    # conv5: 96 -> 128 over the flattened 5x5 map, stored tap-major (25, 96, 128)
    key, kw_, kb_ = jax.random.split(key, 3)
    fan_in5 = 96 * 5 * 5
    w5 = _uniform(kw_, (_C5_OUT, 96, 5, 5), fan_in5)
    b5 = _uniform(kb_, (_C5_OUT,), fan_in5)
    w5_taps = jnp.transpose(w5, (2, 3, 1, 0)).reshape(25, 96, _C5_OUT)
    # Linear(128, out_dim)
    key, kw_, kb_ = jax.random.split(key, 3)
    wl = _uniform(kw_, (out_dim, _C5_OUT), _C5_OUT)           # PyTorch (out, in)
    bl = _uniform(kb_, (out_dim,), _C5_OUT)
    return {
        "conv_w": conv_w,                                     # conv1..conv4 matmul layout
        "conv_b": conv_b,
        "w5": w5_taps.astype(jnp.bfloat16),
        "b5": b5.reshape(1, _C5_OUT).astype(jnp.float32),
        "wl": wl.T.astype(jnp.bfloat16),                      # (128, out_dim)
        "bl": bl.reshape(1, out_dim).astype(jnp.float32),
    }


# ----------------------------------------------------------------------------
# Forward pass == ConvNet(inp_dim, out_dim, image_size=112).forward(x)
#   (x given as NHWC; the x/128-1 normalization is folded into conv1's params)
# ----------------------------------------------------------------------------
def convnet_forward(params, x):
    h = x.astype(jnp.bfloat16)            # 0..255 pixel values are exact in bf16
    # conv1..conv3: lazy im2col + Pallas bf16 matmul + bias + ReLU (bf16 out)
    for li in range(3):
        k, s = _CONV_KS[li]
        patches, (Bc, Ho, Wo) = _extract_patches(h, k, s)
        out = conv_im2col_matmul(patches, params["conv_w"][li], params["conv_b"][li])
        h = out.reshape(Bc, Ho, Wo, -1)
    # conv4 patches, rearranged tap-major (25, B, 576) for the fused head.
    k, s = _CONV_KS[3]
    patches4, (Bc, Ho4, Wo4) = _extract_patches(h, k, s)      # (B*25, 576)
    p4 = jnp.transpose(patches4.reshape(Bc, Ho4 * Wo4, -1), (1, 0, 2))
    # fused conv4 + ReLU + conv5 + ReLU + Linear
    return head_fused(p4, params["conv_w"][3], params["conv_b"][3],
                      params["w5"], params["b5"], params["wl"], params["bl"])


# ----------------------------------------------------------------------------
# Pure-JAX reference (same bf16 weights / bf16 inter-layer activations, f32
# accumulation via lax.conv) — validates the patch feature-order assumption.
# ----------------------------------------------------------------------------
def reference_forward(params, x):
    h = x.astype(jnp.bfloat16)
    for li in range(4):
        k, s = _CONV_KS[li]
        w_mat = params["conv_w"][li]
        cout = w_mat.shape[1]
        cin = w_mat.shape[0] // (k * k)
        w_hwio = jnp.transpose(w_mat.reshape(cin, k, k, cout), (1, 2, 0, 3))
        y = jax.lax.conv_general_dilated(
            h.astype(jnp.float32), w_hwio.astype(jnp.float32),
            window_strides=(s, s), padding="VALID",
            dimension_numbers=("NHWC", "HWIO", "NHWC"))
        h = jnp.maximum(y + params["conv_b"][li][0], 0.0).astype(jnp.bfloat16)
    nb = h.shape[0]
    h25 = h.reshape(nb, 25, 96).astype(jnp.float32)
    h5 = jnp.einsum("bpc,pcn->bn", h25, params["w5"].astype(jnp.float32))
    h5 = jnp.maximum(h5 + params["b5"], 0.0)
    return (jnp.dot(h5.astype(jnp.bfloat16).astype(jnp.float32),
                    params["wl"].astype(jnp.float32)) + params["bl"])


if __name__ == "__main__":
    import numpy as np

    B, H, W, C = 2, 112, 112, 3          # image_size=112 branch requires 112x112
    OUT_DIM = 8

    key = jax.random.PRNGKey(0)
    k_x, k_p = jax.random.split(key)
    # image-like uint8-range values (the /128 - 1 normalization is folded into conv1)
    x = jax.random.uniform(k_x, (B, H, W, C), jnp.float32, 0.0, 255.0)
    params = init_convnet_params(k_p, C, OUT_DIM)

    fwd = jax.jit(convnet_forward)
    out = fwd(params, x)
    jax.block_until_ready(out)
    assert out.shape == (B, OUT_DIM), out.shape
    assert out.dtype == jnp.float32

    # One-time numerics check against a pure-JAX lax.conv reference that uses
    # the same bf16 weights / bf16 activations (only accumulation order differs).
    ref = jax.jit(reference_forward)(params, x)
    np.testing.assert_allclose(np.asarray(out), np.asarray(ref),
                               rtol=5e-2, atol=5e-2)
    print("KERNEL_OK")
</pallas_src>

<mosaic_0001>
module attributes {stable_mosaic.version = 11 : i64} {
  func.func @_matmul_bias_relu_kernel(%arg0: i32, %arg1: memref<976x75xbf16, #tpu.memory_space<vmem>>, %arg2: memref<75x32xbf16, #tpu.memory_space<vmem>>, %arg3: memref<1x32xf32, #tpu.memory_space<vmem>>, %arg4: memref<976x32xbf16, #tpu.memory_space<vmem>>) attributes {dimension_semantics = [#tpu.dimension_semantics<parallel>], iteration_bounds = array<i64: 6>, scalar_prefetch = 0 : i64, scratch_operands = 0 : i64, tpu.core_type = #tpu.core_type<tc>, window_params = [{transform_indices = @transform_0, window_bounds = array<i64: 976, 75>}, {pipeline_mode = #tpu.pipeline_mode<synchronous>, transform_indices = @transform_1, window_bounds = array<i64: 75, 32>}, {pipeline_mode = #tpu.pipeline_mode<synchronous>, transform_indices = @transform_2, window_bounds = array<i64: 1, 32>}, {transform_indices = @transform_3, window_bounds = array<i64: 976, 32>}]} {
    %c0 = arith.constant 0 : index
    %c0_0 = arith.constant 0 : index
    %0 = vector.load %arg1[%c0, %c0_0] : memref<976x75xbf16, #tpu.memory_space<vmem>>, vector<976x75xbf16>
    %c0_1 = arith.constant 0 : index
    %c0_2 = arith.constant 0 : index
    %1 = vector.load %arg2[%c0_1, %c0_2] : memref<75x32xbf16, #tpu.memory_space<vmem>>, vector<75x32xbf16>
    %cst = arith.constant dense<0.000000e+00> : vector<976x32xf32>
    %2 = tpu.matmul %0, %1, %cst {dimension_numbers = #tpu.dot_dimension_numbers<[1], [0], [0], [1], [0, 0, 1, 1], [], []>} : vector<976x75xbf16>, vector<75x32xbf16>, vector<976x32xf32> -> vector<976x32xf32>
    %c0_3 = arith.constant 0 : index
    %c0_4 = arith.constant 0 : index
    %3 = vector.load %arg3[%c0_3, %c0_4] : memref<1x32xf32, #tpu.memory_space<vmem>>, vector<1x32xf32>
    %4 = vector.broadcast %3 : vector<1x32xf32> to vector<976x32xf32>
    %5 = arith.addf %2, %4 : vector<976x32xf32>
    %cst_5 = arith.constant 0.000000e+00 : f32
    %6 = vector.broadcast %cst_5 : f32 to vector<976x32xf32>
    %7 = arith.maximumf %5, %6 : vector<976x32xf32>
    %8 = arith.truncf %7 : vector<976x32xf32> to vector<976x32xbf16>
    %c0_6 = arith.constant 0 : index
    %c0_7 = arith.constant 0 : index
    %9 = vector.load %arg4[%c0_6, %c0_7] : memref<976x32xbf16, #tpu.memory_space<vmem>>, vector<976x32xbf16>
    tpu.vector_store %arg4[%c0_6, %c0_7], %8 {strides = array<i32>} : memref<976x32xbf16, #tpu.memory_space<vmem>>, vector<976x32xbf16>,
    return
  }
  func.func @transform_0(%arg0: i32) -> (i32, i32) {
    %c0_i32 = arith.constant 0 : i32
    %c0_i32_0 = arith.constant 0 : i32
    return %arg0, %c0_i32 : i32, i32
  }
  func.func @transform_1(%arg0: i32) -> (i32, i32) {
    %c0_i32 = arith.constant 0 : i32
    %c0_i32_0 = arith.constant 0 : i32
    %c0_i32_1 = arith.constant 0 : i32
    return %c0_i32, %c0_i32_0 : i32, i32
  }
  func.func @transform_2(%arg0: i32) -> (i32, i32) {
    %c0_i32 = arith.constant 0 : i32
    %c0_i32_0 = arith.constant 0 : i32
    %c0_i32_1 = arith.constant 0 : i32
    return %c0_i32, %c0_i32_0 : i32, i32
  }
  func.func @transform_3(%arg0: i32) -> (i32, i32) {
    %c0_i32 = arith.constant 0 : i32
    %c0_i32_0 = arith.constant 0 : i32
    return %arg0, %c0_i32 : i32, i32
  }
}

module attributes {stable_mosaic.version = 11 : i64} {
  func.func @_matmul_bias_relu_kernel(%arg0: i32, %arg1: memref<680x288xbf16, #tpu.memory_space<vmem>>, %arg2: memref<288x48xbf16, #tpu.memory_space<vmem>>, %arg3: memref<1x48xf32, #tpu.memory_space<vmem>>, %arg4: memref<680x48xbf16, #tpu.memory_space<vmem>>) attributes {dimension_semantics = [#tpu.dimension_semantics<parallel>], iteration_bounds = array<i64: 2>, scalar_prefetch = 0 : i64, scratch_operands = 0 : i64, tpu.core_type = #tpu.core_type<tc>, window_params = [{transform_indices = @transform_0, window_bounds = array<i64: 680, 288>}, {pipeline_mode = #tpu.pipeline_mode<synchronous>, transform_indices = @transform_1, window_bounds = array<i64: 288, 48>}, {pipeline_mode = #tpu.pipeline_mode<synchronous>, transform_indices = @transform_2, window_bounds = array<i64: 1, 48>}, {transform_indices = @transform_3, window_bounds = array<i64: 680, 48>}]} {
    %c0 = arith.constant 0 : index
    %c0_0 = arith.constant 0 : index
    %0 = vector.load %arg1[%c0, %c0_0] : memref<680x288xbf16, #tpu.memory_space<vmem>>, vector<680x288xbf16>
    %c0_1 = arith.constant 0 : index
    %c0_2 = arith.constant 0 : index
    %1 = vector.load %arg2[%c0_1, %c0_2] : memref<288x48xbf16, #tpu.memory_space<vmem>>, vector<288x48xbf16>
    %cst = arith.constant dense<0.000000e+00> : vector<680x48xf32>
    %2 = tpu.matmul %0, %1, %cst {dimension_numbers = #tpu.dot_dimension_numbers<[1], [0], [0], [1], [0, 0, 1, 1], [], []>} : vector<680x288xbf16>, vector<288x48xbf16>, vector<680x48xf32> -> vector<680x48xf32>
    %c0_3 = arith.constant 0 : index
    %c0_4 = arith.constant 0 : index
    %3 = vector.load %arg3[%c0_3, %c0_4] : memref<1x48xf32, #tpu.memory_space<vmem>>, vector<1x48xf32>
    %4 = vector.broadcast %3 : vector<1x48xf32> to vector<680x48xf32>
    %5 = arith.addf %2, %4 : vector<680x48xf32>
    %cst_5 = arith.constant 0.000000e+00 : f32
    %6 = vector.broadcast %cst_5 : f32 to vector<680x48xf32>
    %7 = arith.maximumf %5, %6 : vector<680x48xf32>
    %8 = arith.truncf %7 : vector<680x48xf32> to vector<680x48xbf16>
    %c0_6 = arith.constant 0 : index
    %c0_7 = arith.constant 0 : index
    %9 = vector.load %arg4[%c0_6, %c0_7] : memref<680x48xbf16, #tpu.memory_space<vmem>>, vector<680x48xbf16>
    tpu.vector_store %arg4[%c0_6, %c0_7], %8 {strides = array<i32>} : memref<680x48xbf16, #tpu.memory_space<vmem>>, vector<680x48xbf16>,
    return
  }
  func.func @transform_0(%arg0: i32) -> (i32, i32) {
    %c0_i32 = arith.constant 0 : i32
    %c0_i32_0 = arith.constant 0 : i32
    return %arg0, %c0_i32 : i32, i32
  }
  func.func @transform_1(%arg0: i32) -> (i32, i32) {
    %c0_i32 = arith.constant 0 : i32
    %c0_i32_0 = arith.constant 0 : i32
    %c0_i32_1 = arith.constant 0 : i32
    return %c0_i32, %c0_i32_0 : i32, i32
  }
  func.func @transform_2(%arg0: i32) -> (i32, i32) {
    %c0_i32 = arith.constant 0 : i32
    %c0_i32_0 = arith.constant 0 : i32
    %c0_i32_1 = arith.constant 0 : i32
    return %c0_i32, %c0_i32_0 : i32, i32
  }
  func.func @transform_3(%arg0: i32) -> (i32, i32) {
    %c0_i32 = arith.constant 0 : i32
    %c0_i32_0 = arith.constant 0 : i32
    return %arg0, %c0_i32 : i32, i32
  }
}

module attributes {stable_mosaic.version = 11 : i64} {
  func.func @_matmul_bias_relu_kernel(%arg0: i32, %arg1: memref<288x432xbf16, #tpu.memory_space<vmem>>, %arg2: memref<432x64xbf16, #tpu.memory_space<vmem>>, %arg3: memref<1x64xf32, #tpu.memory_space<vmem>>, %arg4: memref<288x64xbf16, #tpu.memory_space<vmem>>) attributes {dimension_semantics = [#tpu.dimension_semantics<parallel>], iteration_bounds = array<i64: 1>, scalar_prefetch = 0 : i64, scratch_operands = 0 : i64, tpu.core_type = #tpu.core_type<tc>, window_params = [{transform_indices = @transform_0, window_bounds = array<i64: 288, 432>}, {pipeline_mode = #tpu.pipeline_mode<synchronous>, transform_indices = @transform_1, window_bounds = array<i64: 432, 64>}, {pipeline_mode = #tpu.pipeline_mode<synchronous>, transform_indices = @transform_2, window_bounds = array<i64: 1, 64>}, {transform_indices = @transform_3, window_bounds = array<i64: 288, 64>}]} {
    %c0 = arith.constant 0 : index
    %c0_0 = arith.constant 0 : index
    %0 = vector.load %arg1[%c0, %c0_0] : memref<288x432xbf16, #tpu.memory_space<vmem>>, vector<288x432xbf16>
    %c0_1 = arith.constant 0 : index
    %c0_2 = arith.constant 0 : index
    %1 = vector.load %arg2[%c0_1, %c0_2] : memref<432x64xbf16, #tpu.memory_space<vmem>>, vector<432x64xbf16>
    %cst = arith.constant dense<0.000000e+00> : vector<288x64xf32>
    %2 = tpu.matmul %0, %1, %cst {dimension_numbers = #tpu.dot_dimension_numbers<[1], [0], [0], [1], [0, 0, 1, 1], [], []>} : vector<288x432xbf16>, vector<432x64xbf16>, vector<288x64xf32> -> vector<288x64xf32>
    %c0_3 = arith.constant 0 : index
    %c0_4 = arith.constant 0 : index
    %3 = vector.load %arg3[%c0_3, %c0_4] : memref<1x64xf32, #tpu.memory_space<vmem>>, vector<1x64xf32>
    %4 = vector.broadcast %3 : vector<1x64xf32> to vector<288x64xf32>
    %5 = arith.addf %2, %4 : vector<288x64xf32>
    %cst_5 = arith.constant 0.000000e+00 : f32
    %6 = vector.broadcast %cst_5 : f32 to vector<288x64xf32>
    %7 = arith.maximumf %5, %6 : vector<288x64xf32>
    %8 = arith.truncf %7 : vector<288x64xf32> to vector<288x64xbf16>
    %c0_6 = arith.constant 0 : index
    %c0_7 = arith.constant 0 : index
    %9 = vector.load %arg4[%c0_6, %c0_7] : memref<288x64xbf16, #tpu.memory_space<vmem>>, vector<288x64xbf16>
    tpu.vector_store %arg4[%c0_6, %c0_7], %8 {strides = array<i32>} : memref<288x64xbf16, #tpu.memory_space<vmem>>, vector<288x64xbf16>,
    return
  }
  func.func @transform_0(%arg0: i32) -> (i32, i32) {
    %c0_i32 = arith.constant 0 : i32
    %c0_i32_0 = arith.constant 0 : i32
    return %arg0, %c0_i32 : i32, i32
  }
  func.func @transform_1(%arg0: i32) -> (i32, i32) {
    %c0_i32 = arith.constant 0 : i32
    %c0_i32_0 = arith.constant 0 : i32
    %c0_i32_1 = arith.constant 0 : i32
    return %c0_i32, %c0_i32_0 : i32, i32
  }
  func.func @transform_2(%arg0: i32) -> (i32, i32) {
    %c0_i32 = arith.constant 0 : i32
    %c0_i32_0 = arith.constant 0 : i32
    %c0_i32_1 = arith.constant 0 : i32
    return %c0_i32, %c0_i32_0 : i32, i32
  }
  func.func @transform_3(%arg0: i32) -> (i32, i32) {
    %c0_i32 = arith.constant 0 : i32
    %c0_i32_0 = arith.constant 0 : i32
    return %arg0, %c0_i32 : i32, i32
  }
}

module attributes {stable_mosaic.version = 11 : i64} {
  func.func @_head_kernel(%arg0: i32, %arg1: memref<25x2x576xbf16, #tpu.memory_space<vmem>>, %arg2: memref<576x96xbf16, #tpu.memory_space<vmem>>, %arg3: memref<1x96xf32, #tpu.memory_space<vmem>>, %arg4: memref<25x96x128xbf16, #tpu.memory_space<vmem>>, %arg5: memref<1x128xf32, #tpu.memory_space<vmem>>, %arg6: memref<128x8xbf16, #tpu.memory_space<vmem>>, %arg7: memref<1x8xf32, #tpu.memory_space<vmem>>, %arg8: memref<2x8xf32, #tpu.memory_space<vmem>>) attributes {dimension_semantics = [#tpu.dimension_semantics<parallel>], iteration_bounds = array<i64: 1>, scalar_prefetch = 0 : i64, scratch_operands = 0 : i64, tpu.core_type = #tpu.core_type<tc>, window_params = [{transform_indices = @transform_0, window_bounds = array<i64: 25, 2, 576>}, {pipeline_mode = #tpu.pipeline_mode<synchronous>, transform_indices = @transform_1, window_bounds = array<i64: 576, 96>}, {pipeline_mode = #tpu.pipeline_mode<synchronous>, transform_indices = @transform_2, window_bounds = array<i64: 1, 96>}, {pipeline_mode = #tpu.pipeline_mode<synchronous>, transform_indices = @transform_3, window_bounds = array<i64: 25, 96, 128>}, {pipeline_mode = #tpu.pipeline_mode<synchronous>, transform_indices = @transform_4, window_bounds = array<i64: 1, 128>}, {pipeline_mode = #tpu.pipeline_mode<synchronous>, transform_indices = @transform_5, window_bounds = array<i64: 128, 8>}, {pipeline_mode = #tpu.pipeline_mode<synchronous>, transform_indices = @transform_6, window_bounds = array<i64: 1, 8>}, {transform_indices = @transform_7, window_bounds = array<i64: 2, 8>}]} {
    %cst = arith.constant 0.000000e+00 : f32
    %0 = vector.broadcast %cst : f32 to vector<2x128xf32>
    %c0 = arith.constant 0 : index
    %c0_0 = arith.constant 0 : index
    %c0_1 = arith.constant 0 : index
    %1 = vector.load %arg1[%c0, %c0_0, %c0_1] : memref<25x2x576xbf16, #tpu.memory_space<vmem>>, vector<1x2x576xbf16>
    %2 = vector.shape_cast %1 : vector<1x2x576xbf16> to vector<2x576xbf16>
    %c0_2 = arith.constant 0 : index
    %c0_3 = arith.constant 0 : index
    %3 = vector.load %arg2[%c0_2, %c0_3] : memref<576x96xbf16, #tpu.memory_space<vmem>>, vector<576x96xbf16>
    %cst_4 = arith.constant dense<0.000000e+00> : vector<2x96xf32>
    %4 = tpu.matmul %2, %3, %cst_4 {dimension_numbers = #tpu.dot_dimension_numbers<[1], [0], [0], [1], [0, 0, 1, 1], [], []>} : vector<2x576xbf16>, vector<576x96xbf16>, vector<2x96xf32> -> vector<2x96xf32>
    %c0_5 = arith.constant 0 : index
    %c0_6 = arith.constant 0 : index
    %5 = vector.load %arg3[%c0_5, %c0_6] : memref<1x96xf32, #tpu.memory_space<vmem>>, vector<1x96xf32>
    %6 = vector.broadcast %5 : vector<1x96xf32> to vector<2x96xf32>
    %7 = arith.addf %4, %6 : vector<2x96xf32>
    %cst_7 = arith.constant 0.000000e+00 : f32
    %8 = vector.broadcast %cst_7 : f32 to vector<2x96xf32>
    %9 = arith.maximumf %7, %8 : vector<2x96xf32>
    %10 = arith.truncf %9 : vector<2x96xf32> to vector<2x96xbf16>
    %c0_8 = arith.constant 0 : index
    %c0_9 = arith.constant 0 : index
    %c0_10 = arith.constant 0 : index
    %11 = vector.load %arg4[%c0_8, %c0_9, %c0_10] : memref<25x96x128xbf16, #tpu.memory_space<vmem>>, vector<1x96x128xbf16>
    %12 = vector.shape_cast %11 : vector<1x96x128xbf16> to vector<96x128xbf16>
    %cst_11 = arith.constant dense<0.000000e+00> : vector<2x128xf32>
    %13 = tpu.matmul %10, %12, %cst_11 {dimension_numbers = #tpu.dot_dimension_numbers<[1], [0], [0], [1], [0, 0, 1, 1], [], []>} : vector<2x96xbf16>, vector<96x128xbf16>, vector<2x128xf32> -> vector<2x128xf32>
    %14 = arith.addf %0, %13 : vector<2x128xf32>
    %c1 = arith.constant 1 : index
    %c0_12 = arith.constant 0 : index
    %c0_13 = arith.constant 0 : index
    %15 = vector.load %arg1[%c1, %c0_12, %c0_13] : memref<25x2x576xbf16, #tpu.memory_space<vmem>>, vector<1x2x576xbf16>
    %16 = vector.shape_cast %15 : vector<1x2x576xbf16> to vector<2x576xbf16>
    %c0_14 = arith.constant 0 : index
    %c0_15 = arith.constant 0 : index
    %17 = vector.load %arg2[%c0_14, %c0_15] : memref<576x96xbf16, #tpu.memory_space<vmem>>, vector<576x96xbf16>
    %cst_16 = arith.constant dense<0.000000e+00> : vector<2x96xf32>
    %18 = tpu.matmul %16, %17, %cst_16 {dimension_numbers = #tpu.dot_dimension_numbers<[1], [0], [0], [1], [0, 0, 1, 1], [], []>} : vector<2x576xbf16>, vector<576x96xbf16>, vector<2x96xf32> -> vector<2x96xf32>
    %c0_17 = arith.constant 0 : index
    %c0_18 = arith.constant 0 : index
    %19 = vector.load %arg3[%c0_17, %c0_18] : memref<1x96xf32, #tpu.memory_space<vmem>>, vector<1x96xf32>
    %20 = vector.broadcast %19 : vector<1x96xf32> to vector<2x96xf32>
    %21 = arith.addf %18, %20 : vector<2x96xf32>
    %cst_19 = arith.constant 0.000000e+00 : f32
    %22 = vector.broadcast %cst_19 : f32 to vector<2x96xf32>
    %23 = arith.maximumf %21, %22 : vector<2x96xf32>
    %24 = arith.truncf %23 : vector<2x96xf32> to vector<2x96xbf16>
    %c1_20 = arith.constant 1 : index
    %c0_21 = arith.constant 0 : index
    %c0_22 = arith.constant 0 : index
    %25 = vector.load %arg4[%c1_20, %c0_21, %c0_22] : memref<25x96x128xbf16, #tpu.memory_space<vmem>>, vector<1x96x128xbf16>
    %26 = vector.shape_cast %25 : vector<1x96x128xbf16> to vector<96x128xbf16>
    %cst_23 = arith.constant dense<0.000000e+00> : vector<2x128xf32>
    %27 = tpu.matmul %24, %26, %cst_23 {dimension_numbers = #tpu.dot_dimension_numbers<[1], [0], [0], [1], [0, 0, 1, 1], [], []>} : vector<2x96xbf16>, vector<96x128xbf16>, vector<2x128xf32> -> vector<2x128xf32>
    %28 = arith.addf %14, %27 : vector<2x128xf32>
    %c2 = arith.constant 2 : index
    %c0_24 = arith.constant 0 : index
    %c0_25 = arith.constant 0 : index
    %29 = vector.load %arg1[%c2, %c0_24, %c0_25] : memref<25x2x576xbf16, #tpu.memory_space<vmem>>, vector<1x2x576xbf16>
    %30 = vector.shape_cast %29 : vector<1x2x576xbf16> to vector<2x576xbf16>
    %c0_26 = arith.constant 0 : index
    %c0_27 = arith.constant 0 : index
    %31 = vector.load %arg2[%c0_26, %c0_27] : memref<576x96xbf16, #tpu.memory_space<vmem>>, vector<576x96xbf16>
    %cst_28 = arith.constant dense<0.000000e+00> : vector<2x96xf32>
    %32 = tpu.matmul %30, %31, %cst_28 {dimension_numbers = #tpu.dot_dimension_numbers<[1], [0], [0], [1], [0, 0, 1, 1], [], []>} : vector<2x576xbf16>, vector<576x96xbf16>, vector<2x96xf32> -> vector<2x96xf32>
    %c0_29 = arith.constant 0 : index
    %c0_30 = arith.constant 0 : index
    %33 = vector.load %arg3[%c0_29, %c0_30] : memref<1x96xf32, #tpu.memory_space<vmem>>, vector<1x96xf32>
    %34 = vector.broadcast %33 : vector<1x96xf32> to vector<2x96xf32>
    %35 = arith.addf %32, %34 : vector<2x96xf32>
    %cst_31 = arith.constant 0.000000e+00 : f32
    %36 = vector.broadcast %cst_31 : f32 to vector<2x96xf32>
    %37 = arith.maximumf %35, %36 : vector<2x96xf32>
    %38 = arith.truncf %37 : vector<2x96xf32> to vector<2x96xbf16>
    %c2_32 = arith.constant 2 : index
    %c0_33 = arith.constant 0 : index
    %c0_34 = arith.constant 0 : index
    %39 = vector.load %arg4[%c2_32, %c0_33, %c0_34] : memref<25x96x128xbf16, #tpu.memory_space<vmem>>, vector<1x96x128xbf16>
    %40 = vector.shape_cast %39 : vector<1x96x128xbf16> to vector<96x128xbf16>
    %cst_35 = arith.constant dense<0.000000e+00> : vector<2x128xf32>
    %41 = tpu.matmul %38, %40, %cst_35 {dimension_numbers = #tpu.dot_dimension_numbers<[1], [0], [0], [1], [0, 0, 1, 1], [], []>} : vector<2x96xbf16>, vector<96x128xbf16>, vector<2x128xf32> -> vector<2x128xf32>
    %42 = arith.addf %28, %41 : vector<2x128xf32>
    %c3 = arith.constant 3 : index
    %c0_36 = arith.constant 0 : index
    %c0_37 = arith.constant 0 : index
    %43 = vector.load %arg1[%c3, %c0_36, %c0_37] : memref<25x2x576xbf16, #tpu.memory_space<vmem>>, vector<1x2x576xbf16>
    %44 = vector.shape_cast %43 : vector<1x2x576xbf16> to vector<2x576xbf16>
    %c0_38 = arith.constant 0 : index
    %c0_39 = arith.constant 0 : index
    %45 = vector.load %arg2[%c0_38, %c0_39] : memref<576x96xbf16, #tpu.memory_space<vmem>>, vector<576x96xbf16>
    %cst_40 = arith.constant dense<0.000000e+00> : vector<2x96xf32>
    %46 = tpu.matmul %44, %45, %cst_40 {dimension_numbers = #tpu.dot_dimension_numbers<[1], [0], [0], [1], [0, 0, 1, 1], [], []>} : vector<2x576xbf16>, vector<576x96xbf16>, vector<2x96xf32> -> vector<2x96xf32>
    %c0_41 = arith.constant 0 : index
    %c0_42 = arith.constant 0 : index
    %47 = vector.load %arg3[%c0_41, %c0_42] : memref<1x96xf32, #tpu.memory_space<vmem>>, vector<1x96xf32>
    %48 = vector.broadcast %47 : vector<1x96xf32> to vector<2x96xf32>
    %49 = arith.addf %46, %48 : vector<2x96xf32>
    %cst_43 = arith.constant 0.000000e+00 : f32
    %50 = vector.broadcast %cst_43 : f32 to vector<2x96xf32>
    %51 = arith.maximumf %49, %50 : vector<2x96xf32>
    %52 = arith.truncf %51 : vector<2x96xf32> to vector<2x96xbf16>
    %c3_44 = arith.constant 3 : index
    %c0_45 = arith.constant 0 : index
    %c0_46 = arith.constant 0 : index
    %53 = vector.load %arg4[%c3_44, %c0_45, %c0_46] : memref<25x96x128xbf16, #tpu.memory_space<vmem>>, vector<1x96x128xbf16>
    %54 = vector.shape_cast %53 : vector<1x96x128xbf16> to vector<96x128xbf16>
    %cst_47 = arith.constant dense<0.000000e+00> : vector<2x128xf32>
    %55 = tpu.matmul %52, %54, %cst_47 {dimension_numbers = #tpu.dot_dimension_numbers<[1], [0], [0], [1], [0, 0, 1, 1], [], []>} : vector<2x96xbf16>, vector<96x128xbf16>, vector<2x128xf32> -> vector<2x128xf32>
    %56 = arith.addf %42, %55 : vector<2x128xf32>
    %c4 = arith.constant 4 : index
    %c0_48 = arith.constant 0 : index
    %c0_49 = arith.constant 0 : index
    %57 = vector.load %arg1[%c4, %c0_48, %c0_49] : memref<25x2x576xbf16, #tpu.memory_space<vmem>>, vector<1x2x576xbf16>
    %58 = vector.shape_cast %57 : vector<1x2x576xbf16> to vector<2x576xbf16>
    %c0_50 = arith.constant 0 : index
    %c0_51 = arith.constant 0 : index
    %59 = vector.load %arg2[%c0_50, %c0_51] : memref<576x96xbf16, #tpu.memory_space<vmem>>, vector<576x96xbf16>
    %cst_52 = arith.constant dense<0.000000e+00> : vector<2x96xf32>
    %60 = tpu.matmul %58, %59, %cst_52 {dimension_numbers = #tpu.dot_dimension_numbers<[1], [0], [0], [1], [0, 0, 1, 1], [], []>} : vector<2x576xbf16>, vector<576x96xbf16>, vector<2x96xf32> -> vector<2x96xf32>
    %c0_53 = arith.constant 0 : index
    %c0_54 = arith.constant 0 : index
    %61 = vector.load %arg3[%c0_53, %c0_54] : memref<1x96xf32, #tpu.memory_space<vmem>>, vector<1x96xf32>
    %62 = vector.broadcast %61 : vector<1x96xf32> to vector<2x96xf32>
    %63 = arith.addf %60, %62 : vector<2x96xf32>
    %cst_55 = arith.constant 0.000000e+00 : f32
    %64 = vector.broadcast %cst_55 : f32 to vector<2x96xf32>
    %65 = arith.maximumf %63, %64 : vector<2x96xf32>
    %66 = arith.truncf %65 : vector<2x96xf32> to vector<2x96xbf16>
    %c4_56 = arith.constant 4 : index
    %c0_57 = arith.constant 0 : index
    %c0_58 = arith.constant 0 : index
    %67 = vector.load %arg4[%c4_56, %c0_57, %c0_58] : memref<25x96x128xbf16, #tpu.memory_space<vmem>>, vector<1x96x128xbf16>
    %68 = vector.shape_cast %67 : vector<1x96x128xbf16> to vector<96x128xbf16>
    %cst_59 = arith.constant dense<0.000000e+00> : vector<2x128xf32>
    %69 = tpu.matmul %66, %68, %cst_59 {dimension_numbers = #tpu.dot_dimension_numbers<[1], [0], [0], [1], [0, 0, 1, 1], [], []>} : vector<2x96xbf16>, vector<96x128xbf16>, vector<2x128xf32> -> vector<2x128xf32>
    %70 = arith.addf %56, %69 : vector<2x128xf32>
    %c5 = arith.constant 5 : index
    %c0_60 = arith.constant 0 : index
    %c0_61 = arith.constant 0 : index
    %71 = vector.load %arg1[%c5, %c0_60, %c0_61] : memref<25x2x576xbf16, #tpu.memory_space<vmem>>, vector<1x2x576xbf16>
    %72 = vector.shape_cast %71 : vector<1x2x576xbf16> to vector<2x576xbf16>
    %c0_62 = arith.constant 0 : index
    %c0_63 = arith.constant 0 : index
    %73 = vector.load %arg2[%c0_62, %c0_63] : memref<576x96xbf16, #tpu.memory_space<vmem>>, vector<576x96xbf16>
    %cst_64 = arith.constant dense<0.000000e+00> : vector<2x96xf32>
    %74 = tpu.matmul %72, %73, %cst_64 {dimension_numbers = #tpu.dot_dimension_numbers<[1], [0], [0], [1], [0, 0, 1, 1], [], []>} : vector<2x576xbf16>, vector<576x96xbf16>, vector<2x96xf32> -> vector<2x96xf32>
    %c0_65 = arith.constant 0 : index
    %c0_66 = arith.constant 0 : index
    %75 = vector.load %arg3[%c0_65, %c0_66] : memref<1x96xf32, #tpu.memory_space<vmem>>, vector<1x96xf32>
    %76 = vector.broadcast %75 : vector<1x96xf32> to vector<2x96xf32>
    %77 = arith.addf %74, %76 : vector<2x96xf32>
    %cst_67 = arith.constant 0.000000e+00 : f32
    %78 = vector.broadcast %cst_67 : f32 to vector<2x96xf32>
    %79 = arith.maximumf %77, %78 : vector<2x96xf32>
    %80 = arith.truncf %79 : vector<2x96xf32> to vector<2x96xbf16>
    %c5_68 = arith.constant 5 : index
    %c0_69 = arith.constant 0 : index
    %c0_70 = arith.constant 0 : index
    %81 = vector.load %arg4[%c5_68, %c0_69, %c0_70] : memref<25x96x128xbf16, #tpu.memory_space<vmem>>, vector<1x96x128xbf16>
    %82 = vector.shape_cast %81 : vector<1x96x128xbf16> to vector<96x128xbf16>
    %cst_71 = arith.constant dense<0.000000e+00> : vector<2x128xf32>
    %83 = tpu.matmul %80, %82, %cst_71 {dimension_numbers = #tpu.dot_dimension_numbers<[1], [0], [0], [1], [0, 0, 1, 1], [], []>} : vector<2x96xbf16>, vector<96x128xbf16>, vector<2x128xf32> -> vector<2x128xf32>
    %84 = arith.addf %70, %83 : vector<2x128xf32>
    %c6 = arith.constant 6 : index
    %c0_72 = arith.constant 0 : index
    %c0_73 = arith.constant 0 : index
    %85 = vector.load %arg1[%c6, %c0_72, %c0_73] : memref<25x2x576xbf16, #tpu.memory_space<vmem>>, vector<1x2x576xbf16>
    %86 = vector.shape_cast %85 : vector<1x2x576xbf16> to vector<2x576xbf16>
    %c0_74 = arith.constant 0 : index
    %c0_75 = arith.constant 0 : index
    %87 = vector.load %arg2[%c0_74, %c0_75] : memref<576x96xbf16, #tpu.memory_space<vmem>>, vector<576x96xbf16>
    %cst_76 = arith.constant dense<0.000000e+00> : vector<2x96xf32>
    %88 = tpu.matmul %86, %87, %cst_76 {dimension_numbers = #tpu.dot_dimension_numbers<[1], [0], [0], [1], [0, 0, 1, 1], [], []>} : vector<2x576xbf16>, vector<576x96xbf16>, vector<2x96xf32> -> vector<2x96xf32>
    %c0_77 = arith.constant 0 : index
    %c0_78 = arith.constant 0 : index
    %89 = vector.load %arg3[%c0_77, %c0_78] : memref<1x96xf32, #tpu.memory_space<vmem>>, vector<1x96xf32>
    %90 = vector.broadcast %89 : vector<1x96xf32> to vector<2x96xf32>
    %91 = arith.addf %88, %90 : vector<2x96xf32>
    %cst_79 = arith.constant 0.000000e+00 : f32
    %92 = vector.broadcast %cst_79 : f32 to vector<2x96xf32>
    %93 = arith.maximumf %91, %92 : vector<2x96xf32>
    %94 = arith.truncf %93 : vector<2x96xf32> to vector<2x96xbf16>
    %c6_80 = arith.constant 6 : index
    %c0_81 = arith.constant 0 : index
    %c0_82 = arith.constant 0 : index
    %95 = vector.load %arg4[%c6_80, %c0_81, %c0_82] : memref<25x96x128xbf16, #tpu.memory_space<vmem>>, vector<1x96x128xbf16>
    %96 = vector.shape_cast %95 : vector<1x96x128xbf16> to vector<96x128xbf16>
    %cst_83 = arith.constant dense<0.000000e+00> : vector<2x128xf32>
    %97 = tpu.matmul %94, %96, %cst_83 {dimension_numbers = #tpu.dot_dimension_numbers<[1], [0], [0], [1], [0, 0, 1, 1], [], []>} : vector<2x96xbf16>, vector<96x128xbf16>, vector<2x128xf32> -> vector<2x128xf32>
    %98 = arith.addf %84, %97 : vector<2x128xf32>
    %c7 = arith.constant 7 : index
    %c0_84 = arith.constant 0 : index
    %c0_85 = arith.constant 0 : index
    %99 = vector.load %arg1[%c7, %c0_84, %c0_85] : memref<25x2x576xbf16, #tpu.memory_space<vmem>>, vector<1x2x576xbf16>
    %100 = vector.shape_cast %99 : vector<1x2x576xbf16> to vector<2x576xbf16>
    %c0_86 = arith.constant 0 : index
    %c0_87 = arith.constant 0 : index
    %101 = vector.load %arg2[%c0_86, %c0_87] : memref<576x96xbf16, #tpu.memory_space<vmem>>, vector<576x96xbf16>
    %cst_88 = arith.constant dense<0.000000e+00> : vector<2x96xf32>
    %102 = tpu.matmul %100, %101, %cst_88 {dimension_numbers = #tpu.dot_dimension_numbers<[1], [0], [0], [1], [0, 0, 1, 1], [], []>} : vector<2x576xbf16>, vector<576x96xbf16>, vector<2x96xf32> -> vector<2x96xf32>
    %c0_89 = arith.constant 0 : index
    %c0_90 = arith.constant 0 : index
    %103 = vector.load %arg3[%c0_89, %c0_90] : memref<1x96xf32, #tpu.memory_space<vmem>>, vector<1x96xf32>
    %104 = vector.broadcast %103 : vector<1x96xf32> to vector<2x96xf32>
    %105 = arith.addf %102, %104 : vector<2x96xf32>
    %cst_91 = arith.constant 0.000000e+00 : f32
    %106 = vector.broadcast %cst_91 : f32 to vector<2x96xf32>
    %107 = arith.maximumf %105, %106 : vector<2x96xf32>
    %108 = arith.truncf %107 : vector<2x96xf32> to vector<2x96xbf16>
    %c7_92 = arith.constant 7 : index
    %c0_93 = arith.constant 0 : index
    %c0_94 = arith.constant 0 : index
    %109 = vector.load %arg4[%c7_92, %c0_93, %c0_94] : memref<25x96x128xbf16, #tpu.memory_space<vmem>>, vector<1x96x128xbf16>
    %110 = vector.shape_cast %109 : vector<1x96x128xbf16> to vector<96x128xbf16>
    %cst_95 = arith.constant dense<0.000000e+00> : vector<2x128xf32>
    %111 = tpu.matmul %108, %110, %cst_95 {dimension_numbers = #tpu.dot_dimension_numbers<[1], [0], [0], [1], [0, 0, 1, 1], [], []>} : vector<2x96xbf16>, vector<96x128xbf16>, vector<2x128xf32> -> vector<2x128xf32>
    %112 = arith.addf %98, %111 : vector<2x128xf32>
    %c8 = arith.constant 8 : index
    %c0_96 = arith.constant 0 : index
    %c0_97 = arith.constant 0 : index
    %113 = vector.load %arg1[%c8, %c0_96, %c0_97] : memref<25x2x576xbf16, #tpu.memory_space<vmem>>, vector<1x2x576xbf16>
    %114 = vector.shape_cast %113 : vector<1x2x576xbf16> to vector<2x576xbf16>
    %c0_98 = arith.constant 0 : index
    %c0_99 = arith.constant 0 : index
    %115 = vector.load %arg2[%c0_98, %c0_99] : memref<576x96xbf16, #tpu.memory_space<vmem>>, vector<576x96xbf16>
    %cst_100 = arith.constant dense<0.000000e+00> : vector<2x96xf32>
    %116 = tpu.matmul %114, %115, %cst_100 {dimension_numbers = #tpu.dot_dimension_numbers<[1], [0], [0], [1], [0, 0, 1, 1], [], []>} : vector<2x576xbf16>, vector<576x96xbf16>, vector<2x96xf32> -> vector<2x96xf32>
    %c0_101 = arith.constant 0 : index
    %c0_102 = arith.constant 0 : index
    %117 = vector.load %arg3[%c0_101, %c0_102] : memref<1x96xf32, #tpu.memory_space<vmem>>, vector<1x96xf32>
    %118 = vector.broadcast %117 : vector<1x96xf32> to vector<2x96xf32>
    %119 = arith.addf %116, %118 : vector<2x96xf32>
    %cst_103 = arith.constant 0.000000e+00 : f32
    %120 = vector.broadcast %cst_103 : f32 to vector<2x96xf32>
    %121 = arith.maximumf %119, %120 : vector<2x96xf32>
    %122 = arith.truncf %121 : vector<2x96xf32> to vector<2x96xbf16>
    %c8_104 = arith.constant 8 : index
    %c0_105 = arith.constant 0 : index
    %c0_106 = arith.constant 0 : index
    %123 = vector.load %arg4[%c8_104, %c0_105, %c0_106] : memref<25x96x128xbf16, #tpu.memory_space<vmem>>, vector<1x96x128xbf16>
    %124 = vector.shape_cast %123 : vector<1x96x128xbf16> to vector<96x128xbf16>
    %cst_107 = arith.constant dense<0.000000e+00> : vector<2x128xf32>
    %125 = tpu.matmul %122, %124, %cst_107 {dimension_numbers = #tpu.dot_dimension_numbers<[1], [0], [0], [1], [0, 0, 1, 1], [], []>} : vector<2x96xbf16>, vector<96x128xbf16>, vector<2x128xf32> -> vector<2x128xf32>
    %126 = arith.addf %112, %125 : vector<2x128xf32>
    %c9 = arith.constant 9 : index
    %c0_108 = arith.constant 0 : index
    %c0_109 = arith.constant 0 : index
    %127 = vector.load %arg1[%c9, %c0_108, %c0_109] : memref<25x2x576xbf16, #tpu.memory_space<vmem>>, vector<1x2x576xbf16>
    %128 = vector.shape_cast %127 : vector<1x2x576xbf16> to vector<2x576xbf16>
    %c0_110 = arith.constant 0 : index
    %c0_111 = arith.constant 0 : index
    %129 = vector.load %arg2[%c0_110, %c0_111] : memref<576x96xbf16, #tpu.memory_space<vmem>>, vector<576x96xbf16>
    %cst_112 = arith.constant dense<0.000000e+00> : vector<2x96xf32>
    %130 = tpu.matmul %128, %129, %cst_112 {dimension_numbers = #tpu.dot_dimension_numbers<[1], [0], [0], [1], [0, 0, 1, 1], [], []>} : vector<2x576xbf16>, vector<576x96xbf16>, vector<2x96xf32> -> vector<2x96xf32>
    %c0_113 = arith.constant 0 : index
    %c0_114 = arith.constant 0 : index
    %131 = vector.load %arg3[%c0_113, %c0_114] : memref<1x96xf32, #tpu.memory_space<vmem>>, vector<1x96xf32>
    %132 = vector.broadcast %131 : vector<1x96xf32> to vector<2x96xf32>
    %133 = arith.addf %130, %132 : vector<2x96xf32>
    %cst_115 = arith.constant 0.000000e+00 : f32
    %134 = vector.broadcast %cst_115 : f32 to vector<2x96xf32>
    %135 = arith.maximumf %133, %134 : vector<2x96xf32>
    %136 = arith.truncf %135 : vector<2x96xf32> to vector<2x96xbf16>
    %c9_116 = arith.constant 9 : index
    %c0_117 = arith.constant 0 : index
    %c0_118 = arith.constant 0 : index
    %137 = vector.load %arg4[%c9_116, %c0_117, %c0_118] : memref<25x96x128xbf16, #tpu.memory_space<vmem>>, vector<1x96x128xbf16>
    %138 = vector.shape_cast %137 : vector<1x96x128xbf16> to vector<96x128xbf16>
    %cst_119 = arith.constant dense<0.000000e+00> : vector<2x128xf32>
    %139 = tpu.matmul %136, %138, %cst_119 {dimension_numbers = #tpu.dot_dimension_numbers<[1], [0], [0], [1], [0, 0, 1, 1], [], []>} : vector<2x96xbf16>, vector<96x128xbf16>, vector<2x128xf32> -> vector<2x128xf32>
    %140 = arith.addf %126, %139 : vector<2x128xf32>
    %c10 = arith.constant 10 : index
    %c0_120 = arith.constant 0 : index
    %c0_121 = arith.constant 0 : index
    %141 = vector.load %arg1[%c10, %c0_120, %c0_121] : memref<25x2x576xbf16, #tpu.memory_space<vmem>>, vector<1x2x576xbf16>
    %142 = vector.shape_cast %141 : vector<1x2x576xbf16> to vector<2x576xbf16>
    %c0_122 = arith.constant 0 : index
    %c0_123 = arith.constant 0 : index
    %143 = vector.load %arg2[%c0_122, %c0_123] : memref<576x96xbf16, #tpu.memory_space<vmem>>, vector<576x96xbf16>
    %cst_124 = arith.constant dense<0.000000e+00> : vector<2x96xf32>
    %144 = tpu.matmul %142, %143, %cst_124 {dimension_numbers = #tpu.dot_dimension_numbers<[1], [0], [0], [1], [0, 0, 1, 1], [], []>} : vector<2x576xbf16>, vector<576x96xbf16>, vector<2x96xf32> -> vector<2x96xf32>
    %c0_125 = arith.constant 0 : index
    %c0_126 = arith.constant 0 : index
    %145 = vector.load %arg3[%c0_125, %c0_126] : memref<1x96xf32, #tpu.memory_space<vmem>>, vector<1x96xf32>
    %146 = vector.broadcast %145 : vector<1x96xf32> to vector<2x96xf32>
    %147 = arith.addf %144, %146 : vector<2x96xf32>
    %cst_127 = arith.constant 0.000000e+00 : f32
    %148 = vector.broadcast %cst_127 : f32 to vector<2x96xf32>
    %149 = arith.maximumf %147, %148 : vector<2x96xf32>
    %150 = arith.truncf %149 : vector<2x96xf32> to vector<2x96xbf16>
    %c10_128 = arith.constant 10 : index
    %c0_129 = arith.constant 0 : index
    %c0_130 = arith.constant 0 : index
    %151 = vector.load %arg4[%c10_128, %c0_129, %c0_130] : memref<25x96x128xbf16, #tpu.memory_space<vmem>>, vector<1x96x128xbf16>
    %152 = vector.shape_cast %151 : vector<1x96x128xbf16> to vector<96x128xbf16>
    %cst_131 = arith.constant dense<0.000000e+00> : vector<2x128xf32>
    %153 = tpu.matmul %150, %152, %cst_131 {dimension_numbers = #tpu.dot_dimension_numbers<[1], [0], [0], [1], [0, 0, 1, 1], [], []>} : vector<2x96xbf16>, vector<96x128xbf16>, vector<2x128xf32> -> vector<2x128xf32>
    %154 = arith.addf %140, %153 : vector<2x128xf32>
    %c11 = arith.constant 11 : index
    %c0_132 = arith.constant 0 : index
    %c0_133 = arith.constant 0 : index
    %155 = vector.load %arg1[%c11, %c0_132, %c0_133] : memref<25x2x576xbf16, #tpu.memory_space<vmem>>, vector<1x2x576xbf16>
    %156 = vector.shape_cast %155 : vector<1x2x576xbf16> to vector<2x576xbf16>
    %c0_134 = arith.constant 0 : index
    %c0_135 = arith.constant 0 : index
    %157 = vector.load %arg2[%c0_134, %c0_135] : memref<576x96xbf16, #tpu.memory_space<vmem>>, vector<576x96xbf16>
    %cst_136 = arith.constant dense<0.000000e+00> : vector<2x96xf32>
    %158 = tpu.matmul %156, %157, %cst_136 {dimension_numbers = #tpu.dot_dimension_numbers<[1], [0], [0], [1], [0, 0, 1, 1], [], []>} : vector<2x576xbf16>, vector<576x96xbf16>, vector<2x96xf32> -> vector<2x96xf32>
    %c0_137 = arith.constant 0 : index
    %c0_138 = arith.constant 0 : index
    %159 = vector.load %arg3[%c0_137, %c0_138] : memref<1x96xf32, #tpu.memory_space<vmem>>, vector<1x96xf32>
    %160 = vector.broadcast %159 : vector<1x96xf32> to vector<2x96xf32>
    %161 = arith.addf %158, %160 : vector<2x96xf32>
    %cst_139 = arith.constant 0.000000e+00 : f32
    %162 = vector.broadcast %cst_139 : f32 to vector<2x96xf32>
    %163 = arith.maximumf %161, %162 : vector<2x96xf32>
    %164 = arith.truncf %163 : vector<2x96xf32> to vector<2x96xbf16>
    %c11_140 = arith.constant 11 : index
    %c0_141 = arith.constant 0 : index
    %c0_142 = arith.constant 0 : index
    %165 = vector.load %arg4[%c11_140, %c0_141, %c0_142] : memref<25x96x128xbf16, #tpu.memory_space<vmem>>, vector<1x96x128xbf16>
    %166 = vector.shape_cast %165 : vector<1x96x128xbf16> to vector<96x128xbf16>
    %cst_143 = arith.constant dense<0.000000e+00> : vector<2x128xf32>
    %167 = tpu.matmul %164, %166, %cst_143 {dimension_numbers = #tpu.dot_dimension_numbers<[1], [0], [0], [1], [0, 0, 1, 1], [], []>} : vector<2x96xbf16>, vector<96x128xbf16>, vector<2x128xf32> -> vector<2x128xf32>
    %168 = arith.addf %154, %167 : vector<2x128xf32>
    %c12 = arith.constant 12 : index
    %c0_144 = arith.constant 0 : index
    %c0_145 = arith.constant 0 : index
    %169 = vector.load %arg1[%c12, %c0_144, %c0_145] : memref<25x2x576xbf16, #tpu.memory_space<vmem>>, vector<1x2x576xbf16>
    %170 = vector.shape_cast %169 : vector<1x2x576xbf16> to vector<2x576xbf16>
    %c0_146 = arith.constant 0 : index
    %c0_147 = arith.constant 0 : index
    %171 = vector.load %arg2[%c0_146, %c0_147] : memref<576x96xbf16, #tpu.memory_space<vmem>>, vector<576x96xbf16>
    %cst_148 = arith.constant dense<0.000000e+00> : vector<2x96xf32>
    %172 = tpu.matmul %170, %171, %cst_148 {dimension_numbers = #tpu.dot_dimension_numbers<[1], [0], [0], [1], [0, 0, 1, 1], [], []>} : vector<2x576xbf16>, vector<576x96xbf16>, vector<2x96xf32> -> vector<2x96xf32>
    %c0_149 = arith.constant 0 : index
    %c0_150 = arith.constant 0 : index
    %173 = vector.load %arg3[%c0_149, %c0_150] : memref<1x96xf32, #tpu.memory_space<vmem>>, vector<1x96xf32>
    %174 = vector.broadcast %173 : vector<1x96xf32> to vector<2x96xf32>
    %175 = arith.addf %172, %174 : vector<2x96xf32>
    %cst_151 = arith.constant 0.000000e+00 : f32
    %176 = vector.broadcast %cst_151 : f32 to vector<2x96xf32>
    %177 = arith.maximumf %175, %176 : vector<2x96xf32>
    %178 = arith.truncf %177 : vector<2x96xf32> to vector<2x96xbf16>
    %c12_152 = arith.constant 12 : index
    %c0_153 = arith.constant 0 : index
    %c0_154 = arith.constant 0 : index
    %179 = vector.load %arg4[%c12_152, %c0_153, %c0_154] : memref<25x96x128xbf16, #tpu.memory_space<vmem>>, vector<1x96x128xbf16>
    %180 = vector.shape_cast %179 : vector<1x96x128xbf16> to vector<96x128xbf16>
    %cst_155 = arith.constant dense<0.000000e+00> : vector<2x128xf32>
    %181 = tpu.matmul %178, %180, %cst_155 {dimension_numbers = #tpu.dot_dimension_numbers<[1], [0], [0], [1], [0, 0, 1, 1], [], []>} : vector<2x96xbf16>, vector<96x128xbf16>, vector<2x128xf32> -> vector<2x128xf32>
    %182 = arith.addf %168, %181 : vector<2x128xf32>
    %c13 = arith.constant 13 : index
    %c0_156 = arith.constant 0 : index
    %c0_157 = arith.constant 0 : index
    %183 = vector.load %arg1[%c13, %c0_156, %c0_157] : memref<25x2x576xbf16, #tpu.memory_space<vmem>>, vector<1x2x576xbf16>
    %184 = vector.shape_cast %183 : vector<1x2x576xbf16> to vector<2x576xbf16>
    %c0_158 = arith.constant 0 : index
    %c0_159 = arith.constant 0 : index
    %185 = vector.load %arg2[%c0_158, %c0_159] : memref<576x96xbf16, #tpu.memory_space<vmem>>, vector<576x96xbf16>
    %cst_160 = arith.constant dense<0.000000e+00> : vector<2x96xf32>
    %186 = tpu.matmul %184, %185, %cst_160 {dimension_numbers = #tpu.dot_dimension_numbers<[1], [0], [0], [1], [0, 0, 1, 1], [], []>} : vector<2x576xbf16>, vector<576x96xbf16>, vector<2x96xf32> -> vector<2x96xf32>
    %c0_161 = arith.constant 0 : index
    %c0_162 = arith.constant 0 : index
    %187 = vector.load %arg3[%c0_161, %c0_162] : memref<1x96xf32, #tpu.memory_space<vmem>>, vector<1x96xf32>
    %188 = vector.broadcast %187 : vector<1x96xf32> to vector<2x96xf32>
    %189 = arith.addf %186, %188 : vector<2x96xf32>
    %cst_163 = arith.constant 0.000000e+00 : f32
    %190 = vector.broadcast %cst_163 : f32 to vector<2x96xf32>
    %191 = arith.maximumf %189, %190 : vector<2x96xf32>
    %192 = arith.truncf %191 : vector<2x96xf32> to vector<2x96xbf16>
    %c13_164 = arith.constant 13 : index
    %c0_165 = arith.constant 0 : index
    %c0_166 = arith.constant 0 : index
    %193 = vector.load %arg4[%c13_164, %c0_165, %c0_166] : memref<25x96x128xbf16, #tpu.memory_space<vmem>>, vector<1x96x128xbf16>
    %194 = vector.shape_cast %193 : vector<1x96x128xbf16> to vector<96x128xbf16>
    %cst_167 = arith.constant dense<0.000000e+00> : vector<2x128xf32>
    %195 = tpu.matmul %192, %194, %cst_167 {dimension_numbers = #tpu.dot_dimension_numbers<[1], [0], [0], [1], [0, 0, 1, 1], [], []>} : vector<2x96xbf16>, vector<96x128xbf16>, vector<2x128xf32> -> vector<2x128xf32>
    %196 = arith.addf %182, %195 : vector<2x128xf32>
    %c14 = arith.constant 14 : index
    %c0_168 = arith.constant 0 : index
    %c0_169 = arith.constant 0 : index
    %197 = vector.load %arg1[%c14, %c0_168, %c0_169] : memref<25x2x576xbf16, #tpu.memory_space<vmem>>, vector<1x2x576xbf16>
    %198 = vector.shape_cast %197 : vector<1x2x576xbf16> to vector<2x576xbf16>
    %c0_170 = arith.constant 0 : index
    %c0_171 = arith.constant 0 : index
    %199 = vector.load %arg2[%c0_170, %c0_171] : memref<576x96xbf16, #tpu.memory_space<vmem>>, vector<576x96xbf16>
    %cst_172 = arith.constant dense<0.000000e+00> : vector<2x96xf32>
    %200 = tpu.matmul %198, %199, %cst_172 {dimension_numbers = #tpu.dot_dimension_numbers<[1], [0], [0], [1], [0, 0, 1, 1], [], []>} : vector<2x576xbf16>, vector<576x96xbf16>, vector<2x96xf32> -> vector<2x96xf32>
    %c0_173 = arith.constant 0 : index
    %c0_174 = arith.constant 0 : index
    %201 = vector.load %arg3[%c0_173, %c0_174] : memref<1x96xf32, #tpu.memory_space<vmem>>, vector<1x96xf32>
    %202 = vector.broadcast %201 : vector<1x96xf32> to vector<2x96xf32>
    %203 = arith.addf %200, %202 : vector<2x96xf32>
    %cst_175 = arith.constant 0.000000e+00 : f32
    %204 = vector.broadcast %cst_175 : f32 to vector<2x96xf32>
    %205 = arith.maximumf %203, %204 : vector<2x96xf32>
    %206 = arith.truncf %205 : vector<2x96xf32> to vector<2x96xbf16>
    %c14_176 = arith.constant 14 : index
    %c0_177 = arith.constant 0 : index
    %c0_178 = arith.constant 0 : index
    %207 = vector.load %arg4[%c14_176, %c0_177, %c0_178] : memref<25x96x128xbf16, #tpu.memory_space<vmem>>, vector<1x96x128xbf16>
    %208 = vector.shape_cast %207 : vector<1x96x128xbf16> to vector<96x128xbf16>
    %cst_179 = arith.constant dense<0.000000e+00> : vector<2x128xf32>
    %209 = tpu.matmul %206, %208, %cst_179 {dimension_numbers = #tpu.dot_dimension_numbers<[1], [0], [0], [1], [0, 0, 1, 1], [], []>} : vector<2x96xbf16>, vector<96x128xbf16>, vector<2x128xf32> -> vector<2x128xf32>
    %210 = arith.addf %196, %209 : vector<2x128xf32>
    %c15 = arith.constant 15 : index
    %c0_180 = arith.constant 0 : index
    %c0_181 = arith.constant 0 : index
    %211 = vector.load %arg1[%c15, %c0_180, %c0_181] : memref<25x2x576xbf16, #tpu.memory_space<vmem>>, vector<1x2x576xbf16>
    %212 = vector.shape_cast %211 : vector<1x2x576xbf16> to vector<2x576xbf16>
    %c0_182 = arith.constant 0 : index
    %c0_183 = arith.constant 0 : index
    %213 = vector.load %arg2[%c0_182, %c0_183] : memref<576x96xbf16, #tpu.memory_space<vmem>>, vector<576x96xbf16>
    %cst_184 = arith.constant dense<0.000000e+00> : vector<2x96xf32>
    %214 = tpu.matmul %212, %213, %cst_184 {dimension_numbers = #tpu.dot_dimension_numbers<[1], [0], [0], [1], [0, 0, 1, 1], [], []>} : vector<2x576xbf16>, vector<576x96xbf16>, vector<2x96xf32> -> vector<2x96xf32>
    %c0_185 = arith.constant 0 : index
    %c0_186 = arith.constant 0 : index
    %215 = vector.load %arg3[%c0_185, %c0_186] : memref<1x96xf32, #tpu.memory_space<vmem>>, vector<1x96xf32>
    %216 = vector.broadcast %215 : vector<1x96xf32> to vector<2x96xf32>
    %217 = arith.addf %214, %216 : vector<2x96xf32>
    %cst_187 = arith.constant 0.000000e+00 : f32
    %218 = vector.broadcast %cst_187 : f32 to vector<2x96xf32>
    %219 = arith.maximumf %217, %218 : vector<2x96xf32>
    %220 = arith.truncf %219 : vector<2x96xf32> to vector<2x96xbf16>
    %c15_188 = arith.constant 15 : index
    %c0_189 = arith.constant 0 : index
    %c0_190 = arith.constant 0 : index
    %221 = vector.load %arg4[%c15_188, %c0_189, %c0_190] : memref<25x96x128xbf16, #tpu.memory_space<vmem>>, vector<1x96x128xbf16>
    %222 = vector.shape_cast %221 : vector<1x96x128xbf16> to vector<96x128xbf16>
    %cst_191 = arith.constant dense<0.000000e+00> : vector<2x128xf32>
    %223 = tpu.matmul %220, %222, %cst_191 {dimension_numbers = #tpu.dot_dimension_numbers<[1], [0], [0], [1], [0, 0, 1, 1], [], []>} : vector<2x96xbf16>, vector<96x128xbf16>, vector<2x128xf32> -> vector<2x128xf32>
    %224 = arith.addf %210, %223 : vector<2x128xf32>
    %c16 = arith.constant 16 : index
    %c0_192 = arith.constant 0 : index
    %c0_193 = arith.constant 0 : index
    %225 = vector.load %arg1[%c16, %c0_192, %c0_193] : memref<25x2x576xbf16, #tpu.memory_space<vmem>>, vector<1x2x576xbf16>
    %226 = vector.shape_cast %225 : vector<1x2x576xbf16> to vector<2x576xbf16>
    %c0_194 = arith.constant 0 : index
    %c0_195 = arith.constant 0 : index
    %227 = vector.load %arg2[%c0_194, %c0_195] : memref<576x96xbf16, #tpu.memory_space<vmem>>, vector<576x96xbf16>
    %cst_196 = arith.constant dense<0.000000e+00> : vector<2x96xf32>
    %228 = tpu.matmul %226, %227, %cst_196 {dimension_numbers = #tpu.dot_dimension_numbers<[1], [0], [0], [1], [0, 0, 1, 1], [], []>} : vector<2x576xbf16>, vector<576x96xbf16>, vector<2x96xf32> -> vector<2x96xf32>
    %c0_197 = arith.constant 0 : index
    %c0_198 = arith.constant 0 : index
    %229 = vector.load %arg3[%c0_197, %c0_198] : memref<1x96xf32, #tpu.memory_space<vmem>>, vector<1x96xf32>
    %230 = vector.broadcast %229 : vector<1x96xf32> to vector<2x96xf32>
    %231 = arith.addf %228, %230 : vector<2x96xf32>
    %cst_199 = arith.constant 0.000000e+00 : f32
    %232 = vector.broadcast %cst_199 : f32 to vector<2x96xf32>
    %233 = arith.maximumf %231, %232 : vector<2x96xf32>
    %234 = arith.truncf %233 : vector<2x96xf32> to vector<2x96xbf16>
    %c16_200 = arith.constant 16 : index
    %c0_201 = arith.constant 0 : index
    %c0_202 = arith.constant 0 : index
    %235 = vector.load %arg4[%c16_200, %c0_201, %c0_202] : memref<25x96x128xbf16, #tpu.memory_space<vmem>>, vector<1x96x128xbf16>
    %236 = vector.shape_cast %235 : vector<1x96x128xbf16> to vector<96x128xbf16>
    %cst_203 = arith.constant dense<0.000000e+00> : vector<2x128xf32>
    %237 = tpu.matmul %234, %236, %cst_203 {dimension_numbers = #tpu.dot_dimension_numbers<[1], [0], [0], [1], [0, 0, 1, 1], [], []>} : vector<2x96xbf16>, vector<96x128xbf16>, vector<2x128xf32> -> vector<2x128xf32>
    %238 = arith.addf %224, %237 : vector<2x128xf32>
    %c17 = arith.constant 17 : index
    %c0_204 = arith.constant 0 : index
    %c0_205 = arith.constant 0 : index
    %239 = vector.load %arg1[%c17, %c0_204, %c0_205] : memref<25x2x576xbf16, #tpu.memory_space<vmem>>, vector<1x2x576xbf16>
    %240 = vector.shape_cast %239 : vector<1x2x576xbf16> to vector<2x576xbf16>
    %c0_206 = arith.constant 0 : index
    %c0_207 = arith.constant 0 : index
    %241 = vector.load %arg2[%c0_206, %c0_207] : memref<576x96xbf16, #tpu.memory_space<vmem>>, vector<576x96xbf16>
    %cst_208 = arith.constant dense<0.000000e+00> : vector<2x96xf32>
    %242 = tpu.matmul %240, %241, %cst_208 {dimension_numbers = #tpu.dot_dimension_numbers<[1], [0], [0], [1], [0, 0, 1, 1], [], []>} : vector<2x576xbf16>, vector<576x96xbf16>, vector<2x96xf32> -> vector<2x96xf32>
    %c0_209 = arith.constant 0 : index
    %c0_210 = arith.constant 0 : index
    %243 = vector.load %arg3[%c0_209, %c0_210] : memref<1x96xf32, #tpu.memory_space<vmem>>, vector<1x96xf32>
    %244 = vector.broadcast %243 : vector<1x96xf32> to vector<2x96xf32>
    %245 = arith.addf %242, %244 : vector<2x96xf32>
    %cst_211 = arith.constant 0.000000e+00 : f32
    %246 = vector.broadcast %cst_211 : f32 to vector<2x96xf32>
    %247 = arith.maximumf %245, %246 : vector<2x96xf32>
    %248 = arith.truncf %247 : vector<2x96xf32> to vector<2x96xbf16>
    %c17_212 = arith.constant 17 : index
    %c0_213 = arith.constant 0 : index
    %c0_214 = arith.constant 0 : index
    %249 = vector.load %arg4[%c17_212, %c0_213, %c0_214] : memref<25x96x128xbf16, #tpu.memory_space<vmem>>, vector<1x96x128xbf16>
    %250 = vector.shape_cast %249 : vector<1x96x128xbf16> to vector<96x128xbf16>
    %cst_215 = arith.constant dense<0.000000e+00> : vector<2x128xf32>
    %251 = tpu.matmul %248, %250, %cst_215 {dimension_numbers = #tpu.dot_dimension_numbers<[1], [0], [0], [1], [0, 0, 1, 1], [], []>} : vector<2x96xbf16>, vector<96x128xbf16>, vector<2x128xf32> -> vector<2x128xf32>
    %252 = arith.addf %238, %251 : vector<2x128xf32>
    %c18 = arith.constant 18 : index
    %c0_216 = arith.constant 0 : index
    %c0_217 = arith.constant 0 : index
    %253 = vector.load %arg1[%c18, %c0_216, %c0_217] : memref<25x2x576xbf16, #tpu.memory_space<vmem>>, vector<1x2x576xbf16>
    %254 = vector.shape_cast %253 : vector<1x2x576xbf16> to vector<2x576xbf16>
    %c0_218 = arith.constant 0 : index
    %c0_219 = arith.constant 0 : index
    %255 = vector.load %arg2[%c0_218, %c0_219] : memref<576x96xbf16, #tpu.memory_space<vmem>>, vector<576x96xbf16>
    %cst_220 = arith.constant dense<0.000000e+00> : vector<2x96xf32>
    %256 = tpu.matmul %254, %255, %cst_220 {dimension_numbers = #tpu.dot_dimension_numbers<[1], [0], [0], [1], [0, 0, 1, 1], [], []>} : vector<2x576xbf16>, vector<576x96xbf16>, vector<2x96xf32> -> vector<2x96xf32>
    %c0_221 = arith.constant 0 : index
    %c0_222 = arith.constant 0 : index
    %257 = vector.load %arg3[%c0_221, %c0_222] : memref<1x96xf32, #tpu.memory_space<vmem>>, vector<1x96xf32>
    %258 = vector.broadcast %257 : vector<1x96xf32> to vector<2x96xf32>
    %259 = arith.addf %256, %258 : vector<2x96xf32>
    %cst_223 = arith.constant 0.000000e+00 : f32
    %260 = vector.broadcast %cst_223 : f32 to vector<2x96xf32>
    %261 = arith.maximumf %259, %260 : vector<2x96xf32>
    %262 = arith.truncf %261 : vector<2x96xf32> to vector<2x96xbf16>
    %c18_224 = arith.constant 18 : index
    %c0_225 = arith.constant 0 : index
    %c0_226 = arith.constant 0 : index
    %263 = vector.load %arg4[%c18_224, %c0_225, %c0_226] : memref<25x96x128xbf16, #tpu.memory_space<vmem>>, vector<1x96x128xbf16>
    %264 = vector.shape_cast %263 : vector<1x96x128xbf16> to vector<96x128xbf16>
    %cst_227 = arith.constant dense<0.000000e+00> : vector<2x128xf32>
    %265 = tpu.matmul %262, %264, %cst_227 {dimension_numbers = #tpu.dot_dimension_numbers<[1], [0], [0], [1], [0, 0, 1, 1], [], []>} : vector<2x96xbf16>, vector<96x128xbf16>, vector<2x128xf32> -> vector<2x128xf32>
    %266 = arith.addf %252, %265 : vector<2x128xf32>
    %c19 = arith.constant 19 : index
    %c0_228 = arith.constant 0 : index
    %c0_229 = arith.constant 0 : index
    %267 = vector.load %arg1[%c19, %c0_228, %c0_229] : memref<25x2x576xbf16, #tpu.memory_space<vmem>>, vector<1x2x576xbf16>
    %268 = vector.shape_cast %267 : vector<1x2x576xbf16> to vector<2x576xbf16>
    %c0_230 = arith.constant 0 : index
    %c0_231 = arith.constant 0 : index
    %269 = vector.load %arg2[%c0_230, %c0_231] : memref<576x96xbf16, #tpu.memory_space<vmem>>, vector<576x96xbf16>
    %cst_232 = arith.constant dense<0.000000e+00> : vector<2x96xf32>
    %270 = tpu.matmul %268, %269, %cst_232 {dimension_numbers = #tpu.dot_dimension_numbers<[1], [0], [0], [1], [0, 0, 1, 1], [], []>} : vector<2x576xbf16>, vector<576x96xbf16>, vector<2x96xf32> -> vector<2x96xf32>
    %c0_233 = arith.constant 0 : index
    %c0_234 = arith.constant 0 : index
    %271 = vector.load %arg3[%c0_233, %c0_234] : memref<1x96xf32, #tpu.memory_space<vmem>>, vector<1x96xf32>
    %272 = vector.broadcast %271 : vector<1x96xf32> to vector<2x96xf32>
    %273 = arith.addf %270, %272 : vector<2x96xf32>
    %cst_235 = arith.constant 0.000000e+00 : f32
    %274 = vector.broadcast %cst_235 : f32 to vector<2x96xf32>
    %275 = arith.maximumf %273, %274 : vector<2x96xf32>
    %276 = arith.truncf %275 : vector<2x96xf32> to vector<2x96xbf16>
    %c19_236 = arith.constant 19 : index
    %c0_237 = arith.constant 0 : index
    %c0_238 = arith.constant 0 : index
    %277 = vector.load %arg4[%c19_236, %c0_237, %c0_238] : memref<25x96x128xbf16, #tpu.memory_space<vmem>>, vector<1x96x128xbf16>
    %278 = vector.shape_cast %277 : vector<1x96x128xbf16> to vector<96x128xbf16>
    %cst_239 = arith.constant dense<0.000000e+00> : vector<2x128xf32>
    %279 = tpu.matmul %276, %278, %cst_239 {dimension_numbers = #tpu.dot_dimension_numbers<[1], [0], [0], [1], [0, 0, 1, 1], [], []>} : vector<2x96xbf16>, vector<96x128xbf16>, vector<2x128xf32> -> vector<2x128xf32>
    %280 = arith.addf %266, %279 : vector<2x128xf32>
    %c20 = arith.constant 20 : index
    %c0_240 = arith.constant 0 : index
    %c0_241 = arith.constant 0 : index
    %281 = vector.load %arg1[%c20, %c0_240, %c0_241] : memref<25x2x576xbf16, #tpu.memory_space<vmem>>, vector<1x2x576xbf16>
    %282 = vector.shape_cast %281 : vector<1x2x576xbf16> to vector<2x576xbf16>
    %c0_242 = arith.constant 0 : index
    %c0_243 = arith.constant 0 : index
    %283 = vector.load %arg2[%c0_242, %c0_243] : memref<576x96xbf16, #tpu.memory_space<vmem>>, vector<576x96xbf16>
    %cst_244 = arith.constant dense<0.000000e+00> : vector<2x96xf32>
    %284 = tpu.matmul %282, %283, %cst_244 {dimension_numbers = #tpu.dot_dimension_numbers<[1], [0], [0], [1], [0, 0, 1, 1], [], []>} : vector<2x576xbf16>, vector<576x96xbf16>, vector<2x96xf32> -> vector<2x96xf32>
    %c0_245 = arith.constant 0 : index
    %c0_246 = arith.constant 0 : index
    %285 = vector.load %arg3[%c0_245, %c0_246] : memref<1x96xf32, #tpu.memory_space<vmem>>, vector<1x96xf32>
    %286 = vector.broadcast %285 : vector<1x96xf32> to vector<2x96xf32>
    %287 = arith.addf %284, %286 : vector<2x96xf32>
    %cst_247 = arith.constant 0.000000e+00 : f32
    %288 = vector.broadcast %cst_247 : f32 to vector<2x96xf32>
    %289 = arith.maximumf %287, %288 : vector<2x96xf32>
    %290 = arith.truncf %289 : vector<2x96xf32> to vector<2x96xbf16>
    %c20_248 = arith.constant 20 : index
    %c0_249 = arith.constant 0 : index
    %c0_250 = arith.constant 0 : index
    %291 = vector.load %arg4[%c20_248, %c0_249, %c0_250] : memref<25x96x128xbf16, #tpu.memory_space<vmem>>, vector<1x96x128xbf16>
    %292 = vector.shape_cast %291 : vector<1x96x128xbf16> to vector<96x128xbf16>
    %cst_251 = arith.constant dense<0.000000e+00> : vector<2x128xf32>
    %293 = tpu.matmul %290, %292, %cst_251 {dimension_numbers = #tpu.dot_dimension_numbers<[1], [0], [0], [1], [0, 0, 1, 1], [], []>} : vector<2x96xbf16>, vector<96x128xbf16>, vector<2x128xf32> -> vector<2x128xf32>
    %294 = arith.addf %280, %293 : vector<2x128xf32>
    %c21 = arith.constant 21 : index
    %c0_252 = arith.constant 0 : index
    %c0_253 = arith.constant 0 : index
    %295 = vector.load %arg1[%c21, %c0_252, %c0_253] : memref<25x2x576xbf16, #tpu.memory_space<vmem>>, vector<1x2x576xbf16>
    %296 = vector.shape_cast %295 : vector<1x2x576xbf16> to vector<2x576xbf16>
    %c0_254 = arith.constant 0 : index
    %c0_255 = arith.constant 0 : index
    %297 = vector.load %arg2[%c0_254, %c0_255] : memref<576x96xbf16, #tpu.memory_space<vmem>>, vector<576x96xbf16>
    %cst_256 = arith.constant dense<0.000000e+00> : vector<2x96xf32>
    %298 = tpu.matmul %296, %297, %cst_256 {dimension_numbers = #tpu.dot_dimension_numbers<[1], [0], [0], [1], [0, 0, 1, 1], [], []>} : vector<2x576xbf16>, vector<576x96xbf16>, vector<2x96xf32> -> vector<2x96xf32>
    %c0_257 = arith.constant 0 : index
    %c0_258 = arith.constant 0 : index
    %299 = vector.load %arg3[%c0_257, %c0_258] : memref<1x96xf32, #tpu.memory_space<vmem>>, vector<1x96xf32>
    %300 = vector.broadcast %299 : vector<1x96xf32> to vector<2x96xf32>
    %301 = arith.addf %298, %300 : vector<2x96xf32>
    %cst_259 = arith.constant 0.000000e+00 : f32
    %302 = vector.broadcast %cst_259 : f32 to vector<2x96xf32>
    %303 = arith.maximumf %301, %302 : vector<2x96xf32>
    %304 = arith.truncf %303 : vector<2x96xf32> to vector<2x96xbf16>
    %c21_260 = arith.constant 21 : index
    %c0_261 = arith.constant 0 : index
    %c0_262 = arith.constant 0 : index
    %305 = vector.load %arg4[%c21_260, %c0_261, %c0_262] : memref<25x96x128xbf16, #tpu.memory_space<vmem>>, vector<1x96x128xbf16>
    %306 = vector.shape_cast %305 : vector<1x96x128xbf16> to vector<96x128xbf16>
    %cst_263 = arith.constant dense<0.000000e+00> : vector<2x128xf32>
    %307 = tpu.matmul %304, %306, %cst_263 {dimension_numbers = #tpu.dot_dimension_numbers<[1], [0], [0], [1], [0, 0, 1, 1], [], []>} : vector<2x96xbf16>, vector<96x128xbf16>, vector<2x128xf32> -> vector<2x128xf32>
    %308 = arith.addf %294, %307 : vector<2x128xf32>
    %c22 = arith.constant 22 : index
    %c0_264 = arith.constant 0 : index
    %c0_265 = arith.constant 0 : index
    %309 = vector.load %arg1[%c22, %c0_264, %c0_265] : memref<25x2x576xbf16, #tpu.memory_space<vmem>>, vector<1x2x576xbf16>
    %310 = vector.shape_cast %309 : vector<1x2x576xbf16> to vector<2x576xbf16>
    %c0_266 = arith.constant 0 : index
    %c0_267 = arith.constant 0 : index
    %311 = vector.load %arg2[%c0_266, %c0_267] : memref<576x96xbf16, #tpu.memory_space<vmem>>, vector<576x96xbf16>
    %cst_268 = arith.constant dense<0.000000e+00> : vector<2x96xf32>
    %312 = tpu.matmul %310, %311, %cst_268 {dimension_numbers = #tpu.dot_dimension_numbers<[1], [0], [0], [1], [0, 0, 1, 1], [], []>} : vector<2x576xbf16>, vector<576x96xbf16>, vector<2x96xf32> -> vector<2x96xf32>
    %c0_269 = arith.constant 0 : index
    %c0_270 = arith.constant 0 : index
    %313 = vector.load %arg3[%c0_269, %c0_270] : memref<1x96xf32, #tpu.memory_space<vmem>>, vector<1x96xf32>
    %314 = vector.broadcast %313 : vector<1x96xf32> to vector<2x96xf32>
    %315 = arith.addf %312, %314 : vector<2x96xf32>
    %cst_271 = arith.constant 0.000000e+00 : f32
    %316 = vector.broadcast %cst_271 : f32 to vector<2x96xf32>
    %317 = arith.maximumf %315, %316 : vector<2x96xf32>
    %318 = arith.truncf %317 : vector<2x96xf32> to vector<2x96xbf16>
    %c22_272 = arith.constant 22 : index
    %c0_273 = arith.constant 0 : index
    %c0_274 = arith.constant 0 : index
    %319 = vector.load %arg4[%c22_272, %c0_273, %c0_274] : memref<25x96x128xbf16, #tpu.memory_space<vmem>>, vector<1x96x128xbf16>
    %320 = vector.shape_cast %319 : vector<1x96x128xbf16> to vector<96x128xbf16>
    %cst_275 = arith.constant dense<0.000000e+00> : vector<2x128xf32>
    %321 = tpu.matmul %318, %320, %cst_275 {dimension_numbers = #tpu.dot_dimension_numbers<[1], [0], [0], [1], [0, 0, 1, 1], [], []>} : vector<2x96xbf16>, vector<96x128xbf16>, vector<2x128xf32> -> vector<2x128xf32>
    %322 = arith.addf %308, %321 : vector<2x128xf32>
    %c23 = arith.constant 23 : index
    %c0_276 = arith.constant 0 : index
    %c0_277 = arith.constant 0 : index
    %323 = vector.load %arg1[%c23, %c0_276, %c0_277] : memref<25x2x576xbf16, #tpu.memory_space<vmem>>, vector<1x2x576xbf16>
    %324 = vector.shape_cast %323 : vector<1x2x576xbf16> to vector<2x576xbf16>
    %c0_278 = arith.constant 0 : index
    %c0_279 = arith.constant 0 : index
    %325 = vector.load %arg2[%c0_278, %c0_279] : memref<576x96xbf16, #tpu.memory_space<vmem>>, vector<576x96xbf16>
    %cst_280 = arith.constant dense<0.000000e+00> : vector<2x96xf32>
    %326 = tpu.matmul %324, %325, %cst_280 {dimension_numbers = #tpu.dot_dimension_numbers<[1], [0], [0], [1], [0, 0, 1, 1], [], []>} : vector<2x576xbf16>, vector<576x96xbf16>, vector<2x96xf32> -> vector<2x96xf32>
    %c0_281 = arith.constant 0 : index
    %c0_282 = arith.constant 0 : index
    %327 = vector.load %arg3[%c0_281, %c0_282] : memref<1x96xf32, #tpu.memory_space<vmem>>, vector<1x96xf32>
    %328 = vector.broadcast %327 : vector<1x96xf32> to vector<2x96xf32>
    %329 = arith.addf %326, %328 : vector<2x96xf32>
    %cst_283 = arith.constant 0.000000e+00 : f32
    %330 = vector.broadcast %cst_283 : f32 to vector<2x96xf32>
    %331 = arith.maximumf %329, %330 : vector<2x96xf32>
    %332 = arith.truncf %331 : vector<2x96xf32> to vector<2x96xbf16>
    %c23_284 = arith.constant 23 : index
    %c0_285 = arith.constant 0 : index
    %c0_286 = arith.constant 0 : index
    %333 = vector.load %arg4[%c23_284, %c0_285, %c0_286] : memref<25x96x128xbf16, #tpu.memory_space<vmem>>, vector<1x96x128xbf16>
    %334 = vector.shape_cast %333 : vector<1x96x128xbf16> to vector<96x128xbf16>
    %cst_287 = arith.constant dense<0.000000e+00> : vector<2x128xf32>
    %335 = tpu.matmul %332, %334, %cst_287 {dimension_numbers = #tpu.dot_dimension_numbers<[1], [0], [0], [1], [0, 0, 1, 1], [], []>} : vector<2x96xbf16>, vector<96x128xbf16>, vector<2x128xf32> -> vector<2x128xf32>
    %336 = arith.addf %322, %335 : vector<2x128xf32>
    %c24 = arith.constant 24 : index
    %c0_288 = arith.constant 0 : index
    %c0_289 = arith.constant 0 : index
    %337 = vector.load %arg1[%c24, %c0_288, %c0_289] : memref<25x2x576xbf16, #tpu.memory_space<vmem>>, vector<1x2x576xbf16>
    %338 = vector.shape_cast %337 : vector<1x2x576xbf16> to vector<2x576xbf16>
    %c0_290 = arith.constant 0 : index
    %c0_291 = arith.constant 0 : index
    %339 = vector.load %arg2[%c0_290, %c0_291] : memref<576x96xbf16, #tpu.memory_space<vmem>>, vector<576x96xbf16>
    %cst_292 = arith.constant dense<0.000000e+00> : vector<2x96xf32>
    %340 = tpu.matmul %338, %339, %cst_292 {dimension_numbers = #tpu.dot_dimension_numbers<[1], [0], [0], [1], [0, 0, 1, 1], [], []>} : vector<2x576xbf16>, vector<576x96xbf16>, vector<2x96xf32> -> vector<2x96xf32>
    %c0_293 = arith.constant 0 : index
    %c0_294 = arith.constant 0 : index
    %341 = vector.load %arg3[%c0_293, %c0_294] : memref<1x96xf32, #tpu.memory_space<vmem>>, vector<1x96xf32>
    %342 = vector.broadcast %341 : vector<1x96xf32> to vector<2x96xf32>
    %343 = arith.addf %340, %342 : vector<2x96xf32>
    %cst_295 = arith.constant 0.000000e+00 : f32
    %344 = vector.broadcast %cst_295 : f32 to vector<2x96xf32>
    %345 = arith.maximumf %343, %344 : vector<2x96xf32>
    %346 = arith.truncf %345 : vector<2x96xf32> to vector<2x96xbf16>
    %c24_296 = arith.constant 24 : index
    %c0_297 = arith.constant 0 : index
    %c0_298 = arith.constant 0 : index
    %347 = vector.load %arg4[%c24_296, %c0_297, %c0_298] : memref<25x96x128xbf16, #tpu.memory_space<vmem>>, vector<1x96x128xbf16>
    %348 = vector.shape_cast %347 : vector<1x96x128xbf16> to vector<96x128xbf16>
    %cst_299 = arith.constant dense<0.000000e+00> : vector<2x128xf32>
    %349 = tpu.matmul %346, %348, %cst_299 {dimension_numbers = #tpu.dot_dimension_numbers<[1], [0], [0], [1], [0, 0, 1, 1], [], []>} : vector<2x96xbf16>, vector<96x128xbf16>, vector<2x128xf32> -> vector<2x128xf32>
    %350 = arith.addf %336, %349 : vector<2x128xf32>
    %c0_300 = arith.constant 0 : index
    %c0_301 = arith.constant 0 : index
    %351 = vector.load %arg5[%c0_300, %c0_301] : memref<1x128xf32, #tpu.memory_space<vmem>>, vector<1x128xf32>
    %352 = vector.broadcast %351 : vector<1x128xf32> to vector<2x128xf32>
    %353 = arith.addf %350, %352 : vector<2x128xf32>
    %cst_302 = arith.constant 0.000000e+00 : f32
    %354 = vector.broadcast %cst_302 : f32 to vector<2x128xf32>
    %355 = arith.maximumf %353, %354 : vector<2x128xf32>
    %356 = arith.truncf %355 : vector<2x128xf32> to vector<2x128xbf16>
    %c0_303 = arith.constant 0 : index
    %c0_304 = arith.constant 0 : index
    %357 = vector.load %arg6[%c0_303, %c0_304] : memref<128x8xbf16, #tpu.memory_space<vmem>>, vector<128x8xbf16>
    %cst_305 = arith.constant dense<0.000000e+00> : vector<2x8xf32>
    %358 = tpu.matmul %356, %357, %cst_305 {dimension_numbers = #tpu.dot_dimension_numbers<[1], [0], [0], [1], [0, 0, 1, 1], [], []>} : vector<2x128xbf16>, vector<128x8xbf16>, vector<2x8xf32> -> vector<2x8xf32>
    %c0_306 = arith.constant 0 : index
    %c0_307 = arith.constant 0 : index
    %359 = vector.load %arg7[%c0_306, %c0_307] : memref<1x8xf32, #tpu.memory_space<vmem>>, vector<1x8xf32>
    %360 = vector.broadcast %359 : vector<1x8xf32> to vector<2x8xf32>
    %361 = arith.addf %358, %360 : vector<2x8xf32>
    %c0_308 = arith.constant 0 : index
    %c0_309 = arith.constant 0 : index
    %362 = vector.load %arg8[%c0_308, %c0_309] : memref<2x8xf32, #tpu.memory_space<vmem>>, vector<2x8xf32>
    tpu.vector_store %arg8[%c0_308, %c0_309], %361 {strides = array<i32>} : memref<2x8xf32, #tpu.memory_space<vmem>>, vector<2x8xf32>,
    return
  }
  func.func @transform_0(%arg0: i32) -> (i32, i32, i32) {
    %c0_i32 = arith.constant 0 : i32
    %c0_i32_0 = arith.constant 0 : i32
    %c0_i32_1 = arith.constant 0 : i32
    return %c0_i32, %arg0, %c0_i32_0 : i32, i32, i32
  }
  func.func @transform_1(%arg0: i32) -> (i32, i32) {
    %c0_i32 = arith.constant 0 : i32
    %c0_i32_0 = arith.constant 0 : i32
    %c0_i32_1 = arith.constant 0 : i32
    return %c0_i32, %c0_i32_0 : i32, i32
  }
  func.func @transform_2(%arg0: i32) -> (i32, i32) {
    %c0_i32 = arith.constant 0 : i32
    %c0_i32_0 = arith.constant 0 : i32
    %c0_i32_1 = arith.constant 0 : i32
    return %c0_i32, %c0_i32_0 : i32, i32
  }
  func.func @transform_3(%arg0: i32) -> (i32, i32, i32) {
    %c0_i32 = arith.constant 0 : i32
    %c0_i32_0 = arith.constant 0 : i32
    %c0_i32_1 = arith.constant 0 : i32
    %c0_i32_2 = arith.constant 0 : i32
    return %c0_i32, %c0_i32_0, %c0_i32_1 : i32, i32, i32
  }
  func.func @transform_4(%arg0: i32) -> (i32, i32) {
    %c0_i32 = arith.constant 0 : i32
    %c0_i32_0 = arith.constant 0 : i32
    %c0_i32_1 = arith.constant 0 : i32
    return %c0_i32, %c0_i32_0 : i32, i32
  }
  func.func @transform_5(%arg0: i32) -> (i32, i32) {
    %c0_i32 = arith.constant 0 : i32
    %c0_i32_0 = arith.constant 0 : i32
    %c0_i32_1 = arith.constant 0 : i32
    return %c0_i32, %c0_i32_0 : i32, i32
  }
  func.func @transform_6(%arg0: i32) -> (i32, i32) {
    %c0_i32 = arith.constant 0 : i32
    %c0_i32_0 = arith.constant 0 : i32
    %c0_i32_1 = arith.constant 0 : i32
    return %c0_i32, %c0_i32_0 : i32, i32
  }
  func.func @transform_7(%arg0: i32) -> (i32, i32) {
    %c0_i32 = arith.constant 0 : i32
    %c0_i32_0 = arith.constant 0 : i32
    return %arg0, %c0_i32 : i32, i32
  }
}

</mosaic_0001>

<bundles_post_ra>
// kernel: convnet_forward.4
= control target key start
LH: loop header
LB: loop body
LE: loop exit
PB: predicated region body
PF: predicated region fallthrough
CT: control target
= control target key end

     0   :  { %s3572_s12 = smov 0   ;;  %s3574_s13 = smov 0   ;;  %s4458_s0 = inlined_call_operand.vmem [shape: bf16[5832,75], index: 0, kind: input, shape index: {}]   ;;  %s4459_s1 = inlined_call_operand.vmem [shape: bf16[75,32], index: 1, kind: input, shape index: {}]   ;;  %s4460_s2 = inlined_call_operand.vmem [shape: f32[1,32], index: 2, kind: input, shape index: {}]   ;;  %s4461_s3 = inlined_call_operand.vmem [shape: bf16[5832,32], index: 3, kind: output, shape index: {}]  }
   0x1   :  { %s3576_s14 = smov 0  }
   0x2 LB: > { %s3585_s15 = sadd.s32 4294967295, %s3515_s14   ;;  %s3587_s16 = sadd.s32 1, %s3515_s14   ;;  %s3515_s14 = sphi %s3576_s14, %s4468_s14   ;;  %s3511_s13 = sphi %s3574_s13, %s4467_s13   ;;  %s3507_s12 = sphi %s3572_s12, %s4466_s12  }
   0x3   : > { %s85_s17 = ssub.s32 %s3515_s14, %s3587_s16  ;;  %s88_s18 = sadd.s32 1, %s3511_s13 }
   0x4   : > { %p86_p0 = scmp.eq.s32.totalorder %s85_s17, 0  ;;  %p98_p1 = scmp.ne.s32.totalorder %s3511_s13, %s3507_s12 }
   0x5   : > { %p99_p2 = scmp.eq.s32.totalorder %s3585_s15, 5  ;;  %p2580_p3 = scmp.ge.s32.totalorder %s3515_s14, 1 }
   0x6   : > { %s3595_s19 = scalar_select %p86_p0, %s3511_s13, %s88_s18  }
   0x7   : > { %p3597_p4 = por %p99_p2, %p98_p1  ;;  %p146_p5 = scmp.lt.s32.totalorder %s3515_s14, 7 }
   0x9   : > { %p147_p6 = pnand %p2580_p3, %p146_p5 }
   0xa   : > { %v3394_v0 = vld [vmem:[%s4459_s1] sm:$0xff] (!%p147_p6)   ;;  %v3549_v1 = vmov (!%p147_p6), 0.0   ;;  %v3395_v2 = vld [vmem:[%s4459_s1 + $0x8] sm:$0xff] (!%p147_p6)   ;;  %vm850_vm0 = vcmask (!%p147_p6), 1044480   ;;  %s3612_s25 = smul.u32 (!%p147_p6), 122, %s3585_s15  ;;  %v3396_v3 = vld [vmem:[%s4459_s1 + $0x10] sm:$0xff] (!%p147_p6)  }
   0xb   : > { %150 = sbr.rel (%p147_p6) target bundleno = 583 (0x247), region = 32  ;;  %3038 = vmatprep.subr.bf16.mxu0 (!%p147_p6), %v3549_v1  ;;  %3292 = vmatprep.subr.bf16.mxu1 (!%p147_p6), %v3549_v1  ;;  %vm851_vm1 = vcmask (!%p147_p6), 1045504   ;;  %v3550_v4 = vmov (!%p147_p6), 65535   ;;  %vm3551_vm2 = vmmov (!%p147_p6), 0   ;;  %v3397_v6 = vld [vmem:[%s4459_s1 + $0x18] sm:$0xff] (!%p147_p6)   ;;  %vm666_vm3 = vcmask (!%p147_p6), 613376  }
   0xc   : > { %3039 = vmatpush3.bf16.msra.mxu0 (!%p147_p6), %v3394_v0  ;;  %3297 = vmatpush3.bf16.msra.mxu1 (!%p147_p6), %v3394_v0  ;;  %p178_p7 = scmp.lt.s32.totalorder (!%p147_p6), %s3612_s25, 728  ;;  %v852_v5 = vsel (!%p147_p6), %vm850_vm0, 4294967295, %v3550_v4  ;;  %v3398_v7 = vld [vmem:[%s4459_s1 + $0x20] sm:$0x3f] (!%p147_p6)   ;;  %s170_s10 = sand.u32 (!%p147_p6), 1, %s3507_s12   ;;  %vm1988_vm4 = vcmask (!%p147_p6), 257024  }
   0xd   : > { %3040 = vmatprep.subr.bf16.mxu0 (!%p147_p6), %v3549_v1  ;;  %3293 = vmatprep.subr.bf16.mxu1 (!%p147_p6), %v3549_v1  ;;  %v853_v8 = vsel (!%p147_p6), %vm851_vm1, %v852_v5, 0  ;;  %v3856_v0 = vld [vmem:[%s4460_s2] ss:$0 sm:$0xff] (!%p147_p6)  ;;  %s3302_s17 = smul.u32 (!%p147_p6), 488, %s170_s10 }
   0xe   : > { %3048 = vmatprep.mubr.msk.bf16.mxu0 (!%p147_p6), %vm3551_vm2, %v3549_v1  ;;  %3172 = vmatprep.mubr.msk.bf16.mxu1 (!%p147_p6), %vm3551_vm2, %v3549_v1  ;;  %v855_v9 = vand.u32 (!%p147_p6), %v3398_v7, %v853_v8 }
   0xf   : > { %s3874_s12 = scalar_lea.vmem (!%p147_p6), [#allocation2], %s3302_s17  }
  0x10   : > { %3041 = vmatpush3.bf16.msra.mxu0 (!%p147_p6), %v3395_v2  ;;  %3298 = vmatpush3.bf16.msra.mxu1 (!%p147_p6), %v3395_v2 }
  0x11   : > { %3042 = vmatprep.subr.bf16.mxu0 (!%p147_p6), %v3549_v1  ;;  %3294 = vmatprep.subr.bf16.mxu1 (!%p147_p6), %v3549_v1 }
  0x12   : > { %s179_s28 = scalar_select %p178_p7, %s3612_s25, 728 }
  0x13   : > { %s2119_s22 = ssub.s32 (%p3597_p4), 729, %s3612_s25  ;;  %s2969_s23 = smul.u32 (%p3597_p4), 488, %s3585_s15 }
  0x14   : > { %3043 = vmatpush3.bf16.msra.mxu0 %v3396_v3  ;;  %3299 = vmatpush3.bf16.msra.mxu1 %v3396_v3  ;;  %s2581_s6 = sshll.u32 %s179_s28, 2  ;;  %p2120_p8 = scmp.lt.s32.totalorder (%p3597_p4), %s2119_s22, 122 }
  0x15   : > { %3044 = vmatprep.subr.bf16.mxu0 %v3549_v1  ;;  %3295 = vmatprep.subr.bf16.mxu1 %v3549_v1  ;;  %s3636_s9 = scalar_lea.vmem %s4458_s0, %s2581_s6  ;;  %s4266_s27 = scalar_lea.vmem (%p3597_p4), %s4461_s3, %s2969_s23  }
  0x16   : > { %v3399_v10 = vld [vmem:[%s3636_s9] sm:$0xff]   ;;  %v3400_v11 = vld [vmem:[%s3636_s9 + $0xf8] sm:$0xff]   ;;  %v3401_v12 = vld [vmem:[%s3636_s9 + $0x8] sm:$0xff]  }
  0x17   : > { %v3402_v13 = vld [vmem:[%s3636_s9 + $0x100] sm:$0xff]   ;;  %v3403_v14 = vld [vmem:[%s3636_s9 + $0x10] sm:$0xff]   ;;  %v3404_v15 = vld [vmem:[%s3636_s9 + $0x108] sm:$0xff]  }
  0x18   : > { %3045 = vmatpush3.bf16.msra.mxu0 %v3397_v6  ;;  %3300 = vmatpush3.bf16.msra.mxu1 %v3397_v6  ;;  %v3405_v16 = vld [vmem:[%s3636_s9 + $0x18] sm:$0xff]   ;;  %v3406_v17 = vld [vmem:[%s3636_s9 + $0x110] sm:$0xff]   ;;  %v3407_v18 = vld [vmem:[%s3636_s9 + $0x20] sm:$0xff]  }
  0x19   : > { %3046 = vmatprep.subr.bf16.mxu0 %v3549_v1  ;;  %3296 = vmatprep.subr.bf16.mxu1 %v3549_v1  ;;  %v3408_v19 = vld [vmem:[%s3636_s9 + $0x118] sm:$0xff]   ;;  %v3409_v20 = vld [vmem:[%s3636_s9 + $0x28] sm:$0xff]   ;;  %v3410_v21 = vld [vmem:[%s3636_s9 + $0x120] sm:$0xff]  }
  0x1a   : > { %v3411_v22 = vld [vmem:[%s3636_s9 + $0x30] sm:$0xff]   ;;  %v3412_v23 = vld [vmem:[%s3636_s9 + $0x128] sm:$0xff]   ;;  %v3413_v24 = vld [vmem:[%s3636_s9 + $0x38] sm:$0xff]  }
  0x1b   : > { %v3414_v25 = vld [vmem:[%s3636_s9 + $0x130] sm:$0xff]   ;;  %v3415_v26 = vld [vmem:[%s3636_s9 + $0x40] sm:$0xff]   ;;  %v3416_v27 = vld [vmem:[%s3636_s9 + $0x138] sm:$0xff]  }
  0x1c   : > { %3047 = vmatpush3.bf16.msra.mxu0 %v855_v9  ;;  %3301 = vmatpush3.bf16.msra.mxu1 %v855_v9  ;;  %v3417_v28 = vld [vmem:[%s3636_s9 + $0x48] sm:$0xff]   ;;  %v3418_v29 = vld [vmem:[%s3636_s9 + $0x140] sm:$0xff]   ;;  %v3419_v30 = vld [vmem:[%s3636_s9 + $0x50] sm:$0xff]  }
  0x1d   : > { %v3420_v31 = vld [vmem:[%s3636_s9 + $0x148] sm:$0xff]   ;;  %v3421_v32 = vld [vmem:[%s3636_s9 + $0x58] sm:$0xff]   ;;  %v3422_v33 = vld [vmem:[%s3636_s9 + $0x150] sm:$0xff]  }
  0x1e   : > { %v3423_v34 = vld [vmem:[%s3636_s9 + $0x60] sm:$0xff]   ;;  %v3424_v35 = vld [vmem:[%s3636_s9 + $0x158] sm:$0xff]   ;;  %v3425_v36 = vld [vmem:[%s3636_s9 + $0x68] sm:$0xff]  }
  0x1f   : > { %3049 = vmatmul.mubr.msk.bf16.vlgmr.msra.gmra.mrb[0].mxu0 %vm666_vm3, %v3399_v10  ;;  %3173 = vmatmul.mubr.msk.bf16.vlgmr.msra.gmra.mrb[0].mxu1 %vm666_vm3, %v3400_v11  ;;  %v3426_v37 = vld [vmem:[%s3636_s9 + $0x160] sm:$0xff]   ;;  %v3427_v38 = vld [vmem:[%s3636_s9 + $0x70] sm:$0xff]   ;;  %v3428_v39 = vld [vmem:[%s3636_s9 + $0x168] sm:$0xff]  }
  0x20   : > { %3052 = vmatprep.mubr.msk.bf16.mxu0 %vm3551_vm2, %v3549_v1  ;;  %3176 = vmatprep.mubr.msk.bf16.mxu1 %vm3551_vm2, %v3549_v1  ;;  %v3429_v40 = vld [vmem:[%s3636_s9 + $0x78] sm:$0xff]   ;;  %v3430_v41 = vld [vmem:[%s3636_s9 + $0x170] sm:$0xff]   ;;  %v3431_v42 = vld [vmem:[%s3636_s9 + $0x80] sm:$0xff]  }
  0x21   : > { %v3432_v43 = vld [vmem:[%s3636_s9 + $0x178] sm:$0xff]   ;;  %v3433_v44 = vld [vmem:[%s3636_s9 + $0x88] sm:$0xff]   ;;  %v3434_v45 = vld [vmem:[%s3636_s9 + $0x180] sm:$0xff]  }
  0x22   : > { %v3435_v46 = vld [vmem:[%s3636_s9 + $0x90] sm:$0xff]   ;;  %v3436_v47 = vld [vmem:[%s3636_s9 + $0x188] sm:$0xff]   ;;  %v3437_v48 = vld [vmem:[%s3636_s9 + $0x98] sm:$0xff]  }
  0x23   : > { %v3438_v49 = vld [vmem:[%s3636_s9 + $0x190] sm:$0xff]   ;;  %v3439_v50 = vld [vmem:[%s3636_s9 + $0xa0] sm:$0xff]   ;;  %v3440_v51 = vld [vmem:[%s3636_s9 + $0x198] sm:$0xff]  }
  0x24   : > { %v3441_v52 = vld [vmem:[%s3636_s9 + $0xa8] sm:$0xff]   ;;  %v3442_v53 = vld [vmem:[%s3636_s9 + $0x1a0] sm:$0xff]   ;;  %v3443_v54 = vld [vmem:[%s3636_s9 + $0xb0] sm:$0xff]  }
  0x25   : > { %v3444_v55 = vld [vmem:[%s3636_s9 + $0x1a8] sm:$0xff]   ;;  %v3445_v56 = vld [vmem:[%s3636_s9 + $0xb8] sm:$0xff]   ;;  %v3446_v57 = vld [vmem:[%s3636_s9 + $0x1b0] sm:$0xff]  }
  0x26   : > { %v3447_v58 = vld [vmem:[%s3636_s9 + $0xc0] sm:$0xff]   ;;  %v3448_v59 = vld [vmem:[%s3636_s9 + $0x1b8] sm:$0xff]   ;;  %v3449_v60 = vld [vmem:[%s3636_s9 + $0xc8] sm:$0xff]  }
  0x27   : > { %3053 = vmatmul.mubr.msk.bf16.gmra.mrb[4].mxu0 %vm666_vm3, %v3401_v12  ;;  %3177 = vmatmul.mubr.msk.bf16.gmra.mrb[4].mxu1 %vm666_vm3, %v3402_v13  ;;  %v3450_v61 = vld [vmem:[%s3636_s9 + $0x1c0] sm:$0xff]   ;;  %v3451_v62 = vld [vmem:[%s3636_s9 + $0xd0] sm:$0xff]   ;;  %v3452_v63 = vld [vmem:[%s3636_s9 + $0x1c8] sm:$0xff]  }
  0x28   : > { %3056 = vmatprep.mubr.msk.bf16.mxu0 %vm3551_vm2, %v3549_v1  ;;  %3180 = vmatprep.mubr.msk.bf16.mxu1 %vm3551_vm2, %v3549_v1  ;;  %v3453_v6 = vld [vmem:[%s3636_s9 + $0xd8] sm:$0xff]   ;;  %v3454_v9 = vld [vmem:[%s3636_s9 + $0x1d0] sm:$0xff]  }
  0x2f   : > { %3057 = vmatmul.mubr.msk.bf16.gmra.mrb[8].mxu0 %vm666_vm3, %v3403_v14  ;;  %3181 = vmatmul.mubr.msk.bf16.gmra.mrb[8].mxu1 %vm666_vm3, %v3404_v15 }
  0x30   : > { %3060 = vmatprep.mubr.msk.bf16.mxu0 %vm3551_vm2, %v3549_v1  ;;  %3184 = vmatprep.mubr.msk.bf16.mxu1 %vm3551_vm2, %v3549_v1 }
  0x37   : > { %3061 = vmatmul.mubr.msk.bf16.gmra.mrb[12].mxu0 %vm666_vm3, %v3405_v16  ;;  %3185 = vmatmul.mubr.msk.bf16.gmra.mrb[12].mxu1 %vm666_vm3, %v3406_v17 }
  0x38   : > { %3064 = vmatprep.mubr.msk.bf16.mxu0 %vm3551_vm2, %v3549_v1  ;;  %3188 = vmatprep.mubr.msk.bf16.mxu1 %vm3551_vm2, %v3549_v1 }
  0x3f   : > { %3065 = vmatmul.mubr.msk.bf16.gmra.mrb[16].mxu0 %vm666_vm3, %v3407_v18  ;;  %3189 = vmatmul.mubr.msk.bf16.gmra.mrb[16].mxu1 %vm666_vm3, %v3408_v19 }
  0x40   : > { %3068 = vmatprep.mubr.msk.bf16.mxu0 %vm3551_vm2, %v3549_v1  ;;  %3192 = vmatprep.mubr.msk.bf16.mxu1 %vm3551_vm2, %v3549_v1 }
  0x47   : > { %3069 = vmatmul.mubr.msk.bf16.gmra.mrb[20].mxu0 %vm666_vm3, %v3409_v20  ;;  %3193 = vmatmul.mubr.msk.bf16.gmra.mrb[20].mxu1 %vm666_vm3, %v3410_v21 }
  0x48   : > { %3072 = vmatprep.mubr.msk.bf16.mxu0 %vm3551_vm2, %v3549_v1  ;;  %3196 = vmatprep.mubr.msk.bf16.mxu1 %vm3551_vm2, %v3549_v1 }
  0x4f   : > { %3073 = vmatmul.mubr.msk.bf16.gmra.mrb[24].mxu0 %vm666_vm3, %v3411_v22  ;;  %3197 = vmatmul.mubr.msk.bf16.gmra.mrb[24].mxu1 %vm666_vm3, %v3412_v23 }
  0x50   : > { %3076 = vmatprep.mubr.msk.bf16.mxu0 %vm3551_vm2, %v3549_v1  ;;  %3200 = vmatprep.mubr.msk.bf16.mxu1 %vm3551_vm2, %v3549_v1 }
  0x57   : > { %3077 = vmatmul.mubr.msk.bf16.gmra.mrb[28].mxu0 %vm666_vm3, %v3413_v24  ;;  %3201 = vmatmul.mubr.msk.bf16.gmra.mrb[28].mxu1 %vm666_vm3, %v3414_v25 }
  0x58   : > { %3080 = vmatprep.mubr.msk.bf16.mxu0 %vm3551_vm2, %v3549_v1  ;;  %3204 = vmatprep.mubr.msk.bf16.mxu1 %vm3551_vm2, %v3549_v1 }
  0x5f   : > { %3081 = vmatmul.mubr.msk.bf16.gmra.mrb[32].mxu0 %vm666_vm3, %v3415_v26  ;;  %3205 = vmatmul.mubr.msk.bf16.gmra.mrb[32].mxu1 %vm666_vm3, %v3416_v27 }
  0x60   : > { %3084 = vmatprep.mubr.msk.bf16.mxu0 %vm3551_vm2, %v3549_v1  ;;  %3208 = vmatprep.mubr.msk.bf16.mxu1 %vm3551_vm2, %v3549_v1 }
  0x67   : > { %3085 = vmatmul.mubr.msk.bf16.gmra.mrb[36].mxu0 %vm666_vm3, %v3417_v28  ;;  %3209 = vmatmul.mubr.msk.bf16.gmra.mrb[36].mxu1 %vm666_vm3, %v3418_v29  ;;  %v3455_v28 = vld [vmem:[%s3636_s9 + $0xe0] sm:$0xff]  }
  0x68   : > { %3088 = vmatprep.mubr.msk.bf16.mxu0 %vm3551_vm2, %v3549_v1  ;;  %3212 = vmatprep.mubr.msk.bf16.mxu1 %vm3551_vm2, %v3549_v1 }
  0x6f   : > { %3089 = vmatmul.mubr.msk.bf16.gmra.mrb[40].mxu0 %vm666_vm3, %v3419_v30  ;;  %3213 = vmatmul.mubr.msk.bf16.gmra.mrb[40].mxu1 %vm666_vm3, %v3420_v31  ;;  %v3456_v31 = vld [vmem:[%s3636_s9 + $0x1d8] sm:$0xff]  }
  0x70   : > { %3092 = vmatprep.mubr.msk.bf16.mxu0 %vm3551_vm2, %v3549_v1  ;;  %3216 = vmatprep.mubr.msk.bf16.mxu1 %vm3551_vm2, %v3549_v1 }
  0x77   : > { %3093 = vmatmul.mubr.msk.bf16.gmra.mrb[44].mxu0 %vm666_vm3, %v3421_v32  ;;  %3217 = vmatmul.mubr.msk.bf16.gmra.mrb[44].mxu1 %vm666_vm3, %v3422_v33 }
  0x78   : > { %3096 = vmatprep.mubr.msk.bf16.mxu0 %vm3551_vm2, %v3549_v1  ;;  %3220 = vmatprep.mubr.msk.bf16.mxu1 %vm3551_vm2, %v3549_v1 }
  0x7f   : > { %3097 = vmatmul.mubr.msk.bf16.gmra.mrb[48].mxu0 %vm666_vm3, %v3423_v34  ;;  %3221 = vmatmul.mubr.msk.bf16.gmra.mrb[48].mxu1 %vm666_vm3, %v3424_v35 }
  0x80   : > { %3100 = vmatprep.mubr.msk.bf16.mxu0 %vm3551_vm2, %v3549_v1  ;;  %3224 = vmatprep.mubr.msk.bf16.mxu1 %vm3551_vm2, %v3549_v1 }
  0x87   : > { %3101 = vmatmul.mubr.msk.bf16.gmra.mrb[52].mxu0 %vm666_vm3, %v3425_v36  ;;  %3225 = vmatmul.mubr.msk.bf16.gmra.mrb[52].mxu1 %vm666_vm3, %v3426_v37 }
  0x88   : > { %3104 = vmatprep.mubr.msk.bf16.mxu0 %vm3551_vm2, %v3549_v1  ;;  %3228 = vmatprep.mubr.msk.bf16.mxu1 %vm3551_vm2, %v3549_v1 }
  0x8f   : > { %3105 = vmatmul.mubr.msk.bf16.gmra.mrb[56].mxu0 %vm666_vm3, %v3427_v38  ;;  %3229 = vmatmul.mubr.msk.bf16.gmra.mrb[56].mxu1 %vm666_vm3, %v3428_v39 }
  0x90   : > { %3108 = vmatprep.mubr.msk.bf16.mxu0 %vm3551_vm2, %v3549_v1  ;;  %3232 = vmatprep.mubr.msk.bf16.mxu1 %vm3551_vm2, %v3549_v1 }
  0x97   : > { %3109 = vmatmul.mubr.msk.bf16.gmra.mrb[60].mxu0 %vm666_vm3, %v3429_v40  ;;  %3233 = vmatmul.mubr.msk.bf16.gmra.mrb[60].mxu1 %vm666_vm3, %v3430_v41 }
  0x98   : > { %3112 = vmatprep.mubr.msk.bf16.mxu0 %vm3551_vm2, %v3549_v1  ;;  %3236 = vmatprep.mubr.msk.bf16.mxu1 %vm3551_vm2, %v3549_v1 }
  0x9f   : > { %3113 = vmatmul.mubr.msk.bf16.gmra.mrb[64].mxu0 %vm666_vm3, %v3431_v42  ;;  %3237 = vmatmul.mubr.msk.bf16.gmra.mrb[64].mxu1 %vm666_vm3, %v3432_v43 }
  0xa0   : > { %3116 = vmatprep.mubr.msk.bf16.mxu0 %vm3551_vm2, %v3549_v1  ;;  %3240 = vmatprep.mubr.msk.bf16.mxu1 %vm3551_vm2, %v3549_v1 }
  0xa7   : > { %3117 = vmatmul.mubr.msk.bf16.gmra.mrb[68].mxu0 %vm666_vm3, %v3433_v44  ;;  %3241 = vmatmul.mubr.msk.bf16.gmra.mrb[68].mxu1 %vm666_vm3, %v3434_v45 }
  0xa8   : > { %3120 = vmatprep.mubr.msk.bf16.mxu0 %vm3551_vm2, %v3549_v1  ;;  %3244 = vmatprep.mubr.msk.bf16.mxu1 %vm3551_vm2, %v3549_v1 }
  0xaf   : > { %3121 = vmatmul.mubr.msk.bf16.gmra.mrb[72].mxu0 %vm666_vm3, %v3435_v46  ;;  %3245 = vmatmul.mubr.msk.bf16.gmra.mrb[72].mxu1 %vm666_vm3, %v3436_v47 }
  0xb0   : > { %3124 = vmatprep.mubr.msk.bf16.mxu0 %vm3551_vm2, %v3549_v1  ;;  %3248 = vmatprep.mubr.msk.bf16.mxu1 %vm3551_vm2, %v3549_v1 }
  0xb7   : > { %3125 = vmatmul.mubr.msk.bf16.gmra.mrb[76].mxu0 %vm666_vm3, %v3437_v48  ;;  %3249 = vmatmul.mubr.msk.bf16.gmra.mrb[76].mxu1 %vm666_vm3, %v3438_v49 }
  0xb8   : > { %3128 = vmatprep.mubr.msk.bf16.mxu0 %vm3551_vm2, %v3549_v1  ;;  %3252 = vmatprep.mubr.msk.bf16.mxu1 %vm3551_vm2, %v3549_v1 }
  0xbf   : > { %3129 = vmatmul.mubr.msk.bf16.gmra.mrb[80].mxu0 %vm666_vm3, %v3439_v50  ;;  %3253 = vmatmul.mubr.msk.bf16.gmra.mrb[80].mxu1 %vm666_vm3, %v3440_v51  ;;  %v3457_v50 = vld [vmem:[%s3636_s9 + $0xe8] sm:$0xff]  }
  0xc0   : > { %3132 = vmatprep.mubr.msk.bf16.mxu0 %vm3551_vm2, %v3549_v1  ;;  %3256 = vmatprep.mubr.msk.bf16.mxu1 %vm3551_vm2, %v3549_v1 }
  0xc7   : > { %3133 = vmatmul.mubr.msk.bf16.gmra.mrb[84].mxu0 %vm666_vm3, %v3441_v52  ;;  %3257 = vmatmul.mubr.msk.bf16.gmra.mrb[84].mxu1 %vm666_vm3, %v3442_v53  ;;  %v3458_v53 = vld [vmem:[%s3636_s9 + $0x1e0] sm:$0xff]  }
  0xc8   : > { %3136 = vmatprep.mubr.msk.bf16.mxu0 %vm3551_vm2, %v3549_v1  ;;  %3260 = vmatprep.mubr.msk.bf16.mxu1 %vm3551_vm2, %v3549_v1 }
  0xcf   : > { %3137 = vmatmul.mubr.msk.bf16.gmra.mrb[88].mxu0 %vm666_vm3, %v3443_v54  ;;  %3261 = vmatmul.mubr.msk.bf16.gmra.mrb[88].mxu1 %vm666_vm3, %v3444_v55 }
  0xd0   : > { %3140 = vmatprep.mubr.msk.bf16.mxu0 %vm3551_vm2, %v3549_v1  ;;  %3264 = vmatprep.mubr.msk.bf16.mxu1 %vm3551_vm2, %v3549_v1 }
  0xd7   : > { %3141 = vmatmul.mubr.msk.bf16.gmra.mrb[92].mxu0 %vm666_vm3, %v3445_v56  ;;  %3265 = vmatmul.mubr.msk.bf16.gmra.mrb[92].mxu1 %vm666_vm3, %v3446_v57 }
  0xd8   : > { %3144 = vmatprep.mubr.msk.bf16.mxu0 %vm3551_vm2, %v3549_v1  ;;  %3268 = vmatprep.mubr.msk.bf16.mxu1 %vm3551_vm2, %v3549_v1 }
  0xdf   : > { %3145 = vmatmul.mubr.msk.bf16.gmra.mrb[96].mxu0 %vm666_vm3, %v3447_v58  ;;  %3269 = vmatmul.mubr.msk.bf16.gmra.mrb[96].mxu1 %vm666_vm3, %v3448_v59 }
  0xe0   : > { %3148 = vmatprep.mubr.msk.bf16.mxu0 %vm3551_vm2, %v3549_v1  ;;  %3272 = vmatprep.mubr.msk.bf16.mxu1 %vm3551_vm2, %v3549_v1 }
  0xe7   : > { %3149 = vmatmul.mubr.msk.bf16.gmra.mrb[100].mxu0 %vm666_vm3, %v3449_v60  ;;  %3273 = vmatmul.mubr.msk.bf16.gmra.mrb[100].mxu1 %vm666_vm3, %v3450_v61 }
  0xe8   : > { %3152 = vmatprep.mubr.msk.bf16.mxu0 %vm3551_vm2, %v3549_v1  ;;  %3276 = vmatprep.mubr.msk.bf16.mxu1 %vm3551_vm2, %v3549_v1 }
  0xef   : > { %3153 = vmatmul.mubr.msk.bf16.gmra.mrb[104].mxu0 %vm666_vm3, %v3451_v62  ;;  %3277 = vmatmul.mubr.msk.bf16.gmra.mrb[104].mxu1 %vm666_vm3, %v3452_v63 }
  0xf0   : > { %3156 = vmatprep.mubr.msk.bf16.mxu0 %vm3551_vm2, %v3549_v1  ;;  %3280 = vmatprep.mubr.msk.bf16.mxu1 %vm3551_vm2, %v3549_v1 }
  0xf2   : > { %v891_v2 = vpop.f32.mrb[0].mxu0  ;;  %v1139_v3 = vpop.f32.mrb[0].mxu1 }
  0xf3   : > { %v892_v4 = vadd.f32 %v3856_v0, %v891_v2  ;;  %v3050_v5 = vpop.f32.mrb[1].mxu0  ;;  %v1140_v7 = vadd.f32 %v3856_v0, %v1139_v3  ;;  %v3174_v8 = vpop.f32.mrb[1].mxu1 }
  0xf4   : > { %v894_v10 = vpop.f32.mrb[2].mxu0  ;;  %v1142_v11 = vpop.f32.mrb[2].mxu1 }
  0xf5   : > { %v1378_v12 = vmax.f32 %v892_v4, 0.0  ;;  %v895_v13 = vadd.f32 %v3856_v0, %v894_v10  ;;  %v3051_v14 = vpop.f32.mrb[3].mxu0  ;;  %v1440_v15 = vmax.f32 %v1140_v7, 0.0  ;;  %v1143_v16 = vadd.f32 %v3856_v0, %v1142_v11  ;;  %v3175_v17 = vpop.f32.mrb[3].mxu1  ;;  %v3459_v10 = vld [vmem:[%s3636_s9 + $0xf0] sm:$0xff]  }
  0xf7   : > { %v2847_v18 = vpack.c.bf16 %v1378_v12, %v1378_v12  ;;  %v1379_v19 = vmax.f32 %v895_v13, 0.0  ;;  %3157 = vmatmul.mubr.msk.bf16.gmra.mrb[108].mxu0 %vm666_vm3, %v3453_v6  ;;  %v2909_v20 = vpack.c.bf16 %v1440_v15, %v1440_v15  ;;  %v1441_v21 = vmax.f32 %v1143_v16, 0.0  ;;  %3281 = vmatmul.mubr.msk.bf16.gmra.mrb[108].mxu1 %vm666_vm3, %v3454_v9 }
  0xf8   : > { %3160 = vmatprep.mubr.msk.bf16.mxu0 %vm3551_vm2, %v3549_v1  ;;  %3284 = vmatprep.mubr.msk.bf16.mxu1 %vm3551_vm2, %v3549_v1 }
  0xf9   : > { %1989 = vst.msk [vmem:[%s3874_s12] sm:$0xf] %vm1988_vm4, %v2847_v18  ;;  %v2848_v22 = vpack.c.bf16 %v1379_v19, %v1379_v19  ;;  %2051 = vst.msk [vmem:[%s3874_s12 + $0xf8] sm:$0xf] %vm1988_vm4, %v2909_v20  ;;  %v2910_v23 = vpack.c.bf16 %v1441_v21, %v1441_v21 }
  0xfa   : > { %v899_v24 = vpop.f32.mrb[4].mxu0  ;;  %v1147_v25 = vpop.f32.mrb[4].mxu1 }
  0xfb   : > { %1990 = vst.msk [vmem:[%s3874_s12 + $0x4] sm:$0xf] %vm1988_vm4, %v2848_v22  ;;  %2052 = vst.msk [vmem:[%s3874_s12 + $0xfc] sm:$0xf] %vm1988_vm4, %v2910_v23  ;;  %v900_v26 = vadd.f32 %v3856_v0, %v899_v24  ;;  %v3054_v27 = vpop.f32.mrb[5].mxu0  ;;  %v1148_v29 = vadd.f32 %v3856_v0, %v1147_v25  ;;  %v3178_v30 = vpop.f32.mrb[5].mxu1 }
  0xfc   : > { %v902_v32 = vpop.f32.mrb[6].mxu0  ;;  %v1150_v33 = vpop.f32.mrb[6].mxu1 }
  0xfd   : > { %v1380_v34 = vmax.f32 %v900_v26, 0.0  ;;  %v903_v35 = vadd.f32 %v3856_v0, %v902_v32  ;;  %v3055_v36 = vpop.f32.mrb[7].mxu0  ;;  %v1442_v37 = vmax.f32 %v1148_v29, 0.0  ;;  %v1151_v38 = vadd.f32 %v3856_v0, %v1150_v33  ;;  %v3179_v39 = vpop.f32.mrb[7].mxu1 }
  0xff   : > { %v2849_v40 = vpack.c.bf16 %v1380_v34, %v1380_v34  ;;  %v1381_v41 = vmax.f32 %v903_v35, 0.0  ;;  %3161 = vmatmul.mubr.msk.bf16.gmra.mrb[112].mxu0 %vm666_vm3, %v3455_v28  ;;  %v2911_v42 = vpack.c.bf16 %v1442_v37, %v1442_v37  ;;  %v1443_v43 = vmax.f32 %v1151_v38, 0.0  ;;  %3285 = vmatmul.mubr.msk.bf16.gmra.mrb[112].mxu1 %vm666_vm3, %v3456_v31 }
 0x100   : > { %3164 = vmatprep.mubr.msk.bf16.mxu0 %vm3551_vm2, %v3549_v1  ;;  %3288 = vmatprep.mubr.msk.bf16.mxu1 %vm3551_vm2, %v3549_v1 }
 0x101   : > { %1991 = vst.msk [vmem:[%s3874_s12 + $0x8] sm:$0xf] %vm1988_vm4, %v2849_v40  ;;  %v2850_v44 = vpack.c.bf16 %v1381_v41, %v1381_v41  ;;  %2053 = vst.msk [vmem:[%s3874_s12 + $0x100] sm:$0xf] %vm1988_vm4, %v2911_v42  ;;  %v2912_v45 = vpack.c.bf16 %v1443_v43, %v1443_v43 }
 0x102   : > { %v907_v46 = vpop.f32.mrb[8].mxu0  ;;  %v1155_v47 = vpop.f32.mrb[8].mxu1 }
 0x103   : > { %1992 = vst.msk [vmem:[%s3874_s12 + $0xc] sm:$0xf] %vm1988_vm4, %v2850_v44  ;;  %2054 = vst.msk [vmem:[%s3874_s12 + $0x104] sm:$0xf] %vm1988_vm4, %v2912_v45  ;;  %v908_v48 = vadd.f32 %v3856_v0, %v907_v46  ;;  %v3058_v49 = vpop.f32.mrb[9].mxu0  ;;  %v1156_v51 = vadd.f32 %v3856_v0, %v1155_v47  ;;  %v3182_v52 = vpop.f32.mrb[9].mxu1 }
 0x104   : > { %v910_v54 = vpop.f32.mrb[10].mxu0  ;;  %v1158_v55 = vpop.f32.mrb[10].mxu1 }
 0x105   : > { %v1382_v56 = vmax.f32 %v908_v48, 0.0  ;;  %v911_v57 = vadd.f32 %v3856_v0, %v910_v54  ;;  %v3059_v58 = vpop.f32.mrb[11].mxu0  ;;  %v1444_v59 = vmax.f32 %v1156_v51, 0.0  ;;  %v1159_v60 = vadd.f32 %v3856_v0, %v1158_v55  ;;  %v3183_v61 = vpop.f32.mrb[11].mxu1 }
 0x107   : > { %v2851_v62 = vpack.c.bf16 %v1382_v56, %v1382_v56  ;;  %v1383_v63 = vmax.f32 %v911_v57, 0.0  ;;  %3165 = vmatmul.mubr.msk.bf16.gmra.mrb[116].mxu0 %vm666_vm3, %v3457_v50  ;;  %v2913_v2 = vpack.c.bf16 %v1444_v59, %v1444_v59  ;;  %v1445_v3 = vmax.f32 %v1159_v60, 0.0  ;;  %3289 = vmatmul.mubr.msk.bf16.gmra.mrb[116].mxu1 %vm666_vm3, %v3458_v53 }
 0x108   : > { %3168 = vmatprep.mubr.msk.bf16.mxu0 %vm3551_vm2, %v3549_v1 }
 0x109   : > { %1993 = vst.msk [vmem:[%s3874_s12 + $0x10] sm:$0xf] %vm1988_vm4, %v2851_v62  ;;  %v2852_v4 = vpack.c.bf16 %v1383_v63, %v1383_v63  ;;  %2055 = vst.msk [vmem:[%s3874_s12 + $0x108] sm:$0xf] %vm1988_vm4, %v2913_v2  ;;  %v2914_v5 = vpack.c.bf16 %v1445_v3, %v1445_v3 }
 0x10a   : > { %v915_v6 = vpop.f32.mrb[12].mxu0  ;;  %v1163_v7 = vpop.f32.mrb[12].mxu1 }
 0x10b   : > { %1994 = vst.msk [vmem:[%s3874_s12 + $0x14] sm:$0xf] %vm1988_vm4, %v2852_v4  ;;  %2056 = vst.msk [vmem:[%s3874_s12 + $0x10c] sm:$0xf] %vm1988_vm4, %v2914_v5  ;;  %v916_v8 = vadd.f32 %v3856_v0, %v915_v6  ;;  %v3062_v9 = vpop.f32.mrb[13].mxu0  ;;  %v1164_v11 = vadd.f32 %v3856_v0, %v1163_v7  ;;  %v3186_v1 = vpop.f32.mrb[13].mxu1 }
 0x10c   : > { %v918_v12 = vpop.f32.mrb[14].mxu0  ;;  %v1166_v13 = vpop.f32.mrb[14].mxu1 }
 0x10d   : > { %v1384_v14 = vmax.f32 %v916_v8, 0.0  ;;  %v919_v15 = vadd.f32 %v3856_v0, %v918_v12  ;;  %v3063_v16 = vpop.f32.mrb[15].mxu0  ;;  %v1446_v17 = vmax.f32 %v1164_v11, 0.0  ;;  %v1167_v18 = vadd.f32 %v3856_v0, %v1166_v13  ;;  %v3187_v19 = vpop.f32.mrb[15].mxu1 }
 0x10f   : > { %v2853_v20 = vpack.c.bf16 %v1384_v14, %v1384_v14  ;;  %v1385_v21 = vmax.f32 %v919_v15, 0.0  ;;  %3169 = vmatmul.mubr.msk.bf16.gmra.mrb[120].mxu0 %vm666_vm3, %v3459_v10  ;;  %v2915_v22 = vpack.c.bf16 %v1446_v17, %v1446_v17  ;;  %v1447_v23 = vmax.f32 %v1167_v18, 0.0 }
 0x111   : > { %1995 = vst.msk [vmem:[%s3874_s12 + $0x18] sm:$0xf] %vm1988_vm4, %v2853_v20  ;;  %v2854_v24 = vpack.c.bf16 %v1385_v21, %v1385_v21  ;;  %2057 = vst.msk [vmem:[%s3874_s12 + $0x110] sm:$0xf] %vm1988_vm4, %v2915_v22  ;;  %v2916_v25 = vpack.c.bf16 %v1447_v23, %v1447_v23 }
 0x112   : > { %v923_v26 = vpop.f32.mrb[16].mxu0  ;;  %v1171_v27 = vpop.f32.mrb[16].mxu1 }
 0x113   : > { %1996 = vst.msk [vmem:[%s3874_s12 + $0x1c] sm:$0xf] %vm1988_vm4, %v2854_v24  ;;  %2058 = vst.msk [vmem:[%s3874_s12 + $0x114] sm:$0xf] %vm1988_vm4, %v2916_v25  ;;  %v924_v28 = vadd.f32 %v3856_v0, %v923_v26  ;;  %v3066_v29 = vpop.f32.mrb[17].mxu0  ;;  %v1172_v30 = vadd.f32 %v3856_v0, %v1171_v27  ;;  %v3190_v31 = vpop.f32.mrb[17].mxu1 }
 0x114   : > { %v926_v32 = vpop.f32.mrb[18].mxu0  ;;  %v1174_v33 = vpop.f32.mrb[18].mxu1 }
 0x115   : > { %v1386_v34 = vmax.f32 %v924_v28, 0.0  ;;  %v927_v35 = vadd.f32 %v3856_v0, %v926_v32  ;;  %v3067_v36 = vpop.f32.mrb[19].mxu0  ;;  %v1448_v37 = vmax.f32 %v1172_v30, 0.0  ;;  %v1175_v38 = vadd.f32 %v3856_v0, %v1174_v33  ;;  %v3191_v39 = vpop.f32.mrb[19].mxu1 }
 0x117   : > { %v2855_v40 = vpack.c.bf16 %v1386_v34, %v1386_v34  ;;  %v1387_v41 = vmax.f32 %v927_v35, 0.0  ;;  %v2917_v42 = vpack.c.bf16 %v1448_v37, %v1448_v37  ;;  %v1449_v43 = vmax.f32 %v1175_v38, 0.0 }
 0x119   : > { %1997 = vst.msk [vmem:[%s3874_s12 + $0x20] sm:$0xf] %vm1988_vm4, %v2855_v40  ;;  %v2856_v44 = vpack.c.bf16 %v1387_v41, %v1387_v41  ;;  %2059 = vst.msk [vmem:[%s3874_s12 + $0x118] sm:$0xf] %vm1988_vm4, %v2917_v42  ;;  %v2918_v45 = vpack.c.bf16 %v1449_v43, %v1449_v43 }
 0x11a   : > { %v931_v46 = vpop.f32.mrb[20].mxu0  ;;  %v1179_v47 = vpop.f32.mrb[20].mxu1 }
 0x11b   : > { %1998 = vst.msk [vmem:[%s3874_s12 + $0x24] sm:$0xf] %vm1988_vm4, %v2856_v44  ;;  %2060 = vst.msk [vmem:[%s3874_s12 + $0x11c] sm:$0xf] %vm1988_vm4, %v2918_v45  ;;  %v932_v48 = vadd.f32 %v3856_v0, %v931_v46  ;;  %v3070_v49 = vpop.f32.mrb[21].mxu0  ;;  %v1180_v50 = vadd.f32 %v3856_v0, %v1179_v47  ;;  %v3194_v51 = vpop.f32.mrb[21].mxu1 }
 0x11c   : > { %v934_v52 = vpop.f32.mrb[22].mxu0  ;;  %v1182_v53 = vpop.f32.mrb[22].mxu1 }
 0x11d   : > { %v1388_v54 = vmax.f32 %v932_v48, 0.0  ;;  %v935_v55 = vadd.f32 %v3856_v0, %v934_v52  ;;  %v3071_v56 = vpop.f32.mrb[23].mxu0  ;;  %v1450_v57 = vmax.f32 %v1180_v50, 0.0  ;;  %v1183_v58 = vadd.f32 %v3856_v0, %v1182_v53  ;;  %v3195_v59 = vpop.f32.mrb[23].mxu1 }
 0x11f   : > { %v2857_v60 = vpack.c.bf16 %v1388_v54, %v1388_v54  ;;  %v1389_v61 = vmax.f32 %v935_v55, 0.0  ;;  %v2919_v62 = vpack.c.bf16 %v1450_v57, %v1450_v57  ;;  %v1451_v63 = vmax.f32 %v1183_v58, 0.0 }
 0x121   : > { %1999 = vst.msk [vmem:[%s3874_s12 + $0x28] sm:$0xf] %vm1988_vm4, %v2857_v60  ;;  %v2858_v2 = vpack.c.bf16 %v1389_v61, %v1389_v61  ;;  %2061 = vst.msk [vmem:[%s3874_s12 + $0x120] sm:$0xf] %vm1988_vm4, %v2919_v62  ;;  %v2920_v3 = vpack.c.bf16 %v1451_v63, %v1451_v63 }
 0x122   : > { %v939_v4 = vpop.f32.mrb[24].mxu0  ;;  %v1187_v5 = vpop.f32.mrb[24].mxu1 }
 0x123   : > { %2000 = vst.msk [vmem:[%s3874_s12 + $0x2c] sm:$0xf] %vm1988_vm4, %v2858_v2  ;;  %2062 = vst.msk [vmem:[%s3874_s12 + $0x124] sm:$0xf] %vm1988_vm4, %v2920_v3  ;;  %v940_v6 = vadd.f32 %v3856_v0, %v939_v4  ;;  %v3074_v7 = vpop.f32.mrb[25].mxu0  ;;  %v1188_v8 = vadd.f32 %v3856_v0, %v1187_v5  ;;  %v3198_v9 = vpop.f32.mrb[25].mxu1 }
 0x124   : > { %v942_v10 = vpop.f32.mrb[26].mxu0  ;;  %v1190_v11 = vpop.f32.mrb[26].mxu1 }
 0x125   : > { %v1390_v1 = vmax.f32 %v940_v6, 0.0  ;;  %v943_v12 = vadd.f32 %v3856_v0, %v942_v10  ;;  %v3075_v13 = vpop.f32.mrb[27].mxu0  ;;  %v1452_v14 = vmax.f32 %v1188_v8, 0.0  ;;  %v1191_v15 = vadd.f32 %v3856_v0, %v1190_v11  ;;  %v3199_v16 = vpop.f32.mrb[27].mxu1 }
 0x127   : > { %v2859_v17 = vpack.c.bf16 %v1390_v1, %v1390_v1  ;;  %v1391_v18 = vmax.f32 %v943_v12, 0.0  ;;  %v2921_v19 = vpack.c.bf16 %v1452_v14, %v1452_v14  ;;  %v1453_v20 = vmax.f32 %v1191_v15, 0.0 }
 0x129   : > { %2001 = vst.msk [vmem:[%s3874_s12 + $0x30] sm:$0xf] %vm1988_vm4, %v2859_v17  ;;  %v2860_v21 = vpack.c.bf16 %v1391_v18, %v1391_v18  ;;  %2063 = vst.msk [vmem:[%s3874_s12 + $0x128] sm:$0xf] %vm1988_vm4, %v2921_v19  ;;  %v2922_v22 = vpack.c.bf16 %v1453_v20, %v1453_v20 }
 0x12a   : > { %v947_v23 = vpop.f32.mrb[28].mxu0  ;;  %v1195_v24 = vpop.f32.mrb[28].mxu1 }
 0x12b   : > { %2002 = vst.msk [vmem:[%s3874_s12 + $0x34] sm:$0xf] %vm1988_vm4, %v2860_v21  ;;  %2064 = vst.msk [vmem:[%s3874_s12 + $0x12c] sm:$0xf] %vm1988_vm4, %v2922_v22  ;;  %v948_v25 = vadd.f32 %v3856_v0, %v947_v23  ;;  %v3078_v26 = vpop.f32.mrb[29].mxu0  ;;  %v1196_v27 = vadd.f32 %v3856_v0, %v1195_v24  ;;  %v3202_v28 = vpop.f32.mrb[29].mxu1 }
 0x12c   : > { %v950_v29 = vpop.f32.mrb[30].mxu0  ;;  %v1198_v30 = vpop.f32.mrb[30].mxu1 }
 0x12d   : > { %v1392_v31 = vmax.f32 %v948_v25, 0.0  ;;  %v951_v32 = vadd.f32 %v3856_v0, %v950_v29  ;;  %v3079_v33 = vpop.f32.mrb[31].mxu0  ;;  %v1454_v34 = vmax.f32 %v1196_v27, 0.0  ;;  %v1199_v35 = vadd.f32 %v3856_v0, %v1198_v30  ;;  %v3203_v36 = vpop.f32.mrb[31].mxu1 }
 0x12f   : > { %v2861_v37 = vpack.c.bf16 %v1392_v31, %v1392_v31  ;;  %v1393_v38 = vmax.f32 %v951_v32, 0.0  ;;  %v2923_v39 = vpack.c.bf16 %v1454_v34, %v1454_v34  ;;  %v1455_v40 = vmax.f32 %v1199_v35, 0.0 }
 0x131   : > { %2003 = vst.msk [vmem:[%s3874_s12 + $0x38] sm:$0xf] %vm1988_vm4, %v2861_v37  ;;  %v2862_v41 = vpack.c.bf16 %v1393_v38, %v1393_v38  ;;  %2065 = vst.msk [vmem:[%s3874_s12 + $0x130] sm:$0xf] %vm1988_vm4, %v2923_v39  ;;  %v2924_v42 = vpack.c.bf16 %v1455_v40, %v1455_v40 }
 0x132   : > { %v955_v43 = vpop.f32.mrb[32].mxu0  ;;  %v1203_v44 = vpop.f32.mrb[32].mxu1 }
 0x133   : > { %2004 = vst.msk [vmem:[%s3874_s12 + $0x3c] sm:$0xf] %vm1988_vm4, %v2862_v41  ;;  %2066 = vst.msk [vmem:[%s3874_s12 + $0x134] sm:$0xf] %vm1988_vm4, %v2924_v42  ;;  %v956_v45 = vadd.f32 %v3856_v0, %v955_v43  ;;  %v3082_v46 = vpop.f32.mrb[33].mxu0  ;;  %v1204_v47 = vadd.f32 %v3856_v0, %v1203_v44  ;;  %v3206_v48 = vpop.f32.mrb[33].mxu1 }
 0x134   : > { %v958_v49 = vpop.f32.mrb[34].mxu0  ;;  %v1206_v50 = vpop.f32.mrb[34].mxu1 }
 0x135   : > { %v1394_v51 = vmax.f32 %v956_v45, 0.0  ;;  %v959_v52 = vadd.f32 %v3856_v0, %v958_v49  ;;  %v3083_v53 = vpop.f32.mrb[35].mxu0  ;;  %v1456_v54 = vmax.f32 %v1204_v47, 0.0  ;;  %v1207_v55 = vadd.f32 %v3856_v0, %v1206_v50  ;;  %v3207_v56 = vpop.f32.mrb[35].mxu1 }
 0x137   : > { %v2863_v57 = vpack.c.bf16 %v1394_v51, %v1394_v51  ;;  %v1395_v58 = vmax.f32 %v959_v52, 0.0  ;;  %v2925_v59 = vpack.c.bf16 %v1456_v54, %v1456_v54  ;;  %v1457_v60 = vmax.f32 %v1207_v55, 0.0 }
 0x139   : > { %2005 = vst.msk [vmem:[%s3874_s12 + $0x40] sm:$0xf] %vm1988_vm4, %v2863_v57  ;;  %v2864_v61 = vpack.c.bf16 %v1395_v58, %v1395_v58  ;;  %2067 = vst.msk [vmem:[%s3874_s12 + $0x138] sm:$0xf] %vm1988_vm4, %v2925_v59  ;;  %v2926_v62 = vpack.c.bf16 %v1457_v60, %v1457_v60 }
 0x13a   : > { %v963_v63 = vpop.f32.mrb[36].mxu0  ;;  %v1211_v2 = vpop.f32.mrb[36].mxu1 }
 0x13b   : > { %2006 = vst.msk [vmem:[%s3874_s12 + $0x44] sm:$0xf] %vm1988_vm4, %v2864_v61  ;;  %2068 = vst.msk [vmem:[%s3874_s12 + $0x13c] sm:$0xf] %vm1988_vm4, %v2926_v62  ;;  %v964_v3 = vadd.f32 %v3856_v0, %v963_v63  ;;  %v3086_v4 = vpop.f32.mrb[37].mxu0  ;;  %v1212_v5 = vadd.f32 %v3856_v0, %v1211_v2  ;;  %v3210_v6 = vpop.f32.mrb[37].mxu1 }
 0x13c   : > { %v966_v7 = vpop.f32.mrb[38].mxu0  ;;  %v1214_v8 = vpop.f32.mrb[38].mxu1 }
 0x13d   : > { %v1396_v9 = vmax.f32 %v964_v3, 0.0  ;;  %v967_v10 = vadd.f32 %v3856_v0, %v966_v7  ;;  %v3087_v11 = vpop.f32.mrb[39].mxu0  ;;  %v1458_v1 = vmax.f32 %v1212_v5, 0.0  ;;  %v1215_v12 = vadd.f32 %v3856_v0, %v1214_v8  ;;  %v3211_v13 = vpop.f32.mrb[39].mxu1 }
 0x13f   : > { %v2865_v14 = vpack.c.bf16 %v1396_v9, %v1396_v9  ;;  %v1397_v15 = vmax.f32 %v967_v10, 0.0  ;;  %v2927_v16 = vpack.c.bf16 %v1458_v1, %v1458_v1  ;;  %v1459_v17 = vmax.f32 %v1215_v12, 0.0 }
 0x141   : > { %2007 = vst.msk [vmem:[%s3874_s12 + $0x48] sm:$0xf] %vm1988_vm4, %v2865_v14  ;;  %v2866_v18 = vpack.c.bf16 %v1397_v15, %v1397_v15  ;;  %2069 = vst.msk [vmem:[%s3874_s12 + $0x140] sm:$0xf] %vm1988_vm4, %v2927_v16  ;;  %v2928_v19 = vpack.c.bf16 %v1459_v17, %v1459_v17 }
 0x142   : > { %v971_v20 = vpop.f32.mrb[40].mxu0  ;;  %v1219_v21 = vpop.f32.mrb[40].mxu1 }
 0x143   : > { %2008 = vst.msk [vmem:[%s3874_s12 + $0x4c] sm:$0xf] %vm1988_vm4, %v2866_v18  ;;  %2070 = vst.msk [vmem:[%s3874_s12 + $0x144] sm:$0xf] %vm1988_vm4, %v2928_v19  ;;  %v972_v22 = vadd.f32 %v3856_v0, %v971_v20  ;;  %v3090_v23 = vpop.f32.mrb[41].mxu0  ;;  %v1220_v24 = vadd.f32 %v3856_v0, %v1219_v21  ;;  %v3214_v25 = vpop.f32.mrb[41].mxu1 }
 0x144   : > { %v974_v26 = vpop.f32.mrb[42].mxu0  ;;  %v1222_v27 = vpop.f32.mrb[42].mxu1 }
 0x145   : > { %v1398_v28 = vmax.f32 %v972_v22, 0.0  ;;  %v975_v29 = vadd.f32 %v3856_v0, %v974_v26  ;;  %v3091_v30 = vpop.f32.mrb[43].mxu0  ;;  %v1460_v31 = vmax.f32 %v1220_v24, 0.0  ;;  %v1223_v32 = vadd.f32 %v3856_v0, %v1222_v27  ;;  %v3215_v33 = vpop.f32.mrb[43].mxu1 }
 0x147   : > { %v2867_v34 = vpack.c.bf16 %v1398_v28, %v1398_v28  ;;  %v1399_v35 = vmax.f32 %v975_v29, 0.0  ;;  %v2929_v36 = vpack.c.bf16 %v1460_v31, %v1460_v31  ;;  %v1461_v37 = vmax.f32 %v1223_v32, 0.0 }
 0x149   : > { %2009 = vst.msk [vmem:[%s3874_s12 + $0x50] sm:$0xf] %vm1988_vm4, %v2867_v34  ;;  %v2868_v38 = vpack.c.bf16 %v1399_v35, %v1399_v35  ;;  %2071 = vst.msk [vmem:[%s3874_s12 + $0x148] sm:$0xf] %vm1988_vm4, %v2929_v36  ;;  %v2930_v39 = vpack.c.bf16 %v1461_v37, %v1461_v37 }
 0x14a   : > { %v979_v40 = vpop.f32.mrb[44].mxu0  ;;  %v1227_v41 = vpop.f32.mrb[44].mxu1 }
 0x14b   : > { %2010 = vst.msk [vmem:[%s3874_s12 + $0x54] sm:$0xf] %vm1988_vm4, %v2868_v38  ;;  %2072 = vst.msk [vmem:[%s3874_s12 + $0x14c] sm:$0xf] %vm1988_vm4, %v2930_v39  ;;  %v980_v42 = vadd.f32 %v3856_v0, %v979_v40  ;;  %v3094_v43 = vpop.f32.mrb[45].mxu0  ;;  %v1228_v44 = vadd.f32 %v3856_v0, %v1227_v41  ;;  %v3218_v45 = vpop.f32.mrb[45].mxu1 }
 0x14c   : > { %v982_v46 = vpop.f32.mrb[46].mxu0  ;;  %v1230_v47 = vpop.f32.mrb[46].mxu1 }
 0x14d   : > { %v1400_v48 = vmax.f32 %v980_v42, 0.0  ;;  %v983_v49 = vadd.f32 %v3856_v0, %v982_v46  ;;  %v3095_v50 = vpop.f32.mrb[47].mxu0  ;;  %v1462_v51 = vmax.f32 %v1228_v44, 0.0  ;;  %v1231_v52 = vadd.f32 %v3856_v0, %v1230_v47  ;;  %v3219_v53 = vpop.f32.mrb[47].mxu1 }
 0x14f   : > { %v2869_v54 = vpack.c.bf16 %v1400_v48, %v1400_v48  ;;  %v1401_v55 = vmax.f32 %v983_v49, 0.0  ;;  %v2931_v56 = vpack.c.bf16 %v1462_v51, %v1462_v51  ;;  %v1463_v57 = vmax.f32 %v1231_v52, 0.0 }
 0x151   : > { %2011 = vst.msk [vmem:[%s3874_s12 + $0x58] sm:$0xf] %vm1988_vm4, %v2869_v54  ;;  %v2870_v58 = vpack.c.bf16 %v1401_v55, %v1401_v55  ;;  %2073 = vst.msk [vmem:[%s3874_s12 + $0x150] sm:$0xf] %vm1988_vm4, %v2931_v56  ;;  %v2932_v59 = vpack.c.bf16 %v1463_v57, %v1463_v57 }
 0x152   : > { %v987_v60 = vpop.f32.mrb[48].mxu0  ;;  %v1235_v61 = vpop.f32.mrb[48].mxu1 }
 0x153   : > { %2012 = vst.msk [vmem:[%s3874_s12 + $0x5c] sm:$0xf] %vm1988_vm4, %v2870_v58  ;;  %2074 = vst.msk [vmem:[%s3874_s12 + $0x154] sm:$0xf] %vm1988_vm4, %v2932_v59  ;;  %v988_v62 = vadd.f32 %v3856_v0, %v987_v60  ;;  %v3098_v63 = vpop.f32.mrb[49].mxu0  ;;  %v1236_v2 = vadd.f32 %v3856_v0, %v1235_v61  ;;  %v3222_v3 = vpop.f32.mrb[49].mxu1 }
 0x154   : > { %v990_v4 = vpop.f32.mrb[50].mxu0  ;;  %v1238_v5 = vpop.f32.mrb[50].mxu1 }
 0x155   : > { %v1402_v6 = vmax.f32 %v988_v62, 0.0  ;;  %v991_v7 = vadd.f32 %v3856_v0, %v990_v4  ;;  %v3099_v8 = vpop.f32.mrb[51].mxu0  ;;  %v1464_v9 = vmax.f32 %v1236_v2, 0.0  ;;  %v1239_v10 = vadd.f32 %v3856_v0, %v1238_v5  ;;  %v3223_v11 = vpop.f32.mrb[51].mxu1 }
 0x157   : > { %v2871_v1 = vpack.c.bf16 %v1402_v6, %v1402_v6  ;;  %v1403_v12 = vmax.f32 %v991_v7, 0.0  ;;  %v2933_v13 = vpack.c.bf16 %v1464_v9, %v1464_v9  ;;  %v1465_v14 = vmax.f32 %v1239_v10, 0.0 }
 0x159   : > { %2013 = vst.msk [vmem:[%s3874_s12 + $0x60] sm:$0xf] %vm1988_vm4, %v2871_v1  ;;  %v2872_v15 = vpack.c.bf16 %v1403_v12, %v1403_v12  ;;  %2075 = vst.msk [vmem:[%s3874_s12 + $0x158] sm:$0xf] %vm1988_vm4, %v2933_v13  ;;  %v2934_v16 = vpack.c.bf16 %v1465_v14, %v1465_v14 }
 0x15a   : > { %v995_v17 = vpop.f32.mrb[52].mxu0  ;;  %v1243_v18 = vpop.f32.mrb[52].mxu1 }
 0x15b   : > { %2014 = vst.msk [vmem:[%s3874_s12 + $0x64] sm:$0xf] %vm1988_vm4, %v2872_v15  ;;  %2076 = vst.msk [vmem:[%s3874_s12 + $0x15c] sm:$0xf] %vm1988_vm4, %v2934_v16  ;;  %v996_v19 = vadd.f32 %v3856_v0, %v995_v17  ;;  %v3102_v20 = vpop.f32.mrb[53].mxu0  ;;  %v1244_v21 = vadd.f32 %v3856_v0, %v1243_v18  ;;  %v3226_v22 = vpop.f32.mrb[53].mxu1 }
 0x15c   : > { %v998_v23 = vpop.f32.mrb[54].mxu0  ;;  %v1246_v24 = vpop.f32.mrb[54].mxu1 }
 0x15d   : > { %v1404_v25 = vmax.f32 %v996_v19, 0.0  ;;  %v999_v26 = vadd.f32 %v3856_v0, %v998_v23  ;;  %v3103_v27 = vpop.f32.mrb[55].mxu0  ;;  %v1466_v28 = vmax.f32 %v1244_v21, 0.0  ;;  %v1247_v29 = vadd.f32 %v3856_v0, %v1246_v24  ;;  %v3227_v30 = vpop.f32.mrb[55].mxu1 }
 0x15f   : > { %v2873_v31 = vpack.c.bf16 %v1404_v25, %v1404_v25  ;;  %v1405_v32 = vmax.f32 %v999_v26, 0.0  ;;  %v2935_v33 = vpack.c.bf16 %v1466_v28, %v1466_v28  ;;  %v1467_v34 = vmax.f32 %v1247_v29, 0.0 }
 0x161   : > { %2015 = vst.msk [vmem:[%s3874_s12 + $0x68] sm:$0xf] %vm1988_vm4, %v2873_v31  ;;  %v2874_v35 = vpack.c.bf16 %v1405_v32, %v1405_v32  ;;  %2077 = vst.msk [vmem:[%s3874_s12 + $0x160] sm:$0xf] %vm1988_vm4, %v2935_v33  ;;  %v2936_v36 = vpack.c.bf16 %v1467_v34, %v1467_v34 }
 0x162   : > { %v1003_v37 = vpop.f32.mrb[56].mxu0  ;;  %v1251_v38 = vpop.f32.mrb[56].mxu1 }
 0x163   : > { %2016 = vst.msk [vmem:[%s3874_s12 + $0x6c] sm:$0xf] %vm1988_vm4, %v2874_v35  ;;  %2078 = vst.msk [vmem:[%s3874_s12 + $0x164] sm:$0xf] %vm1988_vm4, %v2936_v36  ;;  %v1004_v39 = vadd.f32 %v3856_v0, %v1003_v37  ;;  %v3106_v40 = vpop.f32.mrb[57].mxu0  ;;  %v1252_v41 = vadd.f32 %v3856_v0, %v1251_v38  ;;  %v3230_v42 = vpop.f32.mrb[57].mxu1 }
 0x164   : > { %v1006_v43 = vpop.f32.mrb[58].mxu0  ;;  %v1254_v44 = vpop.f32.mrb[58].mxu1 }
 0x165   : > { %v1406_v45 = vmax.f32 %v1004_v39, 0.0  ;;  %v1007_v46 = vadd.f32 %v3856_v0, %v1006_v43  ;;  %v3107_v47 = vpop.f32.mrb[59].mxu0  ;;  %v1468_v48 = vmax.f32 %v1252_v41, 0.0  ;;  %v1255_v49 = vadd.f32 %v3856_v0, %v1254_v44  ;;  %v3231_v50 = vpop.f32.mrb[59].mxu1 }
 0x167   : > { %v2875_v51 = vpack.c.bf16 %v1406_v45, %v1406_v45  ;;  %v1407_v52 = vmax.f32 %v1007_v46, 0.0  ;;  %v2937_v53 = vpack.c.bf16 %v1468_v48, %v1468_v48  ;;  %v1469_v54 = vmax.f32 %v1255_v49, 0.0 }
 0x169   : > { %2017 = vst.msk [vmem:[%s3874_s12 + $0x70] sm:$0xf] %vm1988_vm4, %v2875_v51  ;;  %v2876_v55 = vpack.c.bf16 %v1407_v52, %v1407_v52  ;;  %2079 = vst.msk [vmem:[%s3874_s12 + $0x168] sm:$0xf] %vm1988_vm4, %v2937_v53  ;;  %v2938_v56 = vpack.c.bf16 %v1469_v54, %v1469_v54 }
 0x16a   : > { %v1011_v57 = vpop.f32.mrb[60].mxu0  ;;  %v1259_v58 = vpop.f32.mrb[60].mxu1 }
 0x16b   : > { %2018 = vst.msk [vmem:[%s3874_s12 + $0x74] sm:$0xf] %vm1988_vm4, %v2876_v55  ;;  %2080 = vst.msk [vmem:[%s3874_s12 + $0x16c] sm:$0xf] %vm1988_vm4, %v2938_v56  ;;  %v1012_v59 = vadd.f32 %v3856_v0, %v1011_v57  ;;  %v3110_v60 = vpop.f32.mrb[61].mxu0  ;;  %v1260_v61 = vadd.f32 %v3856_v0, %v1259_v58  ;;  %v3234_v62 = vpop.f32.mrb[61].mxu1 }
 0x16c   : > { %v1014_v63 = vpop.f32.mrb[62].mxu0  ;;  %v1262_v2 = vpop.f32.mrb[62].mxu1 }
 0x16d   : > { %v1408_v3 = vmax.f32 %v1012_v59, 0.0  ;;  %v1015_v4 = vadd.f32 %v3856_v0, %v1014_v63  ;;  %v3111_v5 = vpop.f32.mrb[63].mxu0  ;;  %v1470_v6 = vmax.f32 %v1260_v61, 0.0  ;;  %v1263_v7 = vadd.f32 %v3856_v0, %v1262_v2  ;;  %v3235_v8 = vpop.f32.mrb[63].mxu1 }
 0x16f   : > { %v2877_v9 = vpack.c.bf16 %v1408_v3, %v1408_v3  ;;  %v1409_v10 = vmax.f32 %v1015_v4, 0.0  ;;  %v2939_v11 = vpack.c.bf16 %v1470_v6, %v1470_v6  ;;  %v1471_v1 = vmax.f32 %v1263_v7, 0.0 }
 0x171   : > { %2019 = vst.msk [vmem:[%s3874_s12 + $0x78] sm:$0xf] %vm1988_vm4, %v2877_v9  ;;  %v2878_v12 = vpack.c.bf16 %v1409_v10, %v1409_v10  ;;  %2081 = vst.msk [vmem:[%s3874_s12 + $0x170] sm:$0xf] %vm1988_vm4, %v2939_v11  ;;  %v2940_v13 = vpack.c.bf16 %v1471_v1, %v1471_v1 }
 0x172   : > { %v1019_v14 = vpop.f32.mrb[64].mxu0  ;;  %v1267_v15 = vpop.f32.mrb[64].mxu1 }
 0x173   : > { %2020 = vst.msk [vmem:[%s3874_s12 + $0x7c] sm:$0xf] %vm1988_vm4, %v2878_v12  ;;  %2082 = vst.msk [vmem:[%s3874_s12 + $0x174] sm:$0xf] %vm1988_vm4, %v2940_v13  ;;  %v1020_v16 = vadd.f32 %v3856_v0, %v1019_v14  ;;  %v3114_v17 = vpop.f32.mrb[65].mxu0  ;;  %v1268_v18 = vadd.f32 %v3856_v0, %v1267_v15  ;;  %v3238_v19 = vpop.f32.mrb[65].mxu1 }
 0x174   : > { %v1022_v20 = vpop.f32.mrb[66].mxu0  ;;  %v1270_v21 = vpop.f32.mrb[66].mxu1 }
 0x175   : > { %v1410_v22 = vmax.f32 %v1020_v16, 0.0  ;;  %v1023_v23 = vadd.f32 %v3856_v0, %v1022_v20  ;;  %v3115_v24 = vpop.f32.mrb[67].mxu0  ;;  %v1472_v25 = vmax.f32 %v1268_v18, 0.0  ;;  %v1271_v26 = vadd.f32 %v3856_v0, %v1270_v21  ;;  %v3239_v27 = vpop.f32.mrb[67].mxu1 }
 0x177   : > { %v2879_v28 = vpack.c.bf16 %v1410_v22, %v1410_v22  ;;  %v1411_v29 = vmax.f32 %v1023_v23, 0.0  ;;  %v2941_v30 = vpack.c.bf16 %v1472_v25, %v1472_v25  ;;  %v1473_v31 = vmax.f32 %v1271_v26, 0.0 }
 0x179   : > { %2021 = vst.msk [vmem:[%s3874_s12 + $0x80] sm:$0xf] %vm1988_vm4, %v2879_v28  ;;  %v2880_v32 = vpack.c.bf16 %v1411_v29, %v1411_v29  ;;  %2083 = vst.msk [vmem:[%s3874_s12 + $0x178] sm:$0xf] %vm1988_vm4, %v2941_v30  ;;  %v2942_v33 = vpack.c.bf16 %v1473_v31, %v1473_v31 }
 0x17a   : > { %v1027_v34 = vpop.f32.mrb[68].mxu0  ;;  %v1275_v35 = vpop.f32.mrb[68].mxu1 }
 0x17b   : > { %2022 = vst.msk [vmem:[%s3874_s12 + $0x84] sm:$0xf] %vm1988_vm4, %v2880_v32  ;;  %2084 = vst.msk [vmem:[%s3874_s12 + $0x17c] sm:$0xf] %vm1988_vm4, %v2942_v33  ;;  %v1028_v36 = vadd.f32 %v3856_v0, %v1027_v34  ;;  %v3118_v37 = vpop.f32.mrb[69].mxu0  ;;  %v1276_v38 = vadd.f32 %v3856_v0, %v1275_v35  ;;  %v3242_v39 = vpop.f32.mrb[69].mxu1 }
 0x17c   : > { %v1030_v40 = vpop.f32.mrb[70].mxu0  ;;  %v1278_v41 = vpop.f32.mrb[70].mxu1 }
 0x17d   : > { %v1412_v42 = vmax.f32 %v1028_v36, 0.0  ;;  %v1031_v43 = vadd.f32 %v3856_v0, %v1030_v40  ;;  %v3119_v44 = vpop.f32.mrb[71].mxu0  ;;  %v1474_v45 = vmax.f32 %v1276_v38, 0.0  ;;  %v1279_v46 = vadd.f32 %v3856_v0, %v1278_v41  ;;  %v3243_v47 = vpop.f32.mrb[71].mxu1  ;;  %v4133_v40 = vld [vmem:[%s4460_s2] ss:$0 sm:$0xff] }
 0x17f   : > { %v2881_v48 = vpack.c.bf16 %v1412_v42, %v1412_v42  ;;  %v1413_v49 = vmax.f32 %v1031_v43, 0.0  ;;  %v2943_v50 = vpack.c.bf16 %v1474_v45, %v1474_v45  ;;  %v1475_v51 = vmax.f32 %v1279_v46, 0.0 }
 0x181   : > { %2023 = vst.msk [vmem:[%s3874_s12 + $0x88] sm:$0xf] %vm1988_vm4, %v2881_v48  ;;  %v2882_v52 = vpack.c.bf16 %v1413_v49, %v1413_v49  ;;  %2085 = vst.msk [vmem:[%s3874_s12 + $0x180] sm:$0xf] %vm1988_vm4, %v2943_v50  ;;  %v2944_v53 = vpack.c.bf16 %v1475_v51, %v1475_v51 }
 0x182   : > { %v1035_v54 = vpop.f32.mrb[72].mxu0  ;;  %v1283_v55 = vpop.f32.mrb[72].mxu1 }
 0x183   : > { %2024 = vst.msk [vmem:[%s3874_s12 + $0x8c] sm:$0xf] %vm1988_vm4, %v2882_v52  ;;  %2086 = vst.msk [vmem:[%s3874_s12 + $0x184] sm:$0xf] %vm1988_vm4, %v2944_v53  ;;  %v1036_v56 = vadd.f32 %v3856_v0, %v1035_v54  ;;  %v3122_v57 = vpop.f32.mrb[73].mxu0  ;;  %v1284_v58 = vadd.f32 %v3856_v0, %v1283_v55  ;;  %v3246_v59 = vpop.f32.mrb[73].mxu1 }
 0x184   : > { %v1038_v60 = vpop.f32.mrb[74].mxu0  ;;  %v1286_v61 = vpop.f32.mrb[74].mxu1 }
 0x185   : > { %v1414_v62 = vmax.f32 %v1036_v56, 0.0  ;;  %v1039_v63 = vadd.f32 %v3856_v0, %v1038_v60  ;;  %v3123_v2 = vpop.f32.mrb[75].mxu0  ;;  %v1476_v3 = vmax.f32 %v1284_v58, 0.0  ;;  %v1287_v4 = vadd.f32 %v3856_v0, %v1286_v61  ;;  %v3247_v5 = vpop.f32.mrb[75].mxu1 }
 0x187   : > { %v2883_v6 = vpack.c.bf16 %v1414_v62, %v1414_v62  ;;  %v1415_v7 = vmax.f32 %v1039_v63, 0.0  ;;  %v2945_v8 = vpack.c.bf16 %v1476_v3, %v1476_v3  ;;  %v1477_v9 = vmax.f32 %v1287_v4, 0.0 }
 0x189   : > { %2025 = vst.msk [vmem:[%s3874_s12 + $0x90] sm:$0xf] %vm1988_vm4, %v2883_v6  ;;  %v2884_v10 = vpack.c.bf16 %v1415_v7, %v1415_v7  ;;  %2087 = vst.msk [vmem:[%s3874_s12 + $0x188] sm:$0xf] %vm1988_vm4, %v2945_v8  ;;  %v2946_v11 = vpack.c.bf16 %v1477_v9, %v1477_v9 }
 0x18a   : > { %v1043_v1 = vpop.f32.mrb[76].mxu0  ;;  %v1291_v12 = vpop.f32.mrb[76].mxu1 }
 0x18b   : > { %2026 = vst.msk [vmem:[%s3874_s12 + $0x94] sm:$0xf] %vm1988_vm4, %v2884_v10  ;;  %2088 = vst.msk [vmem:[%s3874_s12 + $0x18c] sm:$0xf] %vm1988_vm4, %v2946_v11  ;;  %v1044_v13 = vadd.f32 %v3856_v0, %v1043_v1  ;;  %v3126_v14 = vpop.f32.mrb[77].mxu0  ;;  %v1292_v15 = vadd.f32 %v3856_v0, %v1291_v12  ;;  %v3250_v16 = vpop.f32.mrb[77].mxu1 }
 0x18c   : > { %v1046_v17 = vpop.f32.mrb[78].mxu0  ;;  %v1294_v18 = vpop.f32.mrb[78].mxu1 }
 0x18d   : > { %v1416_v19 = vmax.f32 %v1044_v13, 0.0  ;;  %v1047_v20 = vadd.f32 %v3856_v0, %v1046_v17  ;;  %v3127_v21 = vpop.f32.mrb[79].mxu0  ;;  %v1478_v22 = vmax.f32 %v1292_v15, 0.0  ;;  %v1295_v23 = vadd.f32 %v3856_v0, %v1294_v18  ;;  %v3251_v24 = vpop.f32.mrb[79].mxu1 }
 0x18f   : > { %v2885_v25 = vpack.c.bf16 %v1416_v19, %v1416_v19  ;;  %v1417_v26 = vmax.f32 %v1047_v20, 0.0  ;;  %v2947_v27 = vpack.c.bf16 %v1478_v22, %v1478_v22  ;;  %v1479_v28 = vmax.f32 %v1295_v23, 0.0 }
 0x191   : > { %2027 = vst.msk [vmem:[%s3874_s12 + $0x98] sm:$0xf] %vm1988_vm4, %v2885_v25  ;;  %v2886_v29 = vpack.c.bf16 %v1417_v26, %v1417_v26  ;;  %2089 = vst.msk [vmem:[%s3874_s12 + $0x190] sm:$0xf] %vm1988_vm4, %v2947_v27  ;;  %v2948_v30 = vpack.c.bf16 %v1479_v28, %v1479_v28 }
 0x192   : > { %v1051_v31 = vpop.f32.mrb[80].mxu0  ;;  %v1299_v32 = vpop.f32.mrb[80].mxu1 }
 0x193   : > { %2028 = vst.msk [vmem:[%s3874_s12 + $0x9c] sm:$0xf] %vm1988_vm4, %v2886_v29  ;;  %2090 = vst.msk [vmem:[%s3874_s12 + $0x194] sm:$0xf] %vm1988_vm4, %v2948_v30  ;;  %v1052_v33 = vadd.f32 %v3856_v0, %v1051_v31  ;;  %v3130_v34 = vpop.f32.mrb[81].mxu0  ;;  %v1300_v35 = vadd.f32 %v3856_v0, %v1299_v32  ;;  %v3254_v36 = vpop.f32.mrb[81].mxu1 }
 0x194   : > { %v1054_v37 = vpop.f32.mrb[82].mxu0  ;;  %v1302_v38 = vpop.f32.mrb[82].mxu1 }
 0x195   : > { %v1418_v39 = vmax.f32 %v1052_v33, 0.0  ;;  %v1055_v41 = vadd.f32 %v4133_v40, %v1054_v37  ;;  %v3131_v42 = vpop.f32.mrb[83].mxu0  ;;  %v1480_v43 = vmax.f32 %v1300_v35, 0.0  ;;  %v1303_v44 = vadd.f32 %v4133_v40, %v1302_v38  ;;  %v3255_v45 = vpop.f32.mrb[83].mxu1 }
 0x197   : > { %v2887_v0 = vpack.c.bf16 %v1418_v39, %v1418_v39  ;;  %v1419_v46 = vmax.f32 %v1055_v41, 0.0  ;;  %v2949_v47 = vpack.c.bf16 %v1480_v43, %v1480_v43  ;;  %v1481_v48 = vmax.f32 %v1303_v44, 0.0 }
 0x199   : > { %2029 = vst.msk [vmem:[%s3874_s12 + $0xa0] sm:$0xf] %vm1988_vm4, %v2887_v0  ;;  %v2888_v49 = vpack.c.bf16 %v1419_v46, %v1419_v46  ;;  %2091 = vst.msk [vmem:[%s3874_s12 + $0x198] sm:$0xf] %vm1988_vm4, %v2949_v47  ;;  %v2950_v50 = vpack.c.bf16 %v1481_v48, %v1481_v48 }
 0x19a   : > { %v1059_v51 = vpop.f32.mrb[84].mxu0  ;;  %v1307_v52 = vpop.f32.mrb[84].mxu1 }
 0x19b   : > { %2030 = vst.msk [vmem:[%s3874_s12 + $0xa4] sm:$0xf] %vm1988_vm4, %v2888_v49  ;;  %2092 = vst.msk [vmem:[%s3874_s12 + $0x19c] sm:$0xf] %vm1988_vm4, %v2950_v50  ;;  %v1060_v53 = vadd.f32 %v4133_v40, %v1059_v51  ;;  %v3134_v54 = vpop.f32.mrb[85].mxu0  ;;  %v1308_v55 = vadd.f32 %v4133_v40, %v1307_v52  ;;  %v3258_v56 = vpop.f32.mrb[85].mxu1 }
 0x19c   : > { %v1062_v57 = vpop.f32.mrb[86].mxu0  ;;  %v1310_v58 = vpop.f32.mrb[86].mxu1 }
 0x19d   : > { %v1420_v59 = vmax.f32 %v1060_v53, 0.0  ;;  %v1063_v60 = vadd.f32 %v4133_v40, %v1062_v57  ;;  %v3135_v61 = vpop.f32.mrb[87].mxu0  ;;  %v1482_v62 = vmax.f32 %v1308_v55, 0.0  ;;  %v1311_v63 = vadd.f32 %v4133_v40, %v1310_v58  ;;  %v3259_v2 = vpop.f32.mrb[87].mxu1 }
 0x19f   : > { %v2889_v3 = vpack.c.bf16 %v1420_v59, %v1420_v59  ;;  %v1421_v4 = vmax.f32 %v1063_v60, 0.0  ;;  %v2951_v5 = vpack.c.bf16 %v1482_v62, %v1482_v62  ;;  %v1483_v6 = vmax.f32 %v1311_v63, 0.0 }
 0x1a1   : > { %2031 = vst.msk [vmem:[%s3874_s12 + $0xa8] sm:$0xf] %vm1988_vm4, %v2889_v3  ;;  %v2890_v7 = vpack.c.bf16 %v1421_v4, %v1421_v4  ;;  %2093 = vst.msk [vmem:[%s3874_s12 + $0x1a0] sm:$0xf] %vm1988_vm4, %v2951_v5  ;;  %v2952_v8 = vpack.c.bf16 %v1483_v6, %v1483_v6 }
 0x1a2   : > { %v1067_v9 = vpop.f32.mrb[88].mxu0  ;;  %v1315_v10 = vpop.f32.mrb[88].mxu1 }
 0x1a3   : > { %2032 = vst.msk [vmem:[%s3874_s12 + $0xac] sm:$0xf] %vm1988_vm4, %v2890_v7  ;;  %2094 = vst.msk [vmem:[%s3874_s12 + $0x1a4] sm:$0xf] %vm1988_vm4, %v2952_v8  ;;  %v1068_v11 = vadd.f32 %v4133_v40, %v1067_v9  ;;  %v3138_v1 = vpop.f32.mrb[89].mxu0  ;;  %v1316_v12 = vadd.f32 %v4133_v40, %v1315_v10  ;;  %v3262_v13 = vpop.f32.mrb[89].mxu1 }
 0x1a4   : > { %v1070_v14 = vpop.f32.mrb[90].mxu0  ;;  %v1318_v15 = vpop.f32.mrb[90].mxu1 }
 0x1a5   : > { %v1422_v16 = vmax.f32 %v1068_v11, 0.0  ;;  %v1071_v17 = vadd.f32 %v4133_v40, %v1070_v14  ;;  %v3139_v18 = vpop.f32.mrb[91].mxu0  ;;  %v1484_v19 = vmax.f32 %v1316_v12, 0.0  ;;  %v1319_v20 = vadd.f32 %v4133_v40, %v1318_v15  ;;  %v3263_v21 = vpop.f32.mrb[91].mxu1 }
 0x1a7   : > { %v2891_v22 = vpack.c.bf16 %v1422_v16, %v1422_v16  ;;  %v1423_v23 = vmax.f32 %v1071_v17, 0.0  ;;  %v2953_v24 = vpack.c.bf16 %v1484_v19, %v1484_v19  ;;  %v1485_v25 = vmax.f32 %v1319_v20, 0.0 }
 0x1a9   : > { %2033 = vst.msk [vmem:[%s3874_s12 + $0xb0] sm:$0xf] %vm1988_vm4, %v2891_v22  ;;  %v2892_v26 = vpack.c.bf16 %v1423_v23, %v1423_v23  ;;  %2095 = vst.msk [vmem:[%s3874_s12 + $0x1a8] sm:$0xf] %vm1988_vm4, %v2953_v24  ;;  %v2954_v27 = vpack.c.bf16 %v1485_v25, %v1485_v25 }
 0x1aa   : > { %v1075_v28 = vpop.f32.mrb[92].mxu0  ;;  %v1323_v29 = vpop.f32.mrb[92].mxu1 }
 0x1ab   : > { %2034 = vst.msk [vmem:[%s3874_s12 + $0xb4] sm:$0xf] %vm1988_vm4, %v2892_v26  ;;  %2096 = vst.msk [vmem:[%s3874_s12 + $0x1ac] sm:$0xf] %vm1988_vm4, %v2954_v27  ;;  %v1076_v30 = vadd.f32 %v4133_v40, %v1075_v28  ;;  %v3142_v31 = vpop.f32.mrb[93].mxu0  ;;  %v1324_v32 = vadd.f32 %v4133_v40, %v1323_v29  ;;  %v3266_v33 = vpop.f32.mrb[93].mxu1 }
 0x1ac   : > { %v1078_v34 = vpop.f32.mrb[94].mxu0  ;;  %v1326_v35 = vpop.f32.mrb[94].mxu1 }
 0x1ad   : > { %v1424_v36 = vmax.f32 %v1076_v30, 0.0  ;;  %v1079_v37 = vadd.f32 %v4133_v40, %v1078_v34  ;;  %v3143_v38 = vpop.f32.mrb[95].mxu0  ;;  %v1486_v39 = vmax.f32 %v1324_v32, 0.0  ;;  %v1327_v41 = vadd.f32 %v4133_v40, %v1326_v35  ;;  %v3267_v42 = vpop.f32.mrb[95].mxu1 }
 0x1af   : > { %v2893_v43 = vpack.c.bf16 %v1424_v36, %v1424_v36  ;;  %v1425_v44 = vmax.f32 %v1079_v37, 0.0  ;;  %v2955_v45 = vpack.c.bf16 %v1486_v39, %v1486_v39  ;;  %v1487_v0 = vmax.f32 %v1327_v41, 0.0 }
 0x1b1   : > { %2035 = vst.msk [vmem:[%s3874_s12 + $0xb8] sm:$0xf] %vm1988_vm4, %v2893_v43  ;;  %v2894_v46 = vpack.c.bf16 %v1425_v44, %v1425_v44  ;;  %2097 = vst.msk [vmem:[%s3874_s12 + $0x1b0] sm:$0xf] %vm1988_vm4, %v2955_v45  ;;  %v2956_v47 = vpack.c.bf16 %v1487_v0, %v1487_v0 }
 0x1b2   : > { %v1083_v48 = vpop.f32.mrb[96].mxu0  ;;  %v1331_v49 = vpop.f32.mrb[96].mxu1 }
 0x1b3   : > { %2036 = vst.msk [vmem:[%s3874_s12 + $0xbc] sm:$0xf] %vm1988_vm4, %v2894_v46  ;;  %2098 = vst.msk [vmem:[%s3874_s12 + $0x1b4] sm:$0xf] %vm1988_vm4, %v2956_v47  ;;  %v1084_v50 = vadd.f32 %v4133_v40, %v1083_v48  ;;  %v3146_v51 = vpop.f32.mrb[97].mxu0  ;;  %v1332_v52 = vadd.f32 %v4133_v40, %v1331_v49  ;;  %v3270_v53 = vpop.f32.mrb[97].mxu1 }
 0x1b4   : > { %v1086_v54 = vpop.f32.mrb[98].mxu0  ;;  %v1334_v55 = vpop.f32.mrb[98].mxu1 }
 0x1b5   : > { %v1426_v56 = vmax.f32 %v1084_v50, 0.0  ;;  %v1087_v57 = vadd.f32 %v4133_v40, %v1086_v54  ;;  %v3147_v58 = vpop.f32.mrb[99].mxu0  ;;  %v1488_v59 = vmax.f32 %v1332_v52, 0.0  ;;  %v1335_v60 = vadd.f32 %v4133_v40, %v1334_v55  ;;  %v3271_v61 = vpop.f32.mrb[99].mxu1 }
 0x1b7   : > { %v2895_v62 = vpack.c.bf16 %v1426_v56, %v1426_v56  ;;  %v1427_v63 = vmax.f32 %v1087_v57, 0.0  ;;  %v2957_v2 = vpack.c.bf16 %v1488_v59, %v1488_v59  ;;  %v1489_v3 = vmax.f32 %v1335_v60, 0.0 }
 0x1b9   : > { %2037 = vst.msk [vmem:[%s3874_s12 + $0xc0] sm:$0xf] %vm1988_vm4, %v2895_v62  ;;  %v2896_v4 = vpack.c.bf16 %v1427_v63, %v1427_v63  ;;  %2099 = vst.msk [vmem:[%s3874_s12 + $0x1b8] sm:$0xf] %vm1988_vm4, %v2957_v2  ;;  %v2958_v5 = vpack.c.bf16 %v1489_v3, %v1489_v3 }
 0x1ba   : > { %v1091_v6 = vpop.f32.mrb[100].mxu0  ;;  %v1339_v7 = vpop.f32.mrb[100].mxu1 }
 0x1bb   : > { %2038 = vst.msk [vmem:[%s3874_s12 + $0xc4] sm:$0xf] %vm1988_vm4, %v2896_v4  ;;  %2100 = vst.msk [vmem:[%s3874_s12 + $0x1bc] sm:$0xf] %vm1988_vm4, %v2958_v5  ;;  %v1092_v8 = vadd.f32 %v4133_v40, %v1091_v6  ;;  %v3150_v9 = vpop.f32.mrb[101].mxu0  ;;  %v1340_v10 = vadd.f32 %v4133_v40, %v1339_v7  ;;  %v3274_v11 = vpop.f32.mrb[101].mxu1 }
 0x1bc   : > { %v1094_v1 = vpop.f32.mrb[102].mxu0  ;;  %v1342_v12 = vpop.f32.mrb[102].mxu1 }
 0x1bd   : > { %v1428_v13 = vmax.f32 %v1092_v8, 0.0  ;;  %v1095_v14 = vadd.f32 %v4133_v40, %v1094_v1  ;;  %v3151_v15 = vpop.f32.mrb[103].mxu0  ;;  %v1490_v16 = vmax.f32 %v1340_v10, 0.0  ;;  %v1343_v17 = vadd.f32 %v4133_v40, %v1342_v12  ;;  %v3275_v18 = vpop.f32.mrb[103].mxu1 }
 0x1bf   : > { %v2897_v19 = vpack.c.bf16 %v1428_v13, %v1428_v13  ;;  %v1429_v20 = vmax.f32 %v1095_v14, 0.0  ;;  %v2959_v21 = vpack.c.bf16 %v1490_v16, %v1490_v16  ;;  %v1491_v22 = vmax.f32 %v1343_v17, 0.0 }
 0x1c1   : > { %2039 = vst.msk [vmem:[%s3874_s12 + $0xc8] sm:$0xf] %vm1988_vm4, %v2897_v19  ;;  %v2898_v23 = vpack.c.bf16 %v1429_v20, %v1429_v20  ;;  %2101 = vst.msk [vmem:[%s3874_s12 + $0x1c0] sm:$0xf] %vm1988_vm4, %v2959_v21  ;;  %v2960_v24 = vpack.c.bf16 %v1491_v22, %v1491_v22 }
 0x1c2   : > { %v1099_v25 = vpop.f32.mrb[104].mxu0  ;;  %v1347_v26 = vpop.f32.mrb[104].mxu1 }
 0x1c3   : > { %2040 = vst.msk [vmem:[%s3874_s12 + $0xcc] sm:$0xf] %vm1988_vm4, %v2898_v23  ;;  %2102 = vst.msk [vmem:[%s3874_s12 + $0x1c4] sm:$0xf] %vm1988_vm4, %v2960_v24  ;;  %v1100_v27 = vadd.f32 %v4133_v40, %v1099_v25  ;;  %v3154_v28 = vpop.f32.mrb[105].mxu0  ;;  %v1348_v29 = vadd.f32 %v4133_v40, %v1347_v26  ;;  %v3278_v30 = vpop.f32.mrb[105].mxu1 }
 0x1c4   : > { %v1102_v31 = vpop.f32.mrb[106].mxu0  ;;  %v1350_v32 = vpop.f32.mrb[106].mxu1 }
 0x1c5   : > { %v1430_v33 = vmax.f32 %v1100_v27, 0.0  ;;  %v1103_v34 = vadd.f32 %v4133_v40, %v1102_v31  ;;  %v3155_v35 = vpop.f32.mrb[107].mxu0  ;;  %v1492_v36 = vmax.f32 %v1348_v29, 0.0  ;;  %v1351_v37 = vadd.f32 %v4133_v40, %v1350_v32  ;;  %v3279_v38 = vpop.f32.mrb[107].mxu1 }
 0x1c7   : > { %v2899_v39 = vpack.c.bf16 %v1430_v33, %v1430_v33  ;;  %v1431_v41 = vmax.f32 %v1103_v34, 0.0  ;;  %v2961_v42 = vpack.c.bf16 %v1492_v36, %v1492_v36  ;;  %v1493_v43 = vmax.f32 %v1351_v37, 0.0 }
 0x1c9   : > { %2041 = vst.msk [vmem:[%s3874_s12 + $0xd0] sm:$0xf] %vm1988_vm4, %v2899_v39  ;;  %v2900_v44 = vpack.c.bf16 %v1431_v41, %v1431_v41  ;;  %2103 = vst.msk [vmem:[%s3874_s12 + $0x1c8] sm:$0xf] %vm1988_vm4, %v2961_v42  ;;  %v2962_v45 = vpack.c.bf16 %v1493_v43, %v1493_v43 }
 0x1ca   : > { %v1107_v0 = vpop.f32.mrb[108].mxu0  ;;  %v1355_v46 = vpop.f32.mrb[108].mxu1 }
 0x1cb   : > { %2042 = vst.msk [vmem:[%s3874_s12 + $0xd4] sm:$0xf] %vm1988_vm4, %v2900_v44  ;;  %2104 = vst.msk [vmem:[%s3874_s12 + $0x1cc] sm:$0xf] %vm1988_vm4, %v2962_v45  ;;  %v1108_v47 = vadd.f32 %v4133_v40, %v1107_v0  ;;  %v3158_v48 = vpop.f32.mrb[109].mxu0  ;;  %v1356_v49 = vadd.f32 %v4133_v40, %v1355_v46  ;;  %v3282_v50 = vpop.f32.mrb[109].mxu1 }
 0x1cc   : > { %v1110_v51 = vpop.f32.mrb[110].mxu0  ;;  %v1358_v52 = vpop.f32.mrb[110].mxu1 }
 0x1cd   : > { %v1432_v53 = vmax.f32 %v1108_v47, 0.0  ;;  %v1111_v54 = vadd.f32 %v4133_v40, %v1110_v51  ;;  %v3159_v55 = vpop.f32.mrb[111].mxu0  ;;  %v1494_v56 = vmax.f32 %v1356_v49, 0.0  ;;  %v1359_v57 = vadd.f32 %v4133_v40, %v1358_v52  ;;  %v3283_v58 = vpop.f32.mrb[111].mxu1 }
 0x1cf   : > { %v2901_v59 = vpack.c.bf16 %v1432_v53, %v1432_v53  ;;  %v1433_v60 = vmax.f32 %v1111_v54, 0.0  ;;  %v2963_v61 = vpack.c.bf16 %v1494_v56, %v1494_v56  ;;  %v1495_v62 = vmax.f32 %v1359_v57, 0.0 }
 0x1d1   : > { %2043 = vst.msk [vmem:[%s3874_s12 + $0xd8] sm:$0xf] %vm1988_vm4, %v2901_v59  ;;  %v2902_v63 = vpack.c.bf16 %v1433_v60, %v1433_v60  ;;  %2105 = vst.msk [vmem:[%s3874_s12 + $0x1d0] sm:$0xf] %vm1988_vm4, %v2963_v61  ;;  %v2964_v2 = vpack.c.bf16 %v1495_v62, %v1495_v62 }
 0x1d2   : > { %v1115_v3 = vpop.f32.mrb[112].mxu0  ;;  %v1363_v4 = vpop.f32.mrb[112].mxu1 }
 0x1d3   : > { %2044 = vst.msk [vmem:[%s3874_s12 + $0xdc] sm:$0xf] %vm1988_vm4, %v2902_v63  ;;  %2106 = vst.msk [vmem:[%s3874_s12 + $0x1d4] sm:$0xf] %vm1988_vm4, %v2964_v2  ;;  %v1116_v5 = vadd.f32 %v4133_v40, %v1115_v3  ;;  %v3162_v6 = vpop.f32.mrb[113].mxu0  ;;  %v1364_v7 = vadd.f32 %v4133_v40, %v1363_v4  ;;  %v3286_v8 = vpop.f32.mrb[113].mxu1 }
 0x1d4   : > { %v1118_v9 = vpop.f32.mrb[114].mxu0  ;;  %v1366_v10 = vpop.f32.mrb[114].mxu1 }
 0x1d5   : > { %v1434_v11 = vmax.f32 %v1116_v5, 0.0  ;;  %v1119_v1 = vadd.f32 %v4133_v40, %v1118_v9  ;;  %v3163_v12 = vpop.f32.mrb[115].mxu0  ;;  %v1496_v13 = vmax.f32 %v1364_v7, 0.0  ;;  %v1367_v14 = vadd.f32 %v4133_v40, %v1366_v10  ;;  %v3287_v15 = vpop.f32.mrb[115].mxu1 }
 0x1d7   : > { %v2903_v16 = vpack.c.bf16 %v1434_v11, %v1434_v11  ;;  %v1435_v17 = vmax.f32 %v1119_v1, 0.0  ;;  %v2965_v18 = vpack.c.bf16 %v1496_v13, %v1496_v13  ;;  %v1497_v19 = vmax.f32 %v1367_v14, 0.0 }
 0x1d9   : > { %2045 = vst.msk [vmem:[%s3874_s12 + $0xe0] sm:$0xf] %vm1988_vm4, %v2903_v16  ;;  %v2904_v20 = vpack.c.bf16 %v1435_v17, %v1435_v17  ;;  %2107 = vst.msk [vmem:[%s3874_s12 + $0x1d8] sm:$0xf] %vm1988_vm4, %v2965_v18  ;;  %v2966_v21 = vpack.c.bf16 %v1497_v19, %v1497_v19 }
 0x1da   : > { %v1123_v22 = vpop.f32.mrb[116].mxu0  ;;  %v1371_v23 = vpop.f32.mrb[116].mxu1 }
 0x1db   : > { %2046 = vst.msk [vmem:[%s3874_s12 + $0xe4] sm:$0xf] %vm1988_vm4, %v2904_v20  ;;  %2108 = vst.msk [vmem:[%s3874_s12 + $0x1dc] sm:$0xf] %vm1988_vm4, %v2966_v21  ;;  %v1124_v24 = vadd.f32 %v4133_v40, %v1123_v22  ;;  %v3166_v25 = vpop.f32.mrb[117].mxu0  ;;  %v1372_v26 = vadd.f32 %v4133_v40, %v1371_v23  ;;  %v3290_v27 = vpop.f32.mrb[117].mxu1 }
 0x1dc   : > { %v1126_v28 = vpop.f32.mrb[118].mxu0  ;;  %v1374_v29 = vpop.f32.mrb[118].mxu1 }
 0x1dd   : > { %v1436_v30 = vmax.f32 %v1124_v24, 0.0  ;;  %v1127_v31 = vadd.f32 %v4133_v40, %v1126_v28  ;;  %v3167_v32 = vpop.f32.mrb[119].mxu0  ;;  %v1498_v33 = vmax.f32 %v1372_v26, 0.0  ;;  %v1375_v34 = vadd.f32 %v4133_v40, %v1374_v29  ;;  %v3291_v35 = vpop.f32.mrb[119].mxu1 }
 0x1df   : > { %v2905_v36 = vpack.c.bf16 %v1436_v30, %v1436_v30  ;;  %v1437_v37 = vmax.f32 %v1127_v31, 0.0  ;;  %v2967_v38 = vpack.c.bf16 %v1498_v33, %v1498_v33  ;;  %v1499_v39 = vmax.f32 %v1375_v34, 0.0 }
 0x1e1   : > { %2047 = vst.msk [vmem:[%s3874_s12 + $0xe8] sm:$0xf] %vm1988_vm4, %v2905_v36  ;;  %v2906_v41 = vpack.c.bf16 %v1437_v37, %v1437_v37  ;;  %2109 = vst.msk [vmem:[%s3874_s12 + $0x1e0] sm:$0xf] %vm1988_vm4, %v2967_v38  ;;  %v2968_v42 = vpack.c.bf16 %v1499_v39, %v1499_v39 }
 0x1e2   : > { %v1131_v43 = vpop.f32.mrb[120].mxu0 }
 0x1e3   : > { %2048 = vst.msk [vmem:[%s3874_s12 + $0xec] sm:$0xf] %vm1988_vm4, %v2906_v41  ;;  %2110 = vst.msk [vmem:[%s3874_s12 + $0x1e4] sm:$0xf] %vm1988_vm4, %v2968_v42  ;;  %v1132_v44 = vadd.f32 %v4133_v40, %v1131_v43  ;;  %v3170_v45 = vpop.f32.mrb[121].mxu0 }
 0x1e4   : > { %v1134_v0 = vpop.f32.mrb[122].mxu0 }
 0x1e5   : > { %v1438_v46 = vmax.f32 %v1132_v44, 0.0  ;;  %v1135_v47 = vadd.f32 %v4133_v40, %v1134_v0  ;;  %v3171_v48 = vpop.f32.mrb[123].mxu0  ;;  %2117 = sbr.rel (!%p3597_p4) target bundleno = 583 (0x247), region = 36 }
 0x1e7   : > { %v2907_v49 = vpack.c.bf16 %v1438_v46, %v1438_v46  ;;  %v1439_v50 = vmax.f32 %v1135_v47, 0.0 }
 0x1e9   : > { %2049 = vst.msk [vmem:[%s3874_s12 + $0xf0] sm:$0xf] %vm1988_vm4, %v2907_v49  ;;  %v2908_v51 = vpack.c.bf16 %v1439_v50, %v1439_v50 }
 0x1eb   : > { %2050 = vst.msk [vmem:[%s3874_s12 + $0xf4] sm:$0xf] %vm1988_vm4, %v2908_v51 }
 0x1ec   : > { %s4470_s22 = smov (!%p2120_p8, %s2119_s22), 122 }
 0x1ed   : > { %s2832_s28 = sshll.u32 %s4470_s22, 6 }
 0x1ee   : > { %p2835_p9 = scmp.eq.s32.totalorder %s2832_s28, 0 }
 0x1ef   : > { %s4272_s29 = sshrl.u32 (!%p2835_p9), %s4470_s22, 6 }
 0x1f0   : > { %2128 = sbr.rel (%p2835_p9) target bundleno = 583 (0x247), region = 40  ;;  %p2836_p10 = scmp.le.s32.totalorder (!%p2835_p9), %s4272_s29, 0 }
 0x1f7   : > { %2533 = sbr.rel (%p2836_p10) target bundleno = 562 (0x232), region = 112  ;;  %s4463_s15 = smov (!%p2836_p10), %s4266_s27 }
 0x1f8   : > { %s4464_s20 = smov (!%p2836_p10), %s3874_s12  ;;  %s4281_s25 = smov (!%p2836_p10), 0  }
 0x1f9   : > { %s4283_s30 = smov (!%p2836_p10), 0  }
 0x1fe LB: >> { %v2144_v40 = vld [vmem:[%s3523_s20] sm:$0xf]  ;;  %v2146_v52 = vld [vmem:[%s3523_s20 + $0x4] sm:$0xf]  ;;  %v2148_v53 = vld [vmem:[%s3523_s20 + $0x8] sm:$0xf]  ;;  %s3531_s30 = sphi %s4283_s30, %s2138_s30   ;;  %s3527_s25 = sphi %s4281_s25, %s4465_s25   ;;  %s3523_s20 = sphi %s4464_s20, %s2277_s20   ;;  %s3519_s15 = sphi %s4463_s15, %s2278_s15  }
 0x1ff   : >> { %2145 = vst [vmem:[%s3519_s15] sm:$0xf] %v2144_v40  ;;  %2147 = vst [vmem:[%s3519_s15 + $0x4] sm:$0xf] %v2146_v52  ;;  %v2150_v54 = vld [vmem:[%s3523_s20 + $0xc] sm:$0xf]  ;;  %s2272_s4 = sadd.s32 1, %s3527_s25 }
 0x200   : >> { %2149 = vst [vmem:[%s3519_s15 + $0x8] sm:$0xf] %v2148_v53  ;;  %v2152_v55 = vld [vmem:[%s3523_s20 + $0x10] sm:$0xf]  ;;  %v2154_v56 = vld [vmem:[%s3523_s20 + $0x14] sm:$0xf]  ;;  %p2273_p11 = scmp.ge.s32.totalorder %s2272_s4, %s4272_s29 }
 0x201   : >> { %2151 = vst [vmem:[%s3519_s15 + $0xc] sm:$0xf] %v2150_v54  ;;  %2153 = vst [vmem:[%s3519_s15 + $0x10] sm:$0xf] %v2152_v55  ;;  %v2156_v57 = vld [vmem:[%s3523_s20 + $0x18] sm:$0xf] }
 0x202   : >> { %2155 = vst [vmem:[%s3519_s15 + $0x14] sm:$0xf] %v2154_v56  ;;  %v2158_v58 = vld [vmem:[%s3523_s20 + $0x1c] sm:$0xf]  ;;  %v2160_v59 = vld [vmem:[%s3523_s20 + $0x20] sm:$0xf] }
 0x203   : >> { %2157 = vst [vmem:[%s3519_s15 + $0x18] sm:$0xf] %v2156_v57  ;;  %2159 = vst [vmem:[%s3519_s15 + $0x1c] sm:$0xf] %v2158_v58  ;;  %v2162_v60 = vld [vmem:[%s3523_s20 + $0x24] sm:$0xf] }
 0x204   : >> { %2161 = vst [vmem:[%s3519_s15 + $0x20] sm:$0xf] %v2160_v59  ;;  %v2164_v61 = vld [vmem:[%s3523_s20 + $0x28] sm:$0xf]  ;;  %v2166_v62 = vld [vmem:[%s3523_s20 + $0x2c] sm:$0xf] }
 0x205   : >> { %2163 = vst [vmem:[%s3519_s15 + $0x24] sm:$0xf] %v2162_v60  ;;  %2165 = vst [vmem:[%s3519_s15 + $0x28] sm:$0xf] %v2164_v61  ;;  %v2168_v63 = vld [vmem:[%s3523_s20 + $0x30] sm:$0xf] }
 0x206   : >> { %2167 = vst [vmem:[%s3519_s15 + $0x2c] sm:$0xf] %v2166_v62  ;;  %v2170_v2 = vld [vmem:[%s3523_s20 + $0x34] sm:$0xf]  ;;  %v2172_v3 = vld [vmem:[%s3523_s20 + $0x38] sm:$0xf] }
 0x207   : >> { %2169 = vst [vmem:[%s3519_s15 + $0x30] sm:$0xf] %v2168_v63  ;;  %2171 = vst [vmem:[%s3519_s15 + $0x34] sm:$0xf] %v2170_v2  ;;  %v2174_v4 = vld [vmem:[%s3523_s20 + $0x3c] sm:$0xf] }
 0x208   : >> { %2173 = vst [vmem:[%s3519_s15 + $0x38] sm:$0xf] %v2172_v3  ;;  %v2176_v5 = vld [vmem:[%s3523_s20 + $0x40] sm:$0xf]  ;;  %v2178_v6 = vld [vmem:[%s3523_s20 + $0x44] sm:$0xf] }
 0x209   : >> { %2175 = vst [vmem:[%s3519_s15 + $0x3c] sm:$0xf] %v2174_v4  ;;  %2177 = vst [vmem:[%s3519_s15 + $0x40] sm:$0xf] %v2176_v5  ;;  %v2180_v7 = vld [vmem:[%s3523_s20 + $0x48] sm:$0xf] }
 0x20a   : >> { %2179 = vst [vmem:[%s3519_s15 + $0x44] sm:$0xf] %v2178_v6  ;;  %v2182_v8 = vld [vmem:[%s3523_s20 + $0x4c] sm:$0xf]  ;;  %v2184_v9 = vld [vmem:[%s3523_s20 + $0x50] sm:$0xf] }
 0x20b   : >> { %2181 = vst [vmem:[%s3519_s15 + $0x48] sm:$0xf] %v2180_v7  ;;  %2183 = vst [vmem:[%s3519_s15 + $0x4c] sm:$0xf] %v2182_v8  ;;  %v2186_v10 = vld [vmem:[%s3523_s20 + $0x54] sm:$0xf] }
 0x20c   : >> { %2185 = vst [vmem:[%s3519_s15 + $0x50] sm:$0xf] %v2184_v9  ;;  %v2188_v11 = vld [vmem:[%s3523_s20 + $0x58] sm:$0xf]  ;;  %v2190_v1 = vld [vmem:[%s3523_s20 + $0x5c] sm:$0xf] }
 0x20d   : >> { %2187 = vst [vmem:[%s3519_s15 + $0x54] sm:$0xf] %v2186_v10  ;;  %2189 = vst [vmem:[%s3519_s15 + $0x58] sm:$0xf] %v2188_v11  ;;  %v2192_v12 = vld [vmem:[%s3523_s20 + $0x60] sm:$0xf] }
 0x20e   : >> { %2191 = vst [vmem:[%s3519_s15 + $0x5c] sm:$0xf] %v2190_v1  ;;  %v2194_v13 = vld [vmem:[%s3523_s20 + $0x64] sm:$0xf]  ;;  %v2196_v14 = vld [vmem:[%s3523_s20 + $0x68] sm:$0xf] }
 0x20f   : >> { %2193 = vst [vmem:[%s3519_s15 + $0x60] sm:$0xf] %v2192_v12  ;;  %2195 = vst [vmem:[%s3519_s15 + $0x64] sm:$0xf] %v2194_v13  ;;  %v2198_v15 = vld [vmem:[%s3523_s20 + $0x6c] sm:$0xf] }
 0x210   : >> { %2197 = vst [vmem:[%s3519_s15 + $0x68] sm:$0xf] %v2196_v14  ;;  %v2200_v16 = vld [vmem:[%s3523_s20 + $0x70] sm:$0xf]  ;;  %v2202_v17 = vld [vmem:[%s3523_s20 + $0x74] sm:$0xf] }
 0x211   : >> { %2199 = vst [vmem:[%s3519_s15 + $0x6c] sm:$0xf] %v2198_v15  ;;  %2201 = vst [vmem:[%s3519_s15 + $0x70] sm:$0xf] %v2200_v16  ;;  %v2204_v18 = vld [vmem:[%s3523_s20 + $0x78] sm:$0xf] }
 0x212   : >> { %2203 = vst [vmem:[%s3519_s15 + $0x74] sm:$0xf] %v2202_v17  ;;  %v2206_v19 = vld [vmem:[%s3523_s20 + $0x7c] sm:$0xf]  ;;  %v2208_v20 = vld [vmem:[%s3523_s20 + $0x80] sm:$0xf] }
 0x213   : >> { %2205 = vst [vmem:[%s3519_s15 + $0x78] sm:$0xf] %v2204_v18  ;;  %2207 = vst [vmem:[%s3519_s15 + $0x7c] sm:$0xf] %v2206_v19  ;;  %v2210_v21 = vld [vmem:[%s3523_s20 + $0x84] sm:$0xf] }
 0x214   : >> { %2209 = vst [vmem:[%s3519_s15 + $0x80] sm:$0xf] %v2208_v20  ;;  %v2212_v22 = vld [vmem:[%s3523_s20 + $0x88] sm:$0xf]  ;;  %v2214_v23 = vld [vmem:[%s3523_s20 + $0x8c] sm:$0xf] }
 0x215   : >> { %2211 = vst [vmem:[%s3519_s15 + $0x84] sm:$0xf] %v2210_v21  ;;  %2213 = vst [vmem:[%s3519_s15 + $0x88] sm:$0xf] %v2212_v22  ;;  %v2216_v24 = vld [vmem:[%s3523_s20 + $0x90] sm:$0xf] }
 0x216   : >> { %2215 = vst [vmem:[%s3519_s15 + $0x8c] sm:$0xf] %v2214_v23  ;;  %v2218_v25 = vld [vmem:[%s3523_s20 + $0x94] sm:$0xf]  ;;  %v2220_v26 = vld [vmem:[%s3523_s20 + $0x98] sm:$0xf] }
 0x217   : >> { %2217 = vst [vmem:[%s3519_s15 + $0x90] sm:$0xf] %v2216_v24  ;;  %2219 = vst [vmem:[%s3519_s15 + $0x94] sm:$0xf] %v2218_v25  ;;  %v2222_v27 = vld [vmem:[%s3523_s20 + $0x9c] sm:$0xf] }
 0x218   : >> { %2221 = vst [vmem:[%s3519_s15 + $0x98] sm:$0xf] %v2220_v26  ;;  %v2224_v28 = vld [vmem:[%s3523_s20 + $0xa0] sm:$0xf]  ;;  %v2226_v29 = vld [vmem:[%s3523_s20 + $0xa4] sm:$0xf] }
 0x219   : >> { %2223 = vst [vmem:[%s3519_s15 + $0x9c] sm:$0xf] %v2222_v27  ;;  %2225 = vst [vmem:[%s3519_s15 + $0xa0] sm:$0xf] %v2224_v28  ;;  %v2228_v30 = vld [vmem:[%s3523_s20 + $0xa8] sm:$0xf] }
 0x21a   : >> { %2227 = vst [vmem:[%s3519_s15 + $0xa4] sm:$0xf] %v2226_v29  ;;  %v2230_v31 = vld [vmem:[%s3523_s20 + $0xac] sm:$0xf]  ;;  %v2232_v32 = vld [vmem:[%s3523_s20 + $0xb0] sm:$0xf] }
 0x21b   : >> { %2229 = vst [vmem:[%s3519_s15 + $0xa8] sm:$0xf] %v2228_v30  ;;  %2231 = vst [vmem:[%s3519_s15 + $0xac] sm:$0xf] %v2230_v31  ;;  %v2234_v33 = vld [vmem:[%s3523_s20 + $0xb4] sm:$0xf] }
 0x21c   : >> { %2233 = vst [vmem:[%s3519_s15 + $0xb0] sm:$0xf] %v2232_v32  ;;  %v2236_v34 = vld [vmem:[%s3523_s20 + $0xb8] sm:$0xf]  ;;  %v2238_v35 = vld [vmem:[%s3523_s20 + $0xbc] sm:$0xf] }
 0x21d   : >> { %2235 = vst [vmem:[%s3519_s15 + $0xb4] sm:$0xf] %v2234_v33  ;;  %2237 = vst [vmem:[%s3519_s15 + $0xb8] sm:$0xf] %v2236_v34  ;;  %v2240_v36 = vld [vmem:[%s3523_s20 + $0xc0] sm:$0xf] }
 0x21e   : >> { %2239 = vst [vmem:[%s3519_s15 + $0xbc] sm:$0xf] %v2238_v35  ;;  %v2242_v37 = vld [vmem:[%s3523_s20 + $0xc4] sm:$0xf]  ;;  %v2244_v38 = vld [vmem:[%s3523_s20 + $0xc8] sm:$0xf] }
 0x21f   : >> { %2241 = vst [vmem:[%s3519_s15 + $0xc0] sm:$0xf] %v2240_v36  ;;  %2243 = vst [vmem:[%s3519_s15 + $0xc4] sm:$0xf] %v2242_v37  ;;  %v2246_v39 = vld [vmem:[%s3523_s20 + $0xcc] sm:$0xf] }
 0x220   : >> { %2245 = vst [vmem:[%s3519_s15 + $0xc8] sm:$0xf] %v2244_v38  ;;  %v2248_v41 = vld [vmem:[%s3523_s20 + $0xd0] sm:$0xf]  ;;  %v2250_v42 = vld [vmem:[%s3523_s20 + $0xd4] sm:$0xf] }
 0x221   : >> { %2247 = vst [vmem:[%s3519_s15 + $0xcc] sm:$0xf] %v2246_v39  ;;  %2249 = vst [vmem:[%s3519_s15 + $0xd0] sm:$0xf] %v2248_v41  ;;  %v2252_v43 = vld [vmem:[%s3523_s20 + $0xd8] sm:$0xf] }
 0x222   : >> { %2251 = vst [vmem:[%s3519_s15 + $0xd4] sm:$0xf] %v2250_v42  ;;  %v2254_v44 = vld [vmem:[%s3523_s20 + $0xdc] sm:$0xf]  ;;  %v2256_v45 = vld [vmem:[%s3523_s20 + $0xe0] sm:$0xf] }
 0x223   : >> { %2253 = vst [vmem:[%s3519_s15 + $0xd8] sm:$0xf] %v2252_v43  ;;  %2255 = vst [vmem:[%s3519_s15 + $0xdc] sm:$0xf] %v2254_v44  ;;  %v2258_v0 = vld [vmem:[%s3523_s20 + $0xe4] sm:$0xf] }
 0x224   : >> { %2257 = vst [vmem:[%s3519_s15 + $0xe0] sm:$0xf] %v2256_v45  ;;  %v2260_v46 = vld [vmem:[%s3523_s20 + $0xe8] sm:$0xf]  ;;  %v2262_v47 = vld [vmem:[%s3523_s20 + $0xec] sm:$0xf] }
 0x225   : >> { %2259 = vst [vmem:[%s3519_s15 + $0xe4] sm:$0xf] %v2258_v0  ;;  %2261 = vst [vmem:[%s3519_s15 + $0xe8] sm:$0xf] %v2260_v46  ;;  %v2264_v48 = vld [vmem:[%s3523_s20 + $0xf0] sm:$0xf] }
 0x226   : >> { %2263 = vst [vmem:[%s3519_s15 + $0xec] sm:$0xf] %v2262_v47  ;;  %v2266_v49 = vld [vmem:[%s3523_s20 + $0xf4] sm:$0xf]  ;;  %v2268_v50 = vld [vmem:[%s3523_s20 + $0xf8] sm:$0xf] }
 0x227   : >> { %2265 = vst [vmem:[%s3519_s15 + $0xf0] sm:$0xf] %v2264_v48  ;;  %2267 = vst [vmem:[%s3519_s15 + $0xf4] sm:$0xf] %v2266_v49  ;;  %v2270_v51 = vld [vmem:[%s3523_s20 + $0xfc] sm:$0xf] }
 0x228   : >> { %2269 = vst [vmem:[%s3519_s15 + $0xf8] sm:$0xf] %v2268_v50  ;;  %2271 = vst [vmem:[%s3519_s15 + $0xfc] sm:$0xf] %v2270_v51  ;;  %s4472_s4 = smov (%p2273_p11, %s2272_s4), 0  ;;  %s2138_s30 = sadd.s32 1, %s3531_s30  }
 0x229   : >> { %s2837_s5 = sshll.u32 %s4472_s4, 8  ;;  %p2137_p12 = scmp.ge.s32.totalorder %s2138_s30, %s4272_s29 }
 0x22a   : >> { %s2277_s20 = scalar_lea.vmem %s3874_s12, %s2837_s5 [#allocation2]   ;;  %s2278_s15 = scalar_lea.vmem %s4266_s27, %s2837_s5  }
 0x22b   : >> { %s4465_s25 = smov %s4472_s4  ;;  %2140 = sbr.rel (!%p2137_p12) target bundleno = 510 (0x1fe), region = 118 }
 0x232 PF: > { %s4440_s6 = sand.u32 63, %s4470_s22   ;;  %s2970_s7 = sshll.u32 %s4272_s29, 8 }
 0x233   : > { %s2283_s8 = scalar_lea.vmem %s3874_s12, %s2970_s7 [#allocation2]   ;;  %s2285_s9 = scalar_lea.vmem %s4266_s27, %s2970_s7  }
 0x234   : > { %p2842_p13 = scmp.le.s32.totalorder %s4440_s6, 0 }
 0x235   : > { %s3533_s10 = smov (!%p2842_p13), %s2285_s9   ;;  %s3537_s11 = smov (!%p2842_p13), %s2283_s8  }
 0x236   : > { %2547 = sbr.rel (%p2842_p13) target bundleno = 583 (0x247), region = 123  ;;  %s3541_s14 = smov (!%p2842_p13), 0  }
 0x237   : > { %s3545_s17 = smov (!%p2842_p13), 0  }
 0x23d LB: >> { %v2295_v40 = vld [vmem:[%s3539_s11] sm:$0xf]  ;;  %s2297_s18 = sadd.s32 1, %s3543_s14  ;;  %s2289_s17 = sadd.s32 1, %s3547_s17   ;;  %s3547_s17 = sphi %s3545_s17, %s2289_s17   ;;  %s3543_s14 = sphi %s3541_s14, %s3542_s14   ;;  %s3539_s11 = sphi %s3537_s11, %s2302_s11   ;;  %s3535_s10 = sphi %s3533_s10, %s2303_s10  }
 0x23e   : >> { %2296 = vst [vmem:[%s3535_s10] sm:$0xf] %v2295_v40  ;;  %p2298_p0 = scmp.ge.s32.totalorder %s2297_s18, %s4440_s6  ;;  %p2288_p1 = scmp.ge.s32.totalorder %s2289_s17, %s4440_s6 }
 0x240   : >> { %s4474_s18 = smov (%p2298_p0, %s2297_s18), 0  ;;  %2291 = sbr.rel (!%p2288_p1) target bundleno = 573 (0x23d), region = 129 }
 0x241   : >> { %s2843_s12 = sshll.u32 %s4474_s18, 2  ;;  %s3542_s14 = smov %s4474_s18  }
 0x242   : >> { %s2302_s11 = scalar_lea.vmem %s2283_s8, %s2843_s12 [#allocation2]   ;;  %s2303_s10 = scalar_lea.vmem %s2285_s9, %s2843_s12  }
 0x247 PF: > { %p10_p2 = scmp.ge.s32.totalorder %s3587_s16, 8   ;;  %s4466_s12 = smov %s3511_s13 }
 0x248   : > { %s4467_s13 = smov %s3595_s19  ;;  %s4468_s14 = smov %s3587_s16 }
 0x249   :  { %12 = sbr.rel (!%p10_p2) target bundleno = 2 (0x2), region = 140 }

// kernel: convnet_forward.5
= control target key start
LH: loop header
LB: loop body
LE: loop exit
PB: predicated region body
PF: predicated region fallthrough
CT: control target
= control target key end

     0   :  { %s4191_s12 = smov 0   ;;  %s4193_s13 = smov 0   ;;  %s5281_s0 = inlined_call_operand.vmem [shape: bf16[1352,288], index: 0, kind: input, shape index: {}]   ;;  %s5282_s1 = inlined_call_operand.vmem [shape: bf16[288,48], index: 1, kind: input, shape index: {}]   ;;  %s5283_s2 = inlined_call_operand.vmem [shape: f32[1,48], index: 2, kind: input, shape index: {}]   ;;  %s5284_s3 = inlined_call_operand.vmem [shape: bf16[1352,48], index: 3, kind: output, shape index: {}]  }
   0x1   :  { %s4195_s14 = smov 0  }
   0x2 LB: > { %s4204_s15 = sadd.s32 4294967295, %s4134_s14   ;;  %s4206_s16 = sadd.s32 1, %s4134_s14   ;;  %s4134_s14 = sphi %s4195_s14, %s5291_s14   ;;  %s4130_s13 = sphi %s4193_s13, %s5290_s13   ;;  %s4126_s12 = sphi %s4191_s12, %s5289_s12  }
   0x3   : > { %s85_s17 = ssub.s32 %s4134_s14, %s4206_s16  ;;  %s88_s18 = sadd.s32 1, %s4130_s13 }
   0x4   : > { %p86_p0 = scmp.eq.s32.totalorder %s85_s17, 0  ;;  %p98_p1 = scmp.ne.s32.totalorder %s4130_s13, %s4126_s12 }
   0x5   : > { %p99_p2 = scmp.eq.s32.totalorder %s4204_s15, 1  ;;  %p3025_p3 = scmp.ge.s32.totalorder %s4134_s14, 1 }
   0x6   : > { %s4214_s19 = scalar_select %p86_p0, %s4130_s13, %s88_s18  }
   0x7   : > { %p4216_p4 = por %p99_p2, %p98_p1  ;;  %p149_p5 = scmp.lt.s32.totalorder %s4134_s14, 3 }
   0x9   : > { %p150_p6 = pnand %p3025_p3, %p149_p5 }
   0xa   : > { %v3890_v0 = vld [vmem:[%s5282_s1] sm:$0xff] (!%p150_p6)   ;;  %v4168_v1 = vmov (!%p150_p6), 0   ;;  %v3891_v2 = vld [vmem:[%s5282_s1 + $0x8] sm:$0xff] (!%p150_p6)   ;;  %v4169_v3 = vmov (!%p150_p6), 0.0   ;;  %vm4170_vm0 = vmmov (!%p150_p6), 0   ;;  %s4232_s25 = smul.u32 (!%p150_p6), 85, %s4204_s15 }
   0xb   : > { %153 = sbr.rel (%p150_p6) target bundleno = 723 (0x2d3), region = 32  ;;  %1292 = vmatprep.subr.bf16.mxu1 (!%p150_p6), %v4168_v1  ;;  %3451 = vmatprep.subr.bf16.mxu0 (!%p150_p6), %v4169_v3  ;;  %v3892_v4 = vld [vmem:[%s5282_s1 + $0x10] sm:$0xff] (!%p150_p6)   ;;  %v3893_v5 = vld [vmem:[%s5282_s1 + $0x18] sm:$0xff] (!%p150_p6)   ;;  %v3894_v6 = vld [vmem:[%s5282_s1 + $0x20] sm:$0xff] (!%p150_p6)   ;;  %vm1162_vm1 = vcmask (!%p150_p6), 261120   ;;  %s175_s26 = sand.u32 (!%p150_p6), 1, %s4126_s12  }
   0xc   : > { %1293 = vmatpush1.bf16.msra.mxu1 (!%p150_p6), %v3890_v0  ;;  %3455 = vmatprep.mubr.msk.bf16.mxu0 (!%p150_p6), %vm4170_vm0, %v4169_v3  ;;  %p184_p7 = scmp.lt.s32.totalorder (!%p150_p6), %s4232_s25, 168  ;;  %v3904_v7 = vld [vmem:[%s5282_s1 + $0x80] sm:$0xff] (!%p150_p6)   ;;  %v3906_v8 = vld [vmem:[%s5282_s1 + $0x88] sm:$0xff] (!%p150_p6)   ;;  %v3896_v12 = vld [vmem:[%s5282_s1 + $0x30] sm:$0xff] (!%p150_p6)   ;;  %s3797_s27 = smul.u32 (!%p150_p6), 340, %s175_s26  ;;  %vm2470_vm2 = vcmask (!%p150_p6), 388096  }
   0xd   : > { %1294 = vmatprep.subr.bf16.mxu1 (!%p150_p6), %v4168_v1  ;;  %3452 = vmatpush3.bf16.msra.mxu0 (!%p150_p6), %v3904_v7  ;;  %v3895_v9 = vld [vmem:[%s5282_s1 + $0x28] sm:$0xff] (!%p150_p6)   ;;  %v3897_v13 = vld [vmem:[%s5282_s1 + $0x38] sm:$0xff] (!%p150_p6)   ;;  %v3898_v15 = vld [vmem:[%s5282_s1 + $0x40] sm:$0xff] (!%p150_p6)  }
   0xe   : > { %3453 = vmatprep.subr.bf16.mxu0 (!%p150_p6), %v4169_v3  ;;  %v3899_v16 = vld [vmem:[%s5282_s1 + $0x48] sm:$0xff] (!%p150_p6)   ;;  %v3900_v18 = vld [vmem:[%s5282_s1 + $0x50] sm:$0xff] (!%p150_p6)   ;;  %v3901_v19 = vld [vmem:[%s5282_s1 + $0x58] sm:$0xff] (!%p150_p6)   ;;  %s4532_s12 = scalar_lea.vmem (!%p150_p6), [#allocation2], %s3797_s27  }
   0xf   : > { %v3902_v21 = vld [vmem:[%s5282_s1 + $0x60] sm:$0xff] (!%p150_p6)   ;;  %v3903_v22 = vld [vmem:[%s5282_s1 + $0x68] sm:$0xff] (!%p150_p6)   ;;  %v3905_v24 = vld [vmem:[%s5282_s1 + $0x70] sm:$0xff] (!%p150_p6)  }
  0x10   : > { %1295 = vmatpush1.bf16.msra.mxu1 (!%p150_p6), %v3891_v2  ;;  %v3907_v25 = vld [vmem:[%s5282_s1 + $0x78] sm:$0xff] (!%p150_p6)  }
  0x11   : > { %1296 = vmatprep.subr.bf16.mxu1 (!%p150_p6), %v4168_v1  ;;  %3454 = vmatpush3.bf16.msra.mxu0 (!%p150_p6), %v3906_v8 }
  0x12   : > { %s185_s28 = scalar_select %p184_p7, %s4232_s25, 168 }
  0x13   : > { %s2564_s29 = ssub.s32 (%p4216_p4), 169, %s4232_s25  ;;  %s3403_s30 = smul.u32 (%p4216_p4), 340, %s4204_s15 }
  0x14   : > { %1297 = vmatpush1.bf16.msra.mxu1 %v3892_v4  ;;  %s3798_s4 = smul.u32 12, %s185_s28  ;;  %p2565_p8 = scmp.lt.s32.totalorder (%p4216_p4), %s2564_s29, 85 }
  0x15   : > { %1298 = vmatprep.subr.bf16.mxu1 %v4168_v1  ;;  %s5089_s6 = scalar_lea.vmem (%p4216_p4), %s5284_s3, %s3403_s30  }
  0x16   : > { %s4257_s17 = scalar_lea.vmem %s5281_s0, %s3798_s4 }
  0x17   : > { %v3910_v10 = vld [vmem:[%s4257_s17 + $0x4] ss:$12 sps:$4 sm:$0xff]   ;;  %v3911_v11 = vld [vmem:[%s4257_s17 + $0x8] ss:$12 sps:$4 sm:$0xff]   ;;  %v3914_v14 = vld [vmem:[%s4257_s17 + $0x20] ss:$12 sps:$4 sm:$0xff]  }
  0x18   : > { %1299 = vmatpush1.bf16.msra.mxu1 %v3893_v5  ;;  %1324 = vmatprep.mubr.bf16.mxu1 %v3910_v10  ;;  %v3918_v17 = vld [vmem:[%s4257_s17 + $0x38] ss:$12 sps:$4 sm:$0xff]   ;;  %v3922_v20 = vld [vmem:[%s4257_s17 + $0x50] ss:$12 sps:$4 sm:$0xff]   ;;  %v3926_v23 = vld [vmem:[%s4257_s17 + $0x68] ss:$12 sps:$4 sm:$0xff]  }
  0x19   : > { %1300 = vmatprep.subr.bf16.mxu1 %v4168_v1  ;;  %3456 = vmatmul.mubr.msk.bf16.vlgmr.msra.gmra.mrb[0].mxu0 %vm1162_vm1, %v3911_v11  ;;  %v3930_v26 = vld [vmem:[%s4257_s17 + $0x80] ss:$12 sps:$4 sm:$0xff]   ;;  %v3912_v28 = vld [vmem:[%s4257_s17 + $0x1c] ss:$12 sps:$4 sm:$0xff]   ;;  %v3934_v29 = vld [vmem:[%s4257_s17 + $0x98] ss:$12 sps:$4 sm:$0xff]  }
  0x1a   : > { %3459 = vmatprep.mubr.msk.bf16.mxu0 %vm4170_vm0, %v4169_v3  ;;  %v3908_v27 = vld [vmem:[%s4257_s17] ss:$12 sps:$4 sm:$0xff]   ;;  %v3915_v30 = vld [vmem:[%s4257_s17 + $0x18] ss:$12 sps:$4 sm:$0xff]   ;;  %v3938_v32 = vld [vmem:[%s4257_s17 + $0xb0] ss:$12 sps:$4 sm:$0xff]  }
  0x1b   : > { %v3916_v31 = vld [vmem:[%s4257_s17 + $0x34] ss:$12 sps:$4 sm:$0xff]   ;;  %v3919_v33 = vld [vmem:[%s4257_s17 + $0x30] ss:$12 sps:$4 sm:$0xff]   ;;  %v3920_v34 = vld [vmem:[%s4257_s17 + $0x4c] ss:$12 sps:$4 sm:$0xff]  }
  0x1c   : > { %1301 = vmatpush1.bf16.msra.mxu1 %v3894_v6  ;;  %v3942_v35 = vld [vmem:[%s4257_s17 + $0xc8] ss:$12 sps:$4 sm:$0xff]   ;;  %v3924_v37 = vld [vmem:[%s4257_s17 + $0x64] ss:$12 sps:$4 sm:$0xff]   ;;  %v3946_v38 = vld [vmem:[%s4257_s17 + $0xe0] ss:$12 sps:$4 sm:$0xff]  }
  0x1d   : > { %1302 = vmatprep.subr.bf16.mxu1 %v4168_v1  ;;  %v3923_v36 = vld [vmem:[%s4257_s17 + $0x48] ss:$12 sps:$4 sm:$0xff]   ;;  %v3927_v39 = vld [vmem:[%s4257_s17 + $0x60] ss:$12 sps:$4 sm:$0xff]   ;;  %v3950_v41 = vld [vmem:[%s4257_s17 + $0xf8] ss:$12 sps:$4 sm:$0xff]  }
  0x1e   : > { %v3928_v40 = vld [vmem:[%s4257_s17 + $0x7c] ss:$12 sps:$4 sm:$0xff]   ;;  %v3931_v42 = vld [vmem:[%s4257_s17 + $0x78] ss:$12 sps:$4 sm:$0xff]   ;;  %v3932_v43 = vld [vmem:[%s4257_s17 + $0x94] ss:$12 sps:$4 sm:$0xff]  }
  0x1f   : > { %v3954_v44 = vld [vmem:[%s4257_s17 + $0x110] ss:$12 sps:$4 sm:$0xff]   ;;  %v3936_v46 = vld [vmem:[%s4257_s17 + $0xac] ss:$12 sps:$4 sm:$0xff]   ;;  %v3958_v47 = vld [vmem:[%s4257_s17 + $0x128] ss:$12 sps:$4 sm:$0xff]  }
  0x20   : > { %1303 = vmatpush1.bf16.msra.mxu1 %v3895_v9  ;;  %v3935_v45 = vld [vmem:[%s4257_s17 + $0x90] ss:$12 sps:$4 sm:$0xff]   ;;  %v3939_v48 = vld [vmem:[%s4257_s17 + $0xa8] ss:$12 sps:$4 sm:$0xff]   ;;  %v3962_v50 = vld [vmem:[%s4257_s17 + $0x140] ss:$12 sps:$4 sm:$0xff]  }
  0x21   : > { %1304 = vmatprep.subr.bf16.mxu1 %v4168_v1  ;;  %3460 = vmatmul.mubr.msk.bf16.gmra.mrb[4].mxu0 %vm1162_vm1, %v3914_v14  ;;  %v3940_v49 = vld [vmem:[%s4257_s17 + $0xc4] ss:$12 sps:$4 sm:$0xff]   ;;  %v3943_v51 = vld [vmem:[%s4257_s17 + $0xc0] ss:$12 sps:$4 sm:$0xff]   ;;  %v3944_v52 = vld [vmem:[%s4257_s17 + $0xdc] ss:$12 sps:$4 sm:$0xff]  }
  0x22   : > { %3463 = vmatprep.mubr.msk.bf16.mxu0 %vm4170_vm0, %v4169_v3  ;;  %v3966_v53 = vld [vmem:[%s4257_s17 + $0x158] ss:$12 sps:$4 sm:$0xff]   ;;  %v3948_v55 = vld [vmem:[%s4257_s17 + $0xf4] ss:$12 sps:$4 sm:$0xff]   ;;  %v3970_v56 = vld [vmem:[%s4257_s17 + $0x170] ss:$12 sps:$4 sm:$0xff]  }
  0x23   : > { %v3947_v54 = vld [vmem:[%s4257_s17 + $0xd8] ss:$12 sps:$4 sm:$0xff]   ;;  %v3951_v57 = vld [vmem:[%s4257_s17 + $0xf0] ss:$12 sps:$4 sm:$0xff]   ;;  %v3974_v59 = vld [vmem:[%s4257_s17 + $0x188] ss:$12 sps:$4 sm:$0xff]  }
  0x24   : > { %1305 = vmatpush1.bf16.msra.mxu1 %v3896_v12  ;;  %v3952_v58 = vld [vmem:[%s4257_s17 + $0x10c] ss:$12 sps:$4 sm:$0xff]   ;;  %v3955_v60 = vld [vmem:[%s4257_s17 + $0x108] ss:$12 sps:$4 sm:$0xff]   ;;  %v3956_v61 = vld [vmem:[%s4257_s17 + $0x124] ss:$12 sps:$4 sm:$0xff]  }
  0x25   : > { %1306 = vmatprep.subr.bf16.mxu1 %v4168_v1  ;;  %v3978_v62 = vld [vmem:[%s4257_s17 + $0x1a0] ss:$12 sps:$4 sm:$0xff]   ;;  %v3960_v0 = vld [vmem:[%s4257_s17 + $0x13c] ss:$12 sps:$4 sm:$0xff]   ;;  %v3963_v2 = vld [vmem:[%s4257_s17 + $0x138] ss:$12 sps:$4 sm:$0xff]  }
  0x26   : > { %v3959_v63 = vld [vmem:[%s4257_s17 + $0x120] ss:$12 sps:$4 sm:$0xff]   ;;  %v3986_v5 = vld [vmem:[%s4257_s17 + $0x1d0] ss:$12 sps:$4 sm:$0xff]   ;;  %v3990_v8 = vld [vmem:[%s4257_s17 + $0x1e8] ss:$12 sps:$4 sm:$0xff]  }
  0x27   : > { %v3964_v4 = vld [vmem:[%s4257_s17 + $0x154] ss:$12 sps:$4 sm:$0xff]   ;;  %v3967_v6 = vld [vmem:[%s4257_s17 + $0x150] ss:$12 sps:$4 sm:$0xff]   ;;  %v3968_v7 = vld [vmem:[%s4257_s17 + $0x16c] ss:$12 sps:$4 sm:$0xff]  }
  0x28   : > { %1307 = vmatpush1.bf16.msra.mxu1 %v3897_v13  ;;  %v3971_v9 = vld [vmem:[%s4257_s17 + $0x168] ss:$12 sps:$4 sm:$0xff]   ;;  %v3972_v10 = vld [vmem:[%s4257_s17 + $0x184] ss:$12 sps:$4 sm:$0xff]   ;;  %v3994_v11 = vld [vmem:[%s4257_s17 + $0x200] ss:$12 sps:$4 sm:$0xff]  }
  0x29   : > { %1308 = vmatprep.subr.bf16.mxu1 %v4168_v1  ;;  %3464 = vmatmul.mubr.msk.bf16.gmra.mrb[8].mxu0 %vm1162_vm1, %v3918_v17  ;;  %v3975_v12 = vld [vmem:[%s4257_s17 + $0x180] ss:$12 sps:$4 sm:$0xff]   ;;  %v3976_v13 = vld [vmem:[%s4257_s17 + $0x19c] ss:$12 sps:$4 sm:$0xff]   ;;  %v3998_v14 = vld [vmem:[%s4257_s17 + $0x218] ss:$12 sps:$4 sm:$0xff]  }
  0x2a   : > { %3467 = vmatprep.mubr.msk.bf16.mxu0 %vm4170_vm0, %v4169_v3  ;;  %v4002_v17 = vld [vmem:[%s4257_s17 + $0x230] ss:$12 sps:$4 sm:$0xff]  }
  0x2c   : > { %1309 = vmatpush1.bf16.msra.mxu1 %v3898_v15  ;;  %v3979_v15 = vld [vmem:[%s4257_s17 + $0x198] ss:$12 sps:$4 sm:$0xff]  }
  0x2d   : > { %1310 = vmatprep.subr.bf16.mxu1 %v4168_v1 }
  0x30   : > { %1311 = vmatpush1.bf16.msra.mxu1 %v3899_v16  ;;  %v3980_v16 = vld [vmem:[%s4257_s17 + $0x1b4] ss:$12 sps:$4 sm:$0xff]  }
  0x31   : > { %1312 = vmatprep.subr.bf16.mxu1 %v4168_v1  ;;  %3468 = vmatmul.mubr.msk.bf16.gmra.mrb[12].mxu0 %vm1162_vm1, %v3922_v20  ;;  %v4006_v20 = vld [vmem:[%s4257_s17 + $0x248] ss:$12 sps:$4 sm:$0xff]  }
  0x32   : > { %3471 = vmatprep.mubr.msk.bf16.mxu0 %vm4170_vm0, %v4169_v3 }
  0x34   : > { %1313 = vmatpush1.bf16.msra.mxu1 %v3900_v18  ;;  %v3983_v18 = vld [vmem:[%s4257_s17 + $0x1b0] ss:$12 sps:$4 sm:$0xff]  }
  0x35   : > { %1314 = vmatprep.subr.bf16.mxu1 %v4168_v1 }
  0x38   : > { %1315 = vmatpush1.bf16.msra.mxu1 %v3901_v19  ;;  %v3984_v19 = vld [vmem:[%s4257_s17 + $0x1cc] ss:$12 sps:$4 sm:$0xff]  }
  0x39   : > { %1316 = vmatprep.subr.bf16.mxu1 %v4168_v1  ;;  %3472 = vmatmul.mubr.msk.bf16.gmra.mrb[16].mxu0 %vm1162_vm1, %v3926_v23  ;;  %v4010_v23 = vld [vmem:[%s4257_s17 + $0x260] ss:$12 sps:$4 sm:$0xff]  }
  0x3a   : > { %3475 = vmatprep.mubr.msk.bf16.mxu0 %vm4170_vm0, %v4169_v3 }
  0x3c   : > { %1317 = vmatpush1.bf16.msra.mxu1 %v3902_v21  ;;  %v3987_v21 = vld [vmem:[%s4257_s17 + $0x1c8] ss:$12 sps:$4 sm:$0xff]  }
  0x3d   : > { %1318 = vmatprep.subr.bf16.mxu1 %v4168_v1 }
  0x40   : > { %1319 = vmatpush1.bf16.msra.mxu1 %v3903_v22  ;;  %v3988_v22 = vld [vmem:[%s4257_s17 + $0x1e4] ss:$12 sps:$4 sm:$0xff]  }
  0x41   : > { %1320 = vmatprep.subr.bf16.mxu1 %v4168_v1  ;;  %3476 = vmatmul.mubr.msk.bf16.gmra.mrb[20].mxu0 %vm1162_vm1, %v3930_v26  ;;  %v4014_v26 = vld [vmem:[%s4257_s17 + $0x278] ss:$12 sps:$4 sm:$0xff]  }
  0x42   : > { %3479 = vmatprep.mubr.msk.bf16.mxu0 %vm4170_vm0, %v4169_v3 }
  0x44   : > { %1321 = vmatpush1.bf16.msra.mxu1 %v3905_v24  ;;  %v3991_v24 = vld [vmem:[%s4257_s17 + $0x1e0] ss:$12 sps:$4 sm:$0xff]  }
  0x45   : > { %1322 = vmatprep.subr.bf16.mxu1 %v4168_v1  ;;  %v3982_v1 = vld [vmem:[%s4257_s17 + $0x1b8] ss:$12 sps:$4 sm:$0xff]  }
  0x48   : > { %1323 = vmatpush1.bf16.msra.mxu1 %v3907_v25  ;;  %v3992_v25 = vld [vmem:[%s4257_s17 + $0x1fc] ss:$12 sps:$4 sm:$0xff]  }
  0x49   : > { %3480 = vmatmul.mubr.msk.bf16.gmra.mrb[24].mxu0 %vm1162_vm1, %v3934_v29 }
  0x4a   : > { %3483 = vmatprep.mubr.msk.bf16.mxu0 %vm4170_vm0, %v4169_v3 }
  0x4b   : > { %1325 = vmatmul.mubr.bf16.vlgmr.msra.gmra.mrb[0].mxu1 %v3908_v27  ;;  %v3995_v27 = vld [vmem:[%s4257_s17 + $0x1f8] ss:$12 sps:$4 sm:$0xff]  }
  0x4c   : > { %1332 = vmatprep.mubr.bf16.mxu1 %v3912_v28  ;;  %v3996_v28 = vld [vmem:[%s4257_s17 + $0x214] ss:$12 sps:$4 sm:$0xff]  }
  0x51   : > { %3484 = vmatmul.mubr.msk.bf16.gmra.mrb[28].mxu0 %vm1162_vm1, %v3938_v32 }
  0x52   : > { %3487 = vmatprep.mubr.msk.bf16.mxu0 %vm4170_vm0, %v4169_v3 }
  0x53   : > { %1333 = vmatmul.mubr.bf16.gmra.mrb[4].mxu1 %v3915_v30 }
  0x54   : > { %1340 = vmatprep.mubr.bf16.mxu1 %v3916_v31  ;;  %v4018_v31 = vld [vmem:[%s4257_s17 + $0x290] ss:$12 sps:$4 sm:$0xff]  }
  0x59   : > { %3488 = vmatmul.mubr.msk.bf16.gmra.mrb[32].mxu0 %vm1162_vm1, %v3942_v35  ;;  %v4000_v35 = vld [vmem:[%s4257_s17 + $0x22c] ss:$12 sps:$4 sm:$0xff]  }
  0x5a   : > { %3491 = vmatprep.mubr.msk.bf16.mxu0 %vm4170_vm0, %v4169_v3 }
  0x5b   : > { %1341 = vmatmul.mubr.bf16.gmra.mrb[8].mxu1 %v3919_v33  ;;  %v3999_v33 = vld [vmem:[%s4257_s17 + $0x210] ss:$12 sps:$4 sm:$0xff]  }
  0x5c   : > { %1348 = vmatprep.mubr.bf16.mxu1 %v3920_v34 }
  0x61   : > { %3492 = vmatmul.mubr.msk.bf16.gmra.mrb[36].mxu0 %vm1162_vm1, %v3946_v38  ;;  %v4022_v38 = vld [vmem:[%s4257_s17 + $0x2a8] ss:$12 sps:$4 sm:$0xff]  }
  0x62   : > { %3495 = vmatprep.mubr.msk.bf16.mxu0 %vm4170_vm0, %v4169_v3 }
  0x63   : > { %1349 = vmatmul.mubr.bf16.gmra.mrb[12].mxu1 %v3923_v36 }
  0x64   : > { %1356 = vmatprep.mubr.bf16.mxu1 %v3924_v37 }
  0x69   : > { %3496 = vmatmul.mubr.msk.bf16.gmra.mrb[40].mxu0 %vm1162_vm1, %v3950_v41 }
  0x6a   : > { %3499 = vmatprep.mubr.msk.bf16.mxu0 %vm4170_vm0, %v4169_v3 }
  0x6b   : > { %1357 = vmatmul.mubr.bf16.gmra.mrb[16].mxu1 %v3927_v39 }
  0x6c   : > { %1364 = vmatprep.mubr.bf16.mxu1 %v3928_v40  ;;  %v4003_v40 = vld [vmem:[%s4257_s17 + $0x228] ss:$12 sps:$4 sm:$0xff]  }
  0x71   : > { %3500 = vmatmul.mubr.msk.bf16.gmra.mrb[44].mxu0 %vm1162_vm1, %v3954_v44 }
  0x72   : > { %3503 = vmatprep.mubr.msk.bf16.mxu0 %vm4170_vm0, %v4169_v3 }
  0x73   : > { %1365 = vmatmul.mubr.bf16.gmra.mrb[20].mxu1 %v3931_v42  ;;  %v4004_v42 = vld [vmem:[%s4257_s17 + $0x244] ss:$12 sps:$4 sm:$0xff]  }
  0x74   : > { %1372 = vmatprep.mubr.bf16.mxu1 %v3932_v43 }
  0x79   : > { %3504 = vmatmul.mubr.msk.bf16.gmra.mrb[48].mxu0 %vm1162_vm1, %v3958_v47  ;;  %v4007_v47 = vld [vmem:[%s4257_s17 + $0x240] ss:$12 sps:$4 sm:$0xff]  }
  0x7a   : > { %3507 = vmatprep.mubr.msk.bf16.mxu0 %vm4170_vm0, %v4169_v3 }
  0x7b   : > { %1373 = vmatmul.mubr.bf16.gmra.mrb[24].mxu1 %v3935_v45  ;;  %v4026_v45 = vld [vmem:[%s4257_s17 + $0x2c0] ss:$12 sps:$4 sm:$0xff]  }
  0x7c   : > { %1380 = vmatprep.mubr.bf16.mxu1 %v3936_v46 }
  0x81   : > { %3508 = vmatmul.mubr.msk.bf16.gmra.mrb[52].mxu0 %vm1162_vm1, %v3962_v50 }
  0x82   : > { %3511 = vmatprep.mubr.msk.bf16.mxu0 %vm4170_vm0, %v4169_v3 }
  0x83   : > { %1381 = vmatmul.mubr.bf16.gmra.mrb[28].mxu1 %v3939_v48 }
  0x84   : > { %1388 = vmatprep.mubr.bf16.mxu1 %v3940_v49  ;;  %v4008_v49 = vld [vmem:[%s4257_s17 + $0x25c] ss:$12 sps:$4 sm:$0xff]  }
  0x89   : > { %3512 = vmatmul.mubr.msk.bf16.gmra.mrb[56].mxu0 %vm1162_vm1, %v3966_v53 }
  0x8a   : > { %3515 = vmatprep.mubr.msk.bf16.mxu0 %vm4170_vm0, %v4169_v3 }
  0x8b   : > { %1389 = vmatmul.mubr.bf16.gmra.mrb[32].mxu1 %v3943_v51 }
  0x8c   : > { %1396 = vmatprep.mubr.bf16.mxu1 %v3944_v52  ;;  %v4030_v52 = vld [vmem:[%s4257_s17 + $0x2d8] ss:$12 sps:$4 sm:$0xff]  }
  0x91   : > { %3516 = vmatmul.mubr.msk.bf16.gmra.mrb[60].mxu0 %vm1162_vm1, %v3970_v56  ;;  %v4012_v56 = vld [vmem:[%s4257_s17 + $0x274] ss:$12 sps:$4 sm:$0xff]  }
  0x92   : > { %3519 = vmatprep.mubr.msk.bf16.mxu0 %vm4170_vm0, %v4169_v3 }
  0x93   : > { %1397 = vmatmul.mubr.bf16.gmra.mrb[36].mxu1 %v3947_v54  ;;  %v4011_v54 = vld [vmem:[%s4257_s17 + $0x258] ss:$12 sps:$4 sm:$0xff]  }
  0x94   : > { %1404 = vmatprep.mubr.bf16.mxu1 %v3948_v55 }
  0x99   : > { %3520 = vmatmul.mubr.msk.bf16.gmra.mrb[64].mxu0 %vm1162_vm1, %v3974_v59  ;;  %v4034_v59 = vld [vmem:[%s4257_s17 + $0x2f0] ss:$12 sps:$4 sm:$0xff]  }
  0x9a   : > { %3523 = vmatprep.mubr.msk.bf16.mxu0 %vm4170_vm0, %v4169_v3 }
  0x9b   : > { %1405 = vmatmul.mubr.bf16.gmra.mrb[40].mxu1 %v3951_v57 }
  0x9c   : > { %1412 = vmatprep.mubr.bf16.mxu1 %v3952_v58 }
  0xa1   : > { %3524 = vmatmul.mubr.msk.bf16.gmra.mrb[68].mxu0 %vm1162_vm1, %v3978_v62 }
  0xa2   : > { %3527 = vmatprep.mubr.msk.bf16.mxu0 %vm4170_vm0, %v4169_v3 }
  0xa3   : > { %1413 = vmatmul.mubr.bf16.gmra.mrb[44].mxu1 %v3955_v60 }
  0xa4   : > { %1420 = vmatprep.mubr.bf16.mxu1 %v3956_v61  ;;  %v4015_v61 = vld [vmem:[%s4257_s17 + $0x270] ss:$12 sps:$4 sm:$0xff]  }
  0xa9   : > { %3528 = vmatmul.mubr.msk.bf16.gmra.mrb[72].mxu0 %vm1162_vm1, %v3982_v1 }
  0xaa   : > { %3531 = vmatprep.mubr.msk.bf16.mxu0 %vm4170_vm0, %v4169_v3 }
  0xab   : > { %1421 = vmatmul.mubr.bf16.gmra.mrb[48].mxu1 %v3959_v63  ;;  %v4016_v63 = vld [vmem:[%s4257_s17 + $0x28c] ss:$12 sps:$4 sm:$0xff]  }
  0xac   : > { %1428 = vmatprep.mubr.bf16.mxu1 %v3960_v0  ;;  %v4510_v0 = vld [vmem:[%s5283_s2] ss:$0 sm:$0xff] }
  0xb1   : > { %3532 = vmatmul.mubr.msk.bf16.gmra.mrb[76].mxu0 %vm1162_vm1, %v3986_v5 }
  0xb2   : > { %3535 = vmatprep.mubr.msk.bf16.mxu0 %vm4170_vm0, %v4169_v3 }
  0xb3   : > { %1429 = vmatmul.mubr.bf16.gmra.mrb[52].mxu1 %v3963_v2 }
  0xb4   : > { %1436 = vmatprep.mubr.bf16.mxu1 %v3964_v4  ;;  %v4038_v4 = vld [vmem:[%s4257_s17 + $0x308] ss:$12 sps:$4 sm:$0xff]  }
  0xb9   : > { %3536 = vmatmul.mubr.msk.bf16.gmra.mrb[80].mxu0 %vm1162_vm1, %v3990_v8 }
  0xba   : > { %3539 = vmatprep.mubr.msk.bf16.mxu0 %vm4170_vm0, %v4169_v3 }
  0xbb   : > { %1437 = vmatmul.mubr.bf16.gmra.mrb[56].mxu1 %v3967_v6 }
  0xbc   : > { %1444 = vmatprep.mubr.bf16.mxu1 %v3968_v7 }
  0xc1   : > { %3540 = vmatmul.mubr.msk.bf16.gmra.mrb[84].mxu0 %vm1162_vm1, %v3994_v11 }
  0xc2   : > { %3543 = vmatprep.mubr.msk.bf16.mxu0 %vm4170_vm0, %v4169_v3 }
  0xc3   : > { %1445 = vmatmul.mubr.bf16.gmra.mrb[60].mxu1 %v3971_v9  ;;  %v4019_v9 = vld [vmem:[%s4257_s17 + $0x288] ss:$12 sps:$4 sm:$0xff]  }
  0xc4   : > { %1452 = vmatprep.mubr.bf16.mxu1 %v3972_v10 }
  0xc9   : > { %3544 = vmatmul.mubr.msk.bf16.gmra.mrb[88].mxu0 %vm1162_vm1, %v3998_v14 }
  0xca   : > { %3547 = vmatprep.mubr.msk.bf16.mxu0 %vm4170_vm0, %v4169_v3 }
  0xcb   : > { %1453 = vmatmul.mubr.bf16.gmra.mrb[64].mxu1 %v3975_v12  ;;  %v4020_v12 = vld [vmem:[%s4257_s17 + $0x2a4] ss:$12 sps:$4 sm:$0xff]  }
  0xcc   : > { %1460 = vmatprep.mubr.bf16.mxu1 %v3976_v13 }
  0xd1   : > { %3548 = vmatmul.mubr.msk.bf16.gmra.mrb[92].mxu0 %vm1162_vm1, %v4002_v17 }
  0xd2   : > { %3551 = vmatprep.mubr.msk.bf16.mxu0 %vm4170_vm0, %v4169_v3 }
  0xd3   : > { %1461 = vmatmul.mubr.bf16.gmra.mrb[68].mxu1 %v3979_v15 }
  0xd4   : > { %1468 = vmatprep.mubr.bf16.mxu1 %v3980_v16 }
  0xd9   : > { %3552 = vmatmul.mubr.msk.bf16.gmra.mrb[96].mxu0 %vm1162_vm1, %v4006_v20 }
  0xda   : > { %3555 = vmatprep.mubr.msk.bf16.mxu0 %vm4170_vm0, %v4169_v3 }
  0xdb   : > { %1469 = vmatmul.mubr.bf16.gmra.mrb[72].mxu1 %v3983_v18 }
  0xdc   : > { %1476 = vmatprep.mubr.bf16.mxu1 %v3984_v19 }
  0xe1   : > { %3556 = vmatmul.mubr.msk.bf16.gmra.mrb[100].mxu0 %vm1162_vm1, %v4010_v23 }
  0xe2   : > { %3559 = vmatprep.mubr.msk.bf16.mxu0 %vm4170_vm0, %v4169_v3 }
  0xe3   : > { %1477 = vmatmul.mubr.bf16.gmra.mrb[76].mxu1 %v3987_v21 }
  0xe4   : > { %1484 = vmatprep.mubr.bf16.mxu1 %v3988_v22  ;;  %v4042_v22 = vld [vmem:[%s4257_s17 + $0x320] ss:$12 sps:$4 sm:$0xff]  }
  0xe9   : > { %3560 = vmatmul.mubr.msk.bf16.gmra.mrb[104].mxu0 %vm1162_vm1, %v4014_v26 }
  0xea   : > { %3563 = vmatprep.mubr.msk.bf16.mxu0 %vm4170_vm0, %v4169_v3 }
  0xeb   : > { %1485 = vmatmul.mubr.bf16.gmra.mrb[80].mxu1 %v3991_v24 }
  0xec   : > { %1492 = vmatprep.mubr.bf16.mxu1 %v3992_v25  ;;  %v4457_v29 = vpop.f32.mrb[0].mxu0 }
  0xed   : > { %v3457_v30 = vpop.f32.mrb[1].mxu0 }
  0xee   : > { %v4460_v32 = vpop.f32.mrb[2].mxu0 }
  0xef   : > { %v3458_v34 = vpop.f32.mrb[3].mxu0 }
  0xf1   : > { %3564 = vmatmul.mubr.msk.bf16.gmra.mrb[108].mxu0 %vm1162_vm1, %v4018_v31  ;;  %v4024_v31 = vld [vmem:[%s4257_s17 + $0x2bc] ss:$12 sps:$4 sm:$0xff]  }
  0xf2   : > { %3567 = vmatprep.mubr.msk.bf16.mxu0 %vm4170_vm0, %v4169_v3 }
  0xf3   : > { %1493 = vmatmul.mubr.bf16.gmra.mrb[84].mxu1 %v3995_v27 }
  0xf4   : > { %1500 = vmatprep.mubr.bf16.mxu1 %v3996_v28  ;;  %v4467_v36 = vpop.f32.mrb[4].mxu0  ;;  %v4023_v28 = vld [vmem:[%s4257_s17 + $0x2a0] ss:$12 sps:$4 sm:$0xff]  }
  0xf5   : > { %v3461_v37 = vpop.f32.mrb[5].mxu0 }
  0xf6   : > { %v4470_v39 = vpop.f32.mrb[6].mxu0 }
  0xf7   : > { %v3462_v41 = vpop.f32.mrb[7].mxu0 }
  0xf9   : > { %3568 = vmatmul.mubr.msk.bf16.gmra.mrb[112].mxu0 %vm1162_vm1, %v4022_v38 }
  0xfa   : > { %3571 = vmatprep.mubr.msk.bf16.mxu0 %vm4170_vm0, %v4169_v3 }
  0xfb   : > { %1501 = vmatmul.mubr.bf16.gmra.mrb[88].mxu1 %v3999_v33 }
  0xfc   : > { %1508 = vmatprep.mubr.bf16.mxu1 %v4000_v35  ;;  %v4477_v43 = vpop.f32.mrb[8].mxu0 }
  0xfd   : > { %v3465_v44 = vpop.f32.mrb[9].mxu0 }
  0xfe   : > { %v4480_v46 = vpop.f32.mrb[10].mxu0 }
  0xff   : > { %v3466_v48 = vpop.f32.mrb[11].mxu0 }
 0x101   : > { %3572 = vmatmul.mubr.msk.bf16.gmra.mrb[116].mxu0 %vm1162_vm1, %v4026_v45 }
 0x102   : > { %3575 = vmatprep.mubr.msk.bf16.mxu0 %vm4170_vm0, %v4169_v3 }
 0x103   : > { %1509 = vmatmul.mubr.bf16.gmra.mrb[92].mxu1 %v4003_v40 }
 0x104   : > { %1516 = vmatprep.mubr.bf16.mxu1 %v4004_v42  ;;  %v4487_v50 = vpop.f32.mrb[12].mxu0  ;;  %v4046_v42 = vld [vmem:[%s4257_s17 + $0x338] ss:$12 sps:$4 sm:$0xff]  }
 0x105   : > { %v3469_v51 = vpop.f32.mrb[13].mxu0 }
 0x106   : > { %v4490_v53 = vpop.f32.mrb[14].mxu0 }
 0x107   : > { %v3470_v55 = vpop.f32.mrb[15].mxu0 }
 0x109   : > { %3576 = vmatmul.mubr.msk.bf16.gmra.mrb[120].mxu0 %vm1162_vm1, %v4030_v52 }
 0x10a   : > { %3579 = vmatprep.mubr.msk.bf16.mxu0 %vm4170_vm0, %v4169_v3 }
 0x10b   : > { %1517 = vmatmul.mubr.bf16.gmra.mrb[96].mxu1 %v4007_v47 }
 0x10c   : > { %1524 = vmatprep.mubr.bf16.mxu1 %v4008_v49  ;;  %v4497_v57 = vpop.f32.mrb[16].mxu0 }
 0x10d   : > { %v3473_v58 = vpop.f32.mrb[17].mxu0 }
 0x10e   : > { %v4500_v60 = vpop.f32.mrb[18].mxu0 }
 0x10f   : > { %v3474_v62 = vpop.f32.mrb[19].mxu0 }
 0x111   : > { %3580 = vmatmul.mubr.msk.bf16.gmra.mrb[124].mxu0 %vm1162_vm1, %v4034_v59 }
 0x112   : > { %3583 = vmatprep.mubr.msk.bf16.mxu0 %vm4170_vm0, %v4169_v3 }
 0x113   : > { %1525 = vmatmul.mubr.bf16.gmra.mrb[100].mxu1 %v4011_v54  ;;  %v4028_v54 = vld [vmem:[%s4257_s17 + $0x2d4] ss:$12 sps:$4 sm:$0xff]  }
 0x114   : > { %1532 = vmatprep.mubr.bf16.mxu1 %v4012_v56  ;;  %v4512_v1 = vpop.f32.mrb[20].mxu0 }
 0x115   : > { %v3477_v2 = vpop.f32.mrb[21].mxu0 }
 0x116   : > { %v4516_v6 = vpop.f32.mrb[22].mxu0 }
 0x117   : > { %v3478_v10 = vpop.f32.mrb[23].mxu0 }
 0x119   : > { %3584 = vmatmul.mubr.msk.bf16.gmra.mrb[128].mxu0 %vm1162_vm1, %v4038_v4  ;;  %v4050_v4 = vld [vmem:[%s4257_s17 + $0x350] ss:$12 sps:$4 sm:$0xff]  }
 0x11a   : > { %3587 = vmatprep.mubr.msk.bf16.mxu0 %vm4170_vm0, %v4169_v3 }
 0x11b   : > { %1533 = vmatmul.mubr.bf16.gmra.mrb[104].mxu1 %v4015_v61 }
 0x11c   : > { %1540 = vmatprep.mubr.bf16.mxu1 %v4016_v63  ;;  %v4527_v18 = vpop.f32.mrb[24].mxu0 }
 0x11d   : > { %v3481_v21 = vpop.f32.mrb[25].mxu0 }
 0x11e   : > { %v1326_v5 = vpop.f32.mrb[0].mxu1  ;;  %v4530_v24 = vpop.f32.mrb[26].mxu0 }
 0x11f   : > { %v1327_v7 = vadd.f32 %v4510_v0, %v1326_v5  ;;  %v1328_v8 = vpop.f32.mrb[1].mxu1 }
 0x120   : > { %v1329_v11 = vpop.f32.mrb[2].mxu1 }
 0x121   : > { %v1703_v13 = vadd.f32 %v4457_v29, %v1327_v7  ;;  %v1330_v14 = vadd.f32 %v4510_v0, %v1329_v11  ;;  %v1331_v15 = vpop.f32.mrb[3].mxu1  ;;  %v3482_v29 = vpop.f32.mrb[27].mxu0  ;;  %3588 = vmatmul.mubr.msk.bf16.gmra.mrb[132].mxu0 %vm1162_vm1, %v4042_v22 }
 0x122   : > { %3591 = vmatprep.mubr.msk.bf16.mxu0 %vm4170_vm0, %v4169_v3 }
 0x123   : > { %v2044_v16 = vmax.f32 %v1703_v13, 0.0  ;;  %v1706_v17 = vadd.f32 %v4460_v32, %v1330_v14  ;;  %1541 = vmatmul.mubr.bf16.gmra.mrb[108].mxu1 %v4019_v9  ;;  %v4032_v13 = vld [vmem:[%s4257_s17 + $0x2ec] ss:$12 sps:$4 sm:$0xff]  }
 0x124   : > { %1548 = vmatprep.mubr.bf16.mxu1 %v4020_v12  ;;  %v4547_v38 = vpop.f32.mrb[28].mxu0 }
 0x125   : > { %v3318_v19 = vpack.c.bf16 %v2044_v16, %v2044_v16  ;;  %v2045_v20 = vmax.f32 %v1706_v17, 0.0  ;;  %v3485_v41 = vpop.f32.mrb[29].mxu0 }
 0x126   : > { %v1334_v23 = vpop.f32.mrb[4].mxu1  ;;  %v4550_v45 = vpop.f32.mrb[30].mxu0 }
 0x127   : > { %2471 = vst.msk [vmem:[%s4532_s12] sm:$0xf] %vm2470_vm2, %v3318_v19  ;;  %v3319_v25 = vpack.c.bf16 %v2045_v20, %v2045_v20  ;;  %v1335_v26 = vadd.f32 %v4510_v0, %v1334_v23  ;;  %v1336_v27 = vpop.f32.mrb[5].mxu1  ;;  %v3486_v51 = vpop.f32.mrb[31].mxu0  ;;  %v4054_v23 = vld [vmem:[%s4257_s17 + $0x368] ss:$12 sps:$4 sm:$0xff]  }
 0x128   : > { %v1337_v30 = vpop.f32.mrb[6].mxu1 }
 0x129   : > { %2472 = vst.msk [vmem:[%s4532_s12 + $0x4] sm:$0xf] %vm2470_vm2, %v3319_v25  ;;  %v1711_v32 = vadd.f32 %v4467_v36, %v1335_v26  ;;  %v1338_v33 = vadd.f32 %v4510_v0, %v1337_v30  ;;  %v1339_v34 = vpop.f32.mrb[7].mxu1  ;;  %3592 = vmatmul.mubr.msk.bf16.gmra.mrb[136].mxu0 %vm1162_vm1, %v4046_v42 }
 0x12a   : > { %3595 = vmatprep.mubr.msk.bf16.mxu0 %vm4170_vm0, %v4169_v3 }
 0x12b   : > { %v2046_v35 = vmax.f32 %v1711_v32, 0.0  ;;  %v1714_v37 = vadd.f32 %v4470_v39, %v1338_v33  ;;  %1549 = vmatmul.mubr.bf16.gmra.mrb[112].mxu1 %v4023_v28  ;;  %v4027_v39 = vld [vmem:[%s4257_s17 + $0x2b8] ss:$12 sps:$4 sm:$0xff]  }
 0x12c   : > { %1556 = vmatprep.mubr.bf16.mxu1 %v4024_v31  ;;  %v4565_v62 = vpop.f32.mrb[32].mxu0  ;;  %v4036_v32 = vld [vmem:[%s4257_s17 + $0x304] ss:$12 sps:$4 sm:$0xff]  }
 0x12d   : > { %v3320_v36 = vpack.c.bf16 %v2046_v35, %v2046_v35  ;;  %v2047_v40 = vmax.f32 %v1714_v37, 0.0  ;;  %v3489_v2 = vpop.f32.mrb[33].mxu0 }
 0x12e   : > { %v1342_v44 = vpop.f32.mrb[8].mxu1  ;;  %v4568_v7 = vpop.f32.mrb[34].mxu0 }
 0x12f   : > { %2473 = vst.msk [vmem:[%s4532_s12 + $0x8] sm:$0xf] %vm2470_vm2, %v3320_v36  ;;  %v3321_v47 = vpack.c.bf16 %v2047_v40, %v2047_v40  ;;  %v1343_v48 = vadd.f32 %v4510_v0, %v1342_v44  ;;  %v1344_v49 = vpop.f32.mrb[9].mxu1  ;;  %v3490_v11 = vpop.f32.mrb[35].mxu0  ;;  %v4058_v44 = vld [vmem:[%s4257_s17 + $0x380] ss:$12 sps:$4 sm:$0xff]  }
 0x130   : > { %v1345_v52 = vpop.f32.mrb[10].mxu1 }
 0x131   : > { %2474 = vst.msk [vmem:[%s4532_s12 + $0xc] sm:$0xf] %vm2470_vm2, %v3321_v47  ;;  %v1719_v55 = vadd.f32 %v4477_v43, %v1343_v48  ;;  %v1346_v56 = vadd.f32 %v4510_v0, %v1345_v52  ;;  %v1347_v58 = vpop.f32.mrb[11].mxu1  ;;  %3596 = vmatmul.mubr.msk.bf16.gmra.mrb[140].mxu0 %vm1162_vm1, %v4050_v4 }
 0x132   : > { %3599 = vmatprep.mubr.msk.bf16.mxu0 %vm4170_vm0, %v4169_v3 }
 0x133   : > { %v2048_v59 = vmax.f32 %v1719_v55, 0.0  ;;  %v1722_v61 = vadd.f32 %v4480_v46, %v1346_v56  ;;  %1557 = vmatmul.mubr.bf16.gmra.mrb[116].mxu1 %v4027_v39  ;;  %v4031_v46 = vld [vmem:[%s4257_s17 + $0x2d0] ss:$12 sps:$4 sm:$0xff]  }
 0x134   : > { %1564 = vmatprep.mubr.bf16.mxu1 %v4028_v54  ;;  %v4583_v20 = vpop.f32.mrb[36].mxu0  ;;  %v4040_v55 = vld [vmem:[%s4257_s17 + $0x31c] ss:$12 sps:$4 sm:$0xff]  }
 0x135   : > { %v3322_v43 = vpack.c.bf16 %v2048_v59, %v2048_v59  ;;  %v2049_v63 = vmax.f32 %v1722_v61, 0.0  ;;  %v3493_v22 = vpop.f32.mrb[37].mxu0 }
 0x136   : > { %v1350_v5 = vpop.f32.mrb[12].mxu1  ;;  %v4586_v26 = vpop.f32.mrb[38].mxu0 }
 0x137   : > { %2475 = vst.msk [vmem:[%s4532_s12 + $0x10] sm:$0xf] %vm2470_vm2, %v3322_v43  ;;  %v3323_v8 = vpack.c.bf16 %v2049_v63, %v2049_v63  ;;  %v1351_v9 = vadd.f32 %v4510_v0, %v1350_v5  ;;  %v1352_v10 = vpop.f32.mrb[13].mxu1  ;;  %v3494_v30 = vpop.f32.mrb[39].mxu0  ;;  %v4062_v5 = vld [vmem:[%s4257_s17 + $0x398] ss:$12 sps:$4 sm:$0xff]  }
 0x138   : > { %v1353_v12 = vpop.f32.mrb[14].mxu1 }
 0x139   : > { %2476 = vst.msk [vmem:[%s4532_s12 + $0x14] sm:$0xf] %vm2470_vm2, %v3323_v8  ;;  %v1727_v14 = vadd.f32 %v4487_v50, %v1351_v9  ;;  %v1354_v15 = vadd.f32 %v4510_v0, %v1353_v12  ;;  %v1355_v16 = vpop.f32.mrb[15].mxu1  ;;  %3600 = vmatmul.mubr.msk.bf16.gmra.mrb[144].mxu0 %vm1162_vm1, %v4054_v23 }
 0x13a   : > { %3603 = vmatprep.mubr.msk.bf16.mxu0 %vm4170_vm0, %v4169_v3 }
 0x13b   : > { %v2050_v17 = vmax.f32 %v1727_v14, 0.0  ;;  %v1730_v19 = vadd.f32 %v4490_v53, %v1354_v15  ;;  %1565 = vmatmul.mubr.bf16.gmra.mrb[120].mxu1 %v4031_v46  ;;  %v4035_v53 = vld [vmem:[%s4257_s17 + $0x2e8] ss:$12 sps:$4 sm:$0xff]  }
 0x13c   : > { %1572 = vmatprep.mubr.bf16.mxu1 %v4032_v13  ;;  %v4601_v40 = vpop.f32.mrb[40].mxu0  ;;  %v4044_v14 = vld [vmem:[%s4257_s17 + $0x334] ss:$12 sps:$4 sm:$0xff]  }
 0x13d   : > { %v3324_v50 = vpack.c.bf16 %v2050_v17, %v2050_v17  ;;  %v2051_v21 = vmax.f32 %v1730_v19, 0.0  ;;  %v3497_v42 = vpop.f32.mrb[41].mxu0 }
 0x13e   : > { %v1358_v25 = vpop.f32.mrb[16].mxu1  ;;  %v4604_v48 = vpop.f32.mrb[42].mxu0 }
 0x13f   : > { %2477 = vst.msk [vmem:[%s4532_s12 + $0x18] sm:$0xf] %vm2470_vm2, %v3324_v50  ;;  %v3325_v27 = vpack.c.bf16 %v2051_v21, %v2051_v21  ;;  %v1359_v28 = vadd.f32 %v4510_v0, %v1358_v25  ;;  %v1360_v29 = vpop.f32.mrb[17].mxu1  ;;  %v3498_v52 = vpop.f32.mrb[43].mxu0  ;;  %v4066_v25 = vld [vmem:[%s4257_s17 + $0x3b0] ss:$12 sps:$4 sm:$0xff]  }
 0x140   : > { %v1361_v31 = vpop.f32.mrb[18].mxu1 }
 0x141   : > { %2478 = vst.msk [vmem:[%s4532_s12 + $0x1c] sm:$0xf] %vm2470_vm2, %v3325_v27  ;;  %v1735_v33 = vadd.f32 %v4497_v57, %v1359_v28  ;;  %v1362_v34 = vadd.f32 %v4510_v0, %v1361_v31  ;;  %v1363_v35 = vpop.f32.mrb[19].mxu1  ;;  %3604 = vmatmul.mubr.msk.bf16.gmra.mrb[148].mxu0 %vm1162_vm1, %v4058_v44 }
 0x142   : > { %3607 = vmatprep.mubr.msk.bf16.mxu0 %vm4170_vm0, %v4169_v3 }
 0x143   : > { %v2052_v37 = vmax.f32 %v1735_v33, 0.0  ;;  %v1738_v36 = vadd.f32 %v4500_v60, %v1362_v34  ;;  %1573 = vmatmul.mubr.bf16.gmra.mrb[124].mxu1 %v4035_v53  ;;  %v4039_v60 = vld [vmem:[%s4257_s17 + $0x300] ss:$12 sps:$4 sm:$0xff]  }
 0x144   : > { %1580 = vmatprep.mubr.bf16.mxu1 %v4036_v32  ;;  %v4619_v63 = vpop.f32.mrb[44].mxu0  ;;  %v4048_v33 = vld [vmem:[%s4257_s17 + $0x34c] ss:$12 sps:$4 sm:$0xff]  }
 0x145   : > { %v3326_v57 = vpack.c.bf16 %v2052_v37, %v2052_v37  ;;  %v2053_v41 = vmax.f32 %v1738_v36, 0.0  ;;  %v3501_v4 = vpop.f32.mrb[45].mxu0 }
 0x146   : > { %v1366_v47 = vpop.f32.mrb[20].mxu1  ;;  %v4622_v9 = vpop.f32.mrb[46].mxu0 }
 0x147   : > { %2479 = vst.msk [vmem:[%s4532_s12 + $0x20] sm:$0xf] %vm2470_vm2, %v3326_v57  ;;  %v3327_v49 = vpack.c.bf16 %v2053_v41, %v2053_v41  ;;  %v1367_v39 = vadd.f32 %v4510_v0, %v1366_v47  ;;  %v1368_v51 = vpop.f32.mrb[21].mxu1  ;;  %v3502_v12 = vpop.f32.mrb[47].mxu0  ;;  %v4070_v47 = vld [vmem:[%s4257_s17 + $0x3c8] ss:$12 sps:$4 sm:$0xff]  }
 0x148   : > { %v1369_v54 = vpop.f32.mrb[22].mxu1 }
 0x149   : > { %2480 = vst.msk [vmem:[%s4532_s12 + $0x24] sm:$0xf] %vm2470_vm2, %v3327_v49  ;;  %v1743_v56 = vadd.f32 %v4512_v1, %v1367_v39  ;;  %v1370_v58 = vadd.f32 %v4510_v0, %v1369_v54  ;;  %v1371_v59 = vpop.f32.mrb[23].mxu1  ;;  %3608 = vmatmul.mubr.msk.bf16.gmra.mrb[152].mxu0 %vm1162_vm1, %v4062_v5 }
 0x14a   : > { %3611 = vmatprep.mubr.msk.bf16.mxu0 %vm4170_vm0, %v4169_v3 }
 0x14b   : > { %v2054_v61 = vmax.f32 %v1743_v56, 0.0  ;;  %v1746_v43 = vadd.f32 %v4516_v6, %v1370_v58  ;;  %1581 = vmatmul.mubr.bf16.gmra.mrb[128].mxu1 %v4039_v60  ;;  %v4043_v6 = vld [vmem:[%s4257_s17 + $0x318] ss:$12 sps:$4 sm:$0xff]  }
 0x14c   : > { %1588 = vmatprep.mubr.bf16.mxu1 %v4040_v55  ;;  %v4637_v21 = vpop.f32.mrb[48].mxu0  ;;  %v4052_v56 = vld [vmem:[%s4257_s17 + $0x364] ss:$12 sps:$4 sm:$0xff]  }
 0x14d   : > { %v3328_v1 = vpack.c.bf16 %v2054_v61, %v2054_v61  ;;  %v2055_v2 = vmax.f32 %v1746_v43, 0.0  ;;  %v3505_v23 = vpop.f32.mrb[49].mxu0 }
 0x14e   : > { %v1374_v8 = vpop.f32.mrb[24].mxu1  ;;  %v4640_v28 = vpop.f32.mrb[50].mxu0 }
 0x14f   : > { %2481 = vst.msk [vmem:[%s4532_s12 + $0x28] sm:$0xf] %vm2470_vm2, %v3328_v1  ;;  %v3329_v10 = vpack.c.bf16 %v2055_v2, %v2055_v2  ;;  %v1375_v46 = vadd.f32 %v4510_v0, %v1374_v8  ;;  %v1376_v11 = vpop.f32.mrb[25].mxu1  ;;  %v3506_v31 = vpop.f32.mrb[51].mxu0  ;;  %v4074_v8 = vld [vmem:[%s4257_s17 + $0x3e0] ss:$12 sps:$4 sm:$0xff]  }
 0x150   : > { %v1377_v13 = vpop.f32.mrb[26].mxu1 }
 0x151   : > { %2482 = vst.msk [vmem:[%s4532_s12 + $0x2c] sm:$0xf] %vm2470_vm2, %v3329_v10  ;;  %v1751_v15 = vadd.f32 %v4527_v18, %v1375_v46  ;;  %v1378_v16 = vadd.f32 %v4510_v0, %v1377_v13  ;;  %v1379_v17 = vpop.f32.mrb[27].mxu1  ;;  %3612 = vmatmul.mubr.msk.bf16.gmra.mrb[156].mxu0 %vm1162_vm1, %v4066_v25 }
 0x152   : > { %3615 = vmatprep.mubr.msk.bf16.mxu0 %vm4170_vm0, %v4169_v3 }
 0x153   : > { %v2056_v19 = vmax.f32 %v1751_v15, 0.0  ;;  %v1754_v50 = vadd.f32 %v4530_v24, %v1378_v16  ;;  %1589 = vmatmul.mubr.bf16.gmra.mrb[132].mxu1 %v4043_v6  ;;  %v4047_v24 = vld [vmem:[%s4257_s17 + $0x330] ss:$12 sps:$4 sm:$0xff]  }
 0x154   : > { %1596 = vmatprep.mubr.bf16.mxu1 %v4044_v14  ;;  %v4655_v41 = vpop.f32.mrb[52].mxu0  ;;  %v4056_v15 = vld [vmem:[%s4257_s17 + $0x37c] ss:$12 sps:$4 sm:$0xff]  }
 0x155   : > { %v3330_v18 = vpack.c.bf16 %v2056_v19, %v2056_v19  ;;  %v2057_v22 = vmax.f32 %v1754_v50, 0.0  ;;  %v3509_v44 = vpop.f32.mrb[53].mxu0 }
 0x156   : > { %v1382_v27 = vpop.f32.mrb[28].mxu1  ;;  %v4658_v39 = vpop.f32.mrb[54].mxu0 }
 0x157   : > { %2483 = vst.msk [vmem:[%s4532_s12 + $0x30] sm:$0xf] %vm2470_vm2, %v3330_v18  ;;  %v3331_v29 = vpack.c.bf16 %v2057_v22, %v2057_v22  ;;  %v1383_v53 = vadd.f32 %v4510_v0, %v1382_v27  ;;  %v1384_v30 = vpop.f32.mrb[29].mxu1  ;;  %v3510_v54 = vpop.f32.mrb[55].mxu0  ;;  %v4077_v27 = vld [vmem:[%s4257_s17 + $0x3f8] ss:$0 sps:$4 sm:$0xff]  }
 0x158   : > { %v1385_v32 = vpop.f32.mrb[30].mxu1 }
 0x159   : > { %2484 = vst.msk [vmem:[%s4532_s12 + $0x34] sm:$0xf] %vm2470_vm2, %v3331_v29  ;;  %v1759_v34 = vadd.f32 %v4547_v38, %v1383_v53  ;;  %v1386_v35 = vadd.f32 %v4510_v0, %v1385_v32  ;;  %v1387_v37 = vpop.f32.mrb[31].mxu1  ;;  %3616 = vmatmul.mubr.msk.bf16.gmra.mrb[160].mxu0 %vm1162_vm1, %v4070_v47 }
 0x15a   : > { %3619 = vmatprep.mubr.msk.bf16.mxu0 %vm4170_vm0, %v4169_v3 }
 0x15b   : > { %v2058_v36 = vmax.f32 %v1759_v34, 0.0  ;;  %v1762_v57 = vadd.f32 %v4550_v45, %v1386_v35  ;;  %1597 = vmatmul.mubr.bf16.gmra.mrb[136].mxu1 %v4047_v24  ;;  %v4051_v45 = vld [vmem:[%s4257_s17 + $0x348] ss:$12 sps:$4 sm:$0xff]  }
 0x15c   : > { %1604 = vmatprep.mubr.bf16.mxu1 %v4048_v33  ;;  %v4673_v2 = vpop.f32.mrb[56].mxu0  ;;  %v4060_v33 = vld [vmem:[%s4257_s17 + $0x394] ss:$12 sps:$4 sm:$0xff]  }
 0x15d   : > { %v3332_v38 = vpack.c.bf16 %v2058_v36, %v2058_v36  ;;  %v2059_v42 = vmax.f32 %v1762_v57, 0.0  ;;  %v3513_v5 = vpop.f32.mrb[57].mxu0 }
 0x15e   : > { %v1390_v49 = vpop.f32.mrb[32].mxu1  ;;  %v4676_v46 = vpop.f32.mrb[58].mxu0 }
 0x15f   : > { %2485 = vst.msk [vmem:[%s4532_s12 + $0x38] sm:$0xf] %vm2470_vm2, %v3332_v38  ;;  %v3333_v51 = vpack.c.bf16 %v2059_v42, %v2059_v42  ;;  %v1391_v60 = vadd.f32 %v4510_v0, %v1390_v49  ;;  %v1392_v52 = vpop.f32.mrb[33].mxu1  ;;  %v3514_v13 = vpop.f32.mrb[59].mxu0 }
 0x160   : > { %v1393_v55 = vpop.f32.mrb[34].mxu1  ;;  %v4068_v13 = vld [vmem:[%s4257_s17 + $0x3c4] ss:$12 sps:$4 sm:$0xff]  }
 0x161   : > { %2486 = vst.msk [vmem:[%s4532_s12 + $0x3c] sm:$0xf] %vm2470_vm2, %v3333_v51  ;;  %v1767_v58 = vadd.f32 %v4565_v62, %v1391_v60  ;;  %v1394_v59 = vadd.f32 %v4510_v0, %v1393_v55  ;;  %v1395_v61 = vpop.f32.mrb[35].mxu1  ;;  %3620 = vmatmul.mubr.msk.bf16.gmra.mrb[164].mxu0 %vm1162_vm1, %v4074_v8  ;;  %v4064_v55 = vld [vmem:[%s4257_s17 + $0x3ac] ss:$12 sps:$4 sm:$0xff]  }
 0x162   : > { %3623 = vmatprep.mubr.msk.bf16.mxu0 %vm4170_vm0, %v4169_v3 }
 0x163   : > { %v2060_v43 = vmax.f32 %v1767_v58, 0.0  ;;  %v1770_v1 = vadd.f32 %v4568_v7, %v1394_v59  ;;  %1605 = vmatmul.mubr.bf16.gmra.mrb[140].mxu1 %v4051_v45  ;;  %v4055_v7 = vld [vmem:[%s4257_s17 + $0x360] ss:$12 sps:$4 sm:$0xff]   ;;  %v4063_v45 = vld [vmem:[%s4257_s17 + $0x390] ss:$12 sps:$4 sm:$0xff]  }
 0x164   : > { %1612 = vmatprep.mubr.bf16.mxu1 %v4052_v56  ;;  %v4691_v22 = vpop.f32.mrb[60].mxu0 }
 0x165   : > { %v3334_v62 = vpack.c.bf16 %v2060_v43, %v2060_v43  ;;  %v2061_v4 = vmax.f32 %v1770_v1, 0.0  ;;  %v3517_v25 = vpop.f32.mrb[61].mxu0 }
 0x166   : > { %v1398_v10 = vpop.f32.mrb[36].mxu1  ;;  %v4694_v53 = vpop.f32.mrb[62].mxu0 }
 0x167   : > { %2487 = vst.msk [vmem:[%s4532_s12 + $0x40] sm:$0xf] %vm2470_vm2, %v3334_v62  ;;  %v3335_v11 = vpack.c.bf16 %v2061_v4, %v2061_v4  ;;  %v1399_v6 = vadd.f32 %v4510_v0, %v1398_v10  ;;  %v1400_v12 = vpop.f32.mrb[37].mxu1  ;;  %v3518_v31 = vpop.f32.mrb[63].mxu0 }
 0x168   : > { %v1401_v14 = vpop.f32.mrb[38].mxu1  ;;  %v4067_v12 = vld [vmem:[%s4257_s17 + $0x3a8] ss:$12 sps:$4 sm:$0xff]  }
 0x169   : > { %2488 = vst.msk [vmem:[%s4532_s12 + $0x44] sm:$0xf] %vm2470_vm2, %v3335_v11  ;;  %v1775_v16 = vadd.f32 %v4583_v20, %v1399_v6  ;;  %v1402_v17 = vadd.f32 %v4510_v0, %v1401_v14  ;;  %v1403_v19 = vpop.f32.mrb[39].mxu1  ;;  %3624 = vmatmul.mubr.msk.bf16.gmra.mrb[168].mxu0 %vm1162_vm1, %v4077_v27 }
 0x16b   : > { %v2062_v50 = vmax.f32 %v1775_v16, 0.0  ;;  %v1778_v18 = vadd.f32 %v4586_v26, %v1402_v17  ;;  %1613 = vmatmul.mubr.bf16.gmra.mrb[144].mxu1 %v4055_v7  ;;  %v4059_v26 = vld [vmem:[%s4257_s17 + $0x378] ss:$12 sps:$4 sm:$0xff]  }
 0x16c   : > { %1620 = vmatprep.mubr.bf16.mxu1 %v4056_v15  ;;  %v4707_v38 = vpop.f32.mrb[64].mxu0 }
 0x16d   : > { %v3336_v20 = vpack.c.bf16 %v2062_v50, %v2062_v50  ;;  %v2063_v23 = vmax.f32 %v1778_v18, 0.0  ;;  %v3521_v47 = vpop.f32.mrb[65].mxu0 }
 0x16e   : > { %v1406_v29 = vpop.f32.mrb[40].mxu1 }
 0x16f   : > { %2489 = vst.msk [vmem:[%s4532_s12 + $0x48] sm:$0xf] %vm2470_vm2, %v3336_v20  ;;  %v3337_v3 = vpack.c.bf16 %v2063_v23, %v2063_v23  ;;  %v1407_v30 = vadd.f32 %v4510_v0, %v1406_v29  ;;  %v1408_v24 = vpop.f32.mrb[41].mxu1 }
 0x170   : > { %v1409_v32 = vpop.f32.mrb[42].mxu1 }
 0x171   : > { %2490 = vst.msk [vmem:[%s4532_s12 + $0x4c] sm:$0xf] %vm2470_vm2, %v3337_v3  ;;  %v1783_v34 = vadd.f32 %v4601_v40, %v1407_v30  ;;  %v1410_v35 = vadd.f32 %v4510_v0, %v1409_v32  ;;  %v1411_v37 = vpop.f32.mrb[43].mxu1  ;;  %v4709_v40 = vpop.f32.mrb[66].mxu0 }
 0x173   : > { %v2064_v36 = vmax.f32 %v1783_v34, 0.0  ;;  %v1786_v57 = vadd.f32 %v4604_v48, %v1410_v35  ;;  %1621 = vmatmul.mubr.bf16.gmra.mrb[148].mxu1 %v4059_v26  ;;  %v3522_v48 = vpop.f32.mrb[67].mxu0  ;;  %v4072_v26 = vld [vmem:[%s4257_s17 + $0x3dc] ss:$12 sps:$4 sm:$0xff]  }
 0x174   : > { %1628 = vmatprep.mubr.bf16.mxu1 %v4060_v33  ;;  %v4721_v1 = vpop.f32.mrb[68].mxu0 }
 0x175   : > { %v3338_v42 = vpack.c.bf16 %v2064_v36, %v2064_v36  ;;  %v2065_v44 = vmax.f32 %v1786_v57, 0.0  ;;  %v3525_v5 = vpop.f32.mrb[69].mxu0 }
 0x176   : > { %v1414_v49 = vpop.f32.mrb[44].mxu1  ;;  %v4723_v10 = vpop.f32.mrb[70].mxu0 }
 0x177   : > { %2491 = vst.msk [vmem:[%s4532_s12 + $0x50] sm:$0xf] %vm2470_vm2, %v3338_v42  ;;  %v3339_v51 = vpack.c.bf16 %v2065_v44, %v2065_v44  ;;  %v1415_v60 = vadd.f32 %v4510_v0, %v1414_v49  ;;  %v1416_v52 = vpop.f32.mrb[45].mxu1  ;;  %v369_v42 = vld [vmem:[%s4257_s17 + $0x3f0] sm:$0xff] }
 0x178   : > { %v1417_v54 = vpop.f32.mrb[46].mxu1  ;;  %v4075_v52 = vld [vmem:[%s4257_s17 + $0x3d8] ss:$12 sps:$4 sm:$0xff]   ;;  %v3155_v48 = vcombine.high %v369_v42, %v369_v42 }
 0x179   : > { %2492 = vst.msk [vmem:[%s4532_s12 + $0x54] sm:$0xf] %vm2470_vm2, %v3339_v51  ;;  %v1791_v56 = vadd.f32 %v4619_v63, %v1415_v60  ;;  %v1418_v58 = vadd.f32 %v4510_v0, %v1417_v54  ;;  %v1419_v59 = vpop.f32.mrb[47].mxu1 }
 0x17b   : > { %v2066_v61 = vmax.f32 %v1791_v56, 0.0  ;;  %v1794_v43 = vadd.f32 %v4622_v9, %v1418_v58  ;;  %1629 = vmatmul.mubr.bf16.gmra.mrb[152].mxu1 %v4063_v45  ;;  %v3526_v9 = vpop.f32.mrb[71].mxu0 }
 0x17c   : > { %1636 = vmatprep.mubr.bf16.mxu1 %v4064_v55  ;;  %v4735_v50 = vpop.f32.mrb[72].mxu0 }
 0x17d   : > { %v3340_v62 = vpack.c.bf16 %v2066_v61, %v2066_v61  ;;  %v2067_v4 = vmax.f32 %v1794_v43, 0.0  ;;  %v3529_v23 = vpop.f32.mrb[73].mxu0 }
 0x17e   : > { %v1422_v8 = vpop.f32.mrb[48].mxu1  ;;  %v4737_v27 = vpop.f32.mrb[74].mxu0 }
 0x17f   : > { %2493 = vst.msk [vmem:[%s4532_s12 + $0x58] sm:$0xf] %vm2470_vm2, %v3340_v62  ;;  %v3341_v63 = vpack.c.bf16 %v2067_v4, %v2067_v4  ;;  %v1423_v11 = vadd.f32 %v4510_v0, %v1422_v8  ;;  %v1424_v6 = vpop.f32.mrb[49].mxu1  ;;  %v3530_v30 = vpop.f32.mrb[75].mxu0 }
 0x180   : > { %v1425_v7 = vpop.f32.mrb[50].mxu1  ;;  %v3154_v6 = vcombine.low %v369_v42, %v369_v42 }
 0x181   : > { %2494 = vst.msk [vmem:[%s4532_s12 + $0x5c] sm:$0xf] %vm2470_vm2, %v3341_v63  ;;  %v1799_v14 = vadd.f32 %v4637_v21, %v1423_v11  ;;  %v1426_v15 = vadd.f32 %v4510_v0, %v1425_v7  ;;  %v1427_v16 = vpop.f32.mrb[51].mxu1 }
 0x183   : > { %v2068_v17 = vmax.f32 %v1799_v14, 0.0  ;;  %v1802_v19 = vadd.f32 %v4640_v28, %v1426_v15  ;;  %1637 = vmatmul.mubr.bf16.gmra.mrb[156].mxu1 %v4067_v12  ;;  %v4071_v28 = vld [vmem:[%s4257_s17 + $0x3c0] ss:$12 sps:$4 sm:$0xff]  }
 0x184   : > { %1644 = vmatprep.mubr.bf16.mxu1 %v4068_v13  ;;  %v4749_v37 = vpop.f32.mrb[76].mxu0 }
 0x185   : > { %v3342_v18 = vpack.c.bf16 %v2068_v17, %v2068_v17  ;;  %v2069_v20 = vmax.f32 %v1802_v19, 0.0  ;;  %v3533_v44 = vpop.f32.mrb[77].mxu0 }
 0x186   : > { %v1430_v25 = vpop.f32.mrb[52].mxu1  ;;  %v4752_v49 = vpop.f32.mrb[78].mxu0 }
 0x187   : > { %2495 = vst.msk [vmem:[%s4532_s12 + $0x60] sm:$0xf] %vm2470_vm2, %v3342_v18  ;;  %v3343_v21 = vpack.c.bf16 %v2069_v20, %v2069_v20  ;;  %v1431_v29 = vadd.f32 %v4510_v0, %v1430_v25  ;;  %v1432_v3 = vpop.f32.mrb[53].mxu1 }
 0x188   : > { %v1433_v24 = vpop.f32.mrb[54].mxu1 }
 0x189   : > { %2496 = vst.msk [vmem:[%s4532_s12 + $0x64] sm:$0xf] %vm2470_vm2, %v3343_v21  ;;  %v1807_v31 = vadd.f32 %v4655_v41, %v1431_v29  ;;  %v1434_v32 = vadd.f32 %v4510_v0, %v1433_v24  ;;  %v1435_v33 = vpop.f32.mrb[55].mxu1 }
 0x18b   : > { %v2070_v34 = vmax.f32 %v1807_v31, 0.0  ;;  %v1810_v35 = vadd.f32 %v4658_v39, %v1434_v32  ;;  %1645 = vmatmul.mubr.bf16.gmra.mrb[160].mxu1 %v4071_v28  ;;  %v3534_v39 = vpop.f32.mrb[79].mxu0 }
 0x18c   : > { %1652 = vmatprep.mubr.bf16.mxu1 %v4072_v26  ;;  %v4763_v61 = vpop.f32.mrb[80].mxu0 }
 0x18d   : > { %v3344_v36 = vpack.c.bf16 %v2070_v34, %v2070_v34  ;;  %v2071_v57 = vmax.f32 %v1810_v35, 0.0  ;;  %v3537_v4 = vpop.f32.mrb[81].mxu0 }
 0x18e   : > { %v1438_v47 = vpop.f32.mrb[56].mxu1  ;;  %v4765_v8 = vpop.f32.mrb[82].mxu0 }
 0x18f   : > { %2497 = vst.msk [vmem:[%s4532_s12 + $0x68] sm:$0xf] %vm2470_vm2, %v3344_v36  ;;  %v3345_v41 = vpack.c.bf16 %v2071_v57, %v2071_v57  ;;  %v1439_v51 = vadd.f32 %v4510_v0, %v1438_v47  ;;  %v1440_v60 = vpop.f32.mrb[57].mxu1 }
 0x190   : > { %v1441_v45 = vpop.f32.mrb[58].mxu1 }
 0x191   : > { %2498 = vst.msk [vmem:[%s4532_s12 + $0x6c] sm:$0xf] %vm2470_vm2, %v3345_v41  ;;  %v1815_v54 = vadd.f32 %v4673_v2, %v1439_v51  ;;  %v1442_v55 = vadd.f32 %v4510_v0, %v1441_v45  ;;  %v1443_v56 = vpop.f32.mrb[59].mxu1 }
 0x193   : > { %v2072_v58 = vmax.f32 %v1815_v54, 0.0  ;;  %v1818_v59 = vadd.f32 %v4676_v46, %v1442_v55  ;;  %1653 = vmatmul.mubr.bf16.gmra.mrb[164].mxu1 %v4075_v52  ;;  %v3538_v46 = vpop.f32.mrb[83].mxu0 }
 0x194   : > { %1660 = vmatprep.mubr.bf16.mxu1 %v3155_v48  ;;  %v4775_v16 = vpop.f32.mrb[84].mxu0 }
 0x195   : > { %v3346_v43 = vpack.c.bf16 %v2072_v58, %v2072_v58  ;;  %v2073_v62 = vmax.f32 %v1818_v59, 0.0  ;;  %v3541_v18 = vpop.f32.mrb[85].mxu0 }
 0x196   : > { %v1446_v5 = vpop.f32.mrb[60].mxu1  ;;  %v4777_v23 = vpop.f32.mrb[86].mxu0 }
 0x197   : > { %2499 = vst.msk [vmem:[%s4532_s12 + $0x70] sm:$0xf] %vm2470_vm2, %v3346_v43  ;;  %v3347_v2 = vpack.c.bf16 %v2073_v62, %v2073_v62  ;;  %v1447_v63 = vadd.f32 %v4510_v0, %v1446_v5  ;;  %v1448_v11 = vpop.f32.mrb[61].mxu1  ;;  %v3542_v29 = vpop.f32.mrb[87].mxu0 }
 0x198   : > { %v1449_v12 = vpop.f32.mrb[62].mxu1 }
 0x199   : > { %2500 = vst.msk [vmem:[%s4532_s12 + $0x74] sm:$0xf] %vm2470_vm2, %v3347_v2  ;;  %v1823_v9 = vadd.f32 %v4691_v22, %v1447_v63  ;;  %v1450_v7 = vadd.f32 %v4510_v0, %v1449_v12  ;;  %v1451_v13 = vpop.f32.mrb[63].mxu1 }
 0x19b   : > { %v2074_v14 = vmax.f32 %v1823_v9, 0.0  ;;  %v1826_v15 = vadd.f32 %v4694_v53, %v1450_v7  ;;  %1661 = vmatmul.mubr.bf16.gmra.mrb[168].mxu1 %v3154_v6 }
 0x19c   : > { %v4787_v31 = vpop.f32.mrb[88].mxu0 }
 0x19d   : > { %v3348_v17 = vpack.c.bf16 %v2074_v14, %v2074_v14  ;;  %v2075_v19 = vmax.f32 %v1826_v15, 0.0  ;;  %v3545_v34 = vpop.f32.mrb[89].mxu0 }
 0x19e   : > { %v1454_v20 = vpop.f32.mrb[64].mxu1  ;;  %v4789_v36 = vpop.f32.mrb[90].mxu0 }
 0x19f   : > { %2501 = vst.msk [vmem:[%s4532_s12 + $0x78] sm:$0xf] %vm2470_vm2, %v3348_v17  ;;  %v3349_v25 = vpack.c.bf16 %v2075_v19, %v2075_v19  ;;  %v1455_v22 = vadd.f32 %v4510_v0, %v1454_v20  ;;  %v1456_v21 = vpop.f32.mrb[65].mxu1  ;;  %v3546_v44 = vpop.f32.mrb[91].mxu0 }
 0x1a0   : > { %v1457_v3 = vpop.f32.mrb[66].mxu1 }
 0x1a1   : > { %2502 = vst.msk [vmem:[%s4532_s12 + $0x7c] sm:$0xf] %vm2470_vm2, %v3349_v25  ;;  %v1831_v53 = vadd.f32 %v4707_v38, %v1455_v22  ;;  %v1458_v28 = vadd.f32 %v4510_v0, %v1457_v3  ;;  %v1459_v30 = vpop.f32.mrb[67].mxu1 }
 0x1a3   : > { %v2076_v24 = vmax.f32 %v1831_v53, 0.0  ;;  %v1834_v26 = vadd.f32 %v4709_v40, %v1458_v28 }
 0x1a4   : > { %v4799_v39 = vpop.f32.mrb[92].mxu0 }
 0x1a5   : > { %v3350_v32 = vpack.c.bf16 %v2076_v24, %v2076_v24  ;;  %v2077_v33 = vmax.f32 %v1834_v26, 0.0  ;;  %v3549_v54 = vpop.f32.mrb[93].mxu0 }
 0x1a6   : > { %v1462_v35 = vpop.f32.mrb[68].mxu1  ;;  %v4801_v56 = vpop.f32.mrb[94].mxu0 }
 0x1a7   : > { %2503 = vst.msk [vmem:[%s4532_s12 + $0x80] sm:$0xf] %vm2470_vm2, %v3350_v32  ;;  %v3351_v57 = vpack.c.bf16 %v2077_v33, %v2077_v33  ;;  %v1463_v38 = vadd.f32 %v4510_v0, %v1462_v35  ;;  %v1464_v42 = vpop.f32.mrb[69].mxu1  ;;  %v3550_v43 = vpop.f32.mrb[95].mxu0 }
 0x1a8   : > { %v1465_v47 = vpop.f32.mrb[70].mxu1 }
 0x1a9   : > { %2504 = vst.msk [vmem:[%s4532_s12 + $0x84] sm:$0xf] %vm2470_vm2, %v3351_v57  ;;  %v1839_v40 = vadd.f32 %v4721_v1, %v1463_v38  ;;  %v1466_v41 = vadd.f32 %v4510_v0, %v1465_v47  ;;  %v1467_v51 = vpop.f32.mrb[71].mxu1 }
 0x1ab   : > { %v2078_v60 = vmax.f32 %v1839_v40, 0.0  ;;  %v1842_v52 = vadd.f32 %v4723_v10, %v1466_v41 }
 0x1ac   : > { %v4811_v11 = vpop.f32.mrb[96].mxu0 }
 0x1ad   : > { %v3352_v45 = vpack.c.bf16 %v2078_v60, %v2078_v60  ;;  %v2079_v48 = vmax.f32 %v1842_v52, 0.0  ;;  %v3553_v12 = vpop.f32.mrb[97].mxu0 }
 0x1ae   : > { %v1470_v55 = vpop.f32.mrb[72].mxu1  ;;  %v4813_v7 = vpop.f32.mrb[98].mxu0 }
 0x1af   : > { %2505 = vst.msk [vmem:[%s4532_s12 + $0x88] sm:$0xf] %vm2470_vm2, %v3352_v45  ;;  %v3353_v58 = vpack.c.bf16 %v2079_v48, %v2079_v48  ;;  %v1471_v1 = vadd.f32 %v4510_v0, %v1470_v55  ;;  %v1472_v59 = vpop.f32.mrb[73].mxu1  ;;  %v3554_v15 = vpop.f32.mrb[99].mxu0 }
 0x1b0   : > { %v1473_v62 = vpop.f32.mrb[74].mxu1 }
 0x1b1   : > { %2506 = vst.msk [vmem:[%s4532_s12 + $0x8c] sm:$0xf] %vm2470_vm2, %v3353_v58  ;;  %v1847_v10 = vadd.f32 %v4735_v50, %v1471_v1  ;;  %v1474_v4 = vadd.f32 %v4510_v0, %v1473_v62  ;;  %v1475_v5 = vpop.f32.mrb[75].mxu1 }
 0x1b3   : > { %v2080_v2 = vmax.f32 %v1847_v10, 0.0  ;;  %v1850_v63 = vadd.f32 %v4737_v27, %v1474_v4 }
 0x1b4   : > { %v4823_v22 = vpop.f32.mrb[100].mxu0 }
 0x1b5   : > { %v3354_v6 = vpack.c.bf16 %v2080_v2, %v2080_v2  ;;  %v2081_v46 = vmax.f32 %v1850_v63, 0.0  ;;  %v3557_v3 = vpop.f32.mrb[101].mxu0 }
 0x1b6   : > { %v1478_v9 = vpop.f32.mrb[76].mxu1  ;;  %v4825_v28 = vpop.f32.mrb[102].mxu0 }
 0x1b7   : > { %2507 = vst.msk [vmem:[%s4532_s12 + $0x90] sm:$0xf] %vm2470_vm2, %v3354_v6  ;;  %v3355_v13 = vpack.c.bf16 %v2081_v46, %v2081_v46  ;;  %v1479_v50 = vadd.f32 %v4510_v0, %v1478_v9  ;;  %v1480_v14 = vpop.f32.mrb[77].mxu1  ;;  %v3558_v26 = vpop.f32.mrb[103].mxu0 }
 0x1b8   : > { %v1481_v17 = vpop.f32.mrb[78].mxu1 }
 0x1b9   : > { %2508 = vst.msk [vmem:[%s4532_s12 + $0x94] sm:$0xf] %vm2470_vm2, %v3355_v13  ;;  %v1855_v27 = vadd.f32 %v4749_v37, %v1479_v50  ;;  %v1482_v19 = vadd.f32 %v4510_v0, %v1481_v17  ;;  %v1483_v18 = vpop.f32.mrb[79].mxu1 }
 0x1bb   : > { %v2082_v20 = vmax.f32 %v1855_v27, 0.0  ;;  %v1858_v25 = vadd.f32 %v4752_v49, %v1482_v19 }
 0x1bc   : > { %v4835_v38 = vpop.f32.mrb[104].mxu0 }
 0x1bd   : > { %v3356_v21 = vpack.c.bf16 %v2082_v20, %v2082_v20  ;;  %v2083_v29 = vmax.f32 %v1858_v25, 0.0  ;;  %v3561_v47 = vpop.f32.mrb[105].mxu0 }
 0x1be   : > { %v1486_v53 = vpop.f32.mrb[80].mxu1  ;;  %v4837_v41 = vpop.f32.mrb[106].mxu0 }
 0x1bf   : > { %2509 = vst.msk [vmem:[%s4532_s12 + $0x98] sm:$0xf] %vm2470_vm2, %v3356_v21  ;;  %v3357_v30 = vpack.c.bf16 %v2083_v29, %v2083_v29  ;;  %v1487_v37 = vadd.f32 %v4510_v0, %v1486_v53  ;;  %v1488_v24 = vpop.f32.mrb[81].mxu1  ;;  %v3562_v52 = vpop.f32.mrb[107].mxu0 }
 0x1c0   : > { %v1489_v32 = vpop.f32.mrb[82].mxu1 }
 0x1c1   : > { %2510 = vst.msk [vmem:[%s4532_s12 + $0x9c] sm:$0xf] %vm2470_vm2, %v3357_v30  ;;  %v1863_v49 = vadd.f32 %v4763_v61, %v1487_v37  ;;  %v1490_v33 = vadd.f32 %v4510_v0, %v1489_v32  ;;  %v1491_v34 = vpop.f32.mrb[83].mxu1 }
 0x1c3   : > { %v2084_v35 = vmax.f32 %v1863_v49, 0.0  ;;  %v1866_v57 = vadd.f32 %v4765_v8, %v1490_v33 }
 0x1c4   : > { %v4847_v1 = vpop.f32.mrb[108].mxu0 }
 0x1c5   : > { %v3358_v42 = vpack.c.bf16 %v2084_v35, %v2084_v35  ;;  %v2085_v44 = vmax.f32 %v1866_v57, 0.0  ;;  %v3565_v62 = vpop.f32.mrb[109].mxu0 }
 0x1c6   : > { %v1494_v40 = vpop.f32.mrb[84].mxu1  ;;  %v4849_v4 = vpop.f32.mrb[110].mxu0 }
 0x1c7   : > { %2511 = vst.msk [vmem:[%s4532_s12 + $0xa0] sm:$0xf] %vm2470_vm2, %v3358_v42  ;;  %v3359_v51 = vpack.c.bf16 %v2085_v44, %v2085_v44  ;;  %v1495_v61 = vadd.f32 %v4510_v0, %v1494_v40  ;;  %v1496_v60 = vpop.f32.mrb[85].mxu1  ;;  %v3566_v63 = vpop.f32.mrb[111].mxu0 }
 0x1c8   : > { %v1497_v45 = vpop.f32.mrb[86].mxu1 }
 0x1c9   : > { %2512 = vst.msk [vmem:[%s4532_s12 + $0xa4] sm:$0xf] %vm2470_vm2, %v3359_v51  ;;  %v1871_v8 = vadd.f32 %v4775_v16, %v1495_v61  ;;  %v1498_v48 = vadd.f32 %v4510_v0, %v1497_v45  ;;  %v1499_v54 = vpop.f32.mrb[87].mxu1 }
 0x1cb   : > { %v2086_v55 = vmax.f32 %v1871_v8, 0.0  ;;  %v1874_v58 = vadd.f32 %v4777_v23, %v1498_v48 }
 0x1cc   : > { %v4859_v50 = vpop.f32.mrb[112].mxu0 }
 0x1cd   : > { %v3360_v59 = vpack.c.bf16 %v2086_v55, %v2086_v55  ;;  %v2087_v43 = vmax.f32 %v1874_v58, 0.0  ;;  %v3569_v17 = vpop.f32.mrb[113].mxu0 }
 0x1ce   : > { %v1502_v10 = vpop.f32.mrb[88].mxu1  ;;  %v4861_v19 = vpop.f32.mrb[114].mxu0 }
 0x1cf   : > { %2513 = vst.msk [vmem:[%s4532_s12 + $0xa8] sm:$0xf] %vm2470_vm2, %v3360_v59  ;;  %v3361_v5 = vpack.c.bf16 %v2087_v43, %v2087_v43  ;;  %v1503_v16 = vadd.f32 %v4510_v0, %v1502_v10  ;;  %v1504_v2 = vpop.f32.mrb[89].mxu1  ;;  %v3570_v20 = vpop.f32.mrb[115].mxu0 }
 0x1d0   : > { %v1505_v6 = vpop.f32.mrb[90].mxu1 }
 0x1d1   : > { %2514 = vst.msk [vmem:[%s4532_s12 + $0xac] sm:$0xf] %vm2470_vm2, %v3361_v5  ;;  %v1879_v23 = vadd.f32 %v4787_v31, %v1503_v16  ;;  %v1506_v46 = vadd.f32 %v4510_v0, %v1505_v6  ;;  %v1507_v12 = vpop.f32.mrb[91].mxu1  ;;  %v4868_v0 = vld [vmem:[%s5283_s2] ss:$0 sm:$0xff] }
 0x1d3   : > { %v2088_v9 = vmax.f32 %v1879_v23, 0.0  ;;  %v1882_v13 = vadd.f32 %v4789_v36, %v1506_v46 }
 0x1d4   : > { %v4876_v37 = vpop.f32.mrb[116].mxu0 }
 0x1d5   : > { %v3362_v14 = vpack.c.bf16 %v2088_v9, %v2088_v9  ;;  %v2089_v15 = vmax.f32 %v1882_v13, 0.0  ;;  %v3573_v32 = vpop.f32.mrb[117].mxu0 }
 0x1d6   : > { %v1510_v27 = vpop.f32.mrb[92].mxu1  ;;  %v4878_v33 = vpop.f32.mrb[118].mxu0 }
 0x1d7   : > { %2515 = vst.msk [vmem:[%s4532_s12 + $0xb0] sm:$0xf] %vm2470_vm2, %v3362_v14  ;;  %v3363_v18 = vpack.c.bf16 %v2089_v15, %v2089_v15  ;;  %v1511_v31 = vadd.f32 %v4868_v0, %v1510_v27  ;;  %v1512_v36 = vpop.f32.mrb[93].mxu1  ;;  %v3574_v57 = vpop.f32.mrb[119].mxu0 }
 0x1d8   : > { %v1513_v25 = vpop.f32.mrb[94].mxu1 }
 0x1d9   : > { %2516 = vst.msk [vmem:[%s4532_s12 + $0xb4] sm:$0xf] %vm2470_vm2, %v3363_v18  ;;  %v1887_v21 = vadd.f32 %v4799_v39, %v1511_v31  ;;  %v1514_v29 = vadd.f32 %v4868_v0, %v1513_v25  ;;  %v1515_v3 = vpop.f32.mrb[95].mxu1 }
 0x1db   : > { %v2090_v53 = vmax.f32 %v1887_v21, 0.0  ;;  %v1890_v30 = vadd.f32 %v4801_v56, %v1514_v29 }
 0x1dc   : > { %v4888_v61 = vpop.f32.mrb[120].mxu0 }
 0x1dd   : > { %v3364_v24 = vpack.c.bf16 %v2090_v53, %v2090_v53  ;;  %v2091_v26 = vmax.f32 %v1890_v30, 0.0  ;;  %v3577_v45 = vpop.f32.mrb[121].mxu0 }
 0x1de   : > { %v1518_v49 = vpop.f32.mrb[96].mxu1  ;;  %v4890_v48 = vpop.f32.mrb[122].mxu0 }
 0x1df   : > { %2517 = vst.msk [vmem:[%s4532_s12 + $0xb8] sm:$0xf] %vm2470_vm2, %v3364_v24  ;;  %v3365_v34 = vpack.c.bf16 %v2091_v26, %v2091_v26  ;;  %v1519_v39 = vadd.f32 %v4868_v0, %v1518_v49  ;;  %v1520_v35 = vpop.f32.mrb[97].mxu1  ;;  %v3578_v58 = vpop.f32.mrb[123].mxu0 }
 0x1e0   : > { %v1521_v42 = vpop.f32.mrb[98].mxu1 }
 0x1e1   : > { %2518 = vst.msk [vmem:[%s4532_s12 + $0xbc] sm:$0xf] %vm2470_vm2, %v3365_v34  ;;  %v1895_v56 = vadd.f32 %v4811_v11, %v1519_v39  ;;  %v1522_v44 = vadd.f32 %v4868_v0, %v1521_v42  ;;  %v1523_v47 = vpop.f32.mrb[99].mxu1 }
 0x1e3   : > { %v2092_v40 = vmax.f32 %v1895_v56, 0.0  ;;  %v1898_v51 = vadd.f32 %v4813_v7, %v1522_v44 }
 0x1e4   : > { %v4900_v16 = vpop.f32.mrb[124].mxu0 }
 0x1e5   : > { %v3366_v60 = vpack.c.bf16 %v2092_v40, %v2092_v40  ;;  %v2093_v52 = vmax.f32 %v1898_v51, 0.0  ;;  %v3581_v6 = vpop.f32.mrb[125].mxu0 }
 0x1e6   : > { %v1526_v8 = vpop.f32.mrb[100].mxu1  ;;  %v4902_v46 = vpop.f32.mrb[126].mxu0 }
 0x1e7   : > { %2519 = vst.msk [vmem:[%s4532_s12 + $0xc0] sm:$0xf] %vm2470_vm2, %v3366_v60  ;;  %v3367_v54 = vpack.c.bf16 %v2093_v52, %v2093_v52  ;;  %v1527_v11 = vadd.f32 %v4868_v0, %v1526_v8  ;;  %v1528_v55 = vpop.f32.mrb[101].mxu1  ;;  %v3582_v13 = vpop.f32.mrb[127].mxu0 }
 0x1e8   : > { %v1529_v59 = vpop.f32.mrb[102].mxu1 }
 0x1e9   : > { %2520 = vst.msk [vmem:[%s4532_s12 + $0xc4] sm:$0xf] %vm2470_vm2, %v3367_v54  ;;  %v1903_v7 = vadd.f32 %v4823_v22, %v1527_v11  ;;  %v1530_v43 = vadd.f32 %v4868_v0, %v1529_v59  ;;  %v1531_v62 = vpop.f32.mrb[103].mxu1 }
 0x1eb   : > { %v2094_v10 = vmax.f32 %v1903_v7, 0.0  ;;  %v1906_v5 = vadd.f32 %v4825_v28, %v1530_v43 }
 0x1ec   : > { %v4912_v31 = vpop.f32.mrb[128].mxu0 }
 0x1ed   : > { %v3368_v2 = vpack.c.bf16 %v2094_v10, %v2094_v10  ;;  %v2095_v63 = vmax.f32 %v1906_v5, 0.0  ;;  %v3585_v25 = vpop.f32.mrb[129].mxu0 }
 0x1ee   : > { %v1534_v23 = vpop.f32.mrb[104].mxu1  ;;  %v4914_v29 = vpop.f32.mrb[130].mxu0 }
 0x1ef   : > { %2521 = vst.msk [vmem:[%s4532_s12 + $0xc8] sm:$0xf] %vm2470_vm2, %v3368_v2  ;;  %v3369_v12 = vpack.c.bf16 %v2095_v63, %v2095_v63  ;;  %v1535_v22 = vadd.f32 %v4868_v0, %v1534_v23  ;;  %v1536_v9 = vpop.f32.mrb[105].mxu1  ;;  %v3586_v30 = vpop.f32.mrb[131].mxu0 }
 0x1f0   : > { %v1537_v14 = vpop.f32.mrb[106].mxu1 }
 0x1f1   : > { %2522 = vst.msk [vmem:[%s4532_s12 + $0xcc] sm:$0xf] %vm2470_vm2, %v3369_v12  ;;  %v1911_v28 = vadd.f32 %v4835_v38, %v1535_v22  ;;  %v1538_v15 = vadd.f32 %v4868_v0, %v1537_v14  ;;  %v1539_v17 = vpop.f32.mrb[107].mxu1 }
 0x1f3   : > { %v2096_v27 = vmax.f32 %v1911_v28, 0.0  ;;  %v1914_v18 = vadd.f32 %v4837_v41, %v1538_v15 }
 0x1f4   : > { %v4924_v39 = vpop.f32.mrb[132].mxu0 }
 0x1f5   : > { %v3370_v36 = vpack.c.bf16 %v2096_v27, %v2096_v27  ;;  %v2097_v20 = vmax.f32 %v1914_v18, 0.0  ;;  %v3589_v42 = vpop.f32.mrb[133].mxu0 }
 0x1f6   : > { %v1542_v21 = vpop.f32.mrb[108].mxu1  ;;  %v4926_v44 = vpop.f32.mrb[134].mxu0 }
 0x1f7   : > { %2523 = vst.msk [vmem:[%s4532_s12 + $0xd0] sm:$0xf] %vm2470_vm2, %v3370_v36  ;;  %v3371_v3 = vpack.c.bf16 %v2097_v20, %v2097_v20  ;;  %v1543_v38 = vadd.f32 %v4868_v0, %v1542_v21  ;;  %v1544_v53 = vpop.f32.mrb[109].mxu1  ;;  %v3590_v51 = vpop.f32.mrb[135].mxu0 }
 0x1f8   : > { %v1545_v24 = vpop.f32.mrb[110].mxu1 }
 0x1f9   : > { %2524 = vst.msk [vmem:[%s4532_s12 + $0xd4] sm:$0xf] %vm2470_vm2, %v3371_v3  ;;  %v1919_v41 = vadd.f32 %v4847_v1, %v1543_v38  ;;  %v1546_v26 = vadd.f32 %v4868_v0, %v1545_v24  ;;  %v1547_v32 = vpop.f32.mrb[111].mxu1 }
 0x1fb   : > { %v2098_v49 = vmax.f32 %v1919_v41, 0.0  ;;  %v1922_v34 = vadd.f32 %v4849_v4, %v1546_v26 }
 0x1fc   : > { %v4936_v11 = vpop.f32.mrb[136].mxu0 }
 0x1fd   : > { %v3372_v35 = vpack.c.bf16 %v2098_v49, %v2098_v49  ;;  %v2099_v57 = vmax.f32 %v1922_v34, 0.0  ;;  %v3593_v59 = vpop.f32.mrb[137].mxu0 }
 0x1fe   : > { %v1550_v56 = vpop.f32.mrb[112].mxu1  ;;  %v4938_v43 = vpop.f32.mrb[138].mxu0 }
 0x1ff   : > { %2525 = vst.msk [vmem:[%s4532_s12 + $0xd8] sm:$0xf] %vm2470_vm2, %v3372_v35  ;;  %v3373_v47 = vpack.c.bf16 %v2099_v57, %v2099_v57  ;;  %v1551_v1 = vadd.f32 %v4868_v0, %v1550_v56  ;;  %v1552_v40 = vpop.f32.mrb[113].mxu1  ;;  %v3594_v5 = vpop.f32.mrb[139].mxu0 }
 0x200   : > { %v1553_v60 = vpop.f32.mrb[114].mxu1 }
 0x201   : > { %2526 = vst.msk [vmem:[%s4532_s12 + $0xdc] sm:$0xf] %vm2470_vm2, %v3373_v47  ;;  %v1927_v4 = vadd.f32 %v4859_v50, %v1551_v1  ;;  %v1554_v52 = vadd.f32 %v4868_v0, %v1553_v60  ;;  %v1555_v45 = vpop.f32.mrb[115].mxu1 }
 0x203   : > { %v2100_v8 = vmax.f32 %v1927_v4, 0.0  ;;  %v1930_v54 = vadd.f32 %v4861_v19, %v1554_v52 }
 0x204   : > { %v4948_v22 = vpop.f32.mrb[140].mxu0 }
 0x205   : > { %v3374_v55 = vpack.c.bf16 %v2100_v8, %v2100_v8  ;;  %v2101_v58 = vmax.f32 %v1930_v54, 0.0  ;;  %v3597_v14 = vpop.f32.mrb[141].mxu0 }
 0x206   : > { %v1558_v7 = vpop.f32.mrb[116].mxu1  ;;  %v4950_v15 = vpop.f32.mrb[142].mxu0 }
 0x207   : > { %2527 = vst.msk [vmem:[%s4532_s12 + $0xe0] sm:$0xf] %vm2470_vm2, %v3374_v55  ;;  %v3375_v62 = vpack.c.bf16 %v2101_v58, %v2101_v58  ;;  %v1559_v50 = vadd.f32 %v4868_v0, %v1558_v7  ;;  %v1560_v10 = vpop.f32.mrb[117].mxu1  ;;  %v3598_v18 = vpop.f32.mrb[143].mxu0 }
 0x208   : > { %v1561_v2 = vpop.f32.mrb[118].mxu1 }
 0x209   : > { %2528 = vst.msk [vmem:[%s4532_s12 + $0xe4] sm:$0xf] %vm2470_vm2, %v3375_v62  ;;  %v1935_v19 = vadd.f32 %v4876_v37, %v1559_v50  ;;  %v1562_v63 = vadd.f32 %v4868_v0, %v1561_v2  ;;  %v1563_v6 = vpop.f32.mrb[119].mxu1 }
 0x20b   : > { %v2102_v23 = vmax.f32 %v1935_v19, 0.0  ;;  %v1938_v12 = vadd.f32 %v4878_v33, %v1562_v63 }
 0x20c   : > { %v4960_v38 = vpop.f32.mrb[144].mxu0 }
 0x20d   : > { %v3376_v9 = vpack.c.bf16 %v2102_v23, %v2102_v23  ;;  %v2103_v13 = vmax.f32 %v1938_v12, 0.0  ;;  %v3601_v24 = vpop.f32.mrb[145].mxu0 }
 0x20e   : > { %v1566_v28 = vpop.f32.mrb[120].mxu1  ;;  %v4962_v26 = vpop.f32.mrb[146].mxu0 }
 0x20f   : > { %2529 = vst.msk [vmem:[%s4532_s12 + $0xe8] sm:$0xf] %vm2470_vm2, %v3376_v9  ;;  %v3377_v17 = vpack.c.bf16 %v2103_v13, %v2103_v13  ;;  %v1567_v37 = vadd.f32 %v4868_v0, %v1566_v28  ;;  %v1568_v27 = vpop.f32.mrb[121].mxu1  ;;  %v3602_v34 = vpop.f32.mrb[147].mxu0 }
 0x210   : > { %v1569_v36 = vpop.f32.mrb[122].mxu1 }
 0x211   : > { %2530 = vst.msk [vmem:[%s4532_s12 + $0xec] sm:$0xf] %vm2470_vm2, %v3377_v17  ;;  %v1943_v33 = vadd.f32 %v4888_v61, %v1567_v37  ;;  %v1570_v20 = vadd.f32 %v4868_v0, %v1569_v36  ;;  %v1571_v25 = vpop.f32.mrb[123].mxu1 }
 0x213   : > { %v2104_v21 = vmax.f32 %v1943_v33, 0.0  ;;  %v1946_v3 = vadd.f32 %v4890_v48, %v1570_v20 }
 0x214   : > { %v4972_v1 = vpop.f32.mrb[148].mxu0 }
 0x215   : > { %v3378_v53 = vpack.c.bf16 %v2104_v21, %v2104_v21  ;;  %v2105_v30 = vmax.f32 %v1946_v3, 0.0  ;;  %v3605_v60 = vpop.f32.mrb[149].mxu0 }
 0x216   : > { %v1574_v41 = vpop.f32.mrb[124].mxu1  ;;  %v4974_v52 = vpop.f32.mrb[150].mxu0 }
 0x217   : > { %2531 = vst.msk [vmem:[%s4532_s12 + $0xf0] sm:$0xf] %vm2470_vm2, %v3378_v53  ;;  %v3379_v32 = vpack.c.bf16 %v2105_v30, %v2105_v30  ;;  %v1575_v61 = vadd.f32 %v4868_v0, %v1574_v41  ;;  %v1576_v49 = vpop.f32.mrb[125].mxu1  ;;  %v3606_v54 = vpop.f32.mrb[151].mxu0 }
 0x218   : > { %v1577_v35 = vpop.f32.mrb[126].mxu1 }
 0x219   : > { %2532 = vst.msk [vmem:[%s4532_s12 + $0xf4] sm:$0xf] %vm2470_vm2, %v3379_v32  ;;  %v1951_v48 = vadd.f32 %v4900_v16, %v1575_v61  ;;  %v1578_v57 = vadd.f32 %v4868_v0, %v1577_v35  ;;  %v1579_v42 = vpop.f32.mrb[127].mxu1 }
 0x21b   : > { %v2106_v56 = vmax.f32 %v1951_v48, 0.0  ;;  %v1954_v47 = vadd.f32 %v4902_v46, %v1578_v57 }
 0x21c   : > { %v4984_v50 = vpop.f32.mrb[152].mxu0 }
 0x21d   : > { %v3380_v40 = vpack.c.bf16 %v2106_v56, %v2106_v56  ;;  %v2107_v51 = vmax.f32 %v1954_v47, 0.0  ;;  %v3609_v2 = vpop.f32.mrb[153].mxu0 }
 0x21e   : > { %v1582_v4 = vpop.f32.mrb[128].mxu1  ;;  %v4986_v63 = vpop.f32.mrb[154].mxu0 }
 0x21f   : > { %2533 = vst.msk [vmem:[%s4532_s12 + $0xf8] sm:$0xf] %vm2470_vm2, %v3380_v40  ;;  %v3381_v45 = vpack.c.bf16 %v2107_v51, %v2107_v51  ;;  %v1583_v16 = vadd.f32 %v4868_v0, %v1582_v4  ;;  %v1584_v8 = vpop.f32.mrb[129].mxu1  ;;  %v3610_v12 = vpop.f32.mrb[155].mxu0 }
 0x220   : > { %v1585_v55 = vpop.f32.mrb[130].mxu1 }
 0x221   : > { %2534 = vst.msk [vmem:[%s4532_s12 + $0xfc] sm:$0xf] %vm2470_vm2, %v3381_v45  ;;  %v1959_v46 = vadd.f32 %v4912_v31, %v1583_v16  ;;  %v1586_v58 = vadd.f32 %v4868_v0, %v1585_v55  ;;  %v1587_v59 = vpop.f32.mrb[131].mxu1 }
 0x223   : > { %v2108_v7 = vmax.f32 %v1959_v46, 0.0  ;;  %v1962_v62 = vadd.f32 %v4914_v29, %v1586_v58 }
 0x224   : > { %v4996_v37 = vpop.f32.mrb[156].mxu0 }
 0x225   : > { %v3382_v10 = vpack.c.bf16 %v2108_v7, %v2108_v7  ;;  %v2109_v5 = vmax.f32 %v1962_v62, 0.0  ;;  %v3613_v36 = vpop.f32.mrb[157].mxu0 }
 0x226   : > { %v1590_v19 = vpop.f32.mrb[132].mxu1  ;;  %v4998_v20 = vpop.f32.mrb[158].mxu0 }
 0x227   : > { %2535 = vst.msk [vmem:[%s4532_s12 + $0x100] sm:$0xf] %vm2470_vm2, %v3382_v10  ;;  %v3383_v6 = vpack.c.bf16 %v2109_v5, %v2109_v5  ;;  %v1591_v31 = vadd.f32 %v4868_v0, %v1590_v19  ;;  %v1592_v23 = vpop.f32.mrb[133].mxu1  ;;  %v3614_v3 = vpop.f32.mrb[159].mxu0 }
 0x228   : > { %v1593_v9 = vpop.f32.mrb[134].mxu1 }
 0x229   : > { %2536 = vst.msk [vmem:[%s4532_s12 + $0x104] sm:$0xf] %vm2470_vm2, %v3383_v6  ;;  %v1967_v29 = vadd.f32 %v4924_v39, %v1591_v31  ;;  %v1594_v13 = vadd.f32 %v4868_v0, %v1593_v9  ;;  %v1595_v14 = vpop.f32.mrb[135].mxu1 }
 0x22b   : > { %v2110_v28 = vmax.f32 %v1967_v29, 0.0  ;;  %v1970_v17 = vadd.f32 %v4926_v44, %v1594_v13 }
 0x22c   : > { %v5008_v61 = vpop.f32.mrb[160].mxu0 }
 0x22d   : > { %v3384_v27 = vpack.c.bf16 %v2110_v28, %v2110_v28  ;;  %v2111_v18 = vmax.f32 %v1970_v17, 0.0  ;;  %v3617_v35 = vpop.f32.mrb[161].mxu0 }
 0x22e   : > { %v1598_v33 = vpop.f32.mrb[136].mxu1  ;;  %v5010_v57 = vpop.f32.mrb[162].mxu0 }
 0x22f   : > { %2537 = vst.msk [vmem:[%s4532_s12 + $0x108] sm:$0xf] %vm2470_vm2, %v3384_v27  ;;  %v3385_v25 = vpack.c.bf16 %v2111_v18, %v2111_v18  ;;  %v1599_v39 = vadd.f32 %v4868_v0, %v1598_v33  ;;  %v1600_v21 = vpop.f32.mrb[137].mxu1  ;;  %v3618_v47 = vpop.f32.mrb[163].mxu0 }
 0x230   : > { %v1601_v53 = vpop.f32.mrb[138].mxu1 }
 0x231   : > { %2538 = vst.msk [vmem:[%s4532_s12 + $0x10c] sm:$0xf] %vm2470_vm2, %v3385_v25  ;;  %v1975_v44 = vadd.f32 %v4936_v11, %v1599_v39  ;;  %v1602_v30 = vadd.f32 %v4868_v0, %v1601_v53  ;;  %v1603_v24 = vpop.f32.mrb[139].mxu1 }
 0x233   : > { %v2112_v41 = vmax.f32 %v1975_v44, 0.0  ;;  %v1978_v32 = vadd.f32 %v4938_v43, %v1602_v30 }
 0x234   : > { %v5020_v16 = vpop.f32.mrb[164].mxu0 }
 0x235   : > { %v3386_v49 = vpack.c.bf16 %v2112_v41, %v2112_v41  ;;  %v2113_v34 = vmax.f32 %v1978_v32, 0.0  ;;  %v3621_v55 = vpop.f32.mrb[165].mxu0 }
 0x236   : > { %v1606_v48 = vpop.f32.mrb[140].mxu1  ;;  %v5022_v58 = vpop.f32.mrb[166].mxu0 }
 0x237   : > { %2539 = vst.msk [vmem:[%s4532_s12 + $0x110] sm:$0xf] %vm2470_vm2, %v3386_v49  ;;  %v3387_v42 = vpack.c.bf16 %v2113_v34, %v2113_v34  ;;  %v1607_v11 = vadd.f32 %v4868_v0, %v1606_v48  ;;  %v1608_v56 = vpop.f32.mrb[141].mxu1  ;;  %v3622_v62 = vpop.f32.mrb[167].mxu0 }
 0x238   : > { %v1609_v40 = vpop.f32.mrb[142].mxu1 }
 0x239   : > { %2540 = vst.msk [vmem:[%s4532_s12 + $0x114] sm:$0xf] %vm2470_vm2, %v3387_v42  ;;  %v1983_v43 = vadd.f32 %v4948_v22, %v1607_v11  ;;  %v1610_v51 = vadd.f32 %v4868_v0, %v1609_v40  ;;  %v1611_v60 = vpop.f32.mrb[143].mxu1 }
 0x23b   : > { %v2114_v4 = vmax.f32 %v1983_v43, 0.0  ;;  %v1986_v45 = vadd.f32 %v4950_v15, %v1610_v51 }
 0x23c   : > { %v5032_v31 = vpop.f32.mrb[168].mxu0 }
 0x23d   : > { %v3388_v8 = vpack.c.bf16 %v2114_v4, %v2114_v4  ;;  %v2115_v54 = vmax.f32 %v1986_v45, 0.0  ;;  %v3625_v9 = vpop.f32.mrb[169].mxu0 }
 0x23e   : > { %v1614_v46 = vpop.f32.mrb[144].mxu1  ;;  %v2041_v13 = vpop.f32.mrb[170].mxu0 }
 0x23f   : > { %2541 = vst.msk [vmem:[%s4532_s12 + $0x118] sm:$0xf] %vm2470_vm2, %v3388_v8  ;;  %v3389_v59 = vpack.c.bf16 %v2115_v54, %v2115_v54  ;;  %v1615_v22 = vadd.f32 %v4868_v0, %v1614_v46  ;;  %v1616_v7 = vpop.f32.mrb[145].mxu1  ;;  %v3626_v17 = vpop.f32.mrb[171].mxu0 }
 0x240   : > { %v1617_v10 = vpop.f32.mrb[146].mxu1 }
 0x241   : > { %2542 = vst.msk [vmem:[%s4532_s12 + $0x11c] sm:$0xf] %vm2470_vm2, %v3389_v59  ;;  %v1991_v15 = vadd.f32 %v4960_v38, %v1615_v22  ;;  %v1618_v5 = vadd.f32 %v4868_v0, %v1617_v10  ;;  %v1619_v2 = vpop.f32.mrb[147].mxu1 }
 0x243   : > { %v2116_v19 = vmax.f32 %v1991_v15, 0.0  ;;  %v1994_v6 = vadd.f32 %v4962_v26, %v1618_v5 }
 0x245   : > { %v3390_v23 = vpack.c.bf16 %v2116_v19, %v2116_v19  ;;  %v2117_v12 = vmax.f32 %v1994_v6, 0.0 }
 0x246   : > { %v1622_v29 = vpop.f32.mrb[148].mxu1 }
 0x247   : > { %2543 = vst.msk [vmem:[%s4532_s12 + $0x120] sm:$0xf] %vm2470_vm2, %v3390_v23  ;;  %v3391_v14 = vpack.c.bf16 %v2117_v12, %v2117_v12  ;;  %v1623_v38 = vadd.f32 %v4868_v0, %v1622_v29  ;;  %v1624_v28 = vpop.f32.mrb[149].mxu1 }
 0x248   : > { %v1625_v27 = vpop.f32.mrb[150].mxu1 }
 0x249   : > { %2544 = vst.msk [vmem:[%s4532_s12 + $0x124] sm:$0xf] %vm2470_vm2, %v3391_v14  ;;  %v1999_v26 = vadd.f32 %v4972_v1, %v1623_v38  ;;  %v1626_v18 = vadd.f32 %v4868_v0, %v1625_v27  ;;  %v1627_v36 = vpop.f32.mrb[151].mxu1 }
 0x24b   : > { %v2118_v33 = vmax.f32 %v1999_v26, 0.0  ;;  %v2002_v25 = vadd.f32 %v4974_v52, %v1626_v18 }
 0x24d   : > { %v3392_v39 = vpack.c.bf16 %v2118_v33, %v2118_v33  ;;  %v2119_v21 = vmax.f32 %v2002_v25, 0.0 }
 0x24e   : > { %v1630_v3 = vpop.f32.mrb[152].mxu1 }
 0x24f   : > { %2545 = vst.msk [vmem:[%s4532_s12 + $0x128] sm:$0xf] %vm2470_vm2, %v3392_v39  ;;  %v3393_v53 = vpack.c.bf16 %v2119_v21, %v2119_v21  ;;  %v1631_v44 = vadd.f32 %v4868_v0, %v1630_v3  ;;  %v1632_v30 = vpop.f32.mrb[153].mxu1 }
 0x250   : > { %v1633_v24 = vpop.f32.mrb[154].mxu1 }
 0x251   : > { %2546 = vst.msk [vmem:[%s4532_s12 + $0x12c] sm:$0xf] %vm2470_vm2, %v3393_v53  ;;  %v2007_v1 = vadd.f32 %v4984_v50, %v1631_v44  ;;  %v1634_v41 = vadd.f32 %v4868_v0, %v1633_v24  ;;  %v1635_v32 = vpop.f32.mrb[155].mxu1 }
 0x253   : > { %v2120_v52 = vmax.f32 %v2007_v1, 0.0  ;;  %v2010_v49 = vadd.f32 %v4986_v63, %v1634_v41 }
 0x255   : > { %v3394_v34 = vpack.c.bf16 %v2120_v52, %v2120_v52  ;;  %v2121_v35 = vmax.f32 %v2010_v49, 0.0 }
 0x256   : > { %v1638_v48 = vpop.f32.mrb[156].mxu1 }
 0x257   : > { %2547 = vst.msk [vmem:[%s4532_s12 + $0x130] sm:$0xf] %vm2470_vm2, %v3394_v34  ;;  %v3395_v42 = vpack.c.bf16 %v2121_v35, %v2121_v35  ;;  %v1639_v11 = vadd.f32 %v4868_v0, %v1638_v48  ;;  %v1640_v56 = vpop.f32.mrb[157].mxu1 }
 0x258   : > { %v1641_v47 = vpop.f32.mrb[158].mxu1 }
 0x259   : > { %2548 = vst.msk [vmem:[%s4532_s12 + $0x134] sm:$0xf] %vm2470_vm2, %v3395_v42  ;;  %v2015_v50 = vadd.f32 %v4996_v37, %v1639_v11  ;;  %v1642_v40 = vadd.f32 %v4868_v0, %v1641_v47  ;;  %v1643_v43 = vpop.f32.mrb[159].mxu1 }
 0x25b   : > { %v2122_v63 = vmax.f32 %v2015_v50, 0.0  ;;  %v2018_v51 = vadd.f32 %v4998_v20, %v1642_v40 }
 0x25d   : > { %v3396_v60 = vpack.c.bf16 %v2122_v63, %v2122_v63  ;;  %v2123_v4 = vmax.f32 %v2018_v51, 0.0 }
 0x25e   : > { %v1646_v45 = vpop.f32.mrb[160].mxu1 }
 0x25f   : > { %2549 = vst.msk [vmem:[%s4532_s12 + $0x138] sm:$0xf] %vm2470_vm2, %v3396_v60  ;;  %v3397_v8 = vpack.c.bf16 %v2123_v4, %v2123_v4  ;;  %v1647_v54 = vadd.f32 %v4868_v0, %v1646_v45  ;;  %v1648_v55 = vpop.f32.mrb[161].mxu1 }
 0x260   : > { %v1649_v46 = vpop.f32.mrb[162].mxu1 }
 0x261   : > { %2550 = vst.msk [vmem:[%s4532_s12 + $0x13c] sm:$0xf] %vm2470_vm2, %v3397_v8  ;;  %v2023_v37 = vadd.f32 %v5008_v61, %v1647_v54  ;;  %v1650_v59 = vadd.f32 %v4868_v0, %v1649_v46  ;;  %v1651_v22 = vpop.f32.mrb[163].mxu1 }
 0x263   : > { %v2124_v20 = vmax.f32 %v2023_v37, 0.0  ;;  %v2026_v7 = vadd.f32 %v5010_v57, %v1650_v59 }
 0x265   : > { %v3398_v62 = vpack.c.bf16 %v2124_v20, %v2124_v20  ;;  %v2125_v10 = vmax.f32 %v2026_v7, 0.0 }
 0x266   : > { %v1654_v15 = vpop.f32.mrb[164].mxu1 }
 0x267   : > { %2551 = vst.msk [vmem:[%s4532_s12 + $0x140] sm:$0xf] %vm2470_vm2, %v3398_v62  ;;  %v3399_v5 = vpack.c.bf16 %v2125_v10, %v2125_v10  ;;  %v1655_v2 = vadd.f32 %v4868_v0, %v1654_v15  ;;  %v1656_v19 = vpop.f32.mrb[165].mxu1 }
 0x268   : > { %v1657_v6 = vpop.f32.mrb[166].mxu1 }
 0x269   : > { %2552 = vst.msk [vmem:[%s4532_s12 + $0x144] sm:$0xf] %vm2470_vm2, %v3399_v5  ;;  %v2031_v61 = vadd.f32 %v5020_v16, %v1655_v2  ;;  %v1658_v23 = vadd.f32 %v4868_v0, %v1657_v6  ;;  %v1659_v12 = vpop.f32.mrb[167].mxu1 }
 0x26b   : > { %v2126_v57 = vmax.f32 %v2031_v61, 0.0  ;;  %v2034_v9 = vadd.f32 %v5022_v58, %v1658_v23 }
 0x26d   : > { %v3400_v29 = vpack.c.bf16 %v2126_v57, %v2126_v57  ;;  %v2127_v13 = vmax.f32 %v2034_v9, 0.0 }
 0x26e   : > { %v1662_v14 = vpop.f32.mrb[168].mxu1 }
 0x26f   : > { %2553 = vst.msk [vmem:[%s4532_s12 + $0x148] sm:$0xf] %vm2470_vm2, %v3400_v29  ;;  %v3401_v38 = vpack.c.bf16 %v2127_v13, %v2127_v13  ;;  %v1663_v28 = vadd.f32 %v4868_v0, %v1662_v14  ;;  %v1664_v17 = vpop.f32.mrb[169].mxu1 }
 0x270   : > { %v1665_v27 = vpop.f32.mrb[170].mxu1 }
 0x271   : > { %2554 = vst.msk [vmem:[%s4532_s12 + $0x14c] sm:$0xf] %vm2470_vm2, %v3401_v38  ;;  %v2039_v16 = vadd.f32 %v5032_v31, %v1663_v28  ;;  %v1666_v26 = vpop.f32.mrb[171].mxu1  ;;  %2562 = sbr.rel (!%p4216_p4) target bundleno = 723 (0x2d3), region = 36 }
 0x273   : > { %v2128_v18 = vmax.f32 %v2039_v16, 0.0 }
 0x275   : > { %v3402_v36 = vpack.c.bf16 %v2128_v18, %v2128_v18 }
 0x277   : > { %2555 = vst.msk [vmem:[%s4532_s12 + $0x150] sm:$0xf] %vm2470_vm2, %v3402_v36 }
 0x278   : > { %s5293_s29 = smov (!%p2565_p8, %s2564_s29), 85 }
 0x279   : > { %s3303_s7 = sshll.u32 %s5293_s29, 6 }
 0x27a   : > { %p3306_p9 = scmp.eq.s32.totalorder %s3303_s7, 0 }
 0x27b   : > { %s5095_s8 = sshrl.u32 (!%p3306_p9), %s5293_s29, 6 }
 0x27c   : > { %2573 = sbr.rel (%p3306_p9) target bundleno = 723 (0x2d3), region = 40  ;;  %p3307_p10 = scmp.le.s32.totalorder (!%p3306_p9), %s5095_s8, 0 }
 0x283   : > { %2978 = sbr.rel (%p3307_p10) target bundleno = 702 (0x2be), region = 112  ;;  %s5286_s15 = smov (!%p3307_p10), %s5089_s6 }
 0x284   : > { %s5287_s20 = smov (!%p3307_p10), %s4532_s12  ;;  %s5104_s25 = smov (!%p3307_p10), 0  }
 0x285   : > { %s5106_s9 = smov (!%p3307_p10), 0  }
 0x28a LB: >> { %v2589_v0 = vld [vmem:[%s4142_s20] sm:$0xf]  ;;  %v2591_v58 = vld [vmem:[%s4142_s20 + $0x4] sm:$0xf]  ;;  %v2593_v31 = vld [vmem:[%s4142_s20 + $0x8] sm:$0xf]  ;;  %s4150_s9 = sphi %s5106_s9, %s2583_s9   ;;  %s4146_s25 = sphi %s5104_s25, %s5288_s25   ;;  %s4142_s20 = sphi %s5287_s20, %s2722_s20   ;;  %s4138_s15 = sphi %s5286_s15, %s2723_s15  }
 0x28b   : >> { %2590 = vst [vmem:[%s4138_s15] sm:$0xf] %v2589_v0  ;;  %2592 = vst [vmem:[%s4138_s15 + $0x4] sm:$0xf] %v2591_v58  ;;  %v2595_v33 = vld [vmem:[%s4142_s20 + $0xc] sm:$0xf]  ;;  %s2717_s10 = sadd.s32 1, %s4146_s25 }
 0x28c   : >> { %2594 = vst [vmem:[%s4138_s15 + $0x8] sm:$0xf] %v2593_v31  ;;  %v2597_v25 = vld [vmem:[%s4142_s20 + $0x10] sm:$0xf]  ;;  %v2599_v39 = vld [vmem:[%s4142_s20 + $0x14] sm:$0xf]  ;;  %p2718_p11 = scmp.ge.s32.totalorder %s2717_s10, %s5095_s8 }
 0x28d   : >> { %2596 = vst [vmem:[%s4138_s15 + $0xc] sm:$0xf] %v2595_v33  ;;  %2598 = vst [vmem:[%s4138_s15 + $0x10] sm:$0xf] %v2597_v25  ;;  %v2601_v21 = vld [vmem:[%s4142_s20 + $0x18] sm:$0xf] }
 0x28e   : >> { %2600 = vst [vmem:[%s4138_s15 + $0x14] sm:$0xf] %v2599_v39  ;;  %v2603_v3 = vld [vmem:[%s4142_s20 + $0x1c] sm:$0xf]  ;;  %v2605_v53 = vld [vmem:[%s4142_s20 + $0x20] sm:$0xf] }
 0x28f   : >> { %2602 = vst [vmem:[%s4138_s15 + $0x18] sm:$0xf] %v2601_v21  ;;  %2604 = vst [vmem:[%s4138_s15 + $0x1c] sm:$0xf] %v2603_v3  ;;  %v2607_v44 = vld [vmem:[%s4142_s20 + $0x24] sm:$0xf] }
 0x290   : >> { %2606 = vst [vmem:[%s4138_s15 + $0x20] sm:$0xf] %v2605_v53  ;;  %v2609_v30 = vld [vmem:[%s4142_s20 + $0x28] sm:$0xf]  ;;  %v2611_v24 = vld [vmem:[%s4142_s20 + $0x2c] sm:$0xf] }
 0x291   : >> { %2608 = vst [vmem:[%s4138_s15 + $0x24] sm:$0xf] %v2607_v44  ;;  %2610 = vst [vmem:[%s4138_s15 + $0x28] sm:$0xf] %v2609_v30  ;;  %v2613_v1 = vld [vmem:[%s4142_s20 + $0x30] sm:$0xf] }
 0x292   : >> { %2612 = vst [vmem:[%s4138_s15 + $0x2c] sm:$0xf] %v2611_v24  ;;  %v2615_v41 = vld [vmem:[%s4142_s20 + $0x34] sm:$0xf]  ;;  %v2617_v32 = vld [vmem:[%s4142_s20 + $0x38] sm:$0xf] }
 0x293   : >> { %2614 = vst [vmem:[%s4138_s15 + $0x30] sm:$0xf] %v2613_v1  ;;  %2616 = vst [vmem:[%s4138_s15 + $0x34] sm:$0xf] %v2615_v41  ;;  %v2619_v52 = vld [vmem:[%s4142_s20 + $0x3c] sm:$0xf] }
 0x294   : >> { %2618 = vst [vmem:[%s4138_s15 + $0x38] sm:$0xf] %v2617_v32  ;;  %v2621_v49 = vld [vmem:[%s4142_s20 + $0x40] sm:$0xf]  ;;  %v2623_v34 = vld [vmem:[%s4142_s20 + $0x44] sm:$0xf] }
 0x295   : >> { %2620 = vst [vmem:[%s4138_s15 + $0x3c] sm:$0xf] %v2619_v52  ;;  %2622 = vst [vmem:[%s4138_s15 + $0x40] sm:$0xf] %v2621_v49  ;;  %v2625_v35 = vld [vmem:[%s4142_s20 + $0x48] sm:$0xf] }
 0x296   : >> { %2624 = vst [vmem:[%s4138_s15 + $0x44] sm:$0xf] %v2623_v34  ;;  %v2627_v48 = vld [vmem:[%s4142_s20 + $0x4c] sm:$0xf]  ;;  %v2629_v42 = vld [vmem:[%s4142_s20 + $0x50] sm:$0xf] }
 0x297   : >> { %2626 = vst [vmem:[%s4138_s15 + $0x48] sm:$0xf] %v2625_v35  ;;  %2628 = vst [vmem:[%s4138_s15 + $0x4c] sm:$0xf] %v2627_v48  ;;  %v2631_v11 = vld [vmem:[%s4142_s20 + $0x54] sm:$0xf] }
 0x298   : >> { %2630 = vst [vmem:[%s4138_s15 + $0x50] sm:$0xf] %v2629_v42  ;;  %v2633_v56 = vld [vmem:[%s4142_s20 + $0x58] sm:$0xf]  ;;  %v2635_v47 = vld [vmem:[%s4142_s20 + $0x5c] sm:$0xf] }
 0x299   : >> { %2632 = vst [vmem:[%s4138_s15 + $0x54] sm:$0xf] %v2631_v11  ;;  %2634 = vst [vmem:[%s4138_s15 + $0x58] sm:$0xf] %v2633_v56  ;;  %v2637_v50 = vld [vmem:[%s4142_s20 + $0x60] sm:$0xf] }
 0x29a   : >> { %2636 = vst [vmem:[%s4138_s15 + $0x5c] sm:$0xf] %v2635_v47  ;;  %v2639_v40 = vld [vmem:[%s4142_s20 + $0x64] sm:$0xf]  ;;  %v2641_v43 = vld [vmem:[%s4142_s20 + $0x68] sm:$0xf] }
 0x29b   : >> { %2638 = vst [vmem:[%s4138_s15 + $0x60] sm:$0xf] %v2637_v50  ;;  %2640 = vst [vmem:[%s4138_s15 + $0x64] sm:$0xf] %v2639_v40  ;;  %v2643_v63 = vld [vmem:[%s4142_s20 + $0x6c] sm:$0xf] }
 0x29c   : >> { %2642 = vst [vmem:[%s4138_s15 + $0x68] sm:$0xf] %v2641_v43  ;;  %v2645_v51 = vld [vmem:[%s4142_s20 + $0x70] sm:$0xf]  ;;  %v2647_v60 = vld [vmem:[%s4142_s20 + $0x74] sm:$0xf] }
 0x29d   : >> { %2644 = vst [vmem:[%s4138_s15 + $0x6c] sm:$0xf] %v2643_v63  ;;  %2646 = vst [vmem:[%s4138_s15 + $0x70] sm:$0xf] %v2645_v51  ;;  %v2649_v4 = vld [vmem:[%s4142_s20 + $0x78] sm:$0xf] }
 0x29e   : >> { %2648 = vst [vmem:[%s4138_s15 + $0x74] sm:$0xf] %v2647_v60  ;;  %v2651_v45 = vld [vmem:[%s4142_s20 + $0x7c] sm:$0xf]  ;;  %v2653_v8 = vld [vmem:[%s4142_s20 + $0x80] sm:$0xf] }
 0x29f   : >> { %2650 = vst [vmem:[%s4138_s15 + $0x78] sm:$0xf] %v2649_v4  ;;  %2652 = vst [vmem:[%s4138_s15 + $0x7c] sm:$0xf] %v2651_v45  ;;  %v2655_v54 = vld [vmem:[%s4142_s20 + $0x84] sm:$0xf] }
 0x2a0   : >> { %2654 = vst [vmem:[%s4138_s15 + $0x80] sm:$0xf] %v2653_v8  ;;  %v2657_v55 = vld [vmem:[%s4142_s20 + $0x88] sm:$0xf]  ;;  %v2659_v46 = vld [vmem:[%s4142_s20 + $0x8c] sm:$0xf] }
 0x2a1   : >> { %2656 = vst [vmem:[%s4138_s15 + $0x84] sm:$0xf] %v2655_v54  ;;  %2658 = vst [vmem:[%s4138_s15 + $0x88] sm:$0xf] %v2657_v55  ;;  %v2661_v37 = vld [vmem:[%s4142_s20 + $0x90] sm:$0xf] }
 0x2a2   : >> { %2660 = vst [vmem:[%s4138_s15 + $0x8c] sm:$0xf] %v2659_v46  ;;  %v2663_v59 = vld [vmem:[%s4142_s20 + $0x94] sm:$0xf]  ;;  %v2665_v22 = vld [vmem:[%s4142_s20 + $0x98] sm:$0xf] }
 0x2a3   : >> { %2662 = vst [vmem:[%s4138_s15 + $0x90] sm:$0xf] %v2661_v37  ;;  %2664 = vst [vmem:[%s4138_s15 + $0x94] sm:$0xf] %v2663_v59  ;;  %v2667_v20 = vld [vmem:[%s4142_s20 + $0x9c] sm:$0xf] }
 0x2a4   : >> { %2666 = vst [vmem:[%s4138_s15 + $0x98] sm:$0xf] %v2665_v22  ;;  %v2669_v7 = vld [vmem:[%s4142_s20 + $0xa0] sm:$0xf]  ;;  %v2671_v62 = vld [vmem:[%s4142_s20 + $0xa4] sm:$0xf] }
 0x2a5   : >> { %2668 = vst [vmem:[%s4138_s15 + $0x9c] sm:$0xf] %v2667_v20  ;;  %2670 = vst [vmem:[%s4138_s15 + $0xa0] sm:$0xf] %v2669_v7  ;;  %v2673_v10 = vld [vmem:[%s4142_s20 + $0xa8] sm:$0xf] }
 0x2a6   : >> { %2672 = vst [vmem:[%s4138_s15 + $0xa4] sm:$0xf] %v2671_v62  ;;  %v2675_v15 = vld [vmem:[%s4142_s20 + $0xac] sm:$0xf]  ;;  %v2677_v5 = vld [vmem:[%s4142_s20 + $0xb0] sm:$0xf] }
 0x2a7   : >> { %2674 = vst [vmem:[%s4138_s15 + $0xa8] sm:$0xf] %v2673_v10  ;;  %2676 = vst [vmem:[%s4138_s15 + $0xac] sm:$0xf] %v2675_v15  ;;  %v2679_v2 = vld [vmem:[%s4142_s20 + $0xb4] sm:$0xf] }
 0x2a8   : >> { %2678 = vst [vmem:[%s4138_s15 + $0xb0] sm:$0xf] %v2677_v5  ;;  %v2681_v19 = vld [vmem:[%s4142_s20 + $0xb8] sm:$0xf]  ;;  %v2683_v6 = vld [vmem:[%s4142_s20 + $0xbc] sm:$0xf] }
 0x2a9   : >> { %2680 = vst [vmem:[%s4138_s15 + $0xb4] sm:$0xf] %v2679_v2  ;;  %2682 = vst [vmem:[%s4138_s15 + $0xb8] sm:$0xf] %v2681_v19  ;;  %v2685_v61 = vld [vmem:[%s4142_s20 + $0xc0] sm:$0xf] }
 0x2aa   : >> { %2684 = vst [vmem:[%s4138_s15 + $0xbc] sm:$0xf] %v2683_v6  ;;  %v2687_v23 = vld [vmem:[%s4142_s20 + $0xc4] sm:$0xf]  ;;  %v2689_v12 = vld [vmem:[%s4142_s20 + $0xc8] sm:$0xf] }
 0x2ab   : >> { %2686 = vst [vmem:[%s4138_s15 + $0xc0] sm:$0xf] %v2685_v61  ;;  %2688 = vst [vmem:[%s4138_s15 + $0xc4] sm:$0xf] %v2687_v23  ;;  %v2691_v57 = vld [vmem:[%s4142_s20 + $0xcc] sm:$0xf] }
 0x2ac   : >> { %2690 = vst [vmem:[%s4138_s15 + $0xc8] sm:$0xf] %v2689_v12  ;;  %v2693_v9 = vld [vmem:[%s4142_s20 + $0xd0] sm:$0xf]  ;;  %v2695_v29 = vld [vmem:[%s4142_s20 + $0xd4] sm:$0xf] }
 0x2ad   : >> { %2692 = vst [vmem:[%s4138_s15 + $0xcc] sm:$0xf] %v2691_v57  ;;  %2694 = vst [vmem:[%s4138_s15 + $0xd0] sm:$0xf] %v2693_v9  ;;  %v2697_v13 = vld [vmem:[%s4142_s20 + $0xd8] sm:$0xf] }
 0x2ae   : >> { %2696 = vst [vmem:[%s4138_s15 + $0xd4] sm:$0xf] %v2695_v29  ;;  %v2699_v14 = vld [vmem:[%s4142_s20 + $0xdc] sm:$0xf]  ;;  %v2701_v38 = vld [vmem:[%s4142_s20 + $0xe0] sm:$0xf] }
 0x2af   : >> { %2698 = vst [vmem:[%s4138_s15 + $0xd8] sm:$0xf] %v2697_v13  ;;  %2700 = vst [vmem:[%s4138_s15 + $0xdc] sm:$0xf] %v2699_v14  ;;  %v2703_v28 = vld [vmem:[%s4142_s20 + $0xe4] sm:$0xf] }
 0x2b0   : >> { %2702 = vst [vmem:[%s4138_s15 + $0xe0] sm:$0xf] %v2701_v38  ;;  %v2705_v17 = vld [vmem:[%s4142_s20 + $0xe8] sm:$0xf]  ;;  %v2707_v27 = vld [vmem:[%s4142_s20 + $0xec] sm:$0xf] }
 0x2b1   : >> { %2704 = vst [vmem:[%s4138_s15 + $0xe4] sm:$0xf] %v2703_v28  ;;  %2706 = vst [vmem:[%s4138_s15 + $0xe8] sm:$0xf] %v2705_v17  ;;  %v2709_v16 = vld [vmem:[%s4142_s20 + $0xf0] sm:$0xf] }
 0x2b2   : >> { %2708 = vst [vmem:[%s4138_s15 + $0xec] sm:$0xf] %v2707_v27  ;;  %v2711_v26 = vld [vmem:[%s4142_s20 + $0xf4] sm:$0xf]  ;;  %v2713_v18 = vld [vmem:[%s4142_s20 + $0xf8] sm:$0xf] }
 0x2b3   : >> { %2710 = vst [vmem:[%s4138_s15 + $0xf0] sm:$0xf] %v2709_v16  ;;  %2712 = vst [vmem:[%s4138_s15 + $0xf4] sm:$0xf] %v2711_v26  ;;  %v2715_v36 = vld [vmem:[%s4142_s20 + $0xfc] sm:$0xf] }
 0x2b4   : >> { %2714 = vst [vmem:[%s4138_s15 + $0xf8] sm:$0xf] %v2713_v18  ;;  %2716 = vst [vmem:[%s4138_s15 + $0xfc] sm:$0xf] %v2715_v36  ;;  %s5295_s10 = smov (%p2718_p11, %s2717_s10), 0  ;;  %s2583_s9 = sadd.s32 1, %s4150_s9  }
 0x2b5   : >> { %s3308_s11 = sshll.u32 %s5295_s10, 8  ;;  %p2582_p12 = scmp.ge.s32.totalorder %s2583_s9, %s5095_s8 }
 0x2b6   : >> { %s2722_s20 = scalar_lea.vmem %s4532_s12, %s3308_s11 [#allocation2]   ;;  %s2723_s15 = scalar_lea.vmem %s5089_s6, %s3308_s11  }
 0x2b7   : >> { %s5288_s25 = smov %s5295_s10  ;;  %2585 = sbr.rel (!%p2582_p12) target bundleno = 650 (0x28a), region = 118 }
 0x2be PF: > { %s5263_s14 = sand.u32 63, %s5293_s29   ;;  %s3404_s18 = sshll.u32 %s5095_s8, 8 }
 0x2bf   : > { %s2728_s21 = scalar_lea.vmem %s4532_s12, %s3404_s18 [#allocation2]   ;;  %s2730_s22 = scalar_lea.vmem %s5089_s6, %s3404_s18  }
 0x2c0   : > { %p3313_p13 = scmp.le.s32.totalorder %s5263_s14, 0 }
 0x2c1   : > { %s4152_s23 = smov (!%p3313_p13), %s2730_s22   ;;  %s4156_s24 = smov (!%p3313_p13), %s2728_s21  }
 0x2c2   : > { %2992 = sbr.rel (%p3313_p13) target bundleno = 723 (0x2d3), region = 123  ;;  %s4160_s26 = smov (!%p3313_p13), 0  }
 0x2c3   : > { %s4164_s27 = smov (!%p3313_p13), 0  }
 0x2c9 LB: >> { %v2740_v0 = vld [vmem:[%s4158_s24] sm:$0xf]  ;;  %s2742_s17 = sadd.s32 1, %s4162_s26  ;;  %s2734_s27 = sadd.s32 1, %s4166_s27   ;;  %s4166_s27 = sphi %s4164_s27, %s2734_s27   ;;  %s4162_s26 = sphi %s4160_s26, %s4161_s26   ;;  %s4158_s24 = sphi %s4156_s24, %s2747_s24   ;;  %s4154_s23 = sphi %s4152_s23, %s2748_s23  }
 0x2ca   : >> { %2741 = vst [vmem:[%s4154_s23] sm:$0xf] %v2740_v0  ;;  %p2743_p0 = scmp.ge.s32.totalorder %s2742_s17, %s5263_s14  ;;  %p2733_p1 = scmp.ge.s32.totalorder %s2734_s27, %s5263_s14 }
 0x2cc   : >> { %s5297_s17 = smov (%p2743_p0, %s2742_s17), 0  ;;  %2736 = sbr.rel (!%p2733_p1) target bundleno = 713 (0x2c9), region = 129 }
 0x2cd   : >> { %s3314_s12 = sshll.u32 %s5297_s17, 2  ;;  %s4161_s26 = smov %s5297_s17  }
 0x2ce   : >> { %s2747_s24 = scalar_lea.vmem %s2728_s21, %s3314_s12 [#allocation2]   ;;  %s2748_s23 = scalar_lea.vmem %s2730_s22, %s3314_s12  }
 0x2d3 PF: > { %p10_p2 = scmp.ge.s32.totalorder %s4206_s16, 4   ;;  %s5289_s12 = smov %s4130_s13 }
 0x2d4   : > { %s5290_s13 = smov %s4214_s19  ;;  %s5291_s14 = smov %s4206_s16 }
 0x2d5   :  { %12 = sbr.rel (!%p10_p2) target bundleno = 2 (0x2), region = 140 }

// kernel: convnet_forward.6
= control target key start
LH: loop header
LB: loop body
LE: loop exit
PB: predicated region body
PF: predicated region fallthrough
CT: control target
= control target key end

     0   :  { %v1680_v0 = vmov 0   ;;  %vm652_vm0 = vcmask 392192   ;;  %vm1241_vm1 = vcmask 519168   ;;  %s2228_s1 = inlined_call_operand.vmem [shape: bf16[432,64], index: 1, kind: input, shape index: {}]   ;;  %s2229_s0 = inlined_call_operand.vmem [shape: bf16[288,432], index: 0, kind: input, shape index: {}]   ;;  %s2230_s2 = inlined_call_operand.vmem [shape: f32[1,64], index: 2, kind: input, shape index: {}]   ;;  %s2231_s3 = inlined_call_operand.vmem [shape: bf16[288,64], index: 3, kind: output, shape index: {}]  }
   0x1   :  { %707 = vmatprep.subr.bf16.mxu1 %v1680_v0  ;;  %v1545_v1 = vld [vmem:[%s2228_s1] sm:$0xff]   ;;  %884 = vmatprep.subr.bf16.mxu0 %v1680_v0  ;;  %v1546_v2 = vld [vmem:[%s2228_s1 + $0x8] sm:$0xff]   ;;  %v1547_v4 = vld [vmem:[%s2228_s1 + $0x10] sm:$0xff]  }
   0x2   :  { %708 = vmatpush1.bf16.msra.mxu1 %v1545_v1  ;;  %v1550_v3 = vld [vmem:[%s2228_s1 + $0x80] sm:$0xff]   ;;  %v1552_v5 = vld [vmem:[%s2228_s1 + $0x88] sm:$0xff]   ;;  %v1548_v6 = vld [vmem:[%s2228_s1 + $0x18] sm:$0xff]  }
   0x3   :  { %709 = vmatprep.subr.bf16.mxu1 %v1680_v0  ;;  %885 = vmatpush1.bf16.msra.mxu0 %v1550_v3  ;;  %v1554_v7 = vld [vmem:[%s2228_s1 + $0x90] sm:$0xff]   ;;  %v1549_v8 = vld [vmem:[%s2228_s1 + $0x20] sm:$0xff]   ;;  %v1556_v9 = vld [vmem:[%s2228_s1 + $0x98] sm:$0xff]  }
   0x4   :  { %886 = vmatprep.subr.bf16.mxu0 %v1680_v0  ;;  %v1551_v10 = vld [vmem:[%s2228_s1 + $0x28] sm:$0xff]   ;;  %v1558_v11 = vld [vmem:[%s2228_s1 + $0xa0] sm:$0xff]   ;;  %v1553_v12 = vld [vmem:[%s2228_s1 + $0x30] sm:$0xff]  }
   0x5   :  { %v1560_v13 = vld [vmem:[%s2228_s1 + $0xa8] sm:$0xff]   ;;  %v1555_v14 = vld [vmem:[%s2228_s1 + $0x38] sm:$0xff]   ;;  %v1562_v15 = vld [vmem:[%s2228_s1 + $0xb0] sm:$0xff]  }
   0x6   :  { %710 = vmatpush1.bf16.msra.mxu1 %v1546_v2  ;;  %v1574_v16 = vld [vmem:[%s2229_s0 + $0xc] ss:$16 sps:$4 sm:$0xff]   ;;  %v1577_v17 = vld [vmem:[%s2229_s0 + $0x4] ss:$16 sps:$4 sm:$0xff]   ;;  %v1572_v27 = vld [vmem:[%s2229_s0 + $0x8] ss:$16 sps:$4 sm:$0xff]  }
   0x7   :  { %711 = vmatprep.subr.bf16.mxu1 %v1680_v0  ;;  %887 = vmatpush1.bf16.msra.mxu0 %v1552_v5  ;;  %v1557_v18 = vld [vmem:[%s2228_s1 + $0x40] sm:$0xff]   ;;  %v1564_v19 = vld [vmem:[%s2228_s1 + $0xb8] sm:$0xff]   ;;  %v1559_v20 = vld [vmem:[%s2228_s1 + $0x48] sm:$0xff]  }
   0x8   :  { %888 = vmatprep.subr.bf16.mxu0 %v1680_v0  ;;  %1382 = vmatprep.mubr.msk.bf16.mxu0 %vm652_vm0, %v1574_v16  ;;  %v1566_v21 = vld [vmem:[%s2228_s1 + $0xc0] sm:$0xff]   ;;  %v1561_v22 = vld [vmem:[%s2228_s1 + $0x50] sm:$0xff]   ;;  %v1568_v23 = vld [vmem:[%s2228_s1 + $0xc8] sm:$0xff]  }
   0x9   :  { %739 = vmatprep.mubr.bf16.mxu1 %v1577_v17  ;;  %v1563_v24 = vld [vmem:[%s2228_s1 + $0x58] sm:$0xff]   ;;  %v1570_v25 = vld [vmem:[%s2228_s1 + $0xd0] sm:$0xff]   ;;  %v1565_v26 = vld [vmem:[%s2228_s1 + $0x60] sm:$0xff]  }
   0xa   :  { %712 = vmatpush1.bf16.msra.mxu1 %v1547_v4  ;;  %v1578_v28 = vld [vmem:[%s2229_s0 + $0x2c] ss:$16 sps:$4 sm:$0xff]   ;;  %v1569_v30 = vld [vmem:[%s2228_s1 + $0x70] sm:$0xff]   ;;  %v1582_v31 = vld [vmem:[%s2229_s0 + $0x28] ss:$16 sps:$4 sm:$0xff]  }
   0xb   :  { %713 = vmatprep.subr.bf16.mxu1 %v1680_v0  ;;  %889 = vmatpush1.bf16.msra.mxu0 %v1554_v7  ;;  %v1567_v29 = vld [vmem:[%s2228_s1 + $0x68] sm:$0xff]   ;;  %v1571_v33 = vld [vmem:[%s2228_s1 + $0x78] sm:$0xff]   ;;  %v1575_v34 = vld [vmem:[%s2229_s0] ss:$16 sps:$4 sm:$0xff]  }
   0xc   :  { %890 = vmatprep.subr.bf16.mxu0 %v1680_v0  ;;  %v1584_v32 = vld [vmem:[%s2229_s0 + $0x4c] ss:$16 sps:$4 sm:$0xff]   ;;  %v1580_v35 = vld [vmem:[%s2229_s0 + $0x24] ss:$16 sps:$4 sm:$0xff]   ;;  %v1588_v36 = vld [vmem:[%s2229_s0 + $0x48] ss:$16 sps:$4 sm:$0xff]  }
   0xd   :  { %v1590_v37 = vld [vmem:[%s2229_s0 + $0x6c] ss:$16 sps:$4 sm:$0xff]   ;;  %v1583_v38 = vld [vmem:[%s2229_s0 + $0x20] ss:$16 sps:$4 sm:$0xff]   ;;  %v1586_v39 = vld [vmem:[%s2229_s0 + $0x44] ss:$16 sps:$4 sm:$0xff]  }
   0xe   :  { %714 = vmatpush1.bf16.msra.mxu1 %v1548_v6  ;;  %v1594_v40 = vld [vmem:[%s2229_s0 + $0x68] ss:$16 sps:$4 sm:$0xff]   ;;  %v1596_v41 = vld [vmem:[%s2229_s0 + $0x8c] ss:$16 sps:$4 sm:$0xff]   ;;  %v1589_v42 = vld [vmem:[%s2229_s0 + $0x40] ss:$16 sps:$4 sm:$0xff]  }
   0xf   :  { %715 = vmatprep.subr.bf16.mxu1 %v1680_v0  ;;  %891 = vmatpush1.bf16.msra.mxu0 %v1556_v9  ;;  %v1592_v43 = vld [vmem:[%s2229_s0 + $0x64] ss:$16 sps:$4 sm:$0xff]   ;;  %v1600_v44 = vld [vmem:[%s2229_s0 + $0x88] ss:$16 sps:$4 sm:$0xff]   ;;  %v1602_v45 = vld [vmem:[%s2229_s0 + $0xac] ss:$16 sps:$4 sm:$0xff]  }
  0x10   :  { %892 = vmatprep.subr.bf16.mxu0 %v1680_v0  ;;  %v1595_v46 = vld [vmem:[%s2229_s0 + $0x60] ss:$16 sps:$4 sm:$0xff]   ;;  %v1598_v47 = vld [vmem:[%s2229_s0 + $0x84] ss:$16 sps:$4 sm:$0xff]   ;;  %v1606_v48 = vld [vmem:[%s2229_s0 + $0xa8] ss:$16 sps:$4 sm:$0xff]  }
  0x11   :  { %v1608_v49 = vld [vmem:[%s2229_s0 + $0xcc] ss:$16 sps:$4 sm:$0xff]   ;;  %v1601_v50 = vld [vmem:[%s2229_s0 + $0x80] ss:$16 sps:$4 sm:$0xff]   ;;  %v1604_v51 = vld [vmem:[%s2229_s0 + $0xa4] ss:$16 sps:$4 sm:$0xff]  }
  0x12   :  { %716 = vmatpush1.bf16.msra.mxu1 %v1549_v8  ;;  %v1612_v52 = vld [vmem:[%s2229_s0 + $0xc8] ss:$16 sps:$4 sm:$0xff]   ;;  %v1614_v53 = vld [vmem:[%s2229_s0 + $0xec] ss:$16 sps:$4 sm:$0xff]   ;;  %v1607_v54 = vld [vmem:[%s2229_s0 + $0xa0] ss:$16 sps:$4 sm:$0xff]  }
  0x13   :  { %717 = vmatprep.subr.bf16.mxu1 %v1680_v0  ;;  %893 = vmatpush1.bf16.msra.mxu0 %v1558_v11  ;;  %v1610_v55 = vld [vmem:[%s2229_s0 + $0xc4] ss:$16 sps:$4 sm:$0xff]   ;;  %v1618_v56 = vld [vmem:[%s2229_s0 + $0xe8] ss:$16 sps:$4 sm:$0xff]   ;;  %v1620_v57 = vld [vmem:[%s2229_s0 + $0x10c] ss:$16 sps:$4 sm:$0xff]  }
  0x14   :  { %894 = vmatprep.subr.bf16.mxu0 %v1680_v0  ;;  %v1613_v58 = vld [vmem:[%s2229_s0 + $0xc0] ss:$16 sps:$4 sm:$0xff]   ;;  %v1616_v59 = vld [vmem:[%s2229_s0 + $0xe4] ss:$16 sps:$4 sm:$0xff]   ;;  %v1624_v60 = vld [vmem:[%s2229_s0 + $0x108] ss:$16 sps:$4 sm:$0xff]  }
  0x15   :  { %v1626_v61 = vld [vmem:[%s2229_s0 + $0x12c] ss:$16 sps:$4 sm:$0xff]   ;;  %v1619_v62 = vld [vmem:[%s2229_s0 + $0xe0] ss:$16 sps:$4 sm:$0xff]   ;;  %v1622_v63 = vld [vmem:[%s2229_s0 + $0x104] ss:$16 sps:$4 sm:$0xff]  }
  0x16   :  { %718 = vmatpush1.bf16.msra.mxu1 %v1551_v10  ;;  %v1632_v1 = vld [vmem:[%s2229_s0 + $0x14c] ss:$16 sps:$4 sm:$0xff]   ;;  %v1625_v2 = vld [vmem:[%s2229_s0 + $0x100] ss:$16 sps:$4 sm:$0xff]   ;;  %v1628_v3 = vld [vmem:[%s2229_s0 + $0x124] ss:$16 sps:$4 sm:$0xff]  }
  0x17   :  { %719 = vmatprep.subr.bf16.mxu1 %v1680_v0  ;;  %895 = vmatpush1.bf16.msra.mxu0 %v1560_v13  ;;  %v1636_v4 = vld [vmem:[%s2229_s0 + $0x148] ss:$16 sps:$4 sm:$0xff]   ;;  %v1638_v5 = vld [vmem:[%s2229_s0 + $0x16c] ss:$16 sps:$4 sm:$0xff]   ;;  %v1631_v6 = vld [vmem:[%s2229_s0 + $0x120] ss:$16 sps:$4 sm:$0xff]  }
  0x18   :  { %896 = vmatprep.subr.bf16.mxu0 %v1680_v0  ;;  %v1634_v7 = vld [vmem:[%s2229_s0 + $0x144] ss:$16 sps:$4 sm:$0xff]   ;;  %v1642_v8 = vld [vmem:[%s2229_s0 + $0x168] ss:$16 sps:$4 sm:$0xff]   ;;  %v1644_v9 = vld [vmem:[%s2229_s0 + $0x18c] ss:$16 sps:$4 sm:$0xff]  }
  0x19   :  { %v1637_v10 = vld [vmem:[%s2229_s0 + $0x140] ss:$16 sps:$4 sm:$0xff]   ;;  %v1640_v11 = vld [vmem:[%s2229_s0 + $0x164] ss:$16 sps:$4 sm:$0xff]   ;;  %v1650_v13 = vld [vmem:[%s2229_s0 + $0x1ac] ss:$16 sps:$4 sm:$0xff]  }
  0x1a   :  { %720 = vmatpush1.bf16.msra.mxu1 %v1553_v12  ;;  %v1648_v12 = vld [vmem:[%s2229_s0 + $0x188] ss:$16 sps:$4 sm:$0xff]   ;;  %v1656_v17 = vld [vmem:[%s2229_s0 + $0x1cc] ss:$16 sps:$4 sm:$0xff]  }
  0x1b   :  { %721 = vmatprep.subr.bf16.mxu1 %v1680_v0  ;;  %897 = vmatpush1.bf16.msra.mxu0 %v1562_v15  ;;  %v1646_v15 = vld [vmem:[%s2229_s0 + $0x184] ss:$16 sps:$4 sm:$0xff]   ;;  %v1654_v16 = vld [vmem:[%s2229_s0 + $0x1a8] ss:$16 sps:$4 sm:$0xff]  }
  0x1c   :  { %898 = vmatprep.subr.bf16.mxu0 %v1680_v0 }
  0x1e   :  { %722 = vmatpush1.bf16.msra.mxu1 %v1555_v14  ;;  %v1643_v14 = vld [vmem:[%s2229_s0 + $0x160] ss:$16 sps:$4 sm:$0xff]  }
  0x1f   :  { %723 = vmatprep.subr.bf16.mxu1 %v1680_v0  ;;  %899 = vmatpush1.bf16.msra.mxu0 %v1564_v19  ;;  %v1652_v19 = vld [vmem:[%s2229_s0 + $0x1a4] ss:$16 sps:$4 sm:$0xff]  }
  0x20   :  { %900 = vmatprep.subr.bf16.mxu0 %v1680_v0 }
  0x22   :  { %724 = vmatpush1.bf16.msra.mxu1 %v1557_v18  ;;  %v1649_v18 = vld [vmem:[%s2229_s0 + $0x180] ss:$16 sps:$4 sm:$0xff]  }
  0x23   :  { %725 = vmatprep.subr.bf16.mxu1 %v1680_v0  ;;  %901 = vmatpush1.bf16.msra.mxu0 %v1566_v21  ;;  %v1662_v21 = vld [vmem:[%s2229_s0 + $0x1ec] ss:$16 sps:$4 sm:$0xff]  }
  0x24   :  { %902 = vmatprep.subr.bf16.mxu0 %v1680_v0 }
  0x26   :  { %726 = vmatpush1.bf16.msra.mxu1 %v1559_v20  ;;  %v1660_v20 = vld [vmem:[%s2229_s0 + $0x1c8] ss:$16 sps:$4 sm:$0xff]  }
  0x27   :  { %727 = vmatprep.subr.bf16.mxu1 %v1680_v0  ;;  %903 = vmatpush1.bf16.msra.mxu0 %v1568_v23  ;;  %v1658_v23 = vld [vmem:[%s2229_s0 + $0x1c4] ss:$16 sps:$4 sm:$0xff]  }
  0x28   :  { %904 = vmatprep.subr.bf16.mxu0 %v1680_v0 }
  0x2a   :  { %728 = vmatpush1.bf16.msra.mxu1 %v1561_v22  ;;  %v1655_v22 = vld [vmem:[%s2229_s0 + $0x1a0] ss:$16 sps:$4 sm:$0xff]  }
  0x2b   :  { %729 = vmatprep.subr.bf16.mxu1 %v1680_v0  ;;  %905 = vmatpush1.bf16.msra.mxu0 %v1570_v25  ;;  %v1668_v25 = vld [vmem:[%s2229_s0 + $0x20c] ss:$16 sps:$4 sm:$0xff]  }
  0x2e   :  { %730 = vmatpush1.bf16.msra.mxu1 %v1563_v24  ;;  %917 = vmatmul.mubr.bf16.vlgmr.msra.gmra.mrb[0].mxu0 %v1572_v27  ;;  %v1666_v24 = vld [vmem:[%s2229_s0 + $0x1e8] ss:$16 sps:$4 sm:$0xff]   ;;  %v1664_v27 = vld [vmem:[%s2229_s0 + $0x1e4] ss:$16 sps:$4 sm:$0xff]  }
  0x2f   :  { %731 = vmatprep.subr.bf16.mxu1 %v1680_v0  ;;  %1383 = vmatprep.mubr.msk.bf16.mxu0 %vm652_vm0, %v1578_v28  ;;  %v1672_v28 = vld [vmem:[%s2229_s0 + $0x208] ss:$16 sps:$4 sm:$0xff]  }
  0x32   :  { %732 = vmatpush1.bf16.msra.mxu1 %v1565_v26  ;;  %v1661_v26 = vld [vmem:[%s2229_s0 + $0x1c0] ss:$16 sps:$4 sm:$0xff]  }
  0x33   :  { %733 = vmatprep.subr.bf16.mxu1 %v1680_v0 }
  0x36   :  { %734 = vmatpush1.bf16.msra.mxu1 %v1567_v29  ;;  %925 = vmatmul.mubr.bf16.gmra.mrb[4].mxu0 %v1582_v31  ;;  %v1674_v29 = vld [vmem:[%s2229_s0 + $0x22c] ss:$16 sps:$4 sm:$0xff]   ;;  %v1670_v31 = vld [vmem:[%s2229_s0 + $0x204] ss:$16 sps:$4 sm:$0xff]  }
  0x37   :  { %735 = vmatprep.subr.bf16.mxu1 %v1680_v0  ;;  %1384 = vmatprep.mubr.msk.bf16.mxu0 %vm652_vm0, %v1584_v32  ;;  %v1678_v32 = vld [vmem:[%s2229_s0 + $0x228] ss:$16 sps:$4 sm:$0xff]  }
  0x3a   :  { %736 = vmatpush1.bf16.msra.mxu1 %v1569_v30  ;;  %v1667_v30 = vld [vmem:[%s2229_s0 + $0x1e0] ss:$16 sps:$4 sm:$0xff]  }
  0x3b   :  { %737 = vmatprep.subr.bf16.mxu1 %v1680_v0  ;;  %v1630_v0 = vld [vmem:[%s2229_s0 + $0x128] ss:$16 sps:$4 sm:$0xff]  }
  0x3e   :  { %738 = vmatpush1.bf16.msra.mxu1 %v1571_v33  ;;  %933 = vmatmul.mubr.bf16.gmra.mrb[8].mxu0 %v1588_v36  ;;  %v1673_v33 = vld [vmem:[%s2229_s0 + $0x200] ss:$16 sps:$4 sm:$0xff]  }
  0x3f   :  { %1385 = vmatprep.mubr.msk.bf16.mxu0 %vm652_vm0, %v1590_v37 }
  0x41   :  { %740 = vmatmul.mubr.bf16.vlgmr.msra.gmra.mrb[0].mxu1 %v1575_v34  ;;  %v1676_v34 = vld [vmem:[%s2229_s0 + $0x224] ss:$16 sps:$4 sm:$0xff]  }
  0x42   :  { %747 = vmatprep.mubr.bf16.mxu1 %v1580_v35  ;;  %v1679_v35 = vld [vmem:[%s2229_s0 + $0x220] ss:$16 sps:$4 sm:$0xff]  }
  0x46   :  { %941 = vmatmul.mubr.bf16.gmra.mrb[12].mxu0 %v1594_v40 }
  0x47   :  { %1386 = vmatprep.mubr.msk.bf16.mxu0 %vm652_vm0, %v1596_v41 }
  0x49   :  { %748 = vmatmul.mubr.bf16.gmra.mrb[4].mxu1 %v1583_v38 }
  0x4a   :  { %755 = vmatprep.mubr.bf16.mxu1 %v1586_v39 }
  0x4e   :  { %949 = vmatmul.mubr.bf16.gmra.mrb[16].mxu0 %v1600_v44  ;;  %v2046_v44 = vld [vmem:[%s2230_s2] ss:$0 sm:$0xff] }
  0x4f   :  { %1387 = vmatprep.mubr.msk.bf16.mxu0 %vm652_vm0, %v1602_v45 }
  0x51   :  { %756 = vmatmul.mubr.bf16.gmra.mrb[8].mxu1 %v1589_v42 }
  0x52   :  { %763 = vmatprep.mubr.bf16.mxu1 %v1592_v43 }
  0x56   :  { %957 = vmatmul.mubr.bf16.gmra.mrb[20].mxu0 %v1606_v48 }
  0x57   :  { %1388 = vmatprep.mubr.msk.bf16.mxu0 %vm652_vm0, %v1608_v49 }
  0x59   :  { %764 = vmatmul.mubr.bf16.gmra.mrb[12].mxu1 %v1595_v46 }
  0x5a   :  { %771 = vmatprep.mubr.bf16.mxu1 %v1598_v47 }
  0x5e   :  { %965 = vmatmul.mubr.bf16.gmra.mrb[24].mxu0 %v1612_v52 }
  0x5f   :  { %1389 = vmatprep.mubr.msk.bf16.mxu0 %vm652_vm0, %v1614_v53 }
  0x61   :  { %772 = vmatmul.mubr.bf16.gmra.mrb[16].mxu1 %v1601_v50 }
  0x62   :  { %779 = vmatprep.mubr.bf16.mxu1 %v1604_v51 }
  0x66   :  { %973 = vmatmul.mubr.bf16.gmra.mrb[28].mxu0 %v1618_v56 }
  0x67   :  { %1390 = vmatprep.mubr.msk.bf16.mxu0 %vm652_vm0, %v1620_v57 }
  0x69   :  { %780 = vmatmul.mubr.bf16.gmra.mrb[20].mxu1 %v1607_v54 }
  0x6a   :  { %787 = vmatprep.mubr.bf16.mxu1 %v1610_v55 }
  0x6e   :  { %981 = vmatmul.mubr.bf16.gmra.mrb[32].mxu0 %v1624_v60 }
  0x6f   :  { %1391 = vmatprep.mubr.msk.bf16.mxu0 %vm652_vm0, %v1626_v61 }
  0x71   :  { %788 = vmatmul.mubr.bf16.gmra.mrb[24].mxu1 %v1613_v58 }
  0x72   :  { %795 = vmatprep.mubr.bf16.mxu1 %v1616_v59 }
  0x76   :  { %989 = vmatmul.mubr.bf16.gmra.mrb[36].mxu0 %v1630_v0 }
  0x77   :  { %1392 = vmatprep.mubr.msk.bf16.mxu0 %vm652_vm0, %v1632_v1 }
  0x79   :  { %796 = vmatmul.mubr.bf16.gmra.mrb[28].mxu1 %v1619_v62 }
  0x7a   :  { %803 = vmatprep.mubr.bf16.mxu1 %v1622_v63 }
  0x7e   :  { %997 = vmatmul.mubr.bf16.gmra.mrb[40].mxu0 %v1636_v4 }
  0x7f   :  { %1393 = vmatprep.mubr.msk.bf16.mxu0 %vm652_vm0, %v1638_v5 }
  0x81   :  { %804 = vmatmul.mubr.bf16.gmra.mrb[32].mxu1 %v1625_v2 }
  0x82   :  { %811 = vmatprep.mubr.bf16.mxu1 %v1628_v3 }
  0x86   :  { %1005 = vmatmul.mubr.bf16.gmra.mrb[44].mxu0 %v1642_v8 }
  0x87   :  { %1394 = vmatprep.mubr.msk.bf16.mxu0 %vm652_vm0, %v1644_v9 }
  0x89   :  { %812 = vmatmul.mubr.bf16.gmra.mrb[36].mxu1 %v1631_v6 }
  0x8a   :  { %819 = vmatprep.mubr.bf16.mxu1 %v1634_v7 }
  0x8e   :  { %1013 = vmatmul.mubr.bf16.gmra.mrb[48].mxu0 %v1648_v12 }
  0x8f   :  { %1395 = vmatprep.mubr.msk.bf16.mxu0 %vm652_vm0, %v1650_v13 }
  0x91   :  { %820 = vmatmul.mubr.bf16.gmra.mrb[40].mxu1 %v1637_v10 }
  0x92   :  { %827 = vmatprep.mubr.bf16.mxu1 %v1640_v11 }
  0x96   :  { %1021 = vmatmul.mubr.bf16.gmra.mrb[52].mxu0 %v1654_v16 }
  0x97   :  { %1396 = vmatprep.mubr.msk.bf16.mxu0 %vm652_vm0, %v1656_v17 }
  0x99   :  { %828 = vmatmul.mubr.bf16.gmra.mrb[44].mxu1 %v1643_v14 }
  0x9a   :  { %835 = vmatprep.mubr.bf16.mxu1 %v1646_v15 }
  0x9e   :  { %1029 = vmatmul.mubr.bf16.gmra.mrb[56].mxu0 %v1660_v20 }
  0x9f   :  { %1397 = vmatprep.mubr.msk.bf16.mxu0 %vm652_vm0, %v1662_v21 }
  0xa1   :  { %836 = vmatmul.mubr.bf16.gmra.mrb[48].mxu1 %v1649_v18 }
  0xa2   :  { %843 = vmatprep.mubr.bf16.mxu1 %v1652_v19 }
  0xa6   :  { %1037 = vmatmul.mubr.bf16.gmra.mrb[60].mxu0 %v1666_v24 }
  0xa7   :  { %1398 = vmatprep.mubr.msk.bf16.mxu0 %vm652_vm0, %v1668_v25 }
  0xa9   :  { %844 = vmatmul.mubr.bf16.gmra.mrb[52].mxu1 %v1655_v22 }
  0xaa   :  { %851 = vmatprep.mubr.bf16.mxu1 %v1658_v23 }
  0xae   :  { %1045 = vmatmul.mubr.bf16.gmra.mrb[64].mxu0 %v1672_v28 }
  0xaf   :  { %1399 = vmatprep.mubr.msk.bf16.mxu0 %vm652_vm0, %v1674_v29 }
  0xb1   :  { %852 = vmatmul.mubr.bf16.gmra.mrb[56].mxu1 %v1661_v26 }
  0xb2   :  { %859 = vmatprep.mubr.bf16.mxu1 %v1664_v27 }
  0xb6   :  { %1053 = vmatmul.mubr.bf16.gmra.mrb[68].mxu0 %v1678_v32 }
  0xb9   :  { %860 = vmatmul.mubr.bf16.gmra.mrb[60].mxu1 %v1667_v30 }
  0xba   :  { %867 = vmatprep.mubr.bf16.mxu1 %v1670_v31 }
  0xc1   :  { %868 = vmatmul.mubr.bf16.gmra.mrb[64].mxu1 %v1673_v33 }
  0xc2   :  { %875 = vmatprep.mubr.bf16.mxu1 %v1676_v34 }
  0xc9   :  { %876 = vmatmul.mubr.bf16.gmra.mrb[68].mxu1 %v1679_v35 }
 0x101   :  { %v918_v36 = vpop.f32.mrb[0].mxu0 }
 0x102   :  { %v920_v37 = vpop.f32.mrb[1].mxu0 }
 0x103   :  { %v921_v38 = vpop.f32.mrb[2].mxu0 }
 0x104   :  { %v923_v39 = vpop.f32.mrb[3].mxu0 }
 0x109   :  { %v926_v40 = vpop.f32.mrb[4].mxu0 }
 0x10a   :  { %v928_v41 = vpop.f32.mrb[5].mxu0 }
 0x10b   :  { %v929_v42 = vpop.f32.mrb[6].mxu0 }
 0x10c   :  { %v931_v43 = vpop.f32.mrb[7].mxu0 }
 0x111   :  { %v934_v48 = vpop.f32.mrb[8].mxu0 }
 0x112   :  { %v936_v50 = vpop.f32.mrb[9].mxu0 }
 0x113   :  { %v937_v54 = vpop.f32.mrb[10].mxu0 }
 0x114   :  { %v741_v45 = vpop.f32.mrb[0].mxu1  ;;  %v939_v55 = vpop.f32.mrb[11].mxu0 }
 0x115   :  { %v742_v46 = vadd.f32 %v2046_v44, %v741_v45  ;;  %v743_v47 = vpop.f32.mrb[1].mxu1 }
 0x116   :  { %v744_v49 = vpop.f32.mrb[2].mxu1 }
 0x117   :  { %v919_v51 = vadd.f32 %v918_v36, %v742_v46  ;;  %v745_v52 = vadd.f32 %v2046_v44, %v744_v49  ;;  %v746_v53 = vpop.f32.mrb[3].mxu1 }
 0x119   :  { %v1061_v56 = vmax.f32 %v919_v51, 0.0  ;;  %v922_v57 = vadd.f32 %v921_v38, %v745_v52  ;;  %v942_v0 = vpop.f32.mrb[12].mxu0 }
 0x11a   :  { %v944_v2 = vpop.f32.mrb[13].mxu0 }
 0x11b   :  { %v1436_v58 = vpack.c.bf16 %v1061_v56, %v1061_v56  ;;  %v1062_v59 = vmax.f32 %v922_v57, 0.0  ;;  %v945_v6 = vpop.f32.mrb[14].mxu0 }
 0x11c   :  { %v749_v60 = vpop.f32.mrb[4].mxu1  ;;  %v947_v7 = vpop.f32.mrb[15].mxu0 }
 0x11d   :  { %1242 = vst.msk [vmem:[%s2231_s3] sm:$0xf] %vm1241_vm1, %v1436_v58  ;;  %v1437_v61 = vpack.c.bf16 %v1062_v59, %v1062_v59  ;;  %v750_v62 = vadd.f32 %v2046_v44, %v749_v60  ;;  %v751_v63 = vpop.f32.mrb[5].mxu1 }
 0x11e   :  { %v752_v1 = vpop.f32.mrb[6].mxu1 }
 0x11f   :  { %1243 = vst.msk [vmem:[%s2231_s3 + $0x4] sm:$0xf] %vm1241_vm1, %v1437_v61  ;;  %v927_v3 = vadd.f32 %v926_v40, %v750_v62  ;;  %v753_v4 = vadd.f32 %v2046_v44, %v752_v1  ;;  %v754_v5 = vpop.f32.mrb[7].mxu1 }
 0x121   :  { %v1063_v8 = vmax.f32 %v927_v3, 0.0  ;;  %v930_v9 = vadd.f32 %v929_v42, %v753_v4  ;;  %v950_v16 = vpop.f32.mrb[16].mxu0 }
 0x122   :  { %v952_v18 = vpop.f32.mrb[17].mxu0 }
 0x123   :  { %v1438_v10 = vpack.c.bf16 %v1063_v8, %v1063_v8  ;;  %v1064_v11 = vmax.f32 %v930_v9, 0.0  ;;  %v953_v22 = vpop.f32.mrb[18].mxu0 }
 0x124   :  { %v757_v12 = vpop.f32.mrb[8].mxu1  ;;  %v955_v23 = vpop.f32.mrb[19].mxu0 }
 0x125   :  { %1244 = vst.msk [vmem:[%s2231_s3 + $0x8] sm:$0xf] %vm1241_vm1, %v1438_v10  ;;  %v1439_v13 = vpack.c.bf16 %v1064_v11, %v1064_v11  ;;  %v758_v14 = vadd.f32 %v2046_v44, %v757_v12  ;;  %v759_v15 = vpop.f32.mrb[9].mxu1 }
 0x126   :  { %v760_v17 = vpop.f32.mrb[10].mxu1 }
 0x127   :  { %1245 = vst.msk [vmem:[%s2231_s3 + $0xc] sm:$0xf] %vm1241_vm1, %v1439_v13  ;;  %v935_v19 = vadd.f32 %v934_v48, %v758_v14  ;;  %v761_v20 = vadd.f32 %v2046_v44, %v760_v17  ;;  %v762_v21 = vpop.f32.mrb[11].mxu1 }
 0x129   :  { %v1065_v24 = vmax.f32 %v935_v19, 0.0  ;;  %v938_v25 = vadd.f32 %v937_v54, %v761_v20  ;;  %v958_v32 = vpop.f32.mrb[20].mxu0 }
 0x12a   :  { %v960_v34 = vpop.f32.mrb[21].mxu0 }
 0x12b   :  { %v1440_v26 = vpack.c.bf16 %v1065_v24, %v1065_v24  ;;  %v1066_v27 = vmax.f32 %v938_v25, 0.0  ;;  %v961_v38 = vpop.f32.mrb[22].mxu0 }
 0x12c   :  { %v765_v28 = vpop.f32.mrb[12].mxu1  ;;  %v963_v39 = vpop.f32.mrb[23].mxu0 }
 0x12d   :  { %1246 = vst.msk [vmem:[%s2231_s3 + $0x10] sm:$0xf] %vm1241_vm1, %v1440_v26  ;;  %v1441_v29 = vpack.c.bf16 %v1066_v27, %v1066_v27  ;;  %v766_v30 = vadd.f32 %v2046_v44, %v765_v28  ;;  %v767_v31 = vpop.f32.mrb[13].mxu1 }
 0x12e   :  { %v768_v33 = vpop.f32.mrb[14].mxu1 }
 0x12f   :  { %1247 = vst.msk [vmem:[%s2231_s3 + $0x14] sm:$0xf] %vm1241_vm1, %v1441_v29  ;;  %v943_v35 = vadd.f32 %v942_v0, %v766_v30  ;;  %v769_v36 = vadd.f32 %v2046_v44, %v768_v33  ;;  %v770_v37 = vpop.f32.mrb[15].mxu1 }
 0x131   :  { %v1067_v40 = vmax.f32 %v943_v35, 0.0  ;;  %v946_v41 = vadd.f32 %v945_v6, %v769_v36  ;;  %v966_v49 = vpop.f32.mrb[24].mxu0 }
 0x132   :  { %v968_v51 = vpop.f32.mrb[25].mxu0 }
 0x133   :  { %v1442_v42 = vpack.c.bf16 %v1067_v40, %v1067_v40  ;;  %v1068_v43 = vmax.f32 %v946_v41, 0.0  ;;  %v969_v55 = vpop.f32.mrb[26].mxu0 }
 0x134   :  { %v773_v45 = vpop.f32.mrb[16].mxu1  ;;  %v971_v56 = vpop.f32.mrb[27].mxu0 }
 0x135   :  { %1248 = vst.msk [vmem:[%s2231_s3 + $0x18] sm:$0xf] %vm1241_vm1, %v1442_v42  ;;  %v1443_v46 = vpack.c.bf16 %v1068_v43, %v1068_v43  ;;  %v774_v47 = vadd.f32 %v2046_v44, %v773_v45  ;;  %v775_v48 = vpop.f32.mrb[17].mxu1 }
 0x136   :  { %v776_v50 = vpop.f32.mrb[18].mxu1 }
 0x137   :  { %1249 = vst.msk [vmem:[%s2231_s3 + $0x1c] sm:$0xf] %vm1241_vm1, %v1443_v46  ;;  %v951_v52 = vadd.f32 %v950_v16, %v774_v47  ;;  %v777_v53 = vadd.f32 %v2046_v44, %v776_v50  ;;  %v778_v54 = vpop.f32.mrb[19].mxu1 }
 0x139   :  { %v1069_v57 = vmax.f32 %v951_v52, 0.0  ;;  %v954_v58 = vadd.f32 %v953_v22, %v777_v53  ;;  %v974_v1 = vpop.f32.mrb[28].mxu0 }
 0x13a   :  { %v976_v3 = vpop.f32.mrb[29].mxu0 }
 0x13b   :  { %v1444_v59 = vpack.c.bf16 %v1069_v57, %v1069_v57  ;;  %v1070_v60 = vmax.f32 %v954_v58, 0.0  ;;  %v977_v7 = vpop.f32.mrb[30].mxu0 }
 0x13c   :  { %v781_v61 = vpop.f32.mrb[20].mxu1  ;;  %v979_v8 = vpop.f32.mrb[31].mxu0 }
 0x13d   :  { %1250 = vst.msk [vmem:[%s2231_s3 + $0x20] sm:$0xf] %vm1241_vm1, %v1444_v59  ;;  %v1445_v62 = vpack.c.bf16 %v1070_v60, %v1070_v60  ;;  %v782_v63 = vadd.f32 %v2046_v44, %v781_v61  ;;  %v783_v0 = vpop.f32.mrb[21].mxu1 }
 0x13e   :  { %v784_v2 = vpop.f32.mrb[22].mxu1 }
 0x13f   :  { %1251 = vst.msk [vmem:[%s2231_s3 + $0x24] sm:$0xf] %vm1241_vm1, %v1445_v62  ;;  %v959_v4 = vadd.f32 %v958_v32, %v782_v63  ;;  %v785_v5 = vadd.f32 %v2046_v44, %v784_v2  ;;  %v786_v6 = vpop.f32.mrb[23].mxu1 }
 0x141   :  { %v1071_v9 = vmax.f32 %v959_v4, 0.0  ;;  %v962_v10 = vadd.f32 %v961_v38, %v785_v5  ;;  %v982_v17 = vpop.f32.mrb[32].mxu0 }
 0x142   :  { %v984_v19 = vpop.f32.mrb[33].mxu0 }
 0x143   :  { %v1446_v11 = vpack.c.bf16 %v1071_v9, %v1071_v9  ;;  %v1072_v12 = vmax.f32 %v962_v10, 0.0  ;;  %v985_v23 = vpop.f32.mrb[34].mxu0 }
 0x144   :  { %v789_v13 = vpop.f32.mrb[24].mxu1  ;;  %v987_v24 = vpop.f32.mrb[35].mxu0 }
 0x145   :  { %1252 = vst.msk [vmem:[%s2231_s3 + $0x28] sm:$0xf] %vm1241_vm1, %v1446_v11  ;;  %v1447_v14 = vpack.c.bf16 %v1072_v12, %v1072_v12  ;;  %v790_v15 = vadd.f32 %v2046_v44, %v789_v13  ;;  %v791_v16 = vpop.f32.mrb[25].mxu1 }
 0x146   :  { %v792_v18 = vpop.f32.mrb[26].mxu1 }
 0x147   :  { %1253 = vst.msk [vmem:[%s2231_s3 + $0x2c] sm:$0xf] %vm1241_vm1, %v1447_v14  ;;  %v967_v20 = vadd.f32 %v966_v49, %v790_v15  ;;  %v793_v21 = vadd.f32 %v2046_v44, %v792_v18  ;;  %v794_v22 = vpop.f32.mrb[27].mxu1 }
 0x149   :  { %v1073_v25 = vmax.f32 %v967_v20, 0.0  ;;  %v970_v26 = vadd.f32 %v969_v55, %v793_v21  ;;  %v990_v33 = vpop.f32.mrb[36].mxu0 }
 0x14a   :  { %v992_v35 = vpop.f32.mrb[37].mxu0 }
 0x14b   :  { %v1448_v27 = vpack.c.bf16 %v1073_v25, %v1073_v25  ;;  %v1074_v28 = vmax.f32 %v970_v26, 0.0  ;;  %v993_v39 = vpop.f32.mrb[38].mxu0 }
 0x14c   :  { %v797_v29 = vpop.f32.mrb[28].mxu1  ;;  %v995_v40 = vpop.f32.mrb[39].mxu0 }
 0x14d   :  { %1254 = vst.msk [vmem:[%s2231_s3 + $0x30] sm:$0xf] %vm1241_vm1, %v1448_v27  ;;  %v1449_v30 = vpack.c.bf16 %v1074_v28, %v1074_v28  ;;  %v798_v31 = vadd.f32 %v2046_v44, %v797_v29  ;;  %v799_v32 = vpop.f32.mrb[29].mxu1 }
 0x14e   :  { %v800_v34 = vpop.f32.mrb[30].mxu1 }
 0x14f   :  { %1255 = vst.msk [vmem:[%s2231_s3 + $0x34] sm:$0xf] %vm1241_vm1, %v1449_v30  ;;  %v975_v36 = vadd.f32 %v974_v1, %v798_v31  ;;  %v801_v37 = vadd.f32 %v2046_v44, %v800_v34  ;;  %v802_v38 = vpop.f32.mrb[31].mxu1 }
 0x151   :  { %v1075_v41 = vmax.f32 %v975_v36, 0.0  ;;  %v978_v42 = vadd.f32 %v977_v7, %v801_v37  ;;  %v998_v50 = vpop.f32.mrb[40].mxu0 }
 0x152   :  { %v1000_v52 = vpop.f32.mrb[41].mxu0 }
 0x153   :  { %v1450_v43 = vpack.c.bf16 %v1075_v41, %v1075_v41  ;;  %v1076_v45 = vmax.f32 %v978_v42, 0.0  ;;  %v1001_v56 = vpop.f32.mrb[42].mxu0 }
 0x154   :  { %v805_v46 = vpop.f32.mrb[32].mxu1  ;;  %v1003_v57 = vpop.f32.mrb[43].mxu0 }
 0x155   :  { %1256 = vst.msk [vmem:[%s2231_s3 + $0x38] sm:$0xf] %vm1241_vm1, %v1450_v43  ;;  %v1451_v47 = vpack.c.bf16 %v1076_v45, %v1076_v45  ;;  %v806_v48 = vadd.f32 %v2046_v44, %v805_v46  ;;  %v807_v49 = vpop.f32.mrb[33].mxu1 }
 0x156   :  { %v808_v51 = vpop.f32.mrb[34].mxu1 }
 0x157   :  { %1257 = vst.msk [vmem:[%s2231_s3 + $0x3c] sm:$0xf] %vm1241_vm1, %v1451_v47  ;;  %v983_v53 = vadd.f32 %v982_v17, %v806_v48  ;;  %v809_v54 = vadd.f32 %v2046_v44, %v808_v51  ;;  %v810_v55 = vpop.f32.mrb[35].mxu1 }
 0x159   :  { %v1077_v58 = vmax.f32 %v983_v53, 0.0  ;;  %v986_v59 = vadd.f32 %v985_v23, %v809_v54  ;;  %v1006_v2 = vpop.f32.mrb[44].mxu0 }
 0x15a   :  { %v1008_v4 = vpop.f32.mrb[45].mxu0 }
 0x15b   :  { %v1452_v60 = vpack.c.bf16 %v1077_v58, %v1077_v58  ;;  %v1078_v61 = vmax.f32 %v986_v59, 0.0  ;;  %v1009_v8 = vpop.f32.mrb[46].mxu0 }
 0x15c   :  { %v813_v62 = vpop.f32.mrb[36].mxu1  ;;  %v1011_v9 = vpop.f32.mrb[47].mxu0 }
 0x15d   :  { %1258 = vst.msk [vmem:[%s2231_s3 + $0x40] sm:$0xf] %vm1241_vm1, %v1452_v60  ;;  %v1453_v63 = vpack.c.bf16 %v1078_v61, %v1078_v61  ;;  %v814_v0 = vadd.f32 %v2046_v44, %v813_v62  ;;  %v815_v1 = vpop.f32.mrb[37].mxu1 }
 0x15e   :  { %v816_v3 = vpop.f32.mrb[38].mxu1 }
 0x15f   :  { %1259 = vst.msk [vmem:[%s2231_s3 + $0x44] sm:$0xf] %vm1241_vm1, %v1453_v63  ;;  %v991_v5 = vadd.f32 %v990_v33, %v814_v0  ;;  %v817_v6 = vadd.f32 %v2046_v44, %v816_v3  ;;  %v818_v7 = vpop.f32.mrb[39].mxu1 }
 0x161   :  { %v1079_v10 = vmax.f32 %v991_v5, 0.0  ;;  %v994_v11 = vadd.f32 %v993_v39, %v817_v6  ;;  %v1014_v18 = vpop.f32.mrb[48].mxu0 }
 0x162   :  { %v1016_v20 = vpop.f32.mrb[49].mxu0 }
 0x163   :  { %v1454_v12 = vpack.c.bf16 %v1079_v10, %v1079_v10  ;;  %v1080_v13 = vmax.f32 %v994_v11, 0.0  ;;  %v1017_v24 = vpop.f32.mrb[50].mxu0 }
 0x164   :  { %v821_v14 = vpop.f32.mrb[40].mxu1  ;;  %v1019_v25 = vpop.f32.mrb[51].mxu0 }
 0x165   :  { %1260 = vst.msk [vmem:[%s2231_s3 + $0x48] sm:$0xf] %vm1241_vm1, %v1454_v12  ;;  %v1455_v15 = vpack.c.bf16 %v1080_v13, %v1080_v13  ;;  %v822_v16 = vadd.f32 %v2046_v44, %v821_v14  ;;  %v823_v17 = vpop.f32.mrb[41].mxu1 }
 0x166   :  { %v824_v19 = vpop.f32.mrb[42].mxu1 }
 0x167   :  { %1261 = vst.msk [vmem:[%s2231_s3 + $0x4c] sm:$0xf] %vm1241_vm1, %v1455_v15  ;;  %v999_v21 = vadd.f32 %v998_v50, %v822_v16  ;;  %v825_v22 = vadd.f32 %v2046_v44, %v824_v19  ;;  %v826_v23 = vpop.f32.mrb[43].mxu1 }
 0x169   :  { %v1081_v26 = vmax.f32 %v999_v21, 0.0  ;;  %v1002_v27 = vadd.f32 %v1001_v56, %v825_v22  ;;  %v1022_v34 = vpop.f32.mrb[52].mxu0 }
 0x16a   :  { %v1024_v36 = vpop.f32.mrb[53].mxu0 }
 0x16b   :  { %v1456_v28 = vpack.c.bf16 %v1081_v26, %v1081_v26  ;;  %v1082_v29 = vmax.f32 %v1002_v27, 0.0  ;;  %v1025_v40 = vpop.f32.mrb[54].mxu0 }
 0x16c   :  { %v829_v30 = vpop.f32.mrb[44].mxu1  ;;  %v1027_v41 = vpop.f32.mrb[55].mxu0 }
 0x16d   :  { %1262 = vst.msk [vmem:[%s2231_s3 + $0x50] sm:$0xf] %vm1241_vm1, %v1456_v28  ;;  %v1457_v31 = vpack.c.bf16 %v1082_v29, %v1082_v29  ;;  %v830_v32 = vadd.f32 %v2046_v44, %v829_v30  ;;  %v831_v33 = vpop.f32.mrb[45].mxu1 }
 0x16e   :  { %v832_v35 = vpop.f32.mrb[46].mxu1 }
 0x16f   :  { %1263 = vst.msk [vmem:[%s2231_s3 + $0x54] sm:$0xf] %vm1241_vm1, %v1457_v31  ;;  %v1007_v37 = vadd.f32 %v1006_v2, %v830_v32  ;;  %v833_v38 = vadd.f32 %v2046_v44, %v832_v35  ;;  %v834_v39 = vpop.f32.mrb[47].mxu1 }
 0x171   :  { %v1083_v42 = vmax.f32 %v1007_v37, 0.0  ;;  %v1010_v43 = vadd.f32 %v1009_v8, %v833_v38  ;;  %v1030_v51 = vpop.f32.mrb[56].mxu0 }
 0x172   :  { %v1032_v53 = vpop.f32.mrb[57].mxu0 }
 0x173   :  { %v1458_v45 = vpack.c.bf16 %v1083_v42, %v1083_v42  ;;  %v1084_v46 = vmax.f32 %v1010_v43, 0.0  ;;  %v1033_v57 = vpop.f32.mrb[58].mxu0 }
 0x174   :  { %v837_v47 = vpop.f32.mrb[48].mxu1  ;;  %v1035_v58 = vpop.f32.mrb[59].mxu0 }
 0x175   :  { %1264 = vst.msk [vmem:[%s2231_s3 + $0x58] sm:$0xf] %vm1241_vm1, %v1458_v45  ;;  %v1459_v48 = vpack.c.bf16 %v1084_v46, %v1084_v46  ;;  %v838_v49 = vadd.f32 %v2046_v44, %v837_v47  ;;  %v839_v50 = vpop.f32.mrb[49].mxu1 }
 0x176   :  { %v840_v52 = vpop.f32.mrb[50].mxu1 }
 0x177   :  { %1265 = vst.msk [vmem:[%s2231_s3 + $0x5c] sm:$0xf] %vm1241_vm1, %v1459_v48  ;;  %v1015_v54 = vadd.f32 %v1014_v18, %v838_v49  ;;  %v841_v55 = vadd.f32 %v2046_v44, %v840_v52  ;;  %v842_v56 = vpop.f32.mrb[51].mxu1 }
 0x179   :  { %v1085_v59 = vmax.f32 %v1015_v54, 0.0  ;;  %v1018_v60 = vadd.f32 %v1017_v24, %v841_v55  ;;  %v1038_v3 = vpop.f32.mrb[60].mxu0 }
 0x17a   :  { %v1040_v5 = vpop.f32.mrb[61].mxu0 }
 0x17b   :  { %v1460_v61 = vpack.c.bf16 %v1085_v59, %v1085_v59  ;;  %v1086_v62 = vmax.f32 %v1018_v60, 0.0  ;;  %v1041_v9 = vpop.f32.mrb[62].mxu0 }
 0x17c   :  { %v845_v63 = vpop.f32.mrb[52].mxu1  ;;  %v1043_v10 = vpop.f32.mrb[63].mxu0 }
 0x17d   :  { %1266 = vst.msk [vmem:[%s2231_s3 + $0x60] sm:$0xf] %vm1241_vm1, %v1460_v61  ;;  %v1461_v0 = vpack.c.bf16 %v1086_v62, %v1086_v62  ;;  %v846_v1 = vadd.f32 %v2046_v44, %v845_v63  ;;  %v847_v2 = vpop.f32.mrb[53].mxu1 }
 0x17e   :  { %v848_v4 = vpop.f32.mrb[54].mxu1 }
 0x17f   :  { %1267 = vst.msk [vmem:[%s2231_s3 + $0x64] sm:$0xf] %vm1241_vm1, %v1461_v0  ;;  %v1023_v6 = vadd.f32 %v1022_v34, %v846_v1  ;;  %v849_v7 = vadd.f32 %v2046_v44, %v848_v4  ;;  %v850_v8 = vpop.f32.mrb[55].mxu1 }
 0x181   :  { %v1087_v11 = vmax.f32 %v1023_v6, 0.0  ;;  %v1026_v12 = vadd.f32 %v1025_v40, %v849_v7  ;;  %v1046_v19 = vpop.f32.mrb[64].mxu0 }
 0x182   :  { %v1048_v21 = vpop.f32.mrb[65].mxu0 }
 0x183   :  { %v1462_v13 = vpack.c.bf16 %v1087_v11, %v1087_v11  ;;  %v1088_v14 = vmax.f32 %v1026_v12, 0.0  ;;  %v1049_v25 = vpop.f32.mrb[66].mxu0 }
 0x184   :  { %v853_v15 = vpop.f32.mrb[56].mxu1  ;;  %v1051_v26 = vpop.f32.mrb[67].mxu0 }
 0x185   :  { %1268 = vst.msk [vmem:[%s2231_s3 + $0x68] sm:$0xf] %vm1241_vm1, %v1462_v13  ;;  %v1463_v16 = vpack.c.bf16 %v1088_v14, %v1088_v14  ;;  %v854_v17 = vadd.f32 %v2046_v44, %v853_v15  ;;  %v855_v18 = vpop.f32.mrb[57].mxu1 }
 0x186   :  { %v856_v20 = vpop.f32.mrb[58].mxu1 }
 0x187   :  { %1269 = vst.msk [vmem:[%s2231_s3 + $0x6c] sm:$0xf] %vm1241_vm1, %v1463_v16  ;;  %v1031_v22 = vadd.f32 %v1030_v51, %v854_v17  ;;  %v857_v23 = vadd.f32 %v2046_v44, %v856_v20  ;;  %v858_v24 = vpop.f32.mrb[59].mxu1 }
 0x189   :  { %v1089_v27 = vmax.f32 %v1031_v22, 0.0  ;;  %v1034_v28 = vadd.f32 %v1033_v57, %v857_v23  ;;  %v1054_v35 = vpop.f32.mrb[68].mxu0 }
 0x18a   :  { %v1056_v37 = vpop.f32.mrb[69].mxu0 }
 0x18b   :  { %v1464_v29 = vpack.c.bf16 %v1089_v27, %v1089_v27  ;;  %v1090_v30 = vmax.f32 %v1034_v28, 0.0  ;;  %v1057_v41 = vpop.f32.mrb[70].mxu0 }
 0x18c   :  { %v861_v31 = vpop.f32.mrb[60].mxu1  ;;  %v1059_v42 = vpop.f32.mrb[71].mxu0 }
 0x18d   :  { %1270 = vst.msk [vmem:[%s2231_s3 + $0x70] sm:$0xf] %vm1241_vm1, %v1464_v29  ;;  %v1465_v32 = vpack.c.bf16 %v1090_v30, %v1090_v30  ;;  %v862_v33 = vadd.f32 %v2046_v44, %v861_v31  ;;  %v863_v34 = vpop.f32.mrb[61].mxu1 }
 0x18e   :  { %v864_v36 = vpop.f32.mrb[62].mxu1 }
 0x18f   :  { %1271 = vst.msk [vmem:[%s2231_s3 + $0x74] sm:$0xf] %vm1241_vm1, %v1465_v32  ;;  %v1039_v38 = vadd.f32 %v1038_v3, %v862_v33  ;;  %v865_v39 = vadd.f32 %v2046_v44, %v864_v36  ;;  %v866_v40 = vpop.f32.mrb[63].mxu1 }
 0x191   :  { %v1091_v43 = vmax.f32 %v1039_v38, 0.0  ;;  %v1042_v45 = vadd.f32 %v1041_v9, %v865_v39 }
 0x193   :  { %v1466_v46 = vpack.c.bf16 %v1091_v43, %v1091_v43  ;;  %v1092_v47 = vmax.f32 %v1042_v45, 0.0 }
 0x194   :  { %v869_v48 = vpop.f32.mrb[64].mxu1 }
 0x195   :  { %1272 = vst.msk [vmem:[%s2231_s3 + $0x78] sm:$0xf] %vm1241_vm1, %v1466_v46  ;;  %v1467_v49 = vpack.c.bf16 %v1092_v47, %v1092_v47  ;;  %v870_v50 = vadd.f32 %v2046_v44, %v869_v48  ;;  %v871_v51 = vpop.f32.mrb[65].mxu1 }
 0x196   :  { %v872_v52 = vpop.f32.mrb[66].mxu1 }
 0x197   :  { %1273 = vst.msk [vmem:[%s2231_s3 + $0x7c] sm:$0xf] %vm1241_vm1, %v1467_v49  ;;  %v1047_v53 = vadd.f32 %v1046_v19, %v870_v50  ;;  %v873_v54 = vadd.f32 %v2046_v44, %v872_v52  ;;  %v874_v55 = vpop.f32.mrb[67].mxu1 }
 0x199   :  { %v1093_v56 = vmax.f32 %v1047_v53, 0.0  ;;  %v1050_v57 = vadd.f32 %v1049_v25, %v873_v54 }
 0x19b   :  { %v1468_v58 = vpack.c.bf16 %v1093_v56, %v1093_v56  ;;  %v1094_v59 = vmax.f32 %v1050_v57, 0.0 }
 0x19c   :  { %v877_v60 = vpop.f32.mrb[68].mxu1 }
 0x19d   :  { %1274 = vst.msk [vmem:[%s2231_s3 + $0x80] sm:$0xf] %vm1241_vm1, %v1468_v58  ;;  %v1469_v61 = vpack.c.bf16 %v1094_v59, %v1094_v59  ;;  %v878_v62 = vadd.f32 %v2046_v44, %v877_v60  ;;  %v879_v63 = vpop.f32.mrb[69].mxu1 }
 0x19e   :  { %v880_v0 = vpop.f32.mrb[70].mxu1 }
 0x19f   :  { %1275 = vst.msk [vmem:[%s2231_s3 + $0x84] sm:$0xf] %vm1241_vm1, %v1469_v61  ;;  %v1055_v1 = vadd.f32 %v1054_v35, %v878_v62  ;;  %v881_v2 = vadd.f32 %v2046_v44, %v880_v0  ;;  %v882_v3 = vpop.f32.mrb[71].mxu1 }
 0x1a1   :  { %v1095_v4 = vmax.f32 %v1055_v1, 0.0  ;;  %v1058_v5 = vadd.f32 %v1057_v41, %v881_v2 }
 0x1a3   :  { %v1470_v6 = vpack.c.bf16 %v1095_v4, %v1095_v4  ;;  %v1096_v7 = vmax.f32 %v1058_v5, 0.0 }
 0x1a5   :  { %1276 = vst.msk [vmem:[%s2231_s3 + $0x88] sm:$0xf] %vm1241_vm1, %v1470_v6  ;;  %v1471_v8 = vpack.c.bf16 %v1096_v7, %v1096_v7 }
 0x1a7   :  { %1277 = vst.msk [vmem:[%s2231_s3 + $0x8c] sm:$0xf] %vm1241_vm1, %v1471_v8 }

// kernel: convnet_forward.7
= control target key start
LH: loop header
LB: loop body
LE: loop exit
PB: predicated region body
PF: predicated region fallthrough
CT: control target
= control target key end

     0   :  { %v113_v29 = vlaneseq  ;;  %v10141_v32 = vmov 1966171168   ;;  %v10142_v36 = vmov 0.0   ;;  %vm10143_vm0 = vmmov 0   ;;  %s13242_s0 = inlined_call_operand.vmem [shape: bf16[25,2,576], index: 0, kind: input, shape index: {}]   ;;  %s13243_s1 = inlined_call_operand.vmem [shape: bf16[576,96], index: 1, kind: input, shape index: {}]   ;;  %s13244_s2 = inlined_call_operand.vmem [shape: f32[1,96], index: 2, kind: input, shape index: {}]   ;;  %s13245_s3 = inlined_call_operand.vmem [shape: bf16[25,96,128], index: 3, kind: input, shape index: {}]   ;;  %s13246_s4 = inlined_call_operand.vmem [shape: f32[1,128], index: 4, kind: input, shape index: {}]   ;;  %s13247_s5 = inlined_call_operand.vmem [shape: bf16[128,8], index: 5, kind: input, shape index: {}]   ;;  %s13248_s6 = inlined_call_operand.vmem [shape: f32[1,8], index: 6, kind: input, shape index: {}]   ;;  %s13249_s7 = inlined_call_operand.hbm [shape: f32[2,8], index: 7, kind: output, shape index: {}]  }
   0x1   :  { %v10188_v0 = vld [vmem:[%s13243_s1 + $0x40] sm:$0xff]   ;;  %v10211_v4 = vld [vmem:[%s13243_s1 + $0x48] sm:$0xff]   ;;  %v10235_v8 = vld [vmem:[%s13243_s1 + $0x50] sm:$0xff]   ;;  %v111_v33 = vunpack.c.l.s4 %v10141_v32  ;;  %vm368_vm1 = vcmask 523264  }
   0x2   :  { %v10193_v1 = vld [vmem:[%s13243_s1] sm:$0xff]   ;;  %7617 = vmatprep.subr.bf16.mxu0 %v10188_v0  ;;  %v10217_v5 = vld [vmem:[%s13243_s1 + $0x8] sm:$0xff]   ;;  %v10241_v9 = vld [vmem:[%s13243_s1 + $0x10] sm:$0xff]   ;;  %v114_v34 = vshrl.u32 %v113_v29, 7 }
   0x3   :  { %v10199_v2 = vld [vmem:[%s13243_s1 + $0xc0] sm:$0xff]   ;;  %7618 = vmatpush3.bf16.msra.mxu0 %v10193_v1  ;;  %v10223_v6 = vld [vmem:[%s13243_s1 + $0xc8] sm:$0xff]   ;;  %v10247_v10 = vld [vmem:[%s13243_s1 + $0xd0] sm:$0xff]   ;;  %v112_v37 = vunpack.c.0.s8 %v111_v33 }
   0x4   :  { %v10205_v3 = vld [vmem:[%s13243_s1 + $0x80] sm:$0xff]   ;;  %7639 = vmatprep.subr.bf16.mxu1 %v10199_v2  ;;  %7619 = vmatprep.subr.bf16.mxu0 %v10211_v4  ;;  %v10229_v7 = vld [vmem:[%s13243_s1 + $0x88] sm:$0xff]   ;;  %v10253_v11 = vld [vmem:[%s13243_s1 + $0x90] sm:$0xff]  }
   0x5   :  { %7640 = vmatpush3.bf16.msra.mxu1 %v10205_v3  ;;  %v10259_v12 = vld [vmem:[%s13243_s1 + $0x58] sm:$0xff]   ;;  %v10283_v16 = vld [vmem:[%s13243_s1 + $0x60] sm:$0xff]   ;;  %v10307_v20 = vld [vmem:[%s13243_s1 + $0x68] sm:$0xff]   ;;  %v10382_v39 = vsub.s32 %v112_v37, %v114_v34 }
   0x6   :  { %7641 = vmatprep.subr.bf16.mxu1 %v10223_v6  ;;  %v10265_v13 = vld [vmem:[%s13243_s1 + $0x18] sm:$0xff]   ;;  %v10289_v17 = vld [vmem:[%s13243_s1 + $0x20] sm:$0xff]   ;;  %v10313_v21 = vld [vmem:[%s13243_s1 + $0x28] sm:$0xff]  }
   0x7   :  { %7620 = vmatpush3.bf16.msra.mxu0 %v10217_v5  ;;  %v10271_v14 = vld [vmem:[%s13243_s1 + $0xd8] sm:$0xff]   ;;  %v10295_v18 = vld [vmem:[%s13243_s1 + $0xe0] sm:$0xff]   ;;  %v10319_v22 = vld [vmem:[%s13243_s1 + $0xe8] sm:$0xff]  }
   0x8   :  { %7621 = vmatprep.subr.bf16.mxu0 %v10235_v8  ;;  %v10277_v15 = vld [vmem:[%s13243_s1 + $0x98] sm:$0xff]   ;;  %v10301_v19 = vld [vmem:[%s13243_s1 + $0xa0] sm:$0xff]   ;;  %v10325_v23 = vld [vmem:[%s13243_s1 + $0xa8] sm:$0xff]  }
   0x9   :  { %7642 = vmatpush3.bf16.msra.mxu1 %v10229_v7  ;;  %v10331_v24 = vld [vmem:[%s13243_s1 + $0x70] sm:$0xff]   ;;  %v10355_v28 = vld [vmem:[%s13243_s1 + $0x78] sm:$0xff]   ;;  %v28_v38 = vld [vmem:[%s13242_s0] sm:$0x1f] }
   0xa   :  { %7643 = vmatprep.subr.bf16.mxu1 %v10247_v10  ;;  %v10337_v25 = vld [vmem:[%s13243_s1 + $0x30] sm:$0xff]   ;;  %v10361_v30 = vld [vmem:[%s13243_s1 + $0x38] sm:$0xff]   ;;  %v10387_v40 = vld [vmem:[%s13242_s0 + $0x5] sm:$0x1f]  ;;  %v116_v41 = vrot.slane %v28_v38, %v10382_v39  ;;  %v109_v53 = vcombine.high %v28_v38, %v28_v38 }
   0xb   :  { %7622 = vmatpush3.bf16.msra.mxu0 %v10241_v9  ;;  %v10343_v26 = vld [vmem:[%s13243_s1 + $0xf0] sm:$0xff]   ;;  %v10367_v31 = vld [vmem:[%s13243_s1 + $0xf8] sm:$0xff]   ;;  %v516_v42 = vrot.slane %v10387_v40, %v10382_v39  ;;  %v10396_v45 = vld [vmem:[%s13243_s1 + $0x100] sm:$0xff]   ;;  %v509_v59 = vcombine.high %v10387_v40, %v10387_v40 }
   0xc   :  { %7623 = vmatprep.subr.bf16.mxu0 %v10259_v12  ;;  %v10349_v27 = vld [vmem:[%s13243_s1 + $0xb0] sm:$0xff]   ;;  %v10374_v35 = vld [vmem:[%s13243_s1 + $0xb8] sm:$0xff]   ;;  %v124_v43 = vcombine.high %v116_v41, %v116_v41  ;;  %v131_v44 = vrot.slane %v116_v41, %v10382_v39  ;;  %v10402_v50 = vld [vmem:[%s13243_s1 + $0x108] sm:$0xff]   ;;  %v123_v55 = vrot.slane %v109_v53, %v10382_v39 }
   0xd   :  { %7644 = vmatpush3.bf16.msra.mxu1 %v10253_v11  ;;  %v524_v46 = vcombine.high %v516_v42, %v516_v42  ;;  %v10411_v52 = vld [vmem:[%s13243_s1 + $0x110] sm:$0xff]   ;;  %v10422_v54 = vld [vmem:[%s13243_s1 + $0x118] sm:$0xff]   ;;  %v531_v58 = vrot.slane %v516_v42, %v10382_v39  ;;  %v523_v60 = vrot.slane %v509_v59, %v10382_v39  ;;  %v9788_v63 = vld [vmem:[%s13245_s3] sm:$0xff]  }
   0xe   :  { %7645 = vmatprep.subr.bf16.mxu1 %v10271_v14  ;;  %v145_v47 = vrot.slane %v124_v43, %v10382_v39  ;;  %v146_v48 = vcombine.high %v131_v44, %v131_v44  ;;  %v138_v56 = vrot.slane %v123_v55, %v10382_v39 }
   0xf   :  { %7624 = vmatpush3.bf16.msra.mxu0 %v10265_v13  ;;  %v545_v51 = vrot.slane %v524_v46, %v10382_v39  ;;  %v546_v61 = vcombine.high %v531_v58, %v531_v58  ;;  %v538_v62 = vrot.slane %v523_v60, %v10382_v39 }
  0x10   :  { %7625 = vmatprep.subr.bf16.mxu0 %v10283_v16  ;;  %404 = vmatprep.mubr.bf16.mxu0 %v145_v47  ;;  %v147_v49 = vcombine.high %v145_v47, %v145_v47 }
  0x11   :  { %7646 = vmatpush3.bf16.msra.mxu1 %v10277_v15  ;;  %v547_v57 = vcombine.high %v545_v51, %v545_v51 }
  0x12   :  { %7647 = vmatprep.subr.bf16.mxu1 %v10295_v18  ;;  %444 = vmatprep.mubr.bf16.mxu1 %v147_v49 }
  0x13   :  { %7626 = vmatpush3.bf16.msra.mxu0 %v10289_v17 }
  0x14   :  { %7627 = vmatprep.subr.bf16.mxu0 %v10307_v20 }
  0x15   :  { %7648 = vmatpush3.bf16.msra.mxu1 %v10301_v19 }
  0x16   :  { %7649 = vmatprep.subr.bf16.mxu1 %v10319_v22 }
  0x17   :  { %7628 = vmatpush3.bf16.msra.mxu0 %v10313_v21 }
  0x18   :  { %7629 = vmatprep.subr.bf16.mxu0 %v10331_v24 }
  0x19   :  { %7650 = vmatpush3.bf16.msra.mxu1 %v10325_v23 }
  0x1a   :  { %7651 = vmatprep.subr.bf16.mxu1 %v10343_v26 }
  0x1b   :  { %7630 = vmatpush3.bf16.msra.mxu0 %v10337_v25 }
  0x1c   :  { %7631 = vmatprep.subr.bf16.mxu0 %v10355_v28 }
  0x1d   :  { %7652 = vmatpush3.bf16.msra.mxu1 %v10349_v27 }
  0x1e   :  { %7653 = vmatprep.subr.bf16.mxu1 %v10367_v31 }
  0x1f   :  { %7632 = vmatpush3.bf16.msra.mxu0 %v10361_v30 }
  0x20   :  { %9026 = vmatprep.subr.bf16.mxu0 %v10142_v36 }
  0x21   :  { %7654 = vmatpush3.bf16.msra.mxu1 %v10374_v35 }
  0x22   :  { %7666 = vmatprep.subr.bf16.mxu1 %v10188_v0  ;;  %405 = vmatmul.mubr.bf16.vlgmr.msra.gmra.mrb[0].mxu0 %v131_v44  ;;  %v9789_v0 = vld [vmem:[%s13245_s3 + $0x8] sm:$0xff]  }
  0x23   :  { %9027 = vmatpush3.bf16.msra.mxu0 %v10396_v45  ;;  %9034 = vmatprep.mubr.msk.bf16.mxu0 %vm10143_vm0, %v10142_v36 }
  0x24   :  { %445 = vmatmul.mubr.bf16.vlgmr.msra.gmra.mrb[0].mxu1 %v146_v48  ;;  %9028 = vmatprep.subr.bf16.mxu0 %v10142_v36 }
  0x25   :  { %7667 = vmatpush3.bf16.msra.mxu1 %v10193_v1  ;;  %587 = vmatprep.mubr.bf16.mxu1 %v545_v51  ;;  %v9790_v1 = vld [vmem:[%s13245_s3 + $0x10] sm:$0xff]  }
  0x26   :  { %7668 = vmatprep.subr.bf16.mxu1 %v10211_v4 }
  0x27   :  { %9029 = vmatpush3.bf16.msra.mxu0 %v10402_v50 }
  0x28   :  { %9030 = vmatprep.subr.bf16.mxu0 %v10142_v36 }
  0x29   :  { %7669 = vmatpush3.bf16.msra.mxu1 %v10217_v5 }
  0x2a   :  { %7670 = vmatprep.subr.bf16.mxu1 %v10235_v8 }
  0x2b   :  { %9031 = vmatpush3.bf16.msra.mxu0 %v10411_v52 }
  0x2c   :  { %9032 = vmatprep.subr.bf16.mxu0 %v10142_v36 }
  0x2d   :  { %7671 = vmatpush3.bf16.msra.mxu1 %v10241_v9 }
  0x2e   :  { %7672 = vmatprep.subr.bf16.mxu1 %v10259_v12 }
  0x2f   :  { %9033 = vmatpush3.bf16.msra.mxu0 %v10422_v54 }
  0x30   :  { %7688 = vmatprep.subr.bf16.mxu0 %v10199_v2  ;;  %v9791_v2 = vld [vmem:[%s13245_s3 + $0x18] sm:$0xff]  }
  0x31   :  { %7673 = vmatpush3.bf16.msra.mxu1 %v10265_v13 }
  0x32   :  { %9035 = vmatmul.mubr.msk.bf16.vlgmr.msra.gmra.mrb[4].mxu0 %vm368_vm1, %v138_v56  ;;  %7674 = vmatprep.subr.bf16.mxu1 %v10283_v16 }
  0x33   :  { %7689 = vmatpush3.bf16.msra.mxu0 %v10205_v3  ;;  %627 = vmatprep.mubr.bf16.mxu0 %v547_v57  ;;  %v9792_v3 = vld [vmem:[%s13245_s3 + $0x20] sm:$0xff]  }
  0x34   :  { %7690 = vmatprep.subr.bf16.mxu0 %v10223_v6 }
  0x35   :  { %7675 = vmatpush3.bf16.msra.mxu1 %v10289_v17 }
  0x36   :  { %7676 = vmatprep.subr.bf16.mxu1 %v10307_v20 }
  0x37   :  { %7691 = vmatpush3.bf16.msra.mxu0 %v10229_v7 }
  0x38   :  { %7692 = vmatprep.subr.bf16.mxu0 %v10247_v10 }
  0x39   :  { %7677 = vmatpush3.bf16.msra.mxu1 %v10313_v21 }
  0x3a   :  { %7678 = vmatprep.subr.bf16.mxu1 %v10331_v24 }
  0x3b   :  { %7693 = vmatpush3.bf16.msra.mxu0 %v10253_v11 }
  0x3c   :  { %7694 = vmatprep.subr.bf16.mxu0 %v10271_v14 }
  0x3d   :  { %7679 = vmatpush3.bf16.msra.mxu1 %v10337_v25 }
  0x3e   :  { %7680 = vmatprep.subr.bf16.mxu1 %v10355_v28 }
  0x3f   :  { %7695 = vmatpush3.bf16.msra.mxu0 %v10277_v15 }
  0x40   :  { %7696 = vmatprep.subr.bf16.mxu0 %v10295_v18 }
  0x41   :  { %7681 = vmatpush3.bf16.msra.mxu1 %v10361_v30 }
  0x42   :  { %9038 = vmatprep.subr.bf16.mxu1 %v10142_v36 }
  0x43   :  { %7697 = vmatpush3.bf16.msra.mxu0 %v10301_v19 }
  0x44   :  { %588 = vmatmul.mubr.bf16.vlgmr.msra.gmra.mrb[4].mxu1 %v531_v58  ;;  %7698 = vmatprep.subr.bf16.mxu0 %v10319_v22 }
  0x45   :  { %9039 = vmatpush3.bf16.msra.mxu1 %v10396_v45  ;;  %9046 = vmatprep.mubr.msk.bf16.mxu1 %vm10143_vm0, %v10142_v36 }
  0x46   :  { %9040 = vmatprep.subr.bf16.mxu1 %v10142_v36 }
  0x47   :  { %7699 = vmatpush3.bf16.msra.mxu0 %v10325_v23 }
  0x48   :  { %7700 = vmatprep.subr.bf16.mxu0 %v10343_v26 }
  0x49   :  { %9041 = vmatpush3.bf16.msra.mxu1 %v10402_v50 }
  0x4a   :  { %9042 = vmatprep.subr.bf16.mxu1 %v10142_v36 }
  0x4b   :  { %7701 = vmatpush3.bf16.msra.mxu0 %v10349_v27 }
  0x4c   :  { %7702 = vmatprep.subr.bf16.mxu0 %v10367_v31 }
  0x4d   :  { %9043 = vmatpush3.bf16.msra.mxu1 %v10411_v52 }
  0x4e   :  { %9044 = vmatprep.subr.bf16.mxu1 %v10142_v36 }
  0x4f   :  { %7703 = vmatpush3.bf16.msra.mxu0 %v10374_v35 }
  0x50   :  { %9050 = vmatprep.subr.bf16.mxu0 %v10142_v36 }
  0x51   :  { %9045 = vmatpush3.bf16.msra.mxu1 %v10422_v54 }
  0x52   :  { %628 = vmatmul.mubr.bf16.vlgmr.msra.gmra.mrb[8].mxu0 %v546_v61  ;;  %9066 = vmatprep.subr.bf16.mxu1 %v10142_v36 }
  0x53   :  { %9062 = vmatprep.mubr.msk.bf16.mxu0 %vm10143_vm0, %v10142_v36 }
  0x54   :  { %9047 = vmatmul.mubr.msk.bf16.vlgmr.msra.gmra.mrb[8].mxu1 %vm368_vm1, %v538_v62 }
  0x55   :  { %9078 = vmatprep.mubr.msk.bf16.mxu1 %vm10143_vm0, %v10142_v36  ;;  %9067 = vmatpush3.bf16.msra.mxu1 %v9788_v63 }
  0x56   :  { %9068 = vmatprep.subr.bf16.mxu1 %v10142_v36 }
  0x59   :  { %9069 = vmatpush3.bf16.msra.mxu1 %v9789_v0 }
  0x5a   :  { %9070 = vmatprep.subr.bf16.mxu1 %v10142_v36 }
  0x5d   :  { %9071 = vmatpush3.bf16.msra.mxu1 %v9790_v1 }
  0x5e   :  { %9072 = vmatprep.subr.bf16.mxu1 %v10142_v36 }
  0x61   :  { %9073 = vmatpush3.bf16.msra.mxu1 %v9791_v2 }
  0x62   :  { %9074 = vmatprep.subr.bf16.mxu1 %v10142_v36 }
  0x65   :  { %9075 = vmatpush3.bf16.msra.mxu1 %v9792_v3 }
  0x66   :  { %12 = vsyncpa [#allocation3], 0  ;;  %9076 = vmatprep.subr.bf16.mxu1 %v10142_v36  ;;  %v9793_v4 = vld [vmem:[%s13245_s3 + $0x28] sm:$0xff]   ;;  %v10506_v5 = vld [vmem:[%s13243_s1 + $0xc0] sm:$0xff]   ;;  %vm726_vm2 = vcmask 785408   ;;  %s10144_s20 = smov [#allocation2]  }
  0x67   :  { %v9794_v6 = vld [vmem:[%s13245_s3 + $0x30] sm:$0xff]   ;;  %v9795_v7 = vld [vmem:[%s13245_s3 + $0x38] sm:$0xff]   ;;  %v9796_v8 = vld [vmem:[%s13245_s3 + $0x40] sm:$0xff]   ;;  %vm7042_vm3 = vcmask 58368  }
  0x68   :  { %9051 = vmatpush3.bf16.msra.mxu0 %v9794_v6  ;;  %v9797_v9 = vld [vmem:[%s13245_s3 + $0x48] sm:$0xff]   ;;  %v9798_v10 = vld [vmem:[%s13245_s3 + $0x50] sm:$0xff]   ;;  %v9799_v11 = vld [vmem:[%s13245_s3 + $0x58] sm:$0xff]  }
  0x69   :  { %9077 = vmatpush3.bf16.msra.mxu1 %v9793_v4  ;;  %9052 = vmatprep.subr.bf16.mxu0 %v10142_v36  ;;  %v10535_v12 = vld [vmem:[%s13243_s1 + $0x40] sm:$0xff]   ;;  %v10547_v25 = vld [vmem:[%s13242_s0 + $0xa] sm:$0x1f]  ;;  %v10578_v43 = vld [vmem:[%s13243_s1 + $0xd0] sm:$0xff]  }
  0x6a   :  { %7751 = vmatprep.subr.bf16.mxu1 %v10506_v5  ;;  %v10541_v14 = vld [vmem:[%s13244_s2] ss:$0 sm:$0xff]  ;;  %v859_v27 = vrot.slane %v10547_v25, %v10382_v39  ;;  %v10566_v41 = vld [vmem:[%s13243_s1 + $0xc8] sm:$0xff]   ;;  %v10584_v44 = vld [vmem:[%s13243_s1 + $0x90] sm:$0xff]  }
  0x6b   :  { %v10560_v40 = vld [vmem:[%s13243_s1 + $0x80] sm:$0xff]   ;;  %v10572_v42 = vld [vmem:[%s13243_s1 + $0x88] sm:$0xff]   ;;  %v10590_v46 = vld [vmem:[%s13243_s1 + $0xd8] sm:$0xff]  }
  0x6c   :  { %9053 = vmatpush3.bf16.msra.mxu0 %v9795_v7  ;;  %v867_v28 = vcombine.high %v859_v27, %v859_v27  ;;  %v10596_v53 = vld [vmem:[%s13243_s1 + $0x98] sm:$0xff]   ;;  %v10602_v56 = vld [vmem:[%s13243_s1 + $0xe0] sm:$0xff]   ;;  %v10614_v58 = vld [vmem:[%s13243_s1 + $0xe8] sm:$0xff]   ;;  %v874_v61 = vrot.slane %v859_v27, %v10382_v39 }
  0x6d   :  { %9054 = vmatprep.subr.bf16.mxu0 %v10142_v36  ;;  %v10608_v57 = vld [vmem:[%s13243_s1 + $0xa0] sm:$0xff]   ;;  %v10620_v59 = vld [vmem:[%s13243_s1 + $0xa8] sm:$0xff]   ;;  %v10626_v60 = vld [vmem:[%s13243_s1 + $0xf0] sm:$0xff]  }
  0x6e   :  { %v10552_v30 = vrot.slane %v867_v28, %v10382_v39  ;;  %v10633_v63 = vld [vmem:[%s13243_s1 + $0xb0] sm:$0xff]   ;;  %v10639_v1 = vld [vmem:[%s13243_s1 + $0xf8] sm:$0xff]   ;;  %v10699_v27 = vld [vmem:[%s13243_s1 + $0x60] sm:$0xff]  }
  0x6f   :  { %v10705_v28 = vld [vmem:[%s13243_s1 + $0x20] sm:$0xff]  }
  0x70   :  { %9055 = vmatpush3.bf16.msra.mxu0 %v9796_v8  ;;  %v890_v37 = vcombine.high %v10552_v30, %v10552_v30 }
  0x71   :  { %9056 = vmatprep.subr.bf16.mxu0 %v10142_v36 }
  0x74   :  { %9057 = vmatpush3.bf16.msra.mxu0 %v9797_v9  ;;  %v889_v9 = vcombine.high %v874_v61, %v874_v61 }
  0x75   :  { %9058 = vmatprep.subr.bf16.mxu0 %v10142_v36 }
  0x78   :  { %9059 = vmatpush3.bf16.msra.mxu0 %v9798_v10 }
  0x79   :  { %9060 = vmatprep.subr.bf16.mxu0 %v10142_v36 }
  0x7c   :  { %9061 = vmatpush3.bf16.msra.mxu0 %v9799_v11 }
  0x7d   :  { %7729 = vmatprep.subr.bf16.mxu0 %v10535_v12 }
  0xf5   :  { %v7633_v13 = vpop.f32.mrb[0].mxu0 }
  0xf6   :  { %v7634_v15 = vpop.f32.mrb[1].mxu0 }
  0xf7   :  { %v7635_v16 = vadd.f32 %v7634_v15, %v7633_v13  ;;  %v7636_v17 = vpop.f32.mrb[2].mxu0  ;;  %v7655_v18 = vpop.f32.mrb[0].mxu1  ;;  %v10646_v13 = vld [vmem:[%s13243_s1 + $0xb8] sm:$0xff]  }
  0xf8   :  { %v7637_v19 = vpop.f32.mrb[3].mxu0  ;;  %v7656_v20 = vpop.f32.mrb[1].mxu1 }
  0xf9   :  { %v407_v21 = vadd.f32 %v7635_v16, %v10541_v14  ;;  %v7657_v22 = vadd.f32 %v7656_v20, %v7655_v18  ;;  %v7658_v23 = vpop.f32.mrb[2].mxu1  ;;  %v10656_v19 = vld [vmem:[%s13243_s1] sm:$0xff]   ;;  %v10663_v20 = vld [vmem:[%s13243_s1 + $0x48] sm:$0xff]  }
  0xfa   :  { %v7659_v24 = vpop.f32.mrb[3].mxu1  ;;  %v10681_v23 = vld [vmem:[%s13243_s1 + $0x10] sm:$0xff]  }
  0xfb   :  { %v447_v26 = vadd.f32 %v7657_v22, %v407_v21  ;;  %v10669_v21 = vld [vmem:[%s13243_s1 + $0x8] sm:$0xff]   ;;  %v10675_v22 = vld [vmem:[%s13243_s1 + $0x50] sm:$0xff]   ;;  %v10687_v24 = vld [vmem:[%s13243_s1 + $0x58] sm:$0xff]  }
 0x105   :  { %v486_v29 = vpop.f32.mrb[4].mxu0 }
 0x106   :  { %v487_v31 = vadd.f32 %v486_v29, %v447_v26  ;;  %v9036_v32 = vpop.f32.mrb[5].mxu0  ;;  %v10693_v26 = vld [vmem:[%s13243_s1 + $0x18] sm:$0xff]   ;;  %v10711_v29 = vld [vmem:[%s13243_s1 + $0x68] sm:$0xff]  }
 0x107   :  { %v489_v33 = vpop.f32.mrb[6].mxu0  ;;  %v10729_v32 = vld [vmem:[%s13243_s1 + $0x30] sm:$0xff]  }
 0x108   :  { %v492_v34 = vmax.f32 %v487_v31, 0.0  ;;  %v9037_v35 = vpop.f32.mrb[7].mxu0  ;;  %v10723_v31 = vld [vmem:[%s13243_s1 + $0x70] sm:$0xff]   ;;  %v10735_v33 = vld [vmem:[%s13243_s1 + $0x78] sm:$0xff]  }
 0x109   :  { %v852_v35 = vcombine.high %v10547_v25, %v10547_v25  ;;  %v9804_v25 = vld [vmem:[%s13245_s3 + $0x78] sm:$0xff]  }
 0x10a   :  { %v493_v38 = vpack.c.bf16 %v492_v34, %v492_v34  ;;  %v10741_v34 = vld [vmem:[%s13243_s1 + $0x38] sm:$0xff]  }
 0x10c   :  { %9079 = vmatmul.mubr.msk.bf16.vlgmr.msra.gmra.mrb[12].mxu1 %vm726_vm2, %v493_v38  ;;  %v9805_v38 = vld [vmem:[%s13245_s3 + $0x80] sm:$0xff]  }
 0x10d   :  { %7752 = vmatpush3.bf16.msra.mxu1 %v10560_v40  ;;  %970 = vmatprep.mubr.bf16.mxu1 %v890_v37  ;;  %v866_v37 = vrot.slane %v852_v35, %v10382_v39 }
 0x10e   :  { %7753 = vmatprep.subr.bf16.mxu1 %v10566_v41 }
 0x111   :  { %7754 = vmatpush3.bf16.msra.mxu1 %v10572_v42 }
 0x112   :  { %7755 = vmatprep.subr.bf16.mxu1 %v10578_v43 }
 0x115   :  { %7756 = vmatpush3.bf16.msra.mxu1 %v10584_v44 }
 0x116   :  { %7757 = vmatprep.subr.bf16.mxu1 %v10590_v46 }
 0x117   :  { %v7682_v47 = vpop.f32.mrb[4].mxu1 }
 0x118   :  { %v7683_v48 = vpop.f32.mrb[5].mxu1 }
 0x119   :  { %v7684_v49 = vadd.f32 %v7683_v48, %v7682_v47  ;;  %v7685_v51 = vpop.f32.mrb[6].mxu1  ;;  %7758 = vmatpush3.bf16.msra.mxu1 %v10596_v53  ;;  %v9806_v47 = vld [vmem:[%s13245_s3 + $0x88] sm:$0xff]  }
 0x11a   :  { %v7686_v55 = vpop.f32.mrb[7].mxu1  ;;  %7759 = vmatprep.subr.bf16.mxu1 %v10602_v56  ;;  %v7145_v48 = vld [vmem:[%s13242_s0 + $0xf] sm:$0x1f] }
 0x11b   :  { %v590_v2 = vadd.f32 %v7684_v49, %v10541_v14  ;;  %v1123_v49 = vrot.slane %v7145_v48, %v10382_v39 }
 0x11d   :  { %7760 = vmatpush3.bf16.msra.mxu1 %v10608_v57  ;;  %v1131_v51 = vcombine.high %v1123_v49, %v1123_v49 }
 0x11e   :  { %7761 = vmatprep.subr.bf16.mxu1 %v10614_v58 }
 0x11f   :  { %v10805_v55 = vrot.slane %v1131_v51, %v10382_v39 }
 0x121   :  { %7762 = vmatpush3.bf16.msra.mxu1 %v10620_v59 }
 0x122   :  { %7763 = vmatprep.subr.bf16.mxu1 %v10626_v60 }
 0x125   :  { %v7704_v62 = vpop.f32.mrb[8].mxu0  ;;  %7764 = vmatpush3.bf16.msra.mxu1 %v10633_v63 }
 0x126   :  { %v7705_v0 = vpop.f32.mrb[9].mxu0  ;;  %7765 = vmatprep.subr.bf16.mxu1 %v10639_v1 }
 0x127   :  { %v7706_v3 = vadd.f32 %v7705_v0, %v7704_v62  ;;  %v7707_v4 = vpop.f32.mrb[10].mxu0  ;;  %v669_v6 = vpop.f32.mrb[8].mxu1  ;;  %v10815_v62 = vld [vmem:[%s13243_s1 + $0x100] sm:$0xff]   ;;  %v1116_v0 = vcombine.high %v7145_v48, %v7145_v48 }
 0x128   :  { %v7708_v7 = vpop.f32.mrb[11].mxu0  ;;  %v9048_v8 = vpop.f32.mrb[9].mxu1  ;;  %v10832_v4 = vld [vmem:[%s13243_s1 + $0x110] sm:$0xff]  }
 0x129   :  { %v630_v10 = vadd.f32 %v7706_v3, %v590_v2  ;;  %v672_v11 = vpop.f32.mrb[10].mxu1  ;;  %7766 = vmatpush3.bf16.msra.mxu1 %v10646_v13  ;;  %v10824_v2 = vld [vmem:[%s13243_s1 + $0x108] sm:$0xff]   ;;  %v1130_v3 = vrot.slane %v1116_v0, %v10382_v39 }
 0x12a   :  { %v9049_v15 = vpop.f32.mrb[11].mxu1  ;;  %9094 = vmatprep.subr.bf16.mxu1 %v10142_v36 }
 0x12b   :  { %v670_v16 = vadd.f32 %v669_v6, %v630_v10  ;;  %v10839_v6 = vld [vmem:[%s13243_s1 + $0x118] sm:$0xff]   ;;  %v1145_v7 = vrot.slane %v1130_v3, %v10382_v39 }
 0x12c   :  { %971 = vmatmul.mubr.bf16.vlgmr.msra.gmra.mrb[16].mxu1 %v889_v9 }
 0x12d   :  { %v675_v17 = vmax.f32 %v670_v16, 0.0  ;;  %9106 = vmatprep.mubr.msk.bf16.mxu1 %vm10143_vm0, %v10142_v36 }
 0x12f   :  { %v676_v18 = vpack.c.bf16 %v675_v17, %v675_v17 }
 0x131   :  { %9063 = vmatmul.mubr.msk.bf16.vlgmr.msra.gmra.mrb[12].mxu0 %vm726_vm2, %v676_v18 }
 0x132   :  { %7730 = vmatpush3.bf16.msra.mxu0 %v10656_v19  ;;  %930 = vmatprep.mubr.bf16.mxu0 %v10552_v30  ;;  %v10717_v30 = vld [vmem:[%s13243_s1 + $0x28] sm:$0xff]  }
 0x133   :  { %7731 = vmatprep.subr.bf16.mxu0 %v10663_v20 }
 0x136   :  { %7732 = vmatpush3.bf16.msra.mxu0 %v10669_v21 }
 0x137   :  { %7733 = vmatprep.subr.bf16.mxu0 %v10675_v22 }
 0x13a   :  { %7734 = vmatpush3.bf16.msra.mxu0 %v10681_v23 }
 0x13b   :  { %7735 = vmatprep.subr.bf16.mxu0 %v10687_v24 }
 0x13e   :  { %7736 = vmatpush3.bf16.msra.mxu0 %v10693_v26 }
 0x13f   :  { %7737 = vmatprep.subr.bf16.mxu0 %v10699_v27 }
 0x142   :  { %7738 = vmatpush3.bf16.msra.mxu0 %v10705_v28 }
 0x143   :  { %7739 = vmatprep.subr.bf16.mxu0 %v10711_v29 }
 0x146   :  { %7740 = vmatpush3.bf16.msra.mxu0 %v10717_v30 }
 0x147   :  { %7741 = vmatprep.subr.bf16.mxu0 %v10723_v31 }
 0x14a   :  { %7742 = vmatpush3.bf16.msra.mxu0 %v10729_v32 }
 0x14b   :  { %7743 = vmatprep.subr.bf16.mxu0 %v10735_v33 }
 0x14e   :  { %7744 = vmatpush3.bf16.msra.mxu0 %v10741_v34 }
 0x14f   :  { %9082 = vmatprep.subr.bf16.mxu0 %v10142_v36 }
 0x151   :  { %931 = vmatmul.mubr.bf16.vlgmr.msra.gmra.mrb[16].mxu0 %v874_v61  ;;  %v10808_v61 = vrot.slane %v1123_v49, %v10382_v39 }
 0x152   :  { %9083 = vmatpush3.bf16.msra.mxu0 %v10396_v45  ;;  %9090 = vmatprep.mubr.msk.bf16.mxu0 %vm10143_vm0, %v10142_v36  ;;  %v881_v45 = vrot.slane %v866_v37, %v10382_v39 }
 0x153   :  { %9084 = vmatprep.subr.bf16.mxu0 %v10142_v36 }
 0x156   :  { %9085 = vmatpush3.bf16.msra.mxu0 %v10402_v50  ;;  %v9801_v50 = vld [vmem:[%s13245_s3 + $0x60] sm:$0xff]  }
 0x157   :  { %9086 = vmatprep.subr.bf16.mxu0 %v10142_v36  ;;  %9095 = vmatpush3.bf16.msra.mxu1 %v9801_v50 }
 0x158   :  { %9096 = vmatprep.subr.bf16.mxu1 %v10142_v36 }
 0x15a   :  { %9087 = vmatpush3.bf16.msra.mxu0 %v10411_v52  ;;  %v9802_v52 = vld [vmem:[%s13245_s3 + $0x68] sm:$0xff]  }
 0x15b   :  { %9088 = vmatprep.subr.bf16.mxu0 %v10142_v36  ;;  %9097 = vmatpush3.bf16.msra.mxu1 %v9802_v52 }
 0x15c   :  { %9098 = vmatprep.subr.bf16.mxu1 %v10142_v36 }
 0x15e   :  { %9089 = vmatpush3.bf16.msra.mxu0 %v10422_v54  ;;  %v9803_v54 = vld [vmem:[%s13245_s3 + $0x70] sm:$0xff]  }
 0x15f   :  { %7785 = vmatprep.subr.bf16.mxu0 %v10535_v12  ;;  %9099 = vmatpush3.bf16.msra.mxu1 %v9803_v54 }
 0x160   :  { %9100 = vmatprep.subr.bf16.mxu1 %v10142_v36 }
 0x161   :  { %9091 = vmatmul.mubr.msk.bf16.vlgmr.msra.gmra.mrb[20].mxu0 %vm368_vm1, %v881_v45 }
 0x162   :  { %7786 = vmatpush3.bf16.msra.mxu0 %v10656_v19  ;;  %1194 = vmatprep.mubr.bf16.mxu0 %v10805_v55 }
 0x163   :  { %7787 = vmatprep.subr.bf16.mxu0 %v10663_v20  ;;  %9101 = vmatpush3.bf16.msra.mxu1 %v9804_v25 }
 0x164   :  { %9102 = vmatprep.subr.bf16.mxu1 %v10142_v36 }
 0x166   :  { %7788 = vmatpush3.bf16.msra.mxu0 %v10669_v21 }
 0x167   :  { %7789 = vmatprep.subr.bf16.mxu0 %v10675_v22  ;;  %9103 = vmatpush3.bf16.msra.mxu1 %v9805_v38 }
 0x168   :  { %9104 = vmatprep.subr.bf16.mxu1 %v10142_v36 }
 0x16a   :  { %7790 = vmatpush3.bf16.msra.mxu0 %v10681_v23 }
 0x16b   :  { %7791 = vmatprep.subr.bf16.mxu0 %v10687_v24  ;;  %9105 = vmatpush3.bf16.msra.mxu1 %v9806_v47 }
 0x16c   :  { %7807 = vmatprep.subr.bf16.mxu1 %v10506_v5 }
 0x16e   :  { %7792 = vmatpush3.bf16.msra.mxu0 %v10693_v26 }
 0x16f   :  { %7793 = vmatprep.subr.bf16.mxu0 %v10699_v27 }
 0x172   :  { %7794 = vmatpush3.bf16.msra.mxu0 %v10705_v28 }
 0x173   :  { %7795 = vmatprep.subr.bf16.mxu0 %v10711_v29 }
 0x176   :  { %7796 = vmatpush3.bf16.msra.mxu0 %v10717_v30 }
 0x177   :  { %7797 = vmatprep.subr.bf16.mxu0 %v10723_v31 }
 0x17a   :  { %7798 = vmatpush3.bf16.msra.mxu0 %v10729_v32 }
 0x17b   :  { %7799 = vmatprep.subr.bf16.mxu0 %v10735_v33 }
 0x17e   :  { %7800 = vmatpush3.bf16.msra.mxu0 %v10741_v34 }
 0x17f   :  { %9110 = vmatprep.subr.bf16.mxu0 %v10142_v36 }
 0x181   :  { %1195 = vmatmul.mubr.bf16.vlgmr.msra.gmra.mrb[24].mxu0 %v10808_v61 }
 0x182   :  { %9111 = vmatpush3.bf16.msra.mxu0 %v10815_v62  ;;  %9118 = vmatprep.mubr.msk.bf16.mxu0 %vm10143_vm0, %v10142_v36 }
 0x183   :  { %9112 = vmatprep.subr.bf16.mxu0 %v10142_v36 }
 0x186   :  { %9113 = vmatpush3.bf16.msra.mxu0 %v10824_v2 }
 0x187   :  { %9114 = vmatprep.subr.bf16.mxu0 %v10142_v36 }
 0x18a   :  { %9115 = vmatpush3.bf16.msra.mxu0 %v10832_v4 }
 0x18b   :  { %9116 = vmatprep.subr.bf16.mxu0 %v10142_v36 }
 0x18e   :  { %9117 = vmatpush3.bf16.msra.mxu0 %v10839_v6 }
 0x18f   :  { %7841 = vmatprep.subr.bf16.mxu0 %v10535_v12 }
 0x191   :  { %9119 = vmatmul.mubr.msk.bf16.vlgmr.msra.gmra.mrb[28].mxu0 %vm368_vm1, %v1145_v7 }
 0x192   :  { %7842 = vmatpush3.bf16.msra.mxu0 %v10656_v19 }
 0x193   :  { %7843 = vmatprep.subr.bf16.mxu0 %v10663_v20 }
 0x196   :  { %7844 = vmatpush3.bf16.msra.mxu0 %v10669_v21 }
 0x197   :  { %7845 = vmatprep.subr.bf16.mxu0 %v10675_v22 }
 0x19a   :  { %7846 = vmatpush3.bf16.msra.mxu0 %v10681_v23 }
 0x19b   :  { %7847 = vmatprep.subr.bf16.mxu0 %v10687_v24 }
 0x19e   :  { %7848 = vmatpush3.bf16.msra.mxu0 %v10693_v26 }
 0x19f   :  { %7849 = vmatprep.subr.bf16.mxu0 %v10699_v27 }
 0x1a2   :  { %7850 = vmatpush3.bf16.msra.mxu0 %v10705_v28 }
 0x1a3   :  { %7851 = vmatprep.subr.bf16.mxu0 %v10711_v29 }
 0x1a6   :  { %7852 = vmatpush3.bf16.msra.mxu0 %v10717_v30 }
 0x1a7   :  { %7853 = vmatprep.subr.bf16.mxu0 %v10723_v31 }
 0x1aa   :  { %7854 = vmatpush3.bf16.msra.mxu0 %v10729_v32 }
 0x1ab   :  { %7855 = vmatprep.subr.bf16.mxu0 %v10735_v33 }
 0x1ae   :  { %7856 = vmatpush3.bf16.msra.mxu0 %v10741_v34 }
 0x1af   :  { %9138 = vmatprep.subr.bf16.mxu0 %v10142_v36 }
 0x1df   :  { %v843_v8 = vpop.f32.mrb[12].mxu1 }
 0x1e0   :  { %v9080_v9 = vpop.f32.mrb[13].mxu1 }
 0x1e1   :  { %v846_v10 = vpop.f32.mrb[14].mxu1 }
 0x1e2   :  { %v9081_v11 = vpop.f32.mrb[15].mxu1 }
 0x1ff   :  { %v7767_v15 = vpop.f32.mrb[16].mxu1 }
 0x200   :  { %v7768_v16 = vpop.f32.mrb[17].mxu1 }
 0x201   :  { %v7769_v17 = vadd.f32 %v7768_v16, %v7767_v15  ;;  %v7770_v18 = vpop.f32.mrb[18].mxu1 }
 0x202   :  { %v7771_v35 = vpop.f32.mrb[19].mxu1  ;;  %v9809_v18 = vld [vmem:[%s13245_s3 + $0x98] sm:$0xff]  }
 0x204   :  { %v764_v37 = vpop.f32.mrb[12].mxu0 }
 0x205   :  { %v10861_v45 = vadd.f32 %v843_v8, %v764_v37  ;;  %v9064_v50 = vpop.f32.mrb[13].mxu0  ;;  %v1154_v8 = vcombine.high %v10805_v55, %v10805_v55  ;;  %v1153_v55 = vcombine.high %v10808_v61, %v10808_v61  ;;  %v9810_v61 = vld [vmem:[%s13245_s3 + $0xa0] sm:$0xff]  }
 0x206   :  { %v767_v52 = vpop.f32.mrb[14].mxu0 }
 0x207   :  { %v9065_v54 = vpop.f32.mrb[15].mxu0 }
 0x224   :  { %v7745_v25 = vpop.f32.mrb[16].mxu0 }
 0x225   :  { %v7746_v38 = vpop.f32.mrb[17].mxu0 }
 0x226   :  { %v7747_v47 = vadd.f32 %v7746_v38, %v7745_v25  ;;  %v7748_v48 = vpop.f32.mrb[18].mxu0  ;;  %v9811_v25 = vld [vmem:[%s13245_s3 + $0xa8] sm:$0xff]   ;;  %v9812_v38 = vld [vmem:[%s13245_s3 + $0xb0] sm:$0xff]  }
 0x227   :  { %v7749_v49 = vpop.f32.mrb[19].mxu0 }
 0x228   :  { %v933_v51 = vadd.f32 %v7747_v47, %v10541_v14 }
 0x22a   :  { %v973_v0 = vadd.f32 %v7769_v17, %v933_v51  ;;  %v9808_v17 = vld [vmem:[%s13245_s3 + $0x90] sm:$0xff]  }
 0x234   :  { %v1012_v3 = vpop.f32.mrb[20].mxu0 }
 0x235   :  { %v1013_v7 = vadd.f32 %v1012_v3, %v973_v0  ;;  %v9092_v9 = vpop.f32.mrb[21].mxu0  ;;  %v9813_v0 = vld [vmem:[%s13245_s3 + $0xb8] sm:$0xff]  }
 0x236   :  { %v1015_v10 = vpop.f32.mrb[22].mxu0  ;;  %v7166_v3 = vld [vmem:[%s13242_s0 + $0x14] sm:$0x1f] }
 0x237   :  { %v1018_v11 = vmax.f32 %v1013_v7, 0.0  ;;  %v9093_v15 = vpop.f32.mrb[23].mxu0  ;;  %v1387_v7 = vrot.slane %v7166_v3, %v10382_v39 }
 0x238   :  { %v1380_v15 = vcombine.high %v7166_v3, %v7166_v3 }
 0x239   :  { %v1019_v16 = vpack.c.bf16 %v1018_v11, %v1018_v11  ;;  %v1395_v9 = vcombine.high %v1387_v7, %v1387_v7  ;;  %v1402_v11 = vrot.slane %v1387_v7, %v10382_v39 }
 0x23b   :  { %9107 = vmatmul.mubr.msk.bf16.vlgmr.msra.gmra.mrb[20].mxu1 %vm726_vm2, %v1019_v16  ;;  %v1416_v10 = vrot.slane %v1395_v9, %v10382_v39  ;;  %v9817_v9 = vld [vmem:[%s13245_s3 + $0xd0] sm:$0xff]  }
 0x23c   :  { %7808 = vmatpush3.bf16.msra.mxu1 %v10560_v40  ;;  %1234 = vmatprep.mubr.bf16.mxu1 %v1154_v8  ;;  %v1394_v8 = vrot.slane %v1380_v15, %v10382_v39 }
 0x23d   :  { %7809 = vmatprep.subr.bf16.mxu1 %v10566_v41  ;;  %1458 = vmatprep.mubr.bf16.mxu0 %v1416_v10  ;;  %v1418_v3 = vcombine.high %v1416_v10, %v1416_v10 }
 0x23e   :  { %1459 = vmatmul.mubr.bf16.vlgmr.msra.gmra.mrb[32].mxu0 %v1402_v11  ;;  %v1409_v16 = vrot.slane %v1394_v8, %v10382_v39 }
 0x23f   :  { %9139 = vmatpush3.bf16.msra.mxu0 %v10815_v62  ;;  %9146 = vmatprep.mubr.msk.bf16.mxu0 %vm10143_vm0, %v10142_v36 }
 0x240   :  { %7810 = vmatpush3.bf16.msra.mxu1 %v10572_v42  ;;  %9140 = vmatprep.subr.bf16.mxu0 %v10142_v36 }
 0x241   :  { %7811 = vmatprep.subr.bf16.mxu1 %v10578_v43 }
 0x243   :  { %9141 = vmatpush3.bf16.msra.mxu0 %v10824_v2 }
 0x244   :  { %7812 = vmatpush3.bf16.msra.mxu1 %v10584_v44  ;;  %9142 = vmatprep.subr.bf16.mxu0 %v10142_v36 }
 0x245   :  { %7813 = vmatprep.subr.bf16.mxu1 %v10590_v46 }
 0x247   :  { %9143 = vmatpush3.bf16.msra.mxu0 %v10832_v4 }
 0x248   :  { %7814 = vmatpush3.bf16.msra.mxu1 %v10596_v53  ;;  %9144 = vmatprep.subr.bf16.mxu0 %v10142_v36 }
 0x249   :  { %7815 = vmatprep.subr.bf16.mxu1 %v10602_v56 }
 0x24b   :  { %9145 = vmatpush3.bf16.msra.mxu0 %v10839_v6 }
 0x24c   :  { %7816 = vmatpush3.bf16.msra.mxu1 %v10608_v57  ;;  %9150 = vmatprep.subr.bf16.mxu0 %v10142_v36 }
 0x24d   :  { %7817 = vmatprep.subr.bf16.mxu1 %v10614_v58 }
 0x24e   :  { %9147 = vmatmul.mubr.msk.bf16.vlgmr.msra.gmra.mrb[36].mxu0 %vm368_vm1, %v1409_v16 }
 0x24f   :  { %9162 = vmatprep.mubr.msk.bf16.mxu0 %vm10143_vm0, %v10142_v36 }
 0x250   :  { %7818 = vmatpush3.bf16.msra.mxu1 %v10620_v59 }
 0x251   :  { %7819 = vmatprep.subr.bf16.mxu1 %v10626_v60 }
 0x254   :  { %7820 = vmatpush3.bf16.msra.mxu1 %v10633_v63  ;;  %v7801_v35 = vpop.f32.mrb[24].mxu0 }
 0x255   :  { %7821 = vmatprep.subr.bf16.mxu1 %v10639_v1  ;;  %v7802_v37 = vpop.f32.mrb[25].mxu0 }
 0x256   :  { %v7803_v50 = vadd.f32 %v7802_v37, %v7801_v35  ;;  %v7804_v52 = vpop.f32.mrb[26].mxu0 }
 0x257   :  { %v7805_v54 = vpop.f32.mrb[27].mxu0 }
 0x258   :  { %7822 = vmatpush3.bf16.msra.mxu1 %v10646_v13  ;;  %v1197_v54 = vadd.f32 %v7803_v50, %v10541_v14  ;;  %v9815_v50 = vld [vmem:[%s13245_s3 + $0xc0] sm:$0xff]  }
 0x259   :  { %9122 = vmatprep.subr.bf16.mxu1 %v10142_v36  ;;  %9151 = vmatpush3.bf16.msra.mxu0 %v9815_v50 }
 0x25a   :  { %9152 = vmatprep.subr.bf16.mxu0 %v10142_v36 }
 0x25b   :  { %1235 = vmatmul.mubr.bf16.vlgmr.msra.gmra.mrb[24].mxu1 %v1153_v55 }
 0x25c   :  { %9134 = vmatprep.mubr.msk.bf16.mxu1 %vm10143_vm0, %v10142_v36  ;;  %9123 = vmatpush3.bf16.msra.mxu1 %v9808_v17 }
 0x25d   :  { %9124 = vmatprep.subr.bf16.mxu1 %v10142_v36 }
 0x260   :  { %9125 = vmatpush3.bf16.msra.mxu1 %v9809_v18 }
 0x261   :  { %9126 = vmatprep.subr.bf16.mxu1 %v10142_v36 }
 0x264   :  { %9127 = vmatpush3.bf16.msra.mxu1 %v9810_v61  ;;  %v1276_v47 = vpop.f32.mrb[28].mxu0 }
 0x265   :  { %9128 = vmatprep.subr.bf16.mxu1 %v10142_v36  ;;  %v9120_v48 = vpop.f32.mrb[29].mxu0 }
 0x266   :  { %v1279_v49 = vpop.f32.mrb[30].mxu0 }
 0x267   :  { %v9121_v51 = vpop.f32.mrb[31].mxu0 }
 0x268   :  { %9129 = vmatpush3.bf16.msra.mxu1 %v9811_v25 }
 0x269   :  { %9130 = vmatprep.subr.bf16.mxu1 %v10142_v36 }
 0x26c   :  { %9131 = vmatpush3.bf16.msra.mxu1 %v9812_v38 }
 0x26d   :  { %9132 = vmatprep.subr.bf16.mxu1 %v10142_v36 }
 0x270   :  { %9133 = vmatpush3.bf16.msra.mxu1 %v9813_v0 }
 0x271   :  { %7863 = vmatprep.subr.bf16.mxu1 %v10506_v5 }
 0x30e   :  { %v1106_v55 = vpop.f32.mrb[20].mxu1 }
 0x30f   :  { %v10933_v17 = vadd.f32 %v1106_v55, %v10861_v45  ;;  %v9108_v18 = vpop.f32.mrb[21].mxu1  ;;  %v1417_v45 = vcombine.high %v1402_v11, %v1402_v11  ;;  %v9818_v55 = vld [vmem:[%s13245_s3 + $0xd8] sm:$0xff]  }
 0x310   :  { %v1109_v61 = vpop.f32.mrb[22].mxu1  ;;  %v9819_v18 = vld [vmem:[%s13245_s3 + $0xe0] sm:$0xff]  }
 0x311   :  { %v9109_v35 = vpop.f32.mrb[23].mxu1  ;;  %v7857_v10 = vpop.f32.mrb[32].mxu0 }
 0x312   :  { %v7858_v11 = vpop.f32.mrb[33].mxu0 }
 0x313   :  { %v7859_v15 = vadd.f32 %v7858_v11, %v7857_v10  ;;  %v7860_v8 = vpop.f32.mrb[34].mxu0 }
 0x314   :  { %v7861_v16 = vpop.f32.mrb[35].mxu0 }
 0x315   :  { %v1461_v16 = vadd.f32 %v7859_v15, %v10541_v14  ;;  %v9822_v15 = vld [vmem:[%s13245_s3 + $0xf0] sm:$0xff]  }
 0x321   :  { %v1540_v61 = vpop.f32.mrb[36].mxu0 }
 0x322   :  { %v9148_v35 = vpop.f32.mrb[37].mxu0 }
 0x32e   :  { %v7823_v37 = vpop.f32.mrb[24].mxu1 }
 0x32f   :  { %v7824_v52 = vpop.f32.mrb[25].mxu1 }
 0x330   :  { %v7825_v25 = vadd.f32 %v7824_v52, %v7823_v37  ;;  %v7826_v38 = vpop.f32.mrb[26].mxu1  ;;  %v1543_v37 = vpop.f32.mrb[38].mxu0 }
 0x331   :  { %v7827_v48 = vpop.f32.mrb[27].mxu1  ;;  %v9149_v52 = vpop.f32.mrb[39].mxu0 }
 0x332   :  { %v1237_v49 = vadd.f32 %v7825_v25, %v1197_v54  ;;  %v9820_v54 = vld [vmem:[%s13245_s3 + $0xe8] sm:$0xff]   ;;  %v7187_v25 = vld [vmem:[%s13242_s0 + $0x19] sm:$0x1f] }
 0x333   :  { %v1651_v38 = vrot.slane %v7187_v25, %v10382_v39 }
 0x334   :  { %v1277_v51 = vadd.f32 %v1276_v47, %v1237_v49  ;;  %v9816_v47 = vld [vmem:[%s13245_s3 + $0xc8] sm:$0xff]  }
 0x335   :  { %9153 = vmatpush3.bf16.msra.mxu0 %v9816_v47  ;;  %v1659_v48 = vcombine.high %v1651_v38, %v1651_v38 }
 0x336   :  { %v1282_v0 = vmax.f32 %v1277_v51, 0.0  ;;  %9154 = vmatprep.subr.bf16.mxu0 %v10142_v36  ;;  %v1666_v51 = vrot.slane %v1651_v38, %v10382_v39 }
 0x337   :  { %v1680_v49 = vrot.slane %v1659_v48, %v10382_v39  ;;  %v9824_v48 = vld [vmem:[%s13245_s3 + $0x100] sm:$0xff]  }
 0x338   :  { %v1283_v7 = vpack.c.bf16 %v1282_v0, %v1282_v0  ;;  %v1644_v0 = vcombine.high %v7187_v25, %v7187_v25 }
 0x339   :  { %9155 = vmatpush3.bf16.msra.mxu0 %v9817_v9  ;;  %v1682_v25 = vcombine.high %v1680_v49, %v1680_v49 }
 0x33a   :  { %9135 = vmatmul.mubr.msk.bf16.vlgmr.msra.gmra.mrb[28].mxu1 %vm726_vm2, %v1283_v7  ;;  %9156 = vmatprep.subr.bf16.mxu0 %v10142_v36 }
 0x33b   :  { %7864 = vmatpush3.bf16.msra.mxu1 %v10560_v40  ;;  %1498 = vmatprep.mubr.bf16.mxu1 %v1418_v3  ;;  %v1658_v3 = vrot.slane %v1644_v0, %v10382_v39 }
 0x33c   :  { %7865 = vmatprep.subr.bf16.mxu1 %v10566_v41 }
 0x33d   :  { %9157 = vmatpush3.bf16.msra.mxu0 %v9818_v55  ;;  %v1673_v7 = vrot.slane %v1658_v3, %v10382_v39 }
 0x33e   :  { %9158 = vmatprep.subr.bf16.mxu0 %v10142_v36 }
 0x33f   :  { %7866 = vmatpush3.bf16.msra.mxu1 %v10572_v42 }
 0x340   :  { %7867 = vmatprep.subr.bf16.mxu1 %v10578_v43 }
 0x341   :  { %9159 = vmatpush3.bf16.msra.mxu0 %v9819_v18 }
 0x342   :  { %9160 = vmatprep.subr.bf16.mxu0 %v10142_v36 }
 0x343   :  { %7868 = vmatpush3.bf16.msra.mxu1 %v10584_v44 }
 0x344   :  { %7869 = vmatprep.subr.bf16.mxu1 %v10590_v46 }
 0x345   :  { %9161 = vmatpush3.bf16.msra.mxu0 %v9820_v54 }
 0x346   :  { %7919 = vmatprep.subr.bf16.mxu0 %v10506_v5 }
 0x347   :  { %7870 = vmatpush3.bf16.msra.mxu1 %v10596_v53 }
 0x348   :  { %7871 = vmatprep.subr.bf16.mxu1 %v10602_v56 }
 0x34b   :  { %7872 = vmatpush3.bf16.msra.mxu1 %v10608_v57 }
 0x34c   :  { %7873 = vmatprep.subr.bf16.mxu1 %v10614_v58 }
 0x34f   :  { %7874 = vmatpush3.bf16.msra.mxu1 %v10620_v59 }
 0x350   :  { %7875 = vmatprep.subr.bf16.mxu1 %v10626_v60 }
 0x353   :  { %7876 = vmatpush3.bf16.msra.mxu1 %v10633_v63 }
 0x354   :  { %7877 = vmatprep.subr.bf16.mxu1 %v10639_v1 }
 0x357   :  { %7878 = vmatpush3.bf16.msra.mxu1 %v10646_v13 }
 0x358   :  { %7897 = vmatprep.subr.bf16.mxu1 %v10535_v12 }
 0x35a   :  { %1499 = vmatmul.mubr.bf16.vlgmr.msra.gmra.mrb[32].mxu1 %v1417_v45 }
 0x35b   :  { %7898 = vmatpush3.bf16.msra.mxu1 %v10656_v19  ;;  %1722 = vmatprep.mubr.bf16.mxu1 %v1680_v49 }
 0x35c   :  { %7899 = vmatprep.subr.bf16.mxu1 %v10663_v20 }
 0x35f   :  { %7900 = vmatpush3.bf16.msra.mxu1 %v10669_v21 }
 0x360   :  { %7901 = vmatprep.subr.bf16.mxu1 %v10675_v22 }
 0x363   :  { %7902 = vmatpush3.bf16.msra.mxu1 %v10681_v23 }
 0x364   :  { %7903 = vmatprep.subr.bf16.mxu1 %v10687_v24 }
 0x367   :  { %7904 = vmatpush3.bf16.msra.mxu1 %v10693_v26 }
 0x368   :  { %7905 = vmatprep.subr.bf16.mxu1 %v10699_v27 }
 0x36b   :  { %7906 = vmatpush3.bf16.msra.mxu1 %v10705_v28 }
 0x36c   :  { %7907 = vmatprep.subr.bf16.mxu1 %v10711_v29 }
 0x36f   :  { %7908 = vmatpush3.bf16.msra.mxu1 %v10717_v30 }
 0x370   :  { %7909 = vmatprep.subr.bf16.mxu1 %v10723_v31 }
 0x373   :  { %7910 = vmatpush3.bf16.msra.mxu1 %v10729_v32 }
 0x374   :  { %7911 = vmatprep.subr.bf16.mxu1 %v10735_v33 }
 0x377   :  { %7912 = vmatpush3.bf16.msra.mxu1 %v10741_v34 }
 0x378   :  { %9166 = vmatprep.subr.bf16.mxu1 %v10142_v36 }
 0x37a   :  { %1723 = vmatmul.mubr.bf16.vlgmr.msra.gmra.mrb[36].mxu1 %v1666_v51 }
 0x37b   :  { %9167 = vmatpush3.bf16.msra.mxu1 %v10815_v62  ;;  %9174 = vmatprep.mubr.msk.bf16.mxu1 %vm10143_vm0, %v10142_v36 }
 0x37c   :  { %9168 = vmatprep.subr.bf16.mxu1 %v10142_v36 }
 0x37f   :  { %9169 = vmatpush3.bf16.msra.mxu1 %v10824_v2 }
 0x380   :  { %9170 = vmatprep.subr.bf16.mxu1 %v10142_v36 }
 0x383   :  { %9171 = vmatpush3.bf16.msra.mxu1 %v10832_v4 }
 0x384   :  { %9172 = vmatprep.subr.bf16.mxu1 %v10142_v36 }
 0x387   :  { %9173 = vmatpush3.bf16.msra.mxu1 %v10839_v6 }
 0x388   :  { %9178 = vmatprep.subr.bf16.mxu1 %v10142_v36 }
 0x38a   :  { %9175 = vmatmul.mubr.msk.bf16.vlgmr.msra.gmra.mrb[40].mxu1 %vm368_vm1, %v1673_v7 }
 0x38b   :  { %9190 = vmatprep.mubr.msk.bf16.mxu1 %vm10143_vm0, %v10142_v36  ;;  %9179 = vmatpush3.bf16.msra.mxu1 %v9822_v15 }
 0x38c   :  { %9180 = vmatprep.subr.bf16.mxu1 %v10142_v36 }
 0x40d   :  { %v1370_v45 = vpop.f32.mrb[28].mxu1 }
 0x40e   :  { %v11015_v50 = vadd.f32 %v1370_v45, %v10933_v17  ;;  %v9136_v47 = vpop.f32.mrb[29].mxu1  ;;  %v1681_v17 = vcombine.high %v1666_v51, %v1666_v51  ;;  %v9825_v45 = vld [vmem:[%s13245_s3 + $0x108] sm:$0xff]  }
 0x40f   :  { %v1373_v9 = vpop.f32.mrb[30].mxu1  ;;  %v9826_v47 = vld [vmem:[%s13245_s3 + $0x110] sm:$0xff]  }
 0x410   :  { %v9137_v10 = vpop.f32.mrb[31].mxu1 }
 0x42d   :  { %v7879_v11 = vpop.f32.mrb[32].mxu1 }
 0x42e   :  { %v7880_v8 = vpop.f32.mrb[33].mxu1 }
 0x42f   :  { %v7881_v55 = vadd.f32 %v7880_v8, %v7879_v11  ;;  %v7882_v18 = vpop.f32.mrb[34].mxu1 }
 0x430   :  { %v7883_v35 = vpop.f32.mrb[35].mxu1 }
 0x431   :  { %v1501_v37 = vadd.f32 %v7881_v55, %v1461_v16  ;;  %v9827_v16 = vld [vmem:[%s13245_s3 + $0x118] sm:$0xff]  }
 0x432   :  { %v7208_v55 = vld [vmem:[%s13242_s0 + $0x1e] sm:$0x1f] }
 0x433   :  { %v1541_v52 = vadd.f32 %v1540_v61, %v1501_v37  ;;  %v9823_v61 = vld [vmem:[%s13245_s3 + $0xf8] sm:$0xff]   ;;  %v1915_v18 = vrot.slane %v7208_v55, %v10382_v39 }
 0x434   :  { %9181 = vmatpush3.bf16.msra.mxu1 %v9823_v61 }
 0x435   :  { %v1546_v54 = vmax.f32 %v1541_v52, 0.0  ;;  %9182 = vmatprep.subr.bf16.mxu1 %v10142_v36  ;;  %v1923_v35 = vcombine.high %v1915_v18, %v1915_v18  ;;  %v1930_v52 = vrot.slane %v1915_v18, %v10382_v39 }
 0x437   :  { %v1547_v38 = vpack.c.bf16 %v1546_v54, %v1546_v54  ;;  %v1944_v37 = vrot.slane %v1923_v35, %v10382_v39 }
 0x438   :  { %9183 = vmatpush3.bf16.msra.mxu1 %v9824_v48 }
 0x439   :  { %9163 = vmatmul.mubr.msk.bf16.vlgmr.msra.gmra.mrb[40].mxu0 %vm726_vm2, %v1547_v38  ;;  %9184 = vmatprep.subr.bf16.mxu1 %v10142_v36 }
 0x43a   :  { %7920 = vmatpush3.bf16.msra.mxu0 %v10560_v40  ;;  %1762 = vmatprep.mubr.bf16.mxu0 %v1682_v25 }
 0x43b   :  { %7921 = vmatprep.subr.bf16.mxu0 %v10566_v41 }
 0x43c   :  { %9185 = vmatpush3.bf16.msra.mxu1 %v9825_v45 }
 0x43d   :  { %9186 = vmatprep.subr.bf16.mxu1 %v10142_v36 }
 0x43e   :  { %7922 = vmatpush3.bf16.msra.mxu0 %v10572_v42 }
 0x43f   :  { %7923 = vmatprep.subr.bf16.mxu0 %v10578_v43 }
 0x440   :  { %9187 = vmatpush3.bf16.msra.mxu1 %v9826_v47 }
 0x441   :  { %9188 = vmatprep.subr.bf16.mxu1 %v10142_v36 }
 0x442   :  { %7924 = vmatpush3.bf16.msra.mxu0 %v10584_v44 }
 0x443   :  { %7925 = vmatprep.subr.bf16.mxu0 %v10590_v46 }
 0x444   :  { %9189 = vmatpush3.bf16.msra.mxu1 %v9827_v16  ;;  %v1946_v16 = vcombine.high %v1944_v37, %v1944_v37 }
 0x445   :  { %7975 = vmatprep.subr.bf16.mxu1 %v10506_v5  ;;  %v1908_v5 = vcombine.high %v7208_v55, %v7208_v55 }
 0x446   :  { %7926 = vmatpush3.bf16.msra.mxu0 %v10596_v53 }
 0x447   :  { %7927 = vmatprep.subr.bf16.mxu0 %v10602_v56  ;;  %v1922_v54 = vrot.slane %v1908_v5, %v10382_v39  ;;  %v11205_v5 = vld [vmem:[%s13243_s1 + $0xc8] sm:$0xff]  }
 0x449   :  { %v1937_v25 = vrot.slane %v1922_v54, %v10382_v39  ;;  %v11211_v54 = vld [vmem:[%s13243_s1 + $0x88] sm:$0xff]  }
 0x44a   :  { %7928 = vmatpush3.bf16.msra.mxu0 %v10608_v57 }
 0x44b   :  { %7929 = vmatprep.subr.bf16.mxu0 %v10614_v58 }
 0x44d   :  { %v7913_v49 = vpop.f32.mrb[36].mxu1 }
 0x44e   :  { %7930 = vmatpush3.bf16.msra.mxu0 %v10620_v59  ;;  %v7914_v51 = vpop.f32.mrb[37].mxu1 }
 0x44f   :  { %7931 = vmatprep.subr.bf16.mxu0 %v10626_v60  ;;  %v7915_v0 = vadd.f32 %v7914_v51, %v7913_v49  ;;  %v7916_v3 = vpop.f32.mrb[38].mxu1 }
 0x450   :  { %v7917_v7 = vpop.f32.mrb[39].mxu1 }
 0x451   :  { %v1725_v3 = vadd.f32 %v7915_v0, %v10541_v14  ;;  %v1945_v14 = vcombine.high %v1930_v52, %v1930_v52 }
 0x452   :  { %7932 = vmatpush3.bf16.msra.mxu0 %v10633_v63 }
 0x453   :  { %7933 = vmatprep.subr.bf16.mxu0 %v10639_v1 }
 0x456   :  { %7934 = vmatpush3.bf16.msra.mxu0 %v10646_v13 }
 0x457   :  { %7953 = vmatprep.subr.bf16.mxu0 %v10535_v12 }
 0x459   :  { %1763 = vmatmul.mubr.bf16.vlgmr.msra.gmra.mrb[44].mxu0 %v1681_v17 }
 0x45a   :  { %7954 = vmatpush3.bf16.msra.mxu0 %v10656_v19  ;;  %1986 = vmatprep.mubr.bf16.mxu0 %v1944_v37 }
 0x45b   :  { %7955 = vmatprep.subr.bf16.mxu0 %v10663_v20 }
 0x45d   :  { %v1804_v9 = vpop.f32.mrb[40].mxu1 }
 0x45e   :  { %7956 = vmatpush3.bf16.msra.mxu0 %v10669_v21  ;;  %v9176_v10 = vpop.f32.mrb[41].mxu1 }
 0x45f   :  { %7957 = vmatprep.subr.bf16.mxu0 %v10675_v22  ;;  %v1807_v11 = vpop.f32.mrb[42].mxu1 }
 0x460   :  { %v9177_v8 = vpop.f32.mrb[43].mxu1 }
 0x462   :  { %7958 = vmatpush3.bf16.msra.mxu0 %v10681_v23 }
 0x463   :  { %7959 = vmatprep.subr.bf16.mxu0 %v10687_v24 }
 0x466   :  { %7960 = vmatpush3.bf16.msra.mxu0 %v10693_v26 }
 0x467   :  { %7961 = vmatprep.subr.bf16.mxu0 %v10699_v27 }
 0x46a   :  { %7962 = vmatpush3.bf16.msra.mxu0 %v10705_v28 }
 0x46b   :  { %7963 = vmatprep.subr.bf16.mxu0 %v10711_v29 }
 0x46e   :  { %7964 = vmatpush3.bf16.msra.mxu0 %v10717_v30 }
 0x46f   :  { %7965 = vmatprep.subr.bf16.mxu0 %v10723_v31 }
 0x472   :  { %7966 = vmatpush3.bf16.msra.mxu0 %v10729_v32 }
 0x473   :  { %7967 = vmatprep.subr.bf16.mxu0 %v10735_v33 }
 0x476   :  { %7968 = vmatpush3.bf16.msra.mxu0 %v10741_v34 }
 0x477   :  { %9194 = vmatprep.subr.bf16.mxu0 %v10142_v36 }
 0x479   :  { %1987 = vmatmul.mubr.bf16.vlgmr.msra.gmra.mrb[48].mxu0 %v1930_v52  ;;  %v11199_v52 = vld [vmem:[%s13243_s1 + $0x80] sm:$0xff]  }
 0x47a   :  { %9195 = vmatpush3.bf16.msra.mxu0 %v10815_v62  ;;  %9202 = vmatprep.mubr.msk.bf16.mxu0 %vm10143_vm0, %v10142_v36 }
 0x47b   :  { %9196 = vmatprep.subr.bf16.mxu0 %v10142_v36 }
 0x47e   :  { %9197 = vmatpush3.bf16.msra.mxu0 %v10824_v2 }
 0x47f   :  { %9198 = vmatprep.subr.bf16.mxu0 %v10142_v36 }
 0x482   :  { %9199 = vmatpush3.bf16.msra.mxu0 %v10832_v4 }
 0x483   :  { %9200 = vmatprep.subr.bf16.mxu0 %v10142_v36 }
 0x486   :  { %9201 = vmatpush3.bf16.msra.mxu0 %v10839_v6 }
 0x487   :  { %9206 = vmatprep.subr.bf16.mxu0 %v10142_v36 }
 0x489   :  { %9203 = vmatmul.mubr.msk.bf16.vlgmr.msra.gmra.mrb[52].mxu0 %vm368_vm1, %v1937_v25  ;;  %v11217_v25 = vld [vmem:[%s13243_s1 + $0xd0] sm:$0xff]  }
 0x48a   :  { %9218 = vmatprep.mubr.msk.bf16.mxu0 %vm10143_vm0, %v10142_v36 }
 0x50c   :  { %v1634_v38 = vpop.f32.mrb[40].mxu0 }
 0x50d   :  { %v11097_v17 = vadd.f32 %v1634_v38, %v11015_v50  ;;  %v9164_v15 = vpop.f32.mrb[41].mxu0  ;;  %v11223_v38 = vld [vmem:[%s13243_s1 + $0x90] sm:$0xff]  }
 0x50e   :  { %v1637_v61 = vpop.f32.mrb[42].mxu0  ;;  %v11235_v15 = vld [vmem:[%s13243_s1 + $0x98] sm:$0xff]  }
 0x50f   :  { %v9165_v48 = vpop.f32.mrb[43].mxu0  ;;  %v11241_v61 = vld [vmem:[%s13243_s1 + $0xe0] sm:$0xff]  }
 0x510   :  { %v11247_v48 = vld [vmem:[%s13243_s1 + $0xa0] sm:$0xff]  }
 0x52c   :  { %v7935_v49 = vpop.f32.mrb[44].mxu0 }
 0x52d   :  { %v7936_v51 = vpop.f32.mrb[45].mxu0 }
 0x52e   :  { %v7937_v7 = vadd.f32 %v7936_v51, %v7935_v49  ;;  %v7938_v45 = vpop.f32.mrb[46].mxu0  ;;  %v11253_v49 = vld [vmem:[%s13243_s1 + $0xe8] sm:$0xff]  }
 0x52f   :  { %v7939_v47 = vpop.f32.mrb[47].mxu0  ;;  %v11259_v51 = vld [vmem:[%s13243_s1 + $0xa8] sm:$0xff]   ;;  %v11277_v45 = vld [vmem:[%s13243_s1 + $0xf8] sm:$0xff]  }
 0x530   :  { %v1765_v10 = vadd.f32 %v7937_v7, %v1725_v3  ;;  %v11265_v3 = vld [vmem:[%s13243_s1 + $0xf0] sm:$0xff]  }
 0x531   :  { %v11271_v7 = vld [vmem:[%s13243_s1 + $0xb0] sm:$0xff]  }
 0x532   :  { %v1805_v11 = vadd.f32 %v1804_v9, %v1765_v10  ;;  %v11285_v10 = vld [vmem:[%s13243_s1 + $0xb8] sm:$0xff]  }
 0x534   :  { %v1810_v8 = vmax.f32 %v1805_v11, 0.0  ;;  %v11291_v11 = vld [vmem:[%s13243_s1 + $0x40] sm:$0xff]  }
 0x536   :  { %v1811_v55 = vpack.c.bf16 %v1810_v8, %v1810_v8  ;;  %v11297_v8 = vld [vmem:[%s13243_s1] sm:$0xff]  }
 0x538   :  { %9191 = vmatmul.mubr.msk.bf16.vlgmr.msra.gmra.mrb[44].mxu1 %vm726_vm2, %v1811_v55  ;;  %v11309_v55 = vld [vmem:[%s13243_s1 + $0x8] sm:$0xff]  }
 0x539   :  { %7976 = vmatpush3.bf16.msra.mxu1 %v10560_v40  ;;  %2026 = vmatprep.mubr.bf16.mxu1 %v1946_v16  ;;  %v9830_v40 = vld [vmem:[%s13245_s3 + $0x128] sm:$0xff]  }
 0x53a   :  { %7977 = vmatprep.subr.bf16.mxu1 %v10566_v41  ;;  %v9831_v41 = vld [vmem:[%s13245_s3 + $0x130] sm:$0xff]   ;;  %v11303_v16 = vld [vmem:[%s13243_s1 + $0x48] sm:$0xff]  }
 0x53d   :  { %7978 = vmatpush3.bf16.msra.mxu1 %v10572_v42 }
 0x53e   :  { %7979 = vmatprep.subr.bf16.mxu1 %v10578_v43 }
 0x541   :  { %7980 = vmatpush3.bf16.msra.mxu1 %v10584_v44 }
 0x542   :  { %7981 = vmatprep.subr.bf16.mxu1 %v10590_v46 }
 0x545   :  { %7982 = vmatpush3.bf16.msra.mxu1 %v10596_v53 }
 0x546   :  { %7983 = vmatprep.subr.bf16.mxu1 %v10602_v56  ;;  %v9832_v56 = vld [vmem:[%s13245_s3 + $0x138] sm:$0xff]  }
 0x549   :  { %7984 = vmatpush3.bf16.msra.mxu1 %v10608_v57  ;;  %v9833_v57 = vld [vmem:[%s13245_s3 + $0x140] sm:$0xff]  }
 0x54a   :  { %7985 = vmatprep.subr.bf16.mxu1 %v10614_v58 }
 0x54c   :  { %v7969_v42 = vpop.f32.mrb[48].mxu0 }
 0x54d   :  { %7986 = vmatpush3.bf16.msra.mxu1 %v10620_v59  ;;  %v7970_v43 = vpop.f32.mrb[49].mxu0 }
 0x54e   :  { %7987 = vmatprep.subr.bf16.mxu1 %v10626_v60  ;;  %v7971_v44 = vadd.f32 %v7970_v43, %v7969_v42  ;;  %v7972_v46 = vpop.f32.mrb[50].mxu0  ;;  %v11339_v42 = vld [vmem:[%s13243_s1 + $0x60] sm:$0xff]  }
 0x54f   :  { %v7973_v53 = vpop.f32.mrb[51].mxu0  ;;  %v11345_v43 = vld [vmem:[%s13243_s1 + $0x20] sm:$0xff]   ;;  %v11357_v46 = vld [vmem:[%s13243_s1 + $0x28] sm:$0xff]  }
 0x550   :  { %v11363_v53 = vld [vmem:[%s13243_s1 + $0x70] sm:$0xff]  }
 0x551   :  { %7988 = vmatpush3.bf16.msra.mxu1 %v10633_v63 }
 0x552   :  { %7989 = vmatprep.subr.bf16.mxu1 %v10639_v1  ;;  %v9834_v1 = vld [vmem:[%s13245_s3 + $0x148] sm:$0xff]  }
 0x555   :  { %7990 = vmatpush3.bf16.msra.mxu1 %v10646_v13  ;;  %v11159_v13 = vld [vmem:[%s13243_s1 + $0xc0] sm:$0xff]  }
 0x556   :  { %8009 = vmatprep.subr.bf16.mxu1 %v10535_v12  ;;  %v9829_v12 = vld [vmem:[%s13245_s3 + $0x120] sm:$0xff]  }
 0x557   :  { %9207 = vmatpush3.bf16.msra.mxu0 %v9829_v12  ;;  %v11321_v12 = vld [vmem:[%s13243_s1 + $0x10] sm:$0xff]  }
 0x558   :  { %2027 = vmatmul.mubr.bf16.vlgmr.msra.gmra.mrb[48].mxu1 %v1945_v14  ;;  %9208 = vmatprep.subr.bf16.mxu0 %v10142_v36  ;;  %v11315_v14 = vld [vmem:[%s13243_s1 + $0x50] sm:$0xff]  }
 0x559   :  { %8010 = vmatpush3.bf16.msra.mxu1 %v10656_v19  ;;  %v7229_v19 = vld [vmem:[%s13242_s0 + $0x23] sm:$0x1f] }
 0x55a   :  { %8011 = vmatprep.subr.bf16.mxu1 %v10663_v20  ;;  %v2179_v20 = vrot.slane %v7229_v19, %v10382_v39 }
 0x55b   :  { %9209 = vmatpush3.bf16.msra.mxu0 %v9830_v40  ;;  %v11327_v40 = vld [vmem:[%s13243_s1 + $0x58] sm:$0xff]  }
 0x55c   :  { %9210 = vmatprep.subr.bf16.mxu0 %v10142_v36  ;;  %v2068_v58 = vpop.f32.mrb[52].mxu0 }
 0x55d   :  { %8012 = vmatpush3.bf16.msra.mxu1 %v10669_v21  ;;  %v9204_v59 = vpop.f32.mrb[53].mxu0  ;;  %v2187_v21 = vcombine.high %v2179_v20, %v2179_v20 }
 0x55e   :  { %8013 = vmatprep.subr.bf16.mxu1 %v10675_v22  ;;  %v2071_v60 = vpop.f32.mrb[54].mxu0  ;;  %v9836_v59 = vld [vmem:[%s13245_s3 + $0x150] sm:$0xff]  }
 0x55f   :  { %9211 = vmatpush3.bf16.msra.mxu0 %v9831_v41  ;;  %v9205_v63 = vpop.f32.mrb[55].mxu0  ;;  %v2208_v22 = vrot.slane %v2187_v21, %v10382_v39  ;;  %v11333_v41 = vld [vmem:[%s13243_s1 + $0x18] sm:$0xff]  }
 0x560   :  { %9212 = vmatprep.subr.bf16.mxu0 %v10142_v36  ;;  %v9837_v60 = vld [vmem:[%s13245_s3 + $0x158] sm:$0xff]   ;;  %v9838_v63 = vld [vmem:[%s13245_s3 + $0x160] sm:$0xff]  }
 0x561   :  { %8014 = vmatpush3.bf16.msra.mxu1 %v10681_v23  ;;  %v11168_v23 = vrot.slane %v2179_v20, %v10382_v39  ;;  %2250 = vmatprep.mubr.bf16.mxu1 %v2208_v22  ;;  %v2210_v35 = vcombine.high %v2208_v22, %v2208_v22 }
 0x562   :  { %8015 = vmatprep.subr.bf16.mxu1 %v10687_v24  ;;  %v2172_v24 = vcombine.high %v7229_v19, %v7229_v19 }
 0x563   :  { %9213 = vmatpush3.bf16.msra.mxu0 %v9832_v56  ;;  %v2209_v47 = vcombine.high %v11168_v23, %v11168_v23  ;;  %v11369_v56 = vld [vmem:[%s13243_s1 + $0x30] sm:$0xff]  }
 0x564   :  { %9214 = vmatprep.subr.bf16.mxu0 %v10142_v36 }
 0x565   :  { %8016 = vmatpush3.bf16.msra.mxu1 %v10693_v26  ;;  %v2186_v26 = vrot.slane %v2172_v24, %v10382_v39  ;;  %v9840_v24 = vld [vmem:[%s13245_s3 + $0x170] sm:$0xff]  }
 0x566   :  { %8017 = vmatprep.subr.bf16.mxu1 %v10699_v27 }
 0x567   :  { %9215 = vmatpush3.bf16.msra.mxu0 %v9833_v57  ;;  %v2201_v27 = vrot.slane %v2186_v26, %v10382_v39  ;;  %v11375_v57 = vld [vmem:[%s13243_s1 + $0x78] sm:$0xff]  }
 0x568   :  { %9216 = vmatprep.subr.bf16.mxu0 %v10142_v36 }
 0x569   :  { %8018 = vmatpush3.bf16.msra.mxu1 %v10705_v28 }
 0x56a   :  { %8019 = vmatprep.subr.bf16.mxu1 %v10711_v29 }
 0x56b   :  { %9217 = vmatpush3.bf16.msra.mxu0 %v9834_v1 }
 0x56c   :  { %8031 = vmatprep.subr.bf16.mxu0 %v11159_v13 }
 0x56d   :  { %8020 = vmatpush3.bf16.msra.mxu1 %v10717_v30 }
 0x56e   :  { %8021 = vmatprep.subr.bf16.mxu1 %v10723_v31 }
 0x571   :  { %8022 = vmatpush3.bf16.msra.mxu1 %v10729_v32 }
 0x572   :  { %8023 = vmatprep.subr.bf16.mxu1 %v10735_v33 }
 0x575   :  { %8024 = vmatpush3.bf16.msra.mxu1 %v10741_v34 }
 0x576   :  { %9222 = vmatprep.subr.bf16.mxu1 %v10142_v36 }
 0x578   :  { %2251 = vmatmul.mubr.bf16.vlgmr.msra.gmra.mrb[52].mxu1 %v11168_v23  ;;  %v9839_v23 = vld [vmem:[%s13245_s3 + $0x168] sm:$0xff]  }
 0x579   :  { %9223 = vmatpush3.bf16.msra.mxu1 %v10815_v62  ;;  %9230 = vmatprep.mubr.msk.bf16.mxu1 %vm10143_vm0, %v10142_v36  ;;  %v11192_v62 = vld [vmem:[%s13244_s2] ss:$0 sm:$0xff] }
 0x57a   :  { %9224 = vmatprep.subr.bf16.mxu1 %v10142_v36 }
 0x57d   :  { %9225 = vmatpush3.bf16.msra.mxu1 %v10824_v2  ;;  %v1989_v2 = vadd.f32 %v11192_v62, %v7971_v44  ;;  %v11351_v44 = vld [vmem:[%s13243_s1 + $0x68] sm:$0xff]  }
 0x57e   :  { %9226 = vmatprep.subr.bf16.mxu1 %v10142_v36 }
 0x581   :  { %9227 = vmatpush3.bf16.msra.mxu1 %v10832_v4 }
 0x582   :  { %9228 = vmatprep.subr.bf16.mxu1 %v10142_v36 }
 0x585   :  { %9229 = vmatpush3.bf16.msra.mxu1 %v10839_v6 }
 0x586   :  { %9234 = vmatprep.subr.bf16.mxu1 %v10142_v36 }
 0x588   :  { %9231 = vmatmul.mubr.msk.bf16.vlgmr.msra.gmra.mrb[56].mxu1 %vm368_vm1, %v2201_v27 }
 0x589   :  { %9246 = vmatprep.mubr.msk.bf16.mxu1 %vm10143_vm0, %v10142_v36  ;;  %9235 = vmatpush3.bf16.msra.mxu1 %v9836_v59 }
 0x58a   :  { %9236 = vmatprep.subr.bf16.mxu1 %v10142_v36 }
 0x58d   :  { %9237 = vmatpush3.bf16.msra.mxu1 %v9837_v60 }
 0x58e   :  { %9238 = vmatprep.subr.bf16.mxu1 %v10142_v36 }
 0x591   :  { %9239 = vmatpush3.bf16.msra.mxu1 %v9838_v63 }
 0x592   :  { %9240 = vmatprep.subr.bf16.mxu1 %v10142_v36 }
 0x595   :  { %9241 = vmatpush3.bf16.msra.mxu1 %v9839_v23 }
 0x596   :  { %9242 = vmatprep.subr.bf16.mxu1 %v10142_v36 }
 0x599   :  { %9243 = vmatpush3.bf16.msra.mxu1 %v9840_v24 }
 0x59a   :  { %9244 = vmatprep.subr.bf16.mxu1 %v10142_v36 }
 0x60b   :  { %v1898_v28 = vpop.f32.mrb[44].mxu1 }
 0x60c   :  { %v11187_v29 = vadd.f32 %v1898_v28, %v11097_v17  ;;  %v9192_v30 = vpop.f32.mrb[45].mxu1  ;;  %v11229_v17 = vld [vmem:[%s13243_s1 + $0xd8] sm:$0xff]  }
 0x60d   :  { %v1901_v31 = vpop.f32.mrb[46].mxu1 }
 0x60e   :  { %v9193_v32 = vpop.f32.mrb[47].mxu1  ;;  %v9841_v31 = vld [vmem:[%s13245_s3 + $0x178] sm:$0xff]  }
 0x60f   :  { %9245 = vmatpush3.bf16.msra.mxu1 %v9841_v31  ;;  %v7250_v32 = vld [vmem:[%s13242_s0 + $0x28] sm:$0x1f] }
 0x610   :  { %8087 = vmatprep.subr.bf16.mxu1 %v11159_v13 }
 0x62b   :  { %v7991_v33 = vpop.f32.mrb[48].mxu1 }
 0x62c   :  { %v7992_v34 = vpop.f32.mrb[49].mxu1 }
 0x62d   :  { %v7993_v4 = vadd.f32 %v7992_v34, %v7991_v33  ;;  %v7994_v6 = vpop.f32.mrb[50].mxu1  ;;  %v2443_v33 = vrot.slane %v7250_v32, %v10382_v39 }
 0x62e   :  { %v7995_v50 = vpop.f32.mrb[51].mxu1  ;;  %v11418_v6 = vld [vmem:[%s13243_s1 + $0x100] sm:$0xff]  }
 0x62f   :  { %v2029_v0 = vadd.f32 %v7993_v4, %v1989_v2  ;;  %v2451_v34 = vcombine.high %v2443_v33, %v2443_v33  ;;  %v2458_v4 = vrot.slane %v2443_v33, %v10382_v39  ;;  %v2436_v50 = vcombine.high %v7250_v32, %v7250_v32 }
 0x631   :  { %v2069_v9 = vadd.f32 %v2068_v58, %v2029_v0  ;;  %v11381_v58 = vld [vmem:[%s13243_s1 + $0x38] sm:$0xff]   ;;  %v2472_v2 = vrot.slane %v2451_v34, %v10382_v39  ;;  %v11427_v0 = vld [vmem:[%s13243_s1 + $0x108] sm:$0xff]   ;;  %v9845_v34 = vld [vmem:[%s13245_s3 + $0x190] sm:$0xff]  }
 0x633   :  { %v2074_v18 = vmax.f32 %v2069_v9, 0.0  ;;  %v2450_v9 = vrot.slane %v2436_v50, %v10382_v39  ;;  %v2474_v32 = vcombine.high %v2472_v2, %v2472_v2 }
 0x635   :  { %v2075_v37 = vpack.c.bf16 %v2074_v18, %v2074_v18  ;;  %v11435_v18 = vld [vmem:[%s13243_s1 + $0x110] sm:$0xff]  }
 0x637   :  { %9219 = vmatmul.mubr.msk.bf16.vlgmr.msra.gmra.mrb[56].mxu0 %vm726_vm2, %v2075_v37  ;;  %v2465_v37 = vrot.slane %v2450_v9, %v10382_v39 }
 0x638   :  { %8032 = vmatpush3.bf16.msra.mxu0 %v11199_v52  ;;  %2290 = vmatprep.mubr.bf16.mxu0 %v2210_v35  ;;  %v11442_v35 = vld [vmem:[%s13243_s1 + $0x118] sm:$0xff]  }
 0x639   :  { %8033 = vmatprep.subr.bf16.mxu0 %v11205_v5 }
 0x63c   :  { %8034 = vmatpush3.bf16.msra.mxu0 %v11211_v54 }
 0x63d   :  { %8035 = vmatprep.subr.bf16.mxu0 %v11217_v25 }
 0x640   :  { %8036 = vmatpush3.bf16.msra.mxu0 %v11223_v38 }
 0x641   :  { %8037 = vmatprep.subr.bf16.mxu0 %v11229_v17 }
 0x644   :  { %8038 = vmatpush3.bf16.msra.mxu0 %v11235_v15 }
 0x645   :  { %8039 = vmatprep.subr.bf16.mxu0 %v11241_v61 }
 0x648   :  { %8040 = vmatpush3.bf16.msra.mxu0 %v11247_v48 }
 0x649   :  { %8041 = vmatprep.subr.bf16.mxu0 %v11253_v49 }
 0x64b   :  { %v8025_v1 = vpop.f32.mrb[52].mxu1 }
 0x64c   :  { %8042 = vmatpush3.bf16.msra.mxu0 %v11259_v51  ;;  %v8026_v19 = vpop.f32.mrb[53].mxu1 }
 0x64d   :  { %8043 = vmatprep.subr.bf16.mxu0 %v11265_v3  ;;  %v8027_v20 = vadd.f32 %v8026_v19, %v8025_v1  ;;  %v8028_v21 = vpop.f32.mrb[54].mxu1 }
 0x64e   :  { %v8029_v22 = vpop.f32.mrb[55].mxu1 }
 0x64f   :  { %v2253_v22 = vadd.f32 %v11192_v62, %v8027_v20  ;;  %v9843_v20 = vld [vmem:[%s13245_s3 + $0x180] sm:$0xff]  }
 0x650   :  { %8044 = vmatpush3.bf16.msra.mxu0 %v11271_v7 }
 0x651   :  { %8045 = vmatprep.subr.bf16.mxu0 %v11277_v45 }
 0x654   :  { %8046 = vmatpush3.bf16.msra.mxu0 %v11285_v10 }
 0x655   :  { %8065 = vmatprep.subr.bf16.mxu0 %v11291_v11 }
 0x657   :  { %2291 = vmatmul.mubr.bf16.vlgmr.msra.gmra.mrb[60].mxu0 %v2209_v47 }
 0x658   :  { %8066 = vmatpush3.bf16.msra.mxu0 %v11297_v8  ;;  %2514 = vmatprep.mubr.bf16.mxu0 %v2472_v2 }
 0x659   :  { %8067 = vmatprep.subr.bf16.mxu0 %v11303_v16 }
 0x65b   :  { %v2332_v26 = vpop.f32.mrb[56].mxu1 }
 0x65c   :  { %8068 = vmatpush3.bf16.msra.mxu0 %v11309_v55  ;;  %v9232_v27 = vpop.f32.mrb[57].mxu1 }
 0x65d   :  { %8069 = vmatprep.subr.bf16.mxu0 %v11315_v14  ;;  %v2335_v28 = vpop.f32.mrb[58].mxu1 }
 0x65e   :  { %v9233_v30 = vpop.f32.mrb[59].mxu1 }
 0x660   :  { %8070 = vmatpush3.bf16.msra.mxu0 %v11321_v12 }
 0x661   :  { %8071 = vmatprep.subr.bf16.mxu0 %v11327_v40 }
 0x664   :  { %8072 = vmatpush3.bf16.msra.mxu0 %v11333_v41 }
 0x665   :  { %8073 = vmatprep.subr.bf16.mxu0 %v11339_v42 }
 0x668   :  { %8074 = vmatpush3.bf16.msra.mxu0 %v11345_v43 }
 0x669   :  { %8075 = vmatprep.subr.bf16.mxu0 %v11351_v44 }
 0x66c   :  { %8076 = vmatpush3.bf16.msra.mxu0 %v11357_v46 }
 0x66d   :  { %8077 = vmatprep.subr.bf16.mxu0 %v11363_v53 }
 0x670   :  { %8078 = vmatpush3.bf16.msra.mxu0 %v11369_v56 }
 0x671   :  { %8079 = vmatprep.subr.bf16.mxu0 %v11375_v57 }
 0x674   :  { %8080 = vmatpush3.bf16.msra.mxu0 %v11381_v58 }
 0x675   :  { %9250 = vmatprep.subr.bf16.mxu0 %v10142_v36 }
 0x677   :  { %2515 = vmatmul.mubr.bf16.vlgmr.msra.gmra.mrb[64].mxu0 %v2458_v4 }
 0x678   :  { %9251 = vmatpush3.bf16.msra.mxu0 %v11418_v6  ;;  %9258 = vmatprep.mubr.msk.bf16.mxu0 %vm10143_vm0, %v10142_v36 }
 0x679   :  { %9252 = vmatprep.subr.bf16.mxu0 %v10142_v36 }
 0x67c   :  { %9253 = vmatpush3.bf16.msra.mxu0 %v11427_v0 }
 0x67d   :  { %9254 = vmatprep.subr.bf16.mxu0 %v10142_v36 }
 0x680   :  { %9255 = vmatpush3.bf16.msra.mxu0 %v11435_v18 }
 0x681   :  { %9256 = vmatprep.subr.bf16.mxu0 %v10142_v36 }
 0x684   :  { %9257 = vmatpush3.bf16.msra.mxu0 %v11442_v35 }
 0x685   :  { %9262 = vmatprep.subr.bf16.mxu0 %v10142_v36 }
 0x687   :  { %9259 = vmatmul.mubr.msk.bf16.vlgmr.msra.gmra.mrb[68].mxu0 %vm368_vm1, %v2465_v37 }
 0x688   :  { %9274 = vmatprep.mubr.msk.bf16.mxu0 %vm10143_vm0, %v10142_v36  ;;  %9263 = vmatpush3.bf16.msra.mxu0 %v9843_v20 }
 0x689   :  { %9264 = vmatprep.subr.bf16.mxu0 %v10142_v36 }
 0x70a   :  { %v2162_v47 = vpop.f32.mrb[56].mxu0 }
 0x70b   :  { %v11451_v59 = vadd.f32 %v2162_v47, %v11187_v29  ;;  %v9220_v60 = vpop.f32.mrb[57].mxu0  ;;  %v2473_v29 = vcombine.high %v2458_v4, %v2458_v4  ;;  %v9846_v47 = vld [vmem:[%s13245_s3 + $0x198] sm:$0xff]  }
 0x70c   :  { %v2165_v63 = vpop.f32.mrb[58].mxu0  ;;  %v9847_v60 = vld [vmem:[%s13245_s3 + $0x1a0] sm:$0xff]  }
 0x70d   :  { %v9221_v1 = vpop.f32.mrb[59].mxu0 }
 0x72a   :  { %v8047_v19 = vpop.f32.mrb[60].mxu0 }
 0x72b   :  { %v8048_v21 = vpop.f32.mrb[61].mxu0 }
 0x72c   :  { %v8049_v23 = vadd.f32 %v8048_v21, %v8047_v19  ;;  %v8050_v24 = vpop.f32.mrb[62].mxu0 }
 0x72d   :  { %v8051_v27 = vpop.f32.mrb[63].mxu0 }
 0x72e   :  { %v2293_v28 = vadd.f32 %v8049_v23, %v2253_v22  ;;  %v9848_v22 = vld [vmem:[%s13245_s3 + $0x1a8] sm:$0xff]  }
 0x72f   :  { %v7271_v23 = vld [vmem:[%s13242_s0 + $0x2d] sm:$0x1f] }
 0x730   :  { %v2333_v30 = vadd.f32 %v2332_v26, %v2293_v28  ;;  %v9844_v26 = vld [vmem:[%s13245_s3 + $0x188] sm:$0xff]   ;;  %v2707_v24 = vrot.slane %v7271_v23, %v10382_v39 }
 0x731   :  { %9265 = vmatpush3.bf16.msra.mxu0 %v9844_v26 }
 0x732   :  { %v2338_v31 = vmax.f32 %v2333_v30, 0.0  ;;  %9266 = vmatprep.subr.bf16.mxu0 %v10142_v36  ;;  %v2715_v27 = vcombine.high %v2707_v24, %v2707_v24  ;;  %v2722_v30 = vrot.slane %v2707_v24, %v10382_v39 }
 0x734   :  { %v2339_v33 = vpack.c.bf16 %v2338_v31, %v2338_v31  ;;  %v2736_v28 = vrot.slane %v2715_v27, %v10382_v39  ;;  %v2700_v31 = vcombine.high %v7271_v23, %v7271_v23  ;;  %v9852_v27 = vld [vmem:[%s13245_s3 + $0x1c0] sm:$0xff]  }
 0x735   :  { %9267 = vmatpush3.bf16.msra.mxu0 %v9845_v34 }
 0x736   :  { %9247 = vmatmul.mubr.msk.bf16.vlgmr.msra.gmra.mrb[60].mxu1 %vm726_vm2, %v2339_v33  ;;  %9268 = vmatprep.subr.bf16.mxu0 %v10142_v36  ;;  %v2738_v23 = vcombine.high %v2736_v28, %v2736_v28 }
 0x737   :  { %8088 = vmatpush3.bf16.msra.mxu1 %v11199_v52  ;;  %2554 = vmatprep.mubr.bf16.mxu1 %v2474_v32  ;;  %v2714_v32 = vrot.slane %v2700_v31, %v10382_v39 }
 0x738   :  { %8089 = vmatprep.subr.bf16.mxu1 %v11205_v5 }
 0x739   :  { %9269 = vmatpush3.bf16.msra.mxu0 %v9846_v47  ;;  %v2729_v33 = vrot.slane %v2714_v32, %v10382_v39 }
 0x73a   :  { %9270 = vmatprep.subr.bf16.mxu0 %v10142_v36 }
 0x73b   :  { %8090 = vmatpush3.bf16.msra.mxu1 %v11211_v54 }
 0x73c   :  { %8091 = vmatprep.subr.bf16.mxu1 %v11217_v25 }
 0x73d   :  { %9271 = vmatpush3.bf16.msra.mxu0 %v9847_v60 }
 0x73e   :  { %9272 = vmatprep.subr.bf16.mxu0 %v10142_v36 }
 0x73f   :  { %8092 = vmatpush3.bf16.msra.mxu1 %v11223_v38 }
 0x740   :  { %8093 = vmatprep.subr.bf16.mxu1 %v11229_v17 }
 0x741   :  { %9273 = vmatpush3.bf16.msra.mxu0 %v9848_v22 }
 0x742   :  { %8143 = vmatprep.subr.bf16.mxu0 %v11159_v13 }
 0x743   :  { %8094 = vmatpush3.bf16.msra.mxu1 %v11235_v15 }
 0x744   :  { %8095 = vmatprep.subr.bf16.mxu1 %v11241_v61 }
 0x747   :  { %8096 = vmatpush3.bf16.msra.mxu1 %v11247_v48 }
 0x748   :  { %8097 = vmatprep.subr.bf16.mxu1 %v11253_v49 }
 0x74a   :  { %v8081_v2 = vpop.f32.mrb[64].mxu0 }
 0x74b   :  { %8098 = vmatpush3.bf16.msra.mxu1 %v11259_v51  ;;  %v8082_v4 = vpop.f32.mrb[65].mxu0 }
 0x74c   :  { %8099 = vmatprep.subr.bf16.mxu1 %v11265_v3  ;;  %v8083_v50 = vadd.f32 %v8082_v4, %v8081_v2  ;;  %v8084_v9 = vpop.f32.mrb[66].mxu0 }
 0x74d   :  { %v8085_v37 = vpop.f32.mrb[67].mxu0 }
 0x74e   :  { %v2517_v37 = vadd.f32 %v11192_v62, %v8083_v50  ;;  %v9850_v50 = vld [vmem:[%s13245_s3 + $0x1b0] sm:$0xff]  }
 0x74f   :  { %8100 = vmatpush3.bf16.msra.mxu1 %v11271_v7 }
 0x750   :  { %8101 = vmatprep.subr.bf16.mxu1 %v11277_v45 }
 0x753   :  { %8102 = vmatpush3.bf16.msra.mxu1 %v11285_v10 }
 0x754   :  { %8121 = vmatprep.subr.bf16.mxu1 %v11291_v11 }
 0x756   :  { %2555 = vmatmul.mubr.bf16.vlgmr.msra.gmra.mrb[64].mxu1 %v2473_v29 }
 0x757   :  { %8122 = vmatpush3.bf16.msra.mxu1 %v11297_v8  ;;  %2778 = vmatprep.mubr.bf16.mxu1 %v2736_v28 }
 0x758   :  { %8123 = vmatprep.subr.bf16.mxu1 %v11303_v16 }
 0x75a   :  { %v2596_v63 = vpop.f32.mrb[68].mxu0 }
 0x75b   :  { %8124 = vmatpush3.bf16.msra.mxu1 %v11309_v55  ;;  %v9260_v1 = vpop.f32.mrb[69].mxu0 }
 0x75c   :  { %8125 = vmatprep.subr.bf16.mxu1 %v11315_v14  ;;  %v2599_v19 = vpop.f32.mrb[70].mxu0 }
 0x75d   :  { %v9261_v21 = vpop.f32.mrb[71].mxu0 }
 0x75f   :  { %8126 = vmatpush3.bf16.msra.mxu1 %v11321_v12 }
 0x760   :  { %8127 = vmatprep.subr.bf16.mxu1 %v11327_v40 }
 0x763   :  { %8128 = vmatpush3.bf16.msra.mxu1 %v11333_v41 }
 0x764   :  { %8129 = vmatprep.subr.bf16.mxu1 %v11339_v42 }
 0x767   :  { %8130 = vmatpush3.bf16.msra.mxu1 %v11345_v43 }
 0x768   :  { %8131 = vmatprep.subr.bf16.mxu1 %v11351_v44 }
 0x76b   :  { %8132 = vmatpush3.bf16.msra.mxu1 %v11357_v46 }
 0x76c   :  { %8133 = vmatprep.subr.bf16.mxu1 %v11363_v53 }
 0x76f   :  { %8134 = vmatpush3.bf16.msra.mxu1 %v11369_v56 }
 0x770   :  { %8135 = vmatprep.subr.bf16.mxu1 %v11375_v57 }
 0x773   :  { %8136 = vmatpush3.bf16.msra.mxu1 %v11381_v58 }
 0x774   :  { %9278 = vmatprep.subr.bf16.mxu1 %v10142_v36 }
 0x776   :  { %2779 = vmatmul.mubr.bf16.vlgmr.msra.gmra.mrb[68].mxu1 %v2722_v30 }
 0x777   :  { %9279 = vmatpush3.bf16.msra.mxu1 %v11418_v6  ;;  %9286 = vmatprep.mubr.msk.bf16.mxu1 %vm10143_vm0, %v10142_v36 }
 0x778   :  { %9280 = vmatprep.subr.bf16.mxu1 %v10142_v36 }
 0x77b   :  { %9281 = vmatpush3.bf16.msra.mxu1 %v11427_v0 }
 0x77c   :  { %9282 = vmatprep.subr.bf16.mxu1 %v10142_v36 }
 0x77f   :  { %9283 = vmatpush3.bf16.msra.mxu1 %v11435_v18 }
 0x780   :  { %9284 = vmatprep.subr.bf16.mxu1 %v10142_v36 }
 0x783   :  { %9285 = vmatpush3.bf16.msra.mxu1 %v11442_v35 }
 0x784   :  { %9290 = vmatprep.subr.bf16.mxu1 %v10142_v36 }
 0x786   :  { %9287 = vmatmul.mubr.msk.bf16.vlgmr.msra.gmra.mrb[72].mxu1 %vm368_vm1, %v2729_v33 }
 0x787   :  { %9302 = vmatprep.mubr.msk.bf16.mxu1 %vm10143_vm0, %v10142_v36  ;;  %9291 = vmatpush3.bf16.msra.mxu1 %v9850_v50 }
 0x788   :  { %9292 = vmatprep.subr.bf16.mxu1 %v10142_v36 }
 0x809   :  { %v2426_v29 = vpop.f32.mrb[60].mxu1 }
 0x80a   :  { %v11533_v20 = vadd.f32 %v2426_v29, %v11451_v59  ;;  %v9248_v26 = vpop.f32.mrb[61].mxu1  ;;  %v2737_v59 = vcombine.high %v2722_v30, %v2722_v30  ;;  %v9853_v29 = vld [vmem:[%s13245_s3 + $0x1c8] sm:$0xff]  }
 0x80b   :  { %v2429_v34 = vpop.f32.mrb[62].mxu1  ;;  %v9854_v26 = vld [vmem:[%s13245_s3 + $0x1d0] sm:$0xff]  }
 0x80c   :  { %v9249_v2 = vpop.f32.mrb[63].mxu1 }
 0x829   :  { %v8103_v4 = vpop.f32.mrb[64].mxu1 }
 0x82a   :  { %v8104_v9 = vpop.f32.mrb[65].mxu1 }
 0x82b   :  { %v8105_v47 = vadd.f32 %v8104_v9, %v8103_v4  ;;  %v8106_v60 = vpop.f32.mrb[66].mxu1 }
 0x82c   :  { %v8107_v1 = vpop.f32.mrb[67].mxu1 }
 0x82d   :  { %v2557_v19 = vadd.f32 %v8105_v47, %v2517_v37  ;;  %v9855_v37 = vld [vmem:[%s13245_s3 + $0x1d8] sm:$0xff]   ;;  %v7292_v47 = vld [vmem:[%s13242_s0 + $0x32] sm:$0x1f] }
 0x82e   :  { %v2971_v60 = vrot.slane %v7292_v47, %v10382_v39 }
 0x82f   :  { %v2597_v21 = vadd.f32 %v2596_v63, %v2557_v19  ;;  %v9851_v63 = vld [vmem:[%s13245_s3 + $0x1b8] sm:$0xff]  }
 0x830   :  { %9293 = vmatpush3.bf16.msra.mxu1 %v9851_v63  ;;  %v2979_v1 = vcombine.high %v2971_v60, %v2971_v60 }
 0x831   :  { %v2602_v22 = vmax.f32 %v2597_v21, 0.0  ;;  %9294 = vmatprep.subr.bf16.mxu1 %v10142_v36  ;;  %v2986_v21 = vrot.slane %v2971_v60, %v10382_v39 }
 0x832   :  { %v3000_v19 = vrot.slane %v2979_v1, %v10382_v39  ;;  %v9859_v1 = vld [vmem:[%s13245_s3 + $0x1f0] sm:$0xff]  }
 0x833   :  { %v2603_v24 = vpack.c.bf16 %v2602_v22, %v2602_v22  ;;  %v2964_v22 = vcombine.high %v7292_v47, %v7292_v47 }
 0x834   :  { %9295 = vmatpush3.bf16.msra.mxu1 %v9852_v27  ;;  %v3002_v47 = vcombine.high %v3000_v19, %v3000_v19 }
 0x835   :  { %9275 = vmatmul.mubr.msk.bf16.vlgmr.msra.gmra.mrb[72].mxu0 %vm726_vm2, %v2603_v24  ;;  %9296 = vmatprep.subr.bf16.mxu1 %v10142_v36 }
 0x836   :  { %8144 = vmatpush3.bf16.msra.mxu0 %v11199_v52  ;;  %2818 = vmatprep.mubr.bf16.mxu0 %v2738_v23  ;;  %v2978_v23 = vrot.slane %v2964_v22, %v10382_v39 }
 0x837   :  { %8145 = vmatprep.subr.bf16.mxu0 %v11205_v5 }
 0x838   :  { %9297 = vmatpush3.bf16.msra.mxu1 %v9853_v29  ;;  %v2993_v24 = vrot.slane %v2978_v23, %v10382_v39 }
 0x839   :  { %9298 = vmatprep.subr.bf16.mxu1 %v10142_v36 }
 0x83a   :  { %8146 = vmatpush3.bf16.msra.mxu0 %v11211_v54 }
 0x83b   :  { %8147 = vmatprep.subr.bf16.mxu0 %v11217_v25 }
 0x83c   :  { %9299 = vmatpush3.bf16.msra.mxu1 %v9854_v26 }
 0x83d   :  { %9300 = vmatprep.subr.bf16.mxu1 %v10142_v36 }
 0x83e   :  { %8148 = vmatpush3.bf16.msra.mxu0 %v11223_v38 }
 0x83f   :  { %8149 = vmatprep.subr.bf16.mxu0 %v11229_v17 }
 0x840   :  { %9301 = vmatpush3.bf16.msra.mxu1 %v9855_v37 }
 0x841   :  { %8199 = vmatprep.subr.bf16.mxu1 %v11159_v13 }
 0x842   :  { %8150 = vmatpush3.bf16.msra.mxu0 %v11235_v15 }
 0x843   :  { %8151 = vmatprep.subr.bf16.mxu0 %v11241_v61 }
 0x846   :  { %8152 = vmatpush3.bf16.msra.mxu0 %v11247_v48 }
 0x847   :  { %8153 = vmatprep.subr.bf16.mxu0 %v11253_v49 }
 0x849   :  { %v8137_v28 = vpop.f32.mrb[68].mxu1 }
 0x84a   :  { %8154 = vmatpush3.bf16.msra.mxu0 %v11259_v51  ;;  %v8138_v30 = vpop.f32.mrb[69].mxu1 }
 0x84b   :  { %8155 = vmatprep.subr.bf16.mxu0 %v11265_v3  ;;  %v8139_v31 = vadd.f32 %v8138_v30, %v8137_v28  ;;  %v8140_v32 = vpop.f32.mrb[70].mxu1 }
 0x84c   :  { %v8141_v33 = vpop.f32.mrb[71].mxu1 }
 0x84d   :  { %v2781_v33 = vadd.f32 %v11192_v62, %v8139_v31  ;;  %v9857_v31 = vld [vmem:[%s13245_s3 + $0x1e0] sm:$0xff]  }
 0x84e   :  { %8156 = vmatpush3.bf16.msra.mxu0 %v11271_v7 }
 0x84f   :  { %8157 = vmatprep.subr.bf16.mxu0 %v11277_v45 }
 0x852   :  { %8158 = vmatpush3.bf16.msra.mxu0 %v11285_v10 }
 0x853   :  { %8177 = vmatprep.subr.bf16.mxu0 %v11291_v11 }
 0x855   :  { %2819 = vmatmul.mubr.bf16.vlgmr.msra.gmra.mrb[76].mxu0 %v2737_v59 }
 0x856   :  { %8178 = vmatpush3.bf16.msra.mxu0 %v11297_v8  ;;  %3042 = vmatprep.mubr.bf16.mxu0 %v3000_v19 }
 0x857   :  { %8179 = vmatprep.subr.bf16.mxu0 %v11303_v16 }
 0x859   :  { %v2860_v34 = vpop.f32.mrb[72].mxu1 }
 0x85a   :  { %8180 = vmatpush3.bf16.msra.mxu0 %v11309_v55  ;;  %v9288_v2 = vpop.f32.mrb[73].mxu1 }
 0x85b   :  { %8181 = vmatprep.subr.bf16.mxu0 %v11315_v14  ;;  %v2863_v4 = vpop.f32.mrb[74].mxu1 }
 0x85c   :  { %v9289_v9 = vpop.f32.mrb[75].mxu1 }
 0x85e   :  { %8182 = vmatpush3.bf16.msra.mxu0 %v11321_v12 }
 0x85f   :  { %8183 = vmatprep.subr.bf16.mxu0 %v11327_v40 }
 0x862   :  { %8184 = vmatpush3.bf16.msra.mxu0 %v11333_v41 }
 0x863   :  { %8185 = vmatprep.subr.bf16.mxu0 %v11339_v42 }
 0x866   :  { %8186 = vmatpush3.bf16.msra.mxu0 %v11345_v43 }
 0x867   :  { %8187 = vmatprep.subr.bf16.mxu0 %v11351_v44 }
 0x86a   :  { %8188 = vmatpush3.bf16.msra.mxu0 %v11357_v46 }
 0x86b   :  { %8189 = vmatprep.subr.bf16.mxu0 %v11363_v53 }
 0x86e   :  { %8190 = vmatpush3.bf16.msra.mxu0 %v11369_v56 }
 0x86f   :  { %8191 = vmatprep.subr.bf16.mxu0 %v11375_v57 }
 0x872   :  { %8192 = vmatpush3.bf16.msra.mxu0 %v11381_v58 }
 0x873   :  { %9306 = vmatprep.subr.bf16.mxu0 %v10142_v36 }
 0x875   :  { %3043 = vmatmul.mubr.bf16.vlgmr.msra.gmra.mrb[80].mxu0 %v2986_v21 }
 0x876   :  { %9307 = vmatpush3.bf16.msra.mxu0 %v11418_v6  ;;  %9314 = vmatprep.mubr.msk.bf16.mxu0 %vm10143_vm0, %v10142_v36 }
 0x877   :  { %9308 = vmatprep.subr.bf16.mxu0 %v10142_v36 }
 0x87a   :  { %9309 = vmatpush3.bf16.msra.mxu0 %v11427_v0 }
 0x87b   :  { %9310 = vmatprep.subr.bf16.mxu0 %v10142_v36 }
 0x87e   :  { %9311 = vmatpush3.bf16.msra.mxu0 %v11435_v18 }
 0x87f   :  { %9312 = vmatprep.subr.bf16.mxu0 %v10142_v36 }
 0x882   :  { %9313 = vmatpush3.bf16.msra.mxu0 %v11442_v35 }
 0x883   :  { %9318 = vmatprep.subr.bf16.mxu0 %v10142_v36 }
 0x885   :  { %9315 = vmatmul.mubr.msk.bf16.vlgmr.msra.gmra.mrb[84].mxu0 %vm368_vm1, %v2993_v24 }
 0x886   :  { %9330 = vmatprep.mubr.msk.bf16.mxu0 %vm10143_vm0, %v10142_v36  ;;  %9319 = vmatpush3.bf16.msra.mxu0 %v9857_v31 }
 0x887   :  { %9320 = vmatprep.subr.bf16.mxu0 %v10142_v36 }
 0x908   :  { %v2690_v59 = vpop.f32.mrb[72].mxu0 }
 0x909   :  { %v11615_v50 = vadd.f32 %v2690_v59, %v11533_v20  ;;  %v9276_v63 = vpop.f32.mrb[73].mxu0  ;;  %v3001_v20 = vcombine.high %v2986_v21, %v2986_v21  ;;  %v9860_v59 = vld [vmem:[%s13245_s3 + $0x1f8] sm:$0xff]  }
 0x90a   :  { %v2693_v27 = vpop.f32.mrb[74].mxu0  ;;  %v9861_v63 = vld [vmem:[%s13245_s3 + $0x200] sm:$0xff]  }
 0x90b   :  { %v9277_v28 = vpop.f32.mrb[75].mxu0 }
 0x928   :  { %v8159_v30 = vpop.f32.mrb[76].mxu0 }
 0x929   :  { %v8160_v32 = vpop.f32.mrb[77].mxu0 }
 0x92a   :  { %v8161_v29 = vadd.f32 %v8160_v32, %v8159_v30  ;;  %v8162_v26 = vpop.f32.mrb[78].mxu0 }
 0x92b   :  { %v8163_v2 = vpop.f32.mrb[79].mxu0 }
 0x92c   :  { %v2821_v4 = vadd.f32 %v8161_v29, %v2781_v33  ;;  %v9862_v33 = vld [vmem:[%s13245_s3 + $0x208] sm:$0xff]   ;;  %v7313_v29 = vld [vmem:[%s13242_s0 + $0x37] sm:$0x1f] }
 0x92d   :  { %v3235_v26 = vrot.slane %v7313_v29, %v10382_v39 }
 0x92e   :  { %v2861_v9 = vadd.f32 %v2860_v34, %v2821_v4  ;;  %v9858_v34 = vld [vmem:[%s13245_s3 + $0x1e8] sm:$0xff]  }
 0x92f   :  { %9321 = vmatpush3.bf16.msra.mxu0 %v9858_v34  ;;  %v3243_v2 = vcombine.high %v3235_v26, %v3235_v26 }
 0x930   :  { %v2866_v37 = vmax.f32 %v2861_v9, 0.0  ;;  %9322 = vmatprep.subr.bf16.mxu0 %v10142_v36  ;;  %v3250_v9 = vrot.slane %v3235_v26, %v10382_v39 }
 0x931   :  { %v3264_v4 = vrot.slane %v3243_v2, %v10382_v39  ;;  %v9866_v2 = vld [vmem:[%s13245_s3 + $0x220] sm:$0xff]  }
 0x932   :  { %v2867_v60 = vpack.c.bf16 %v2866_v37, %v2866_v37  ;;  %v3228_v37 = vcombine.high %v7313_v29, %v7313_v29 }
 0x933   :  { %9323 = vmatpush3.bf16.msra.mxu0 %v9859_v1  ;;  %v3266_v29 = vcombine.high %v3264_v4, %v3264_v4 }
 0x934   :  { %9303 = vmatmul.mubr.msk.bf16.vlgmr.msra.gmra.mrb[76].mxu1 %vm726_vm2, %v2867_v60  ;;  %9324 = vmatprep.subr.bf16.mxu0 %v10142_v36 }
 0x935   :  { %8200 = vmatpush3.bf16.msra.mxu1 %v11199_v52  ;;  %3082 = vmatprep.mubr.bf16.mxu1 %v3002_v47  ;;  %v3242_v47 = vrot.slane %v3228_v37, %v10382_v39 }
 0x936   :  { %8201 = vmatprep.subr.bf16.mxu1 %v11205_v5 }
 0x937   :  { %9325 = vmatpush3.bf16.msra.mxu0 %v9860_v59  ;;  %v3257_v60 = vrot.slane %v3242_v47, %v10382_v39 }
 0x938   :  { %9326 = vmatprep.subr.bf16.mxu0 %v10142_v36 }
 0x939   :  { %8202 = vmatpush3.bf16.msra.mxu1 %v11211_v54 }
 0x93a   :  { %8203 = vmatprep.subr.bf16.mxu1 %v11217_v25 }
 0x93b   :  { %9327 = vmatpush3.bf16.msra.mxu0 %v9861_v63 }
 0x93c   :  { %9328 = vmatprep.subr.bf16.mxu0 %v10142_v36 }
 0x93d   :  { %8204 = vmatpush3.bf16.msra.mxu1 %v11223_v38 }
 0x93e   :  { %8205 = vmatprep.subr.bf16.mxu1 %v11229_v17 }
 0x93f   :  { %9329 = vmatpush3.bf16.msra.mxu0 %v9862_v33 }
 0x940   :  { %8255 = vmatprep.subr.bf16.mxu0 %v11159_v13 }
 0x941   :  { %8206 = vmatpush3.bf16.msra.mxu1 %v11235_v15 }
 0x942   :  { %8207 = vmatprep.subr.bf16.mxu1 %v11241_v61 }
 0x945   :  { %8208 = vmatpush3.bf16.msra.mxu1 %v11247_v48 }
 0x946   :  { %8209 = vmatprep.subr.bf16.mxu1 %v11253_v49 }
 0x948   :  { %v8193_v19 = vpop.f32.mrb[80].mxu0 }
 0x949   :  { %8210 = vmatpush3.bf16.msra.mxu1 %v11259_v51  ;;  %v8194_v21 = vpop.f32.mrb[81].mxu0 }
 0x94a   :  { %8211 = vmatprep.subr.bf16.mxu1 %v11265_v3  ;;  %v8195_v22 = vadd.f32 %v8194_v21, %v8193_v19  ;;  %v8196_v23 = vpop.f32.mrb[82].mxu0 }
 0x94b   :  { %v8197_v24 = vpop.f32.mrb[83].mxu0 }
 0x94c   :  { %v3045_v24 = vadd.f32 %v11192_v62, %v8195_v22  ;;  %v9864_v22 = vld [vmem:[%s13245_s3 + $0x210] sm:$0xff]  }
 0x94d   :  { %8212 = vmatpush3.bf16.msra.mxu1 %v11271_v7 }
 0x94e   :  { %8213 = vmatprep.subr.bf16.mxu1 %v11277_v45 }
 0x951   :  { %8214 = vmatpush3.bf16.msra.mxu1 %v11285_v10 }
 0x952   :  { %8233 = vmatprep.subr.bf16.mxu1 %v11291_v11 }
 0x954   :  { %3083 = vmatmul.mubr.bf16.vlgmr.msra.gmra.mrb[80].mxu1 %v3001_v20 }
 0x955   :  { %8234 = vmatpush3.bf16.msra.mxu1 %v11297_v8  ;;  %3306 = vmatprep.mubr.bf16.mxu1 %v3264_v4 }
 0x956   :  { %8235 = vmatprep.subr.bf16.mxu1 %v11303_v16 }
 0x958   :  { %v3124_v27 = vpop.f32.mrb[84].mxu0 }
 0x959   :  { %8236 = vmatpush3.bf16.msra.mxu1 %v11309_v55  ;;  %v9316_v28 = vpop.f32.mrb[85].mxu0 }
 0x95a   :  { %8237 = vmatprep.subr.bf16.mxu1 %v11315_v14  ;;  %v3127_v30 = vpop.f32.mrb[86].mxu0 }
 0x95b   :  { %v9317_v32 = vpop.f32.mrb[87].mxu0 }
 0x95d   :  { %8238 = vmatpush3.bf16.msra.mxu1 %v11321_v12 }
 0x95e   :  { %8239 = vmatprep.subr.bf16.mxu1 %v11327_v40 }
 0x961   :  { %8240 = vmatpush3.bf16.msra.mxu1 %v11333_v41 }
 0x962   :  { %8241 = vmatprep.subr.bf16.mxu1 %v11339_v42 }
 0x965   :  { %8242 = vmatpush3.bf16.msra.mxu1 %v11345_v43 }
 0x966   :  { %8243 = vmatprep.subr.bf16.mxu1 %v11351_v44 }
 0x969   :  { %8244 = vmatpush3.bf16.msra.mxu1 %v11357_v46 }
 0x96a   :  { %8245 = vmatprep.subr.bf16.mxu1 %v11363_v53 }
 0x96d   :  { %8246 = vmatpush3.bf16.msra.mxu1 %v11369_v56 }
 0x96e   :  { %8247 = vmatprep.subr.bf16.mxu1 %v11375_v57 }
 0x971   :  { %8248 = vmatpush3.bf16.msra.mxu1 %v11381_v58 }
 0x972   :  { %9334 = vmatprep.subr.bf16.mxu1 %v10142_v36 }
 0x974   :  { %3307 = vmatmul.mubr.bf16.vlgmr.msra.gmra.mrb[84].mxu1 %v3250_v9 }
 0x975   :  { %9335 = vmatpush3.bf16.msra.mxu1 %v11418_v6  ;;  %9342 = vmatprep.mubr.msk.bf16.mxu1 %vm10143_vm0, %v10142_v36 }
 0x976   :  { %9336 = vmatprep.subr.bf16.mxu1 %v10142_v36 }
 0x979   :  { %9337 = vmatpush3.bf16.msra.mxu1 %v11427_v0 }
 0x97a   :  { %9338 = vmatprep.subr.bf16.mxu1 %v10142_v36 }
 0x97d   :  { %9339 = vmatpush3.bf16.msra.mxu1 %v11435_v18 }
 0x97e   :  { %9340 = vmatprep.subr.bf16.mxu1 %v10142_v36 }
 0x981   :  { %9341 = vmatpush3.bf16.msra.mxu1 %v11442_v35 }
 0x982   :  { %9346 = vmatprep.subr.bf16.mxu1 %v10142_v36 }
 0x984   :  { %9343 = vmatmul.mubr.msk.bf16.vlgmr.msra.gmra.mrb[88].mxu1 %vm368_vm1, %v3257_v60 }
 0x985   :  { %9358 = vmatprep.mubr.msk.bf16.mxu1 %vm10143_vm0, %v10142_v36  ;;  %9347 = vmatpush3.bf16.msra.mxu1 %v9864_v22 }
 0x986   :  { %9348 = vmatprep.subr.bf16.mxu1 %v10142_v36 }
 0xa07   :  { %v2954_v20 = vpop.f32.mrb[76].mxu1 }
 0xa08   :  { %v11697_v31 = vadd.f32 %v2954_v20, %v11615_v50  ;;  %v9304_v34 = vpop.f32.mrb[77].mxu1  ;;  %v3265_v50 = vcombine.high %v3250_v9, %v3250_v9  ;;  %v9867_v20 = vld [vmem:[%s13245_s3 + $0x228] sm:$0xff]  }
 0xa09   :  { %v2957_v1 = vpop.f32.mrb[78].mxu1  ;;  %v9868_v34 = vld [vmem:[%s13245_s3 + $0x230] sm:$0xff]  }
 0xa0a   :  { %v9305_v19 = vpop.f32.mrb[79].mxu1 }
 0xa27   :  { %v8215_v21 = vpop.f32.mrb[80].mxu1 }
 0xa28   :  { %v8216_v23 = vpop.f32.mrb[81].mxu1 }
 0xa29   :  { %v8217_v59 = vadd.f32 %v8216_v23, %v8215_v21  ;;  %v8218_v63 = vpop.f32.mrb[82].mxu1 }
 0xa2a   :  { %v8219_v28 = vpop.f32.mrb[83].mxu1 }
 0xa2b   :  { %v3085_v30 = vadd.f32 %v8217_v59, %v3045_v24  ;;  %v9869_v24 = vld [vmem:[%s13245_s3 + $0x238] sm:$0xff]  }
 0xa2c   :  { %v7334_v59 = vld [vmem:[%s13242_s0 + $0x3c] sm:$0x1f] }
 0xa2d   :  { %v3125_v32 = vadd.f32 %v3124_v27, %v3085_v30  ;;  %v9865_v27 = vld [vmem:[%s13245_s3 + $0x218] sm:$0xff]   ;;  %v3499_v63 = vrot.slane %v7334_v59, %v10382_v39 }
 0xa2e   :  { %9349 = vmatpush3.bf16.msra.mxu1 %v9865_v27 }
 0xa2f   :  { %v3130_v33 = vmax.f32 %v3125_v32, 0.0  ;;  %9350 = vmatprep.subr.bf16.mxu1 %v10142_v36  ;;  %v3507_v28 = vcombine.high %v3499_v63, %v3499_v63  ;;  %v3514_v32 = vrot.slane %v3499_v63, %v10382_v39 }
 0xa31   :  { %v3131_v26 = vpack.c.bf16 %v3130_v33, %v3130_v33  ;;  %v3528_v30 = vrot.slane %v3507_v28, %v10382_v39 }
 0xa32   :  { %9351 = vmatpush3.bf16.msra.mxu1 %v9866_v2 }
 0xa33   :  { %9331 = vmatmul.mubr.msk.bf16.vlgmr.msra.gmra.mrb[88].mxu0 %vm726_vm2, %v3131_v26  ;;  %9352 = vmatprep.subr.bf16.mxu1 %v10142_v36 }
 0xa34   :  { %8256 = vmatpush3.bf16.msra.mxu0 %v11199_v52  ;;  %3346 = vmatprep.mubr.bf16.mxu0 %v3266_v29 }
 0xa35   :  { %8257 = vmatprep.subr.bf16.mxu0 %v11205_v5 }
 0xa36   :  { %9353 = vmatpush3.bf16.msra.mxu1 %v9867_v20 }
 0xa37   :  { %9354 = vmatprep.subr.bf16.mxu1 %v10142_v36 }
 0xa38   :  { %8258 = vmatpush3.bf16.msra.mxu0 %v11211_v54 }
 0xa39   :  { %8259 = vmatprep.subr.bf16.mxu0 %v11217_v25 }
 0xa3a   :  { %9355 = vmatpush3.bf16.msra.mxu1 %v9868_v34 }
 0xa3b   :  { %9356 = vmatprep.subr.bf16.mxu1 %v10142_v36 }
 0xa3c   :  { %8260 = vmatpush3.bf16.msra.mxu0 %v11223_v38 }
 0xa3d   :  { %8261 = vmatprep.subr.bf16.mxu0 %v11229_v17 }
 0xa3e   :  { %9357 = vmatpush3.bf16.msra.mxu1 %v9869_v24  ;;  %v3530_v24 = vcombine.high %v3528_v30, %v3528_v30 }
 0xa3f   :  { %8311 = vmatprep.subr.bf16.mxu1 %v11159_v13  ;;  %v3492_v13 = vcombine.high %v7334_v59, %v7334_v59 }
 0xa40   :  { %8262 = vmatpush3.bf16.msra.mxu0 %v11235_v15 }
 0xa41   :  { %8263 = vmatprep.subr.bf16.mxu0 %v11241_v61  ;;  %v3506_v33 = vrot.slane %v3492_v13, %v10382_v39  ;;  %v11887_v13 = vld [vmem:[%s13243_s1 + $0xc8] sm:$0xff]  }
 0xa43   :  { %v3521_v29 = vrot.slane %v3506_v33, %v10382_v39  ;;  %v11893_v33 = vld [vmem:[%s13243_s1 + $0x88] sm:$0xff]  }
 0xa44   :  { %8264 = vmatpush3.bf16.msra.mxu0 %v11247_v48 }
 0xa45   :  { %8265 = vmatprep.subr.bf16.mxu0 %v11253_v49 }
 0xa47   :  { %v8249_v4 = vpop.f32.mrb[84].mxu1 }
 0xa48   :  { %8266 = vmatpush3.bf16.msra.mxu0 %v11259_v51  ;;  %v8250_v9 = vpop.f32.mrb[85].mxu1 }
 0xa49   :  { %8267 = vmatprep.subr.bf16.mxu0 %v11265_v3  ;;  %v8251_v37 = vadd.f32 %v8250_v9, %v8249_v4  ;;  %v8252_v47 = vpop.f32.mrb[86].mxu1 }
 0xa4a   :  { %v8253_v60 = vpop.f32.mrb[87].mxu1 }
 0xa4b   :  { %v3309_v47 = vadd.f32 %v11192_v62, %v8251_v37  ;;  %v3529_v62 = vcombine.high %v3514_v32, %v3514_v32 }
 0xa4c   :  { %8268 = vmatpush3.bf16.msra.mxu0 %v11271_v7 }
 0xa4d   :  { %8269 = vmatprep.subr.bf16.mxu0 %v11277_v45 }
 0xa50   :  { %8270 = vmatpush3.bf16.msra.mxu0 %v11285_v10 }
 0xa51   :  { %8289 = vmatprep.subr.bf16.mxu0 %v11291_v11 }
 0xa53   :  { %3347 = vmatmul.mubr.bf16.vlgmr.msra.gmra.mrb[92].mxu0 %v3265_v50 }
 0xa54   :  { %8290 = vmatpush3.bf16.msra.mxu0 %v11297_v8  ;;  %3570 = vmatprep.mubr.bf16.mxu0 %v3528_v30 }
 0xa55   :  { %8291 = vmatprep.subr.bf16.mxu0 %v11303_v16 }
 0xa57   :  { %v3388_v1 = vpop.f32.mrb[88].mxu1 }
 0xa58   :  { %8292 = vmatpush3.bf16.msra.mxu0 %v11309_v55  ;;  %v9344_v19 = vpop.f32.mrb[89].mxu1 }
 0xa59   :  { %8293 = vmatprep.subr.bf16.mxu0 %v11315_v14  ;;  %v3391_v21 = vpop.f32.mrb[90].mxu1 }
 0xa5a   :  { %v9345_v23 = vpop.f32.mrb[91].mxu1 }
 0xa5c   :  { %8294 = vmatpush3.bf16.msra.mxu0 %v11321_v12 }
 0xa5d   :  { %8295 = vmatprep.subr.bf16.mxu0 %v11327_v40 }
 0xa60   :  { %8296 = vmatpush3.bf16.msra.mxu0 %v11333_v41 }
 0xa61   :  { %8297 = vmatprep.subr.bf16.mxu0 %v11339_v42 }
 0xa64   :  { %8298 = vmatpush3.bf16.msra.mxu0 %v11345_v43 }
 0xa65   :  { %8299 = vmatprep.subr.bf16.mxu0 %v11351_v44 }
 0xa68   :  { %8300 = vmatpush3.bf16.msra.mxu0 %v11357_v46 }
 0xa69   :  { %8301 = vmatprep.subr.bf16.mxu0 %v11363_v53 }
 0xa6c   :  { %8302 = vmatpush3.bf16.msra.mxu0 %v11369_v56 }
 0xa6d   :  { %8303 = vmatprep.subr.bf16.mxu0 %v11375_v57 }
 0xa70   :  { %8304 = vmatpush3.bf16.msra.mxu0 %v11381_v58 }
 0xa71   :  { %9362 = vmatprep.subr.bf16.mxu0 %v10142_v36 }
 0xa73   :  { %3571 = vmatmul.mubr.bf16.vlgmr.msra.gmra.mrb[96].mxu0 %v3514_v32  ;;  %v11881_v32 = vld [vmem:[%s13243_s1 + $0x80] sm:$0xff]  }
 0xa74   :  { %9363 = vmatpush3.bf16.msra.mxu0 %v11418_v6  ;;  %9370 = vmatprep.mubr.msk.bf16.mxu0 %vm10143_vm0, %v10142_v36 }
 0xa75   :  { %9364 = vmatprep.subr.bf16.mxu0 %v10142_v36 }
 0xa78   :  { %9365 = vmatpush3.bf16.msra.mxu0 %v11427_v0 }
 0xa79   :  { %9366 = vmatprep.subr.bf16.mxu0 %v10142_v36 }
 0xa7c   :  { %9367 = vmatpush3.bf16.msra.mxu0 %v11435_v18 }
 0xa7d   :  { %9368 = vmatprep.subr.bf16.mxu0 %v10142_v36 }
 0xa80   :  { %9369 = vmatpush3.bf16.msra.mxu0 %v11442_v35 }
 0xa81   :  { %9374 = vmatprep.subr.bf16.mxu0 %v10142_v36 }
 0xa83   :  { %9371 = vmatmul.mubr.msk.bf16.vlgmr.msra.gmra.mrb[100].mxu0 %vm368_vm1, %v3521_v29  ;;  %v11899_v29 = vld [vmem:[%s13243_s1 + $0xd0] sm:$0xff]  }
 0xa84   :  { %9386 = vmatprep.mubr.msk.bf16.mxu0 %vm10143_vm0, %v10142_v36 }
 0xb06   :  { %v3218_v26 = vpop.f32.mrb[88].mxu0 }
 0xb07   :  { %v11779_v50 = vadd.f32 %v3218_v26, %v11697_v31  ;;  %v9332_v22 = vpop.f32.mrb[89].mxu0  ;;  %v11905_v26 = vld [vmem:[%s13243_s1 + $0x90] sm:$0xff]  }
 0xb08   :  { %v3221_v27 = vpop.f32.mrb[90].mxu0  ;;  %v11917_v22 = vld [vmem:[%s13243_s1 + $0x98] sm:$0xff]  }
 0xb09   :  { %v9333_v2 = vpop.f32.mrb[91].mxu0  ;;  %v11923_v27 = vld [vmem:[%s13243_s1 + $0xe0] sm:$0xff]  }
 0xb0a   :  { %v11929_v2 = vld [vmem:[%s13243_s1 + $0xa0] sm:$0xff]  }
 0xb26   :  { %v8271_v4 = vpop.f32.mrb[92].mxu0 }
 0xb27   :  { %v8272_v9 = vpop.f32.mrb[93].mxu0 }
 0xb28   :  { %v8273_v60 = vadd.f32 %v8272_v9, %v8271_v4  ;;  %v8274_v20 = vpop.f32.mrb[94].mxu0  ;;  %v11935_v4 = vld [vmem:[%s13243_s1 + $0xe8] sm:$0xff]  }
 0xb29   :  { %v8275_v34 = vpop.f32.mrb[95].mxu0  ;;  %v11941_v9 = vld [vmem:[%s13243_s1 + $0xa8] sm:$0xff]   ;;  %v11959_v20 = vld [vmem:[%s13243_s1 + $0xf8] sm:$0xff]  }
 0xb2a   :  { %v3349_v19 = vadd.f32 %v8273_v60, %v3309_v47  ;;  %v11947_v47 = vld [vmem:[%s13243_s1 + $0xf0] sm:$0xff]  }
 0xb2b   :  { %v11953_v60 = vld [vmem:[%s13243_s1 + $0xb0] sm:$0xff]  }
 0xb2c   :  { %v3389_v21 = vadd.f32 %v3388_v1, %v3349_v19  ;;  %v11967_v19 = vld [vmem:[%s13243_s1 + $0xb8] sm:$0xff]  }
 0xb2e   :  { %v3394_v23 = vmax.f32 %v3389_v21, 0.0  ;;  %v11973_v21 = vld [vmem:[%s13243_s1 + $0x40] sm:$0xff]  }
 0xb30   :  { %v3395_v59 = vpack.c.bf16 %v3394_v23, %v3394_v23  ;;  %v11979_v23 = vld [vmem:[%s13243_s1] sm:$0xff]  }
 0xb32   :  { %9359 = vmatmul.mubr.msk.bf16.vlgmr.msra.gmra.mrb[92].mxu1 %vm726_vm2, %v3395_v59  ;;  %v11991_v59 = vld [vmem:[%s13243_s1 + $0x8] sm:$0xff]  }
 0xb33   :  { %8312 = vmatpush3.bf16.msra.mxu1 %v11199_v52  ;;  %3610 = vmatprep.mubr.bf16.mxu1 %v3530_v24  ;;  %v9871_v52 = vld [vmem:[%s13245_s3 + $0x240] sm:$0xff]   ;;  %v11985_v24 = vld [vmem:[%s13243_s1 + $0x48] sm:$0xff]  }
 0xb34   :  { %8313 = vmatprep.subr.bf16.mxu1 %v11205_v5  ;;  %9375 = vmatpush3.bf16.msra.mxu0 %v9871_v52  ;;  %v9872_v5 = vld [vmem:[%s13245_s3 + $0x248] sm:$0xff]   ;;  %v12003_v52 = vld [vmem:[%s13243_s1 + $0x10] sm:$0xff]  }
 0xb35   :  { %9376 = vmatprep.subr.bf16.mxu0 %v10142_v36 }
 0xb37   :  { %8314 = vmatpush3.bf16.msra.mxu1 %v11211_v54  ;;  %v9873_v54 = vld [vmem:[%s13245_s3 + $0x250] sm:$0xff]  }
 0xb38   :  { %8315 = vmatprep.subr.bf16.mxu1 %v11217_v25  ;;  %9377 = vmatpush3.bf16.msra.mxu0 %v9872_v5  ;;  %v12009_v5 = vld [vmem:[%s13243_s1 + $0x58] sm:$0xff]  }
 0xb39   :  { %9378 = vmatprep.subr.bf16.mxu0 %v10142_v36 }
 0xb3b   :  { %8316 = vmatpush3.bf16.msra.mxu1 %v11223_v38 }
 0xb3c   :  { %8317 = vmatprep.subr.bf16.mxu1 %v11229_v17  ;;  %9379 = vmatpush3.bf16.msra.mxu0 %v9873_v54  ;;  %v12015_v54 = vld [vmem:[%s13243_s1 + $0x18] sm:$0xff]  }
 0xb3d   :  { %9380 = vmatprep.subr.bf16.mxu0 %v10142_v36 }
 0xb3f   :  { %8318 = vmatpush3.bf16.msra.mxu1 %v11235_v15 }
 0xb40   :  { %8319 = vmatprep.subr.bf16.mxu1 %v11241_v61 }
 0xb43   :  { %8320 = vmatpush3.bf16.msra.mxu1 %v11247_v48  ;;  %v9874_v48 = vld [vmem:[%s13245_s3 + $0x258] sm:$0xff]  }
 0xb44   :  { %8321 = vmatprep.subr.bf16.mxu1 %v11253_v49  ;;  %9381 = vmatpush3.bf16.msra.mxu0 %v9874_v48  ;;  %v9875_v49 = vld [vmem:[%s13245_s3 + $0x260] sm:$0xff]   ;;  %v12051_v48 = vld [vmem:[%s13243_s1 + $0x30] sm:$0xff]  }
 0xb45   :  { %9382 = vmatprep.subr.bf16.mxu0 %v10142_v36 }
 0xb46   :  { %v8305_v25 = vpop.f32.mrb[96].mxu0 }
 0xb47   :  { %8322 = vmatpush3.bf16.msra.mxu1 %v11259_v51  ;;  %v8306_v38 = vpop.f32.mrb[97].mxu0 }
 0xb48   :  { %8323 = vmatprep.subr.bf16.mxu1 %v11265_v3  ;;  %v8307_v17 = vadd.f32 %v8306_v38, %v8305_v25  ;;  %v8308_v15 = vpop.f32.mrb[98].mxu0  ;;  %9383 = vmatpush3.bf16.msra.mxu0 %v9875_v49  ;;  %v12021_v25 = vld [vmem:[%s13243_s1 + $0x60] sm:$0xff]   ;;  %v12057_v49 = vld [vmem:[%s13243_s1 + $0x78] sm:$0xff]  }
 0xb49   :  { %v8309_v61 = vpop.f32.mrb[99].mxu0  ;;  %9384 = vmatprep.subr.bf16.mxu0 %v10142_v36  ;;  %v12027_v38 = vld [vmem:[%s13243_s1 + $0x20] sm:$0xff]   ;;  %v12039_v15 = vld [vmem:[%s13243_s1 + $0x28] sm:$0xff]  }
 0xb4a   :  { %v12045_v61 = vld [vmem:[%s13243_s1 + $0x70] sm:$0xff]  }
 0xb4b   :  { %8324 = vmatpush3.bf16.msra.mxu1 %v11271_v7 }
 0xb4c   :  { %8325 = vmatprep.subr.bf16.mxu1 %v11277_v45 }
 0xb4f   :  { %8326 = vmatpush3.bf16.msra.mxu1 %v11285_v10  ;;  %v9876_v10 = vld [vmem:[%s13245_s3 + $0x268] sm:$0xff]  }
 0xb50   :  { %8345 = vmatprep.subr.bf16.mxu1 %v11291_v11  ;;  %9385 = vmatpush3.bf16.msra.mxu0 %v9876_v10  ;;  %v11841_v11 = vld [vmem:[%s13243_s1 + $0xc0] sm:$0xff]  }
 0xb51   :  { %8367 = vmatprep.subr.bf16.mxu0 %v11841_v11 }
 0xb52   :  { %3611 = vmatmul.mubr.bf16.vlgmr.msra.gmra.mrb[96].mxu1 %v3529_v62  ;;  %v11997_v62 = vld [vmem:[%s13243_s1 + $0x50] sm:$0xff]  }
 0xb53   :  { %8346 = vmatpush3.bf16.msra.mxu1 %v11297_v8  ;;  %v7355_v8 = vld [vmem:[%s13242_s0 + $0x41] sm:$0x1f] }
 0xb54   :  { %8347 = vmatprep.subr.bf16.mxu1 %v11303_v16  ;;  %v3763_v16 = vrot.slane %v7355_v8, %v10382_v39 }
 0xb56   :  { %v3652_v51 = vpop.f32.mrb[100].mxu0 }
 0xb57   :  { %8348 = vmatpush3.bf16.msra.mxu1 %v11309_v55  ;;  %v9372_v3 = vpop.f32.mrb[101].mxu0  ;;  %v3771_v55 = vcombine.high %v3763_v16, %v3763_v16 }
 0xb58   :  { %8349 = vmatprep.subr.bf16.mxu1 %v11315_v14  ;;  %v3655_v7 = vpop.f32.mrb[102].mxu0  ;;  %v9878_v3 = vld [vmem:[%s13245_s3 + $0x270] sm:$0xff]  }
 0xb59   :  { %v9373_v45 = vpop.f32.mrb[103].mxu0  ;;  %v3792_v14 = vrot.slane %v3771_v55, %v10382_v39  ;;  %v9879_v7 = vld [vmem:[%s13245_s3 + $0x278] sm:$0xff]  }
 0xb5a   :  { %v9880_v45 = vld [vmem:[%s13245_s3 + $0x280] sm:$0xff]  }
 0xb5b   :  { %8350 = vmatpush3.bf16.msra.mxu1 %v11321_v12  ;;  %v11850_v12 = vrot.slane %v3763_v16, %v10382_v39  ;;  %3834 = vmatprep.mubr.bf16.mxu1 %v3792_v14  ;;  %v3794_v28 = vcombine.high %v3792_v14, %v3792_v14 }
 0xb5c   :  { %8351 = vmatprep.subr.bf16.mxu1 %v11327_v40  ;;  %v3756_v40 = vcombine.high %v7355_v8, %v7355_v8 }
 0xb5d   :  { %v3793_v34 = vcombine.high %v11850_v12, %v11850_v12 }
 0xb5f   :  { %8352 = vmatpush3.bf16.msra.mxu1 %v11333_v41  ;;  %v3770_v41 = vrot.slane %v3756_v40, %v10382_v39  ;;  %v9882_v40 = vld [vmem:[%s13245_s3 + $0x290] sm:$0xff]  }
 0xb60   :  { %8353 = vmatprep.subr.bf16.mxu1 %v11339_v42 }
 0xb61   :  { %v3785_v42 = vrot.slane %v3770_v41, %v10382_v39 }
 0xb63   :  { %8354 = vmatpush3.bf16.msra.mxu1 %v11345_v43 }
 0xb64   :  { %8355 = vmatprep.subr.bf16.mxu1 %v11351_v44 }
 0xb67   :  { %8356 = vmatpush3.bf16.msra.mxu1 %v11357_v46 }
 0xb68   :  { %8357 = vmatprep.subr.bf16.mxu1 %v11363_v53 }
 0xb6b   :  { %8358 = vmatpush3.bf16.msra.mxu1 %v11369_v56 }
 0xb6c   :  { %8359 = vmatprep.subr.bf16.mxu1 %v11375_v57 }
 0xb6f   :  { %8360 = vmatpush3.bf16.msra.mxu1 %v11381_v58 }
 0xb70   :  { %9390 = vmatprep.subr.bf16.mxu1 %v10142_v36 }
 0xb72   :  { %3835 = vmatmul.mubr.bf16.vlgmr.msra.gmra.mrb[100].mxu1 %v11850_v12  ;;  %v9881_v12 = vld [vmem:[%s13245_s3 + $0x288] sm:$0xff]  }
 0xb73   :  { %9391 = vmatpush3.bf16.msra.mxu1 %v11418_v6  ;;  %9398 = vmatprep.mubr.msk.bf16.mxu1 %vm10143_vm0, %v10142_v36  ;;  %v11874_v6 = vld [vmem:[%s13244_s2] ss:$0 sm:$0xff] }
 0xb74   :  { %9392 = vmatprep.subr.bf16.mxu1 %v10142_v36 }
 0xb77   :  { %9393 = vmatpush3.bf16.msra.mxu1 %v11427_v0  ;;  %v3573_v0 = vadd.f32 %v11874_v6, %v8307_v17  ;;  %v12033_v17 = vld [vmem:[%s13243_s1 + $0x68] sm:$0xff]  }
 0xb78   :  { %9394 = vmatprep.subr.bf16.mxu1 %v10142_v36 }
 0xb7b   :  { %9395 = vmatpush3.bf16.msra.mxu1 %v11435_v18 }
 0xb7c   :  { %9396 = vmatprep.subr.bf16.mxu1 %v10142_v36 }
 0xb7f   :  { %9397 = vmatpush3.bf16.msra.mxu1 %v11442_v35 }
 0xb80   :  { %9402 = vmatprep.subr.bf16.mxu1 %v10142_v36 }
 0xb82   :  { %9399 = vmatmul.mubr.msk.bf16.vlgmr.msra.gmra.mrb[104].mxu1 %vm368_vm1, %v3785_v42 }
 0xb83   :  { %9414 = vmatprep.mubr.msk.bf16.mxu1 %vm10143_vm0, %v10142_v36  ;;  %9403 = vmatpush3.bf16.msra.mxu1 %v9878_v3 }
 0xb84   :  { %9404 = vmatprep.subr.bf16.mxu1 %v10142_v36 }
 0xb87   :  { %9405 = vmatpush3.bf16.msra.mxu1 %v9879_v7 }
 0xb88   :  { %9406 = vmatprep.subr.bf16.mxu1 %v10142_v36 }
 0xb8b   :  { %9407 = vmatpush3.bf16.msra.mxu1 %v9880_v45 }
 0xb8c   :  { %9408 = vmatprep.subr.bf16.mxu1 %v10142_v36 }
 0xb8f   :  { %9409 = vmatpush3.bf16.msra.mxu1 %v9881_v12 }
 0xb90   :  { %9410 = vmatprep.subr.bf16.mxu1 %v10142_v36 }
 0xb93   :  { %9411 = vmatpush3.bf16.msra.mxu1 %v9882_v40 }
 0xb94   :  { %9412 = vmatprep.subr.bf16.mxu1 %v10142_v36 }
 0xc05   :  { %v3482_v43 = vpop.f32.mrb[92].mxu1 }
 0xc06   :  { %v11869_v44 = vadd.f32 %v3482_v43, %v11779_v50  ;;  %v9360_v46 = vpop.f32.mrb[93].mxu1  ;;  %v11911_v50 = vld [vmem:[%s13243_s1 + $0xd8] sm:$0xff]  }
 0xc07   :  { %v3485_v53 = vpop.f32.mrb[94].mxu1 }
 0xc08   :  { %v9361_v56 = vpop.f32.mrb[95].mxu1  ;;  %v9883_v53 = vld [vmem:[%s13245_s3 + $0x298] sm:$0xff]  }
 0xc09   :  { %9413 = vmatpush3.bf16.msra.mxu1 %v9883_v53  ;;  %v7376_v56 = vld [vmem:[%s13242_s0 + $0x46] sm:$0x1f] }
 0xc0a   :  { %8423 = vmatprep.subr.bf16.mxu1 %v11841_v11 }
 0xc25   :  { %v8327_v57 = vpop.f32.mrb[96].mxu1 }
 0xc26   :  { %v8328_v58 = vpop.f32.mrb[97].mxu1 }
 0xc27   :  { %v8329_v18 = vadd.f32 %v8328_v58, %v8327_v57  ;;  %v8330_v35 = vpop.f32.mrb[98].mxu1  ;;  %v4027_v57 = vrot.slane %v7376_v56, %v10382_v39 }
 0xc28   :  { %v8331_v31 = vpop.f32.mrb[99].mxu1  ;;  %v12100_v35 = vld [vmem:[%s13243_s1 + $0x100] sm:$0xff]  }
 0xc29   :  { %v3613_v37 = vadd.f32 %v8329_v18, %v3573_v0  ;;  %v4035_v58 = vcombine.high %v4027_v57, %v4027_v57  ;;  %v4042_v18 = vrot.slane %v4027_v57, %v10382_v39  ;;  %v4020_v31 = vcombine.high %v7376_v56, %v7376_v56 }
 0xc2b   :  { %v3653_v1 = vadd.f32 %v3652_v51, %v3613_v37  ;;  %v12063_v51 = vld [vmem:[%s13243_s1 + $0x38] sm:$0xff]   ;;  %v4056_v0 = vrot.slane %v4035_v58, %v10382_v39  ;;  %v12109_v37 = vld [vmem:[%s13243_s1 + $0x108] sm:$0xff]   ;;  %v9887_v58 = vld [vmem:[%s13245_s3 + $0x2b0] sm:$0xff]  }
 0xc2d   :  { %v3658_v63 = vmax.f32 %v3653_v1, 0.0  ;;  %v4034_v1 = vrot.slane %v4020_v31, %v10382_v39  ;;  %v4058_v56 = vcombine.high %v4056_v0, %v4056_v0 }
 0xc2f   :  { %v3659_v30 = vpack.c.bf16 %v3658_v63, %v3658_v63  ;;  %v12117_v63 = vld [vmem:[%s13243_s1 + $0x110] sm:$0xff]  }
 0xc31   :  { %9387 = vmatmul.mubr.msk.bf16.vlgmr.msra.gmra.mrb[104].mxu0 %vm726_vm2, %v3659_v30  ;;  %v4049_v30 = vrot.slane %v4034_v1, %v10382_v39 }
 0xc32   :  { %8368 = vmatpush3.bf16.msra.mxu0 %v11881_v32  ;;  %3874 = vmatprep.mubr.bf16.mxu0 %v3794_v28  ;;  %v12124_v28 = vld [vmem:[%s13243_s1 + $0x118] sm:$0xff]  }
 0xc33   :  { %8369 = vmatprep.subr.bf16.mxu0 %v11887_v13 }
 0xc36   :  { %8370 = vmatpush3.bf16.msra.mxu0 %v11893_v33 }
 0xc37   :  { %8371 = vmatprep.subr.bf16.mxu0 %v11899_v29 }
 0xc3a   :  { %8372 = vmatpush3.bf16.msra.mxu0 %v11905_v26 }
 0xc3b   :  { %8373 = vmatprep.subr.bf16.mxu0 %v11911_v50 }
 0xc3e   :  { %8374 = vmatpush3.bf16.msra.mxu0 %v11917_v22 }
 0xc3f   :  { %8375 = vmatprep.subr.bf16.mxu0 %v11923_v27 }
 0xc42   :  { %8376 = vmatpush3.bf16.msra.mxu0 %v11929_v2 }
 0xc43   :  { %8377 = vmatprep.subr.bf16.mxu0 %v11935_v4 }
 0xc45   :  { %v8361_v10 = vpop.f32.mrb[100].mxu1 }
 0xc46   :  { %8378 = vmatpush3.bf16.msra.mxu0 %v11941_v9  ;;  %v8362_v8 = vpop.f32.mrb[101].mxu1 }
 0xc47   :  { %8379 = vmatprep.subr.bf16.mxu0 %v11947_v47  ;;  %v8363_v16 = vadd.f32 %v8362_v8, %v8361_v10  ;;  %v8364_v55 = vpop.f32.mrb[102].mxu1 }
 0xc48   :  { %v8365_v14 = vpop.f32.mrb[103].mxu1 }
 0xc49   :  { %v3837_v14 = vadd.f32 %v11874_v6, %v8363_v16  ;;  %v9885_v16 = vld [vmem:[%s13245_s3 + $0x2a0] sm:$0xff]  }
 0xc4a   :  { %8380 = vmatpush3.bf16.msra.mxu0 %v11953_v60 }
 0xc4b   :  { %8381 = vmatprep.subr.bf16.mxu0 %v11959_v20 }
 0xc4e   :  { %8382 = vmatpush3.bf16.msra.mxu0 %v11967_v19 }
 0xc4f   :  { %8401 = vmatprep.subr.bf16.mxu0 %v11973_v21 }
 0xc51   :  { %3875 = vmatmul.mubr.bf16.vlgmr.msra.gmra.mrb[108].mxu0 %v3793_v34 }
 0xc52   :  { %8402 = vmatpush3.bf16.msra.mxu0 %v11979_v23  ;;  %4098 = vmatprep.mubr.bf16.mxu0 %v4056_v0 }
 0xc53   :  { %8403 = vmatprep.subr.bf16.mxu0 %v11985_v24 }
 0xc55   :  { %v3916_v41 = vpop.f32.mrb[104].mxu1 }
 0xc56   :  { %8404 = vmatpush3.bf16.msra.mxu0 %v11991_v59  ;;  %v9400_v42 = vpop.f32.mrb[105].mxu1 }
 0xc57   :  { %8405 = vmatprep.subr.bf16.mxu0 %v11997_v62  ;;  %v3919_v43 = vpop.f32.mrb[106].mxu1 }
 0xc58   :  { %v9401_v46 = vpop.f32.mrb[107].mxu1 }
 0xc5a   :  { %8406 = vmatpush3.bf16.msra.mxu0 %v12003_v52 }
 0xc5b   :  { %8407 = vmatprep.subr.bf16.mxu0 %v12009_v5 }
 0xc5e   :  { %8408 = vmatpush3.bf16.msra.mxu0 %v12015_v54 }
 0xc5f   :  { %8409 = vmatprep.subr.bf16.mxu0 %v12021_v25 }
 0xc62   :  { %8410 = vmatpush3.bf16.msra.mxu0 %v12027_v38 }
 0xc63   :  { %8411 = vmatprep.subr.bf16.mxu0 %v12033_v17 }
 0xc66   :  { %8412 = vmatpush3.bf16.msra.mxu0 %v12039_v15 }
 0xc67   :  { %8413 = vmatprep.subr.bf16.mxu0 %v12045_v61 }
 0xc6a   :  { %8414 = vmatpush3.bf16.msra.mxu0 %v12051_v48 }
 0xc6b   :  { %8415 = vmatprep.subr.bf16.mxu0 %v12057_v49 }
 0xc6e   :  { %8416 = vmatpush3.bf16.msra.mxu0 %v12063_v51 }
 0xc6f   :  { %9418 = vmatprep.subr.bf16.mxu0 %v10142_v36 }
 0xc71   :  { %4099 = vmatmul.mubr.bf16.vlgmr.msra.gmra.mrb[112].mxu0 %v4042_v18 }
 0xc72   :  { %9419 = vmatpush3.bf16.msra.mxu0 %v12100_v35  ;;  %9426 = vmatprep.mubr.msk.bf16.mxu0 %vm10143_vm0, %v10142_v36 }
 0xc73   :  { %9420 = vmatprep.subr.bf16.mxu0 %v10142_v36 }
 0xc76   :  { %9421 = vmatpush3.bf16.msra.mxu0 %v12109_v37 }
 0xc77   :  { %9422 = vmatprep.subr.bf16.mxu0 %v10142_v36 }
 0xc7a   :  { %9423 = vmatpush3.bf16.msra.mxu0 %v12117_v63 }
 0xc7b   :  { %9424 = vmatprep.subr.bf16.mxu0 %v10142_v36 }
 0xc7e   :  { %9425 = vmatpush3.bf16.msra.mxu0 %v12124_v28 }
 0xc7f   :  { %9430 = vmatprep.subr.bf16.mxu0 %v10142_v36 }
 0xc81   :  { %9427 = vmatmul.mubr.msk.bf16.vlgmr.msra.gmra.mrb[116].mxu0 %vm368_vm1, %v4049_v30 }
 0xc82   :  { %9442 = vmatprep.mubr.msk.bf16.mxu0 %vm10143_vm0, %v10142_v36  ;;  %9431 = vmatpush3.bf16.msra.mxu0 %v9885_v16 }
 0xc83   :  { %9432 = vmatprep.subr.bf16.mxu0 %v10142_v36 }
 0xd04   :  { %v3746_v34 = vpop.f32.mrb[104].mxu0 }
 0xd05   :  { %v12133_v3 = vadd.f32 %v3746_v34, %v11869_v44  ;;  %v9388_v7 = vpop.f32.mrb[105].mxu0  ;;  %v4057_v44 = vcombine.high %v4042_v18, %v4042_v18  ;;  %v9888_v34 = vld [vmem:[%s13245_s3 + $0x2b8] sm:$0xff]  }
 0xd06   :  { %v3749_v45 = vpop.f32.mrb[106].mxu0  ;;  %v9889_v7 = vld [vmem:[%s13245_s3 + $0x2c0] sm:$0xff]  }
 0xd07   :  { %v9389_v10 = vpop.f32.mrb[107].mxu0 }
 0xd24   :  { %v8383_v8 = vpop.f32.mrb[108].mxu0 }
 0xd25   :  { %v8384_v55 = vpop.f32.mrb[109].mxu0 }
 0xd26   :  { %v8385_v12 = vadd.f32 %v8384_v55, %v8383_v8  ;;  %v8386_v40 = vpop.f32.mrb[110].mxu0 }
 0xd27   :  { %v8387_v42 = vpop.f32.mrb[111].mxu0 }
 0xd28   :  { %v3877_v43 = vadd.f32 %v8385_v12, %v3837_v14  ;;  %v9890_v14 = vld [vmem:[%s13245_s3 + $0x2c8] sm:$0xff]  }
 0xd29   :  { %v7397_v12 = vld [vmem:[%s13242_s0 + $0x4b] sm:$0x1f] }
 0xd2a   :  { %v3917_v46 = vadd.f32 %v3916_v41, %v3877_v43  ;;  %v9886_v41 = vld [vmem:[%s13245_s3 + $0x2a8] sm:$0xff]   ;;  %v4291_v40 = vrot.slane %v7397_v12, %v10382_v39 }
 0xd2b   :  { %9433 = vmatpush3.bf16.msra.mxu0 %v9886_v41 }
 0xd2c   :  { %v3922_v53 = vmax.f32 %v3917_v46, 0.0  ;;  %9434 = vmatprep.subr.bf16.mxu0 %v10142_v36  ;;  %v4299_v42 = vcombine.high %v4291_v40, %v4291_v40  ;;  %v4306_v46 = vrot.slane %v4291_v40, %v10382_v39 }
 0xd2e   :  { %v3923_v57 = vpack.c.bf16 %v3922_v53, %v3922_v53  ;;  %v4320_v43 = vrot.slane %v4299_v42, %v10382_v39  ;;  %v4284_v53 = vcombine.high %v7397_v12, %v7397_v12  ;;  %v9894_v42 = vld [vmem:[%s13245_s3 + $0x2e0] sm:$0xff]  }
 0xd2f   :  { %9435 = vmatpush3.bf16.msra.mxu0 %v9887_v58 }
 0xd30   :  { %9415 = vmatmul.mubr.msk.bf16.vlgmr.msra.gmra.mrb[108].mxu1 %vm726_vm2, %v3923_v57  ;;  %9436 = vmatprep.subr.bf16.mxu0 %v10142_v36  ;;  %v4322_v12 = vcombine.high %v4320_v43, %v4320_v43 }
 0xd31   :  { %8424 = vmatpush3.bf16.msra.mxu1 %v11881_v32  ;;  %4138 = vmatprep.mubr.bf16.mxu1 %v4058_v56  ;;  %v4298_v56 = vrot.slane %v4284_v53, %v10382_v39 }
 0xd32   :  { %8425 = vmatprep.subr.bf16.mxu1 %v11887_v13 }
 0xd33   :  { %9437 = vmatpush3.bf16.msra.mxu0 %v9888_v34  ;;  %v4313_v57 = vrot.slane %v4298_v56, %v10382_v39 }
 0xd34   :  { %9438 = vmatprep.subr.bf16.mxu0 %v10142_v36 }
 0xd35   :  { %8426 = vmatpush3.bf16.msra.mxu1 %v11893_v33 }
 0xd36   :  { %8427 = vmatprep.subr.bf16.mxu1 %v11899_v29 }
 0xd37   :  { %9439 = vmatpush3.bf16.msra.mxu0 %v9889_v7 }
 0xd38   :  { %9440 = vmatprep.subr.bf16.mxu0 %v10142_v36 }
 0xd39   :  { %8428 = vmatpush3.bf16.msra.mxu1 %v11905_v26 }
 0xd3a   :  { %8429 = vmatprep.subr.bf16.mxu1 %v11911_v50 }
 0xd3b   :  { %9441 = vmatpush3.bf16.msra.mxu0 %v9890_v14 }
 0xd3c   :  { %8479 = vmatprep.subr.bf16.mxu0 %v11841_v11 }
 0xd3d   :  { %8430 = vmatpush3.bf16.msra.mxu1 %v11917_v22 }
 0xd3e   :  { %8431 = vmatprep.subr.bf16.mxu1 %v11923_v27 }
 0xd41   :  { %8432 = vmatpush3.bf16.msra.mxu1 %v11929_v2 }
 0xd42   :  { %8433 = vmatprep.subr.bf16.mxu1 %v11935_v4 }
 0xd44   :  { %v8417_v0 = vpop.f32.mrb[112].mxu0 }
 0xd45   :  { %8434 = vmatpush3.bf16.msra.mxu1 %v11941_v9  ;;  %v8418_v18 = vpop.f32.mrb[113].mxu0 }
 0xd46   :  { %8435 = vmatprep.subr.bf16.mxu1 %v11947_v47  ;;  %v8419_v31 = vadd.f32 %v8418_v18, %v8417_v0  ;;  %v8420_v1 = vpop.f32.mrb[114].mxu0 }
 0xd47   :  { %v8421_v30 = vpop.f32.mrb[115].mxu0 }
 0xd48   :  { %v4101_v30 = vadd.f32 %v11874_v6, %v8419_v31  ;;  %v9892_v31 = vld [vmem:[%s13245_s3 + $0x2d0] sm:$0xff]  }
 0xd49   :  { %8436 = vmatpush3.bf16.msra.mxu1 %v11953_v60 }
 0xd4a   :  { %8437 = vmatprep.subr.bf16.mxu1 %v11959_v20 }
 0xd4d   :  { %8438 = vmatpush3.bf16.msra.mxu1 %v11967_v19 }
 0xd4e   :  { %8457 = vmatprep.subr.bf16.mxu1 %v11973_v21 }
 0xd50   :  { %4139 = vmatmul.mubr.bf16.vlgmr.msra.gmra.mrb[112].mxu1 %v4057_v44 }
 0xd51   :  { %8458 = vmatpush3.bf16.msra.mxu1 %v11979_v23  ;;  %4362 = vmatprep.mubr.bf16.mxu1 %v4320_v43 }
 0xd52   :  { %8459 = vmatprep.subr.bf16.mxu1 %v11985_v24 }
 0xd54   :  { %v4180_v45 = vpop.f32.mrb[116].mxu0 }
 0xd55   :  { %8460 = vmatpush3.bf16.msra.mxu1 %v11991_v59  ;;  %v9428_v10 = vpop.f32.mrb[117].mxu0 }
 0xd56   :  { %8461 = vmatprep.subr.bf16.mxu1 %v11997_v62  ;;  %v4183_v8 = vpop.f32.mrb[118].mxu0 }
 0xd57   :  { %v9429_v55 = vpop.f32.mrb[119].mxu0 }
 0xd59   :  { %8462 = vmatpush3.bf16.msra.mxu1 %v12003_v52 }
 0xd5a   :  { %8463 = vmatprep.subr.bf16.mxu1 %v12009_v5 }
 0xd5d   :  { %8464 = vmatpush3.bf16.msra.mxu1 %v12015_v54 }
 0xd5e   :  { %8465 = vmatprep.subr.bf16.mxu1 %v12021_v25 }
 0xd61   :  { %8466 = vmatpush3.bf16.msra.mxu1 %v12027_v38 }
 0xd62   :  { %8467 = vmatprep.subr.bf16.mxu1 %v12033_v17 }
 0xd65   :  { %8468 = vmatpush3.bf16.msra.mxu1 %v12039_v15 }
 0xd66   :  { %8469 = vmatprep.subr.bf16.mxu1 %v12045_v61 }
 0xd69   :  { %8470 = vmatpush3.bf16.msra.mxu1 %v12051_v48 }
 0xd6a   :  { %8471 = vmatprep.subr.bf16.mxu1 %v12057_v49 }
 0xd6d   :  { %8472 = vmatpush3.bf16.msra.mxu1 %v12063_v51 }
 0xd6e   :  { %9446 = vmatprep.subr.bf16.mxu1 %v10142_v36 }
 0xd70   :  { %4363 = vmatmul.mubr.bf16.vlgmr.msra.gmra.mrb[116].mxu1 %v4306_v46 }
 0xd71   :  { %9447 = vmatpush3.bf16.msra.mxu1 %v12100_v35  ;;  %9454 = vmatprep.mubr.msk.bf16.mxu1 %vm10143_vm0, %v10142_v36 }
 0xd72   :  { %9448 = vmatprep.subr.bf16.mxu1 %v10142_v36 }
 0xd75   :  { %9449 = vmatpush3.bf16.msra.mxu1 %v12109_v37 }
 0xd76   :  { %9450 = vmatprep.subr.bf16.mxu1 %v10142_v36 }
 0xd79   :  { %9451 = vmatpush3.bf16.msra.mxu1 %v12117_v63 }
 0xd7a   :  { %9452 = vmatprep.subr.bf16.mxu1 %v10142_v36 }
 0xd7d   :  { %9453 = vmatpush3.bf16.msra.mxu1 %v12124_v28 }
 0xd7e   :  { %9458 = vmatprep.subr.bf16.mxu1 %v10142_v36 }
 0xd80   :  { %9455 = vmatmul.mubr.msk.bf16.vlgmr.msra.gmra.mrb[120].mxu1 %vm368_vm1, %v4313_v57 }
 0xd81   :  { %9470 = vmatprep.mubr.msk.bf16.mxu1 %vm10143_vm0, %v10142_v36  ;;  %9459 = vmatpush3.bf16.msra.mxu1 %v9892_v31 }
 0xd82   :  { %9460 = vmatprep.subr.bf16.mxu1 %v10142_v36 }
 0xe03   :  { %v4010_v44 = vpop.f32.mrb[108].mxu1 }
 0xe04   :  { %v12215_v16 = vadd.f32 %v4010_v44, %v12133_v3  ;;  %v9416_v41 = vpop.f32.mrb[109].mxu1  ;;  %v4321_v3 = vcombine.high %v4306_v46, %v4306_v46  ;;  %v9895_v44 = vld [vmem:[%s13245_s3 + $0x2e8] sm:$0xff]  }
 0xe05   :  { %v4013_v58 = vpop.f32.mrb[110].mxu1  ;;  %v9896_v41 = vld [vmem:[%s13245_s3 + $0x2f0] sm:$0xff]  }
 0xe06   :  { %v9417_v0 = vpop.f32.mrb[111].mxu1 }
 0xe23   :  { %v8439_v18 = vpop.f32.mrb[112].mxu1 }
 0xe24   :  { %v8440_v1 = vpop.f32.mrb[113].mxu1 }
 0xe25   :  { %v8441_v34 = vadd.f32 %v8440_v1, %v8439_v18  ;;  %v8442_v7 = vpop.f32.mrb[114].mxu1 }
 0xe26   :  { %v8443_v10 = vpop.f32.mrb[115].mxu1 }
 0xe27   :  { %v4141_v8 = vadd.f32 %v8441_v34, %v4101_v30  ;;  %v9897_v30 = vld [vmem:[%s13245_s3 + $0x2f8] sm:$0xff]   ;;  %v7418_v34 = vld [vmem:[%s13242_s0 + $0x50] sm:$0x1f] }
 0xe28   :  { %v4555_v7 = vrot.slane %v7418_v34, %v10382_v39 }
 0xe29   :  { %v4181_v55 = vadd.f32 %v4180_v45, %v4141_v8  ;;  %v9893_v45 = vld [vmem:[%s13245_s3 + $0x2d8] sm:$0xff]  }
 0xe2a   :  { %9461 = vmatpush3.bf16.msra.mxu1 %v9893_v45  ;;  %v4563_v10 = vcombine.high %v4555_v7, %v4555_v7 }
 0xe2b   :  { %v4186_v14 = vmax.f32 %v4181_v55, 0.0  ;;  %9462 = vmatprep.subr.bf16.mxu1 %v10142_v36  ;;  %v4570_v55 = vrot.slane %v4555_v7, %v10382_v39 }
 0xe2c   :  { %v4584_v8 = vrot.slane %v4563_v10, %v10382_v39  ;;  %v9901_v10 = vld [vmem:[%s13245_s3 + $0x310] sm:$0xff]  }
 0xe2d   :  { %v4187_v40 = vpack.c.bf16 %v4186_v14, %v4186_v14  ;;  %v4548_v14 = vcombine.high %v7418_v34, %v7418_v34 }
 0xe2e   :  { %9463 = vmatpush3.bf16.msra.mxu1 %v9894_v42  ;;  %v4586_v34 = vcombine.high %v4584_v8, %v4584_v8 }
 0xe2f   :  { %9443 = vmatmul.mubr.msk.bf16.vlgmr.msra.gmra.mrb[120].mxu0 %vm726_vm2, %v4187_v40  ;;  %9464 = vmatprep.subr.bf16.mxu1 %v10142_v36 }
 0xe30   :  { %8480 = vmatpush3.bf16.msra.mxu0 %v11881_v32  ;;  %4402 = vmatprep.mubr.bf16.mxu0 %v4322_v12  ;;  %v4562_v12 = vrot.slane %v4548_v14, %v10382_v39 }
 0xe31   :  { %8481 = vmatprep.subr.bf16.mxu0 %v11887_v13 }
 0xe32   :  { %9465 = vmatpush3.bf16.msra.mxu1 %v9895_v44  ;;  %v4577_v40 = vrot.slane %v4562_v12, %v10382_v39 }
 0xe33   :  { %9466 = vmatprep.subr.bf16.mxu1 %v10142_v36 }
 0xe34   :  { %8482 = vmatpush3.bf16.msra.mxu0 %v11893_v33 }
 0xe35   :  { %8483 = vmatprep.subr.bf16.mxu0 %v11899_v29 }
 0xe36   :  { %9467 = vmatpush3.bf16.msra.mxu1 %v9896_v41 }
 0xe37   :  { %9468 = vmatprep.subr.bf16.mxu1 %v10142_v36 }
 0xe38   :  { %8484 = vmatpush3.bf16.msra.mxu0 %v11905_v26 }
 0xe39   :  { %8485 = vmatprep.subr.bf16.mxu0 %v11911_v50 }
 0xe3a   :  { %9469 = vmatpush3.bf16.msra.mxu1 %v9897_v30 }
 0xe3b   :  { %8535 = vmatprep.subr.bf16.mxu1 %v11841_v11 }
 0xe3c   :  { %8486 = vmatpush3.bf16.msra.mxu0 %v11917_v22 }
 0xe3d   :  { %8487 = vmatprep.subr.bf16.mxu0 %v11923_v27 }
 0xe40   :  { %8488 = vmatpush3.bf16.msra.mxu0 %v11929_v2 }
 0xe41   :  { %8489 = vmatprep.subr.bf16.mxu0 %v11935_v4 }
 0xe43   :  { %v8473_v43 = vpop.f32.mrb[116].mxu1 }
 0xe44   :  { %8490 = vmatpush3.bf16.msra.mxu0 %v11941_v9  ;;  %v8474_v46 = vpop.f32.mrb[117].mxu1 }
 0xe45   :  { %8491 = vmatprep.subr.bf16.mxu0 %v11947_v47  ;;  %v8475_v53 = vadd.f32 %v8474_v46, %v8473_v43  ;;  %v8476_v56 = vpop.f32.mrb[118].mxu1 }
 0xe46   :  { %v8477_v57 = vpop.f32.mrb[119].mxu1 }
 0xe47   :  { %v4365_v57 = vadd.f32 %v11874_v6, %v8475_v53  ;;  %v9899_v53 = vld [vmem:[%s13245_s3 + $0x300] sm:$0xff]  }
 0xe48   :  { %8492 = vmatpush3.bf16.msra.mxu0 %v11953_v60 }
 0xe49   :  { %8493 = vmatprep.subr.bf16.mxu0 %v11959_v20 }
 0xe4c   :  { %8494 = vmatpush3.bf16.msra.mxu0 %v11967_v19 }
 0xe4d   :  { %8513 = vmatprep.subr.bf16.mxu0 %v11973_v21 }
 0xe4f   :  { %4403 = vmatmul.mubr.bf16.vlgmr.msra.gmra.mrb[124].mxu0 %v4321_v3 }
 0xe50   :  { %8514 = vmatpush3.bf16.msra.mxu0 %v11979_v23  ;;  %4626 = vmatprep.mubr.bf16.mxu0 %v4584_v8 }
 0xe51   :  { %8515 = vmatprep.subr.bf16.mxu0 %v11985_v24 }
 0xe53   :  { %v4444_v58 = vpop.f32.mrb[120].mxu1 }
 0xe54   :  { %8516 = vmatpush3.bf16.msra.mxu0 %v11991_v59  ;;  %v9456_v0 = vpop.f32.mrb[121].mxu1 }
 0xe55   :  { %8517 = vmatprep.subr.bf16.mxu0 %v11997_v62  ;;  %v4447_v18 = vpop.f32.mrb[122].mxu1 }
 0xe56   :  { %v9457_v1 = vpop.f32.mrb[123].mxu1 }
 0xe58   :  { %8518 = vmatpush3.bf16.msra.mxu0 %v12003_v52 }
 0xe59   :  { %8519 = vmatprep.subr.bf16.mxu0 %v12009_v5 }
 0xe5c   :  { %8520 = vmatpush3.bf16.msra.mxu0 %v12015_v54 }
 0xe5d   :  { %8521 = vmatprep.subr.bf16.mxu0 %v12021_v25 }
 0xe60   :  { %8522 = vmatpush3.bf16.msra.mxu0 %v12027_v38 }
 0xe61   :  { %8523 = vmatprep.subr.bf16.mxu0 %v12033_v17 }
 0xe64   :  { %8524 = vmatpush3.bf16.msra.mxu0 %v12039_v15 }
 0xe65   :  { %8525 = vmatprep.subr.bf16.mxu0 %v12045_v61 }
 0xe68   :  { %8526 = vmatpush3.bf16.msra.mxu0 %v12051_v48 }
 0xe69   :  { %8527 = vmatprep.subr.bf16.mxu0 %v12057_v49 }
 0xe6c   :  { %8528 = vmatpush3.bf16.msra.mxu0 %v12063_v51 }
 0xe6d   :  { %9474 = vmatprep.subr.bf16.mxu0 %v10142_v36 }
 0xe6f   :  { %4627 = vmatmul.mubr.bf16.vlgmr.msra.gmra.mrb[128].mxu0 %v4570_v55 }
 0xe70   :  { %9475 = vmatpush3.bf16.msra.mxu0 %v12100_v35  ;;  %9482 = vmatprep.mubr.msk.bf16.mxu0 %vm10143_vm0, %v10142_v36 }
 0xe71   :  { %9476 = vmatprep.subr.bf16.mxu0 %v10142_v36 }
 0xe74   :  { %9477 = vmatpush3.bf16.msra.mxu0 %v12109_v37 }
 0xe75   :  { %9478 = vmatprep.subr.bf16.mxu0 %v10142_v36 }
 0xe78   :  { %9479 = vmatpush3.bf16.msra.mxu0 %v12117_v63 }
 0xe79   :  { %9480 = vmatprep.subr.bf16.mxu0 %v10142_v36 }
 0xe7c   :  { %9481 = vmatpush3.bf16.msra.mxu0 %v12124_v28 }
 0xe7d   :  { %9486 = vmatprep.subr.bf16.mxu0 %v10142_v36 }
 0xe7f   :  { %9483 = vmatmul.mubr.msk.bf16.vlgmr.msra.gmra.mrb[132].mxu0 %vm368_vm1, %v4577_v40 }
 0xe80   :  { %9498 = vmatprep.mubr.msk.bf16.mxu0 %vm10143_vm0, %v10142_v36  ;;  %9487 = vmatpush3.bf16.msra.mxu0 %v9899_v53 }
 0xe81   :  { %9488 = vmatprep.subr.bf16.mxu0 %v10142_v36 }
 0xf02   :  { %v4274_v3 = vpop.f32.mrb[120].mxu0 }
 0xf03   :  { %v12297_v31 = vadd.f32 %v4274_v3, %v12215_v16  ;;  %v9444_v45 = vpop.f32.mrb[121].mxu0  ;;  %v4585_v16 = vcombine.high %v4570_v55, %v4570_v55  ;;  %v9902_v3 = vld [vmem:[%s13245_s3 + $0x318] sm:$0xff]  }
 0xf04   :  { %v4277_v42 = vpop.f32.mrb[122].mxu0  ;;  %v9903_v45 = vld [vmem:[%s13245_s3 + $0x320] sm:$0xff]  }
 0xf05   :  { %v9445_v43 = vpop.f32.mrb[123].mxu0 }
 0xf22   :  { %v8495_v46 = vpop.f32.mrb[124].mxu0 }
 0xf23   :  { %v8496_v56 = vpop.f32.mrb[125].mxu0 }
 0xf24   :  { %v8497_v44 = vadd.f32 %v8496_v56, %v8495_v46  ;;  %v8498_v41 = vpop.f32.mrb[126].mxu0 }
 0xf25   :  { %v8499_v0 = vpop.f32.mrb[127].mxu0 }
 0xf26   :  { %v4405_v18 = vadd.f32 %v8497_v44, %v4365_v57  ;;  %v9904_v57 = vld [vmem:[%s13245_s3 + $0x328] sm:$0xff]   ;;  %v7439_v44 = vld [vmem:[%s13242_s0 + $0x55] sm:$0x1f] }
 0xf27   :  { %v4819_v41 = vrot.slane %v7439_v44, %v10382_v39 }
 0xf28   :  { %v4445_v1 = vadd.f32 %v4444_v58, %v4405_v18  ;;  %v9900_v58 = vld [vmem:[%s13245_s3 + $0x308] sm:$0xff]  }
 0xf29   :  { %9489 = vmatpush3.bf16.msra.mxu0 %v9900_v58  ;;  %v4827_v0 = vcombine.high %v4819_v41, %v4819_v41 }
 0xf2a   :  { %v4450_v30 = vmax.f32 %v4445_v1, 0.0  ;;  %9490 = vmatprep.subr.bf16.mxu0 %v10142_v36  ;;  %v4834_v1 = vrot.slane %v4819_v41, %v10382_v39 }
 0xf2b   :  { %v4848_v18 = vrot.slane %v4827_v0, %v10382_v39  ;;  %v9908_v0 = vld [vmem:[%s13245_s3 + $0x340] sm:$0xff]  }
 0xf2c   :  { %v4451_v7 = vpack.c.bf16 %v4450_v30, %v4450_v30  ;;  %v4812_v30 = vcombine.high %v7439_v44, %v7439_v44 }
 0xf2d   :  { %9491 = vmatpush3.bf16.msra.mxu0 %v9901_v10  ;;  %v4850_v44 = vcombine.high %v4848_v18, %v4848_v18 }
 0xf2e   :  { %9471 = vmatmul.mubr.msk.bf16.vlgmr.msra.gmra.mrb[124].mxu1 %vm726_vm2, %v4451_v7  ;;  %9492 = vmatprep.subr.bf16.mxu0 %v10142_v36 }
 0xf2f   :  { %8536 = vmatpush3.bf16.msra.mxu1 %v11881_v32  ;;  %4666 = vmatprep.mubr.bf16.mxu1 %v4586_v34  ;;  %v4826_v34 = vrot.slane %v4812_v30, %v10382_v39 }
 0xf30   :  { %8537 = vmatprep.subr.bf16.mxu1 %v11887_v13 }
 0xf31   :  { %9493 = vmatpush3.bf16.msra.mxu0 %v9902_v3  ;;  %v4841_v7 = vrot.slane %v4826_v34, %v10382_v39 }
 0xf32   :  { %9494 = vmatprep.subr.bf16.mxu0 %v10142_v36 }
 0xf33   :  { %8538 = vmatpush3.bf16.msra.mxu1 %v11893_v33 }
 0xf34   :  { %8539 = vmatprep.subr.bf16.mxu1 %v11899_v29 }
 0xf35   :  { %9495 = vmatpush3.bf16.msra.mxu0 %v9903_v45 }
 0xf36   :  { %9496 = vmatprep.subr.bf16.mxu0 %v10142_v36 }
 0xf37   :  { %8540 = vmatpush3.bf16.msra.mxu1 %v11905_v26 }
 0xf38   :  { %8541 = vmatprep.subr.bf16.mxu1 %v11911_v50 }
 0xf39   :  { %9497 = vmatpush3.bf16.msra.mxu0 %v9904_v57 }
 0xf3a   :  { %8591 = vmatprep.subr.bf16.mxu0 %v11841_v11 }
 0xf3b   :  { %8542 = vmatpush3.bf16.msra.mxu1 %v11917_v22 }
 0xf3c   :  { %8543 = vmatprep.subr.bf16.mxu1 %v11923_v27 }
 0xf3f   :  { %8544 = vmatpush3.bf16.msra.mxu1 %v11929_v2 }
 0xf40   :  { %8545 = vmatprep.subr.bf16.mxu1 %v11935_v4 }
 0xf42   :  { %v8529_v8 = vpop.f32.mrb[128].mxu0 }
 0xf43   :  { %8546 = vmatpush3.bf16.msra.mxu1 %v11941_v9  ;;  %v8530_v55 = vpop.f32.mrb[129].mxu0 }
 0xf44   :  { %8547 = vmatprep.subr.bf16.mxu1 %v11947_v47  ;;  %v8531_v14 = vadd.f32 %v8530_v55, %v8529_v8  ;;  %v8532_v12 = vpop.f32.mrb[130].mxu0 }
 0xf45   :  { %v8533_v40 = vpop.f32.mrb[131].mxu0 }
 0xf46   :  { %v4629_v40 = vadd.f32 %v11874_v6, %v8531_v14  ;;  %v9906_v14 = vld [vmem:[%s13245_s3 + $0x330] sm:$0xff]  }
 0xf47   :  { %8548 = vmatpush3.bf16.msra.mxu1 %v11953_v60 }
 0xf48   :  { %8549 = vmatprep.subr.bf16.mxu1 %v11959_v20 }
 0xf4b   :  { %8550 = vmatpush3.bf16.msra.mxu1 %v11967_v19 }
 0xf4c   :  { %8569 = vmatprep.subr.bf16.mxu1 %v11973_v21 }
 0xf4e   :  { %4667 = vmatmul.mubr.bf16.vlgmr.msra.gmra.mrb[128].mxu1 %v4585_v16 }
 0xf4f   :  { %8570 = vmatpush3.bf16.msra.mxu1 %v11979_v23  ;;  %4890 = vmatprep.mubr.bf16.mxu1 %v4848_v18 }
 0xf50   :  { %8571 = vmatprep.subr.bf16.mxu1 %v11985_v24 }
 0xf52   :  { %v4708_v42 = vpop.f32.mrb[132].mxu0 }
 0xf53   :  { %8572 = vmatpush3.bf16.msra.mxu1 %v11991_v59  ;;  %v9484_v43 = vpop.f32.mrb[133].mxu0 }
 0xf54   :  { %8573 = vmatprep.subr.bf16.mxu1 %v11997_v62  ;;  %v4711_v46 = vpop.f32.mrb[134].mxu0 }
 0xf55   :  { %v9485_v56 = vpop.f32.mrb[135].mxu0 }
 0xf57   :  { %8574 = vmatpush3.bf16.msra.mxu1 %v12003_v52 }
 0xf58   :  { %8575 = vmatprep.subr.bf16.mxu1 %v12009_v5 }
 0xf5b   :  { %8576 = vmatpush3.bf16.msra.mxu1 %v12015_v54 }
 0xf5c   :  { %8577 = vmatprep.subr.bf16.mxu1 %v12021_v25 }
 0xf5f   :  { %8578 = vmatpush3.bf16.msra.mxu1 %v12027_v38 }
 0xf60   :  { %8579 = vmatprep.subr.bf16.mxu1 %v12033_v17 }
 0xf63   :  { %8580 = vmatpush3.bf16.msra.mxu1 %v12039_v15 }
 0xf64   :  { %8581 = vmatprep.subr.bf16.mxu1 %v12045_v61 }
 0xf67   :  { %8582 = vmatpush3.bf16.msra.mxu1 %v12051_v48 }
 0xf68   :  { %8583 = vmatprep.subr.bf16.mxu1 %v12057_v49 }
 0xf6b   :  { %8584 = vmatpush3.bf16.msra.mxu1 %v12063_v51 }
 0xf6c   :  { %9502 = vmatprep.subr.bf16.mxu1 %v10142_v36 }
 0xf6e   :  { %4891 = vmatmul.mubr.bf16.vlgmr.msra.gmra.mrb[132].mxu1 %v4834_v1 }
 0xf6f   :  { %9503 = vmatpush3.bf16.msra.mxu1 %v12100_v35  ;;  %9510 = vmatprep.mubr.msk.bf16.mxu1 %vm10143_vm0, %v10142_v36 }
 0xf70   :  { %9504 = vmatprep.subr.bf16.mxu1 %v10142_v36 }
 0xf73   :  { %9505 = vmatpush3.bf16.msra.mxu1 %v12109_v37 }
 0xf74   :  { %9506 = vmatprep.subr.bf16.mxu1 %v10142_v36 }
 0xf77   :  { %9507 = vmatpush3.bf16.msra.mxu1 %v12117_v63 }
 0xf78   :  { %9508 = vmatprep.subr.bf16.mxu1 %v10142_v36 }
 0xf7b   :  { %9509 = vmatpush3.bf16.msra.mxu1 %v12124_v28 }
 0xf7c   :  { %9514 = vmatprep.subr.bf16.mxu1 %v10142_v36 }
 0xf7e   :  { %9511 = vmatmul.mubr.msk.bf16.vlgmr.msra.gmra.mrb[136].mxu1 %vm368_vm1, %v4841_v7 }
 0xf7f   :  { %9526 = vmatprep.mubr.msk.bf16.mxu1 %vm10143_vm0, %v10142_v36  ;;  %9515 = vmatpush3.bf16.msra.mxu1 %v9906_v14 }
 0xf80   :  { %9516 = vmatprep.subr.bf16.mxu1 %v10142_v36 }
0x1001   :  { %v4538_v16 = vpop.f32.mrb[124].mxu1 }
0x1002   :  { %v12379_v53 = vadd.f32 %v4538_v16, %v12297_v31  ;;  %v9472_v58 = vpop.f32.mrb[125].mxu1  ;;  %v4849_v31 = vcombine.high %v4834_v1, %v4834_v1  ;;  %v9909_v16 = vld [vmem:[%s13245_s3 + $0x348] sm:$0xff]  }
0x1003   :  { %v4541_v10 = vpop.f32.mrb[126].mxu1  ;;  %v9910_v58 = vld [vmem:[%s13245_s3 + $0x350] sm:$0xff]  }
0x1004   :  { %v9473_v8 = vpop.f32.mrb[127].mxu1 }
0x1021   :  { %v8551_v55 = vpop.f32.mrb[128].mxu1 }
0x1022   :  { %v8552_v12 = vpop.f32.mrb[129].mxu1 }
0x1023   :  { %v8553_v3 = vadd.f32 %v8552_v12, %v8551_v55  ;;  %v8554_v45 = vpop.f32.mrb[130].mxu1 }
0x1024   :  { %v8555_v43 = vpop.f32.mrb[131].mxu1 }
0x1025   :  { %v4669_v46 = vadd.f32 %v8553_v3, %v4629_v40  ;;  %v9911_v40 = vld [vmem:[%s13245_s3 + $0x358] sm:$0xff]  }
0x1026   :  { %v7460_v3 = vld [vmem:[%s13242_s0 + $0x5a] sm:$0x1f] }
0x1027   :  { %v4709_v56 = vadd.f32 %v4708_v42, %v4669_v46  ;;  %v9907_v42 = vld [vmem:[%s13245_s3 + $0x338] sm:$0xff]   ;;  %v5083_v45 = vrot.slane %v7460_v3, %v10382_v39 }
0x1028   :  { %9517 = vmatpush3.bf16.msra.mxu1 %v9907_v42 }
0x1029   :  { %v4714_v57 = vmax.f32 %v4709_v56, 0.0  ;;  %9518 = vmatprep.subr.bf16.mxu1 %v10142_v36  ;;  %v5091_v43 = vcombine.high %v5083_v45, %v5083_v45  ;;  %v5098_v56 = vrot.slane %v5083_v45, %v10382_v39 }
0x102b   :  { %v4715_v41 = vpack.c.bf16 %v4714_v57, %v4714_v57  ;;  %v5112_v46 = vrot.slane %v5091_v43, %v10382_v39 }
0x102c   :  { %9519 = vmatpush3.bf16.msra.mxu1 %v9908_v0 }
0x102d   :  { %9499 = vmatmul.mubr.msk.bf16.vlgmr.msra.gmra.mrb[136].mxu0 %vm726_vm2, %v4715_v41  ;;  %9520 = vmatprep.subr.bf16.mxu1 %v10142_v36 }
0x102e   :  { %8592 = vmatpush3.bf16.msra.mxu0 %v11881_v32  ;;  %4930 = vmatprep.mubr.bf16.mxu0 %v4850_v44 }
0x102f   :  { %8593 = vmatprep.subr.bf16.mxu0 %v11887_v13 }
0x1030   :  { %9521 = vmatpush3.bf16.msra.mxu1 %v9909_v16 }
0x1031   :  { %9522 = vmatprep.subr.bf16.mxu1 %v10142_v36 }
0x1032   :  { %8594 = vmatpush3.bf16.msra.mxu0 %v11893_v33 }
0x1033   :  { %8595 = vmatprep.subr.bf16.mxu0 %v11899_v29 }
0x1034   :  { %9523 = vmatpush3.bf16.msra.mxu1 %v9910_v58 }
0x1035   :  { %9524 = vmatprep.subr.bf16.mxu1 %v10142_v36 }
0x1036   :  { %8596 = vmatpush3.bf16.msra.mxu0 %v11905_v26 }
0x1037   :  { %8597 = vmatprep.subr.bf16.mxu0 %v11911_v50 }
0x1038   :  { %9525 = vmatpush3.bf16.msra.mxu1 %v9911_v40  ;;  %v5114_v40 = vcombine.high %v5112_v46, %v5112_v46 }
0x1039   :  { %8647 = vmatprep.subr.bf16.mxu1 %v11841_v11  ;;  %v5076_v11 = vcombine.high %v7460_v3, %v7460_v3 }
0x103a   :  { %8598 = vmatpush3.bf16.msra.mxu0 %v11917_v22 }
0x103b   :  { %8599 = vmatprep.subr.bf16.mxu0 %v11923_v27  ;;  %v5090_v57 = vrot.slane %v5076_v11, %v10382_v39  ;;  %v12569_v11 = vld [vmem:[%s13243_s1 + $0xc8] sm:$0xff]  }
0x103d   :  { %v5105_v44 = vrot.slane %v5090_v57, %v10382_v39  ;;  %v12575_v57 = vld [vmem:[%s13243_s1 + $0x88] sm:$0xff]  }
0x103e   :  { %8600 = vmatpush3.bf16.msra.mxu0 %v11929_v2 }
0x103f   :  { %8601 = vmatprep.subr.bf16.mxu0 %v11935_v4 }
0x1041   :  { %v8585_v18 = vpop.f32.mrb[132].mxu1 }
0x1042   :  { %8602 = vmatpush3.bf16.msra.mxu0 %v11941_v9  ;;  %v8586_v1 = vpop.f32.mrb[133].mxu1 }
0x1043   :  { %8603 = vmatprep.subr.bf16.mxu0 %v11947_v47  ;;  %v8587_v30 = vadd.f32 %v8586_v1, %v8585_v18  ;;  %v8588_v34 = vpop.f32.mrb[134].mxu1 }
0x1044   :  { %v8589_v7 = vpop.f32.mrb[135].mxu1 }
0x1045   :  { %v4893_v34 = vadd.f32 %v11874_v6, %v8587_v30  ;;  %v5113_v6 = vcombine.high %v5098_v56, %v5098_v56 }
0x1046   :  { %8604 = vmatpush3.bf16.msra.mxu0 %v11953_v60 }
0x1047   :  { %8605 = vmatprep.subr.bf16.mxu0 %v11959_v20 }
0x104a   :  { %8606 = vmatpush3.bf16.msra.mxu0 %v11967_v19 }
0x104b   :  { %8625 = vmatprep.subr.bf16.mxu0 %v11973_v21 }
0x104d   :  { %4931 = vmatmul.mubr.bf16.vlgmr.msra.gmra.mrb[140].mxu0 %v4849_v31 }
0x104e   :  { %8626 = vmatpush3.bf16.msra.mxu0 %v11979_v23  ;;  %5154 = vmatprep.mubr.bf16.mxu0 %v5112_v46 }
0x104f   :  { %8627 = vmatprep.subr.bf16.mxu0 %v11985_v24 }
0x1051   :  { %v4972_v10 = vpop.f32.mrb[136].mxu1 }
0x1052   :  { %8628 = vmatpush3.bf16.msra.mxu0 %v11991_v59  ;;  %v9512_v8 = vpop.f32.mrb[137].mxu1 }
0x1053   :  { %8629 = vmatprep.subr.bf16.mxu0 %v11997_v62  ;;  %v4975_v55 = vpop.f32.mrb[138].mxu1 }
0x1054   :  { %v9513_v12 = vpop.f32.mrb[139].mxu1 }
0x1056   :  { %8630 = vmatpush3.bf16.msra.mxu0 %v12003_v52 }
0x1057   :  { %8631 = vmatprep.subr.bf16.mxu0 %v12009_v5 }
0x105a   :  { %8632 = vmatpush3.bf16.msra.mxu0 %v12015_v54 }
0x105b   :  { %8633 = vmatprep.subr.bf16.mxu0 %v12021_v25 }
0x105e   :  { %8634 = vmatpush3.bf16.msra.mxu0 %v12027_v38 }
0x105f   :  { %8635 = vmatprep.subr.bf16.mxu0 %v12033_v17 }
0x1062   :  { %8636 = vmatpush3.bf16.msra.mxu0 %v12039_v15 }
0x1063   :  { %8637 = vmatprep.subr.bf16.mxu0 %v12045_v61 }
0x1066   :  { %8638 = vmatpush3.bf16.msra.mxu0 %v12051_v48 }
0x1067   :  { %8639 = vmatprep.subr.bf16.mxu0 %v12057_v49 }
0x106a   :  { %8640 = vmatpush3.bf16.msra.mxu0 %v12063_v51 }
0x106b   :  { %9530 = vmatprep.subr.bf16.mxu0 %v10142_v36 }
0x106d   :  { %5155 = vmatmul.mubr.bf16.vlgmr.msra.gmra.mrb[144].mxu0 %v5098_v56  ;;  %v12563_v56 = vld [vmem:[%s13243_s1 + $0x80] sm:$0xff]  }
0x106e   :  { %9531 = vmatpush3.bf16.msra.mxu0 %v12100_v35  ;;  %9538 = vmatprep.mubr.msk.bf16.mxu0 %vm10143_vm0, %v10142_v36 }
0x106f   :  { %9532 = vmatprep.subr.bf16.mxu0 %v10142_v36 }
0x1072   :  { %9533 = vmatpush3.bf16.msra.mxu0 %v12109_v37 }
0x1073   :  { %9534 = vmatprep.subr.bf16.mxu0 %v10142_v36 }
0x1076   :  { %9535 = vmatpush3.bf16.msra.mxu0 %v12117_v63 }
0x1077   :  { %9536 = vmatprep.subr.bf16.mxu0 %v10142_v36 }
0x107a   :  { %9537 = vmatpush3.bf16.msra.mxu0 %v12124_v28 }
0x107b   :  { %9542 = vmatprep.subr.bf16.mxu0 %v10142_v36 }
0x107d   :  { %9539 = vmatmul.mubr.msk.bf16.vlgmr.msra.gmra.mrb[148].mxu0 %vm368_vm1, %v5105_v44  ;;  %v12581_v44 = vld [vmem:[%s13243_s1 + $0xd0] sm:$0xff]  }
0x107e   :  { %9554 = vmatprep.mubr.msk.bf16.mxu0 %vm10143_vm0, %v10142_v36 }
0x1100   :  { %v4802_v41 = vpop.f32.mrb[136].mxu0 }
0x1101   :  { %v12461_v31 = vadd.f32 %v4802_v41, %v12379_v53  ;;  %v9500_v14 = vpop.f32.mrb[137].mxu0  ;;  %v12587_v41 = vld [vmem:[%s13243_s1 + $0x90] sm:$0xff]  }
0x1102   :  { %v4805_v42 = vpop.f32.mrb[138].mxu0  ;;  %v12599_v14 = vld [vmem:[%s13243_s1 + $0x98] sm:$0xff]  }
0x1103   :  { %v9501_v0 = vpop.f32.mrb[139].mxu0  ;;  %v12605_v42 = vld [vmem:[%s13243_s1 + $0xe0] sm:$0xff]  }
0x1104   :  { %v12611_v0 = vld [vmem:[%s13243_s1 + $0xa0] sm:$0xff]  }
0x1120   :  { %v8607_v18 = vpop.f32.mrb[140].mxu0 }
0x1121   :  { %v8608_v1 = vpop.f32.mrb[141].mxu0 }
0x1122   :  { %v8609_v7 = vadd.f32 %v8608_v1, %v8607_v18  ;;  %v8610_v16 = vpop.f32.mrb[142].mxu0  ;;  %v12617_v18 = vld [vmem:[%s13243_s1 + $0xe8] sm:$0xff]  }
0x1123   :  { %v8611_v58 = vpop.f32.mrb[143].mxu0  ;;  %v12623_v1 = vld [vmem:[%s13243_s1 + $0xa8] sm:$0xff]   ;;  %v12641_v16 = vld [vmem:[%s13243_s1 + $0xf8] sm:$0xff]  }
0x1124   :  { %v4933_v8 = vadd.f32 %v8609_v7, %v4893_v34  ;;  %v12629_v34 = vld [vmem:[%s13243_s1 + $0xf0] sm:$0xff]  }
0x1125   :  { %v12635_v7 = vld [vmem:[%s13243_s1 + $0xb0] sm:$0xff]  }
0x1126   :  { %v4973_v55 = vadd.f32 %v4972_v10, %v4933_v8  ;;  %v12649_v8 = vld [vmem:[%s13243_s1 + $0xb8] sm:$0xff]  }
0x1128   :  { %v4978_v12 = vmax.f32 %v4973_v55, 0.0  ;;  %v12655_v55 = vld [vmem:[%s13243_s1 + $0x40] sm:$0xff]  }
0x112a   :  { %v4979_v3 = vpack.c.bf16 %v4978_v12, %v4978_v12  ;;  %v12661_v12 = vld [vmem:[%s13243_s1] sm:$0xff]  }
0x112c   :  { %9527 = vmatmul.mubr.msk.bf16.vlgmr.msra.gmra.mrb[140].mxu1 %vm726_vm2, %v4979_v3  ;;  %v12673_v3 = vld [vmem:[%s13243_s1 + $0x8] sm:$0xff]  }
0x112d   :  { %8648 = vmatpush3.bf16.msra.mxu1 %v11881_v32  ;;  %5194 = vmatprep.mubr.bf16.mxu1 %v5114_v40  ;;  %v9913_v32 = vld [vmem:[%s13245_s3 + $0x360] sm:$0xff]   ;;  %v12667_v40 = vld [vmem:[%s13243_s1 + $0x48] sm:$0xff]  }
0x112e   :  { %8649 = vmatprep.subr.bf16.mxu1 %v11887_v13  ;;  %9543 = vmatpush3.bf16.msra.mxu0 %v9913_v32  ;;  %v9914_v13 = vld [vmem:[%s13245_s3 + $0x368] sm:$0xff]   ;;  %v12685_v32 = vld [vmem:[%s13243_s1 + $0x10] sm:$0xff]  }
0x112f   :  { %9544 = vmatprep.subr.bf16.mxu0 %v10142_v36 }
0x1131   :  { %8650 = vmatpush3.bf16.msra.mxu1 %v11893_v33  ;;  %v9915_v33 = vld [vmem:[%s13245_s3 + $0x370] sm:$0xff]  }
0x1132   :  { %8651 = vmatprep.subr.bf16.mxu1 %v11899_v29  ;;  %9545 = vmatpush3.bf16.msra.mxu0 %v9914_v13  ;;  %v12691_v13 = vld [vmem:[%s13243_s1 + $0x58] sm:$0xff]  }
0x1133   :  { %9546 = vmatprep.subr.bf16.mxu0 %v10142_v36 }
0x1135   :  { %8652 = vmatpush3.bf16.msra.mxu1 %v11905_v26 }
0x1136   :  { %8653 = vmatprep.subr.bf16.mxu1 %v11911_v50  ;;  %9547 = vmatpush3.bf16.msra.mxu0 %v9915_v33  ;;  %v12697_v33 = vld [vmem:[%s13243_s1 + $0x18] sm:$0xff]  }
0x1137   :  { %9548 = vmatprep.subr.bf16.mxu0 %v10142_v36 }
0x1139   :  { %8654 = vmatpush3.bf16.msra.mxu1 %v11917_v22 }
0x113a   :  { %8655 = vmatprep.subr.bf16.mxu1 %v11923_v27 }
0x113d   :  { %8656 = vmatpush3.bf16.msra.mxu1 %v11929_v2  ;;  %v9916_v2 = vld [vmem:[%s13245_s3 + $0x378] sm:$0xff]  }
0x113e   :  { %8657 = vmatprep.subr.bf16.mxu1 %v11935_v4  ;;  %9549 = vmatpush3.bf16.msra.mxu0 %v9916_v2  ;;  %v9917_v4 = vld [vmem:[%s13245_s3 + $0x380] sm:$0xff]   ;;  %v12733_v2 = vld [vmem:[%s13243_s1 + $0x30] sm:$0xff]  }
0x113f   :  { %9550 = vmatprep.subr.bf16.mxu0 %v10142_v36 }
0x1140   :  { %v8641_v29 = vpop.f32.mrb[144].mxu0 }
0x1141   :  { %8658 = vmatpush3.bf16.msra.mxu1 %v11941_v9  ;;  %v8642_v26 = vpop.f32.mrb[145].mxu0 }
0x1142   :  { %8659 = vmatprep.subr.bf16.mxu1 %v11947_v47  ;;  %v8643_v50 = vadd.f32 %v8642_v26, %v8641_v29  ;;  %v8644_v22 = vpop.f32.mrb[146].mxu0  ;;  %9551 = vmatpush3.bf16.msra.mxu0 %v9917_v4  ;;  %v12703_v29 = vld [vmem:[%s13243_s1 + $0x60] sm:$0xff]   ;;  %v12739_v4 = vld [vmem:[%s13243_s1 + $0x78] sm:$0xff]  }
0x1143   :  { %v8645_v27 = vpop.f32.mrb[147].mxu0  ;;  %9552 = vmatprep.subr.bf16.mxu0 %v10142_v36  ;;  %v12709_v26 = vld [vmem:[%s13243_s1 + $0x20] sm:$0xff]   ;;  %v12721_v22 = vld [vmem:[%s13243_s1 + $0x28] sm:$0xff]  }
0x1144   :  { %v12727_v27 = vld [vmem:[%s13243_s1 + $0x70] sm:$0xff]  }
0x1145   :  { %8660 = vmatpush3.bf16.msra.mxu1 %v11953_v60 }
0x1146   :  { %8661 = vmatprep.subr.bf16.mxu1 %v11959_v20 }
0x1149   :  { %8662 = vmatpush3.bf16.msra.mxu1 %v11967_v19  ;;  %v9918_v19 = vld [vmem:[%s13245_s3 + $0x388] sm:$0xff]  }
0x114a   :  { %8681 = vmatprep.subr.bf16.mxu1 %v11973_v21  ;;  %9553 = vmatpush3.bf16.msra.mxu0 %v9918_v19  ;;  %v12523_v21 = vld [vmem:[%s13243_s1 + $0xc0] sm:$0xff]  }
0x114b   :  { %8703 = vmatprep.subr.bf16.mxu0 %v12523_v21 }
0x114c   :  { %5195 = vmatmul.mubr.bf16.vlgmr.msra.gmra.mrb[144].mxu1 %v5113_v6  ;;  %v12679_v6 = vld [vmem:[%s13243_s1 + $0x50] sm:$0xff]  }
0x114d   :  { %8682 = vmatpush3.bf16.msra.mxu1 %v11979_v23  ;;  %v7481_v23 = vld [vmem:[%s13242_s0 + $0x5f] sm:$0x1f] }
0x114e   :  { %8683 = vmatprep.subr.bf16.mxu1 %v11985_v24  ;;  %v5347_v24 = vrot.slane %v7481_v23, %v10382_v39 }
0x1150   :  { %v5236_v9 = vpop.f32.mrb[148].mxu0 }
0x1151   :  { %8684 = vmatpush3.bf16.msra.mxu1 %v11991_v59  ;;  %v9540_v47 = vpop.f32.mrb[149].mxu0  ;;  %v5355_v59 = vcombine.high %v5347_v24, %v5347_v24 }
0x1152   :  { %8685 = vmatprep.subr.bf16.mxu1 %v11997_v62  ;;  %v5239_v60 = vpop.f32.mrb[150].mxu0  ;;  %v9920_v47 = vld [vmem:[%s13245_s3 + $0x390] sm:$0xff]  }
0x1153   :  { %v9541_v20 = vpop.f32.mrb[151].mxu0  ;;  %v5376_v62 = vrot.slane %v5355_v59, %v10382_v39  ;;  %v9921_v60 = vld [vmem:[%s13245_s3 + $0x398] sm:$0xff]  }
0x1154   :  { %v9922_v20 = vld [vmem:[%s13245_s3 + $0x3a0] sm:$0xff]  }
0x1155   :  { %8686 = vmatpush3.bf16.msra.mxu1 %v12003_v52  ;;  %v12532_v52 = vrot.slane %v5347_v24, %v10382_v39  ;;  %5418 = vmatprep.mubr.bf16.mxu1 %v5376_v62  ;;  %v5378_v43 = vcombine.high %v5376_v62, %v5376_v62 }
0x1156   :  { %8687 = vmatprep.subr.bf16.mxu1 %v12009_v5  ;;  %v5340_v5 = vcombine.high %v7481_v23, %v7481_v23 }
0x1157   :  { %v5377_v58 = vcombine.high %v12532_v52, %v12532_v52 }
0x1159   :  { %8688 = vmatpush3.bf16.msra.mxu1 %v12015_v54  ;;  %v5354_v54 = vrot.slane %v5340_v5, %v10382_v39  ;;  %v9924_v5 = vld [vmem:[%s13245_s3 + $0x3b0] sm:$0xff]  }
0x115a   :  { %8689 = vmatprep.subr.bf16.mxu1 %v12021_v25 }
0x115b   :  { %v5369_v25 = vrot.slane %v5354_v54, %v10382_v39 }
0x115d   :  { %8690 = vmatpush3.bf16.msra.mxu1 %v12027_v38 }
0x115e   :  { %8691 = vmatprep.subr.bf16.mxu1 %v12033_v17 }
0x1161   :  { %8692 = vmatpush3.bf16.msra.mxu1 %v12039_v15 }
0x1162   :  { %8693 = vmatprep.subr.bf16.mxu1 %v12045_v61 }
0x1165   :  { %8694 = vmatpush3.bf16.msra.mxu1 %v12051_v48 }
0x1166   :  { %8695 = vmatprep.subr.bf16.mxu1 %v12057_v49 }
0x1169   :  { %8696 = vmatpush3.bf16.msra.mxu1 %v12063_v51 }
0x116a   :  { %9558 = vmatprep.subr.bf16.mxu1 %v10142_v36 }
0x116c   :  { %5419 = vmatmul.mubr.bf16.vlgmr.msra.gmra.mrb[148].mxu1 %v12532_v52  ;;  %v9923_v52 = vld [vmem:[%s13245_s3 + $0x3a8] sm:$0xff]  }
0x116d   :  { %9559 = vmatpush3.bf16.msra.mxu1 %v12100_v35  ;;  %9566 = vmatprep.mubr.msk.bf16.mxu1 %vm10143_vm0, %v10142_v36  ;;  %v12556_v35 = vld [vmem:[%s13244_s2] ss:$0 sm:$0xff] }
0x116e   :  { %9560 = vmatprep.subr.bf16.mxu1 %v10142_v36 }
0x1171   :  { %9561 = vmatpush3.bf16.msra.mxu1 %v12109_v37  ;;  %v5157_v37 = vadd.f32 %v12556_v35, %v8643_v50  ;;  %v12715_v50 = vld [vmem:[%s13243_s1 + $0x68] sm:$0xff]  }
0x1172   :  { %9562 = vmatprep.subr.bf16.mxu1 %v10142_v36 }
0x1175   :  { %9563 = vmatpush3.bf16.msra.mxu1 %v12117_v63 }
0x1176   :  { %9564 = vmatprep.subr.bf16.mxu1 %v10142_v36 }
0x1179   :  { %9565 = vmatpush3.bf16.msra.mxu1 %v12124_v28 }
0x117a   :  { %9570 = vmatprep.subr.bf16.mxu1 %v10142_v36 }
0x117c   :  { %9567 = vmatmul.mubr.msk.bf16.vlgmr.msra.gmra.mrb[152].mxu1 %vm368_vm1, %v5369_v25 }
0x117d   :  { %9582 = vmatprep.mubr.msk.bf16.mxu1 %vm10143_vm0, %v10142_v36  ;;  %9571 = vmatpush3.bf16.msra.mxu1 %v9920_v47 }
0x117e   :  { %9572 = vmatprep.subr.bf16.mxu1 %v10142_v36 }
0x1181   :  { %9573 = vmatpush3.bf16.msra.mxu1 %v9921_v60 }
0x1182   :  { %9574 = vmatprep.subr.bf16.mxu1 %v10142_v36 }
0x1185   :  { %9575 = vmatpush3.bf16.msra.mxu1 %v9922_v20 }
0x1186   :  { %9576 = vmatprep.subr.bf16.mxu1 %v10142_v36 }
0x1189   :  { %9577 = vmatpush3.bf16.msra.mxu1 %v9923_v52 }
0x118a   :  { %9578 = vmatprep.subr.bf16.mxu1 %v10142_v36 }
0x118d   :  { %9579 = vmatpush3.bf16.msra.mxu1 %v9924_v5 }
0x118e   :  { %9580 = vmatprep.subr.bf16.mxu1 %v10142_v36 }
0x11ff   :  { %v5066_v38 = vpop.f32.mrb[140].mxu1 }
0x1200   :  { %v12551_v17 = vadd.f32 %v5066_v38, %v12461_v31  ;;  %v9528_v15 = vpop.f32.mrb[141].mxu1  ;;  %v12593_v31 = vld [vmem:[%s13243_s1 + $0xd8] sm:$0xff]  }
0x1201   :  { %v5069_v61 = vpop.f32.mrb[142].mxu1 }
0x1202   :  { %v9529_v48 = vpop.f32.mrb[143].mxu1  ;;  %v9925_v61 = vld [vmem:[%s13245_s3 + $0x3b8] sm:$0xff]  }
0x1203   :  { %9581 = vmatpush3.bf16.msra.mxu1 %v9925_v61  ;;  %v7502_v48 = vld [vmem:[%s13242_s0 + $0x64] sm:$0x1f] }
0x1204   :  { %8759 = vmatprep.subr.bf16.mxu1 %v12523_v21 }
0x121f   :  { %v8663_v49 = vpop.f32.mrb[144].mxu1 }
0x1220   :  { %v8664_v51 = vpop.f32.mrb[145].mxu1 }
0x1221   :  { %v8665_v63 = vadd.f32 %v8664_v51, %v8663_v49  ;;  %v8666_v28 = vpop.f32.mrb[146].mxu1  ;;  %v5611_v49 = vrot.slane %v7502_v48, %v10382_v39 }
0x1222   :  { %v8667_v53 = vpop.f32.mrb[147].mxu1  ;;  %v12782_v28 = vld [vmem:[%s13243_s1 + $0x100] sm:$0xff]  }
0x1223   :  { %v5197_v30 = vadd.f32 %v8665_v63, %v5157_v37  ;;  %v5619_v51 = vcombine.high %v5611_v49, %v5611_v49  ;;  %v5626_v63 = vrot.slane %v5611_v49, %v10382_v39  ;;  %v5604_v53 = vcombine.high %v7502_v48, %v7502_v48 }
0x1225   :  { %v5237_v10 = vadd.f32 %v5236_v9, %v5197_v30  ;;  %v12745_v9 = vld [vmem:[%s13243_s1 + $0x38] sm:$0xff]   ;;  %v5640_v37 = vrot.slane %v5619_v51, %v10382_v39  ;;  %v12791_v30 = vld [vmem:[%s13243_s1 + $0x108] sm:$0xff]   ;;  %v9929_v51 = vld [vmem:[%s13245_s3 + $0x3d0] sm:$0xff]  }
0x1227   :  { %v5242_v45 = vmax.f32 %v5237_v10, 0.0  ;;  %v5618_v10 = vrot.slane %v5604_v53, %v10382_v39  ;;  %v5642_v48 = vcombine.high %v5640_v37, %v5640_v37 }
0x1229   :  { %v5243_v46 = vpack.c.bf16 %v5242_v45, %v5242_v45  ;;  %v12799_v45 = vld [vmem:[%s13243_s1 + $0x110] sm:$0xff]  }
0x122b   :  { %9555 = vmatmul.mubr.msk.bf16.vlgmr.msra.gmra.mrb[152].mxu0 %vm726_vm2, %v5243_v46  ;;  %v5633_v46 = vrot.slane %v5618_v10, %v10382_v39 }
0x122c   :  { %8704 = vmatpush3.bf16.msra.mxu0 %v12563_v56  ;;  %5458 = vmatprep.mubr.bf16.mxu0 %v5378_v43  ;;  %v12806_v43 = vld [vmem:[%s13243_s1 + $0x118] sm:$0xff]  }
0x122d   :  { %8705 = vmatprep.subr.bf16.mxu0 %v12569_v11 }
0x1230   :  { %8706 = vmatpush3.bf16.msra.mxu0 %v12575_v57 }
0x1231   :  { %8707 = vmatprep.subr.bf16.mxu0 %v12581_v44 }
0x1234   :  { %8708 = vmatpush3.bf16.msra.mxu0 %v12587_v41 }
0x1235   :  { %8709 = vmatprep.subr.bf16.mxu0 %v12593_v31 }
0x1238   :  { %8710 = vmatpush3.bf16.msra.mxu0 %v12599_v14 }
0x1239   :  { %8711 = vmatprep.subr.bf16.mxu0 %v12605_v42 }
0x123c   :  { %8712 = vmatpush3.bf16.msra.mxu0 %v12611_v0 }
0x123d   :  { %8713 = vmatprep.subr.bf16.mxu0 %v12617_v18 }
0x123f   :  { %v8697_v19 = vpop.f32.mrb[148].mxu1 }
0x1240   :  { %8714 = vmatpush3.bf16.msra.mxu0 %v12623_v1  ;;  %v8698_v23 = vpop.f32.mrb[149].mxu1 }
0x1241   :  { %8715 = vmatprep.subr.bf16.mxu0 %v12629_v34  ;;  %v8699_v24 = vadd.f32 %v8698_v23, %v8697_v19  ;;  %v8700_v59 = vpop.f32.mrb[150].mxu1 }
0x1242   :  { %v8701_v62 = vpop.f32.mrb[151].mxu1 }
0x1243   :  { %v5421_v62 = vadd.f32 %v12556_v35, %v8699_v24  ;;  %v9927_v24 = vld [vmem:[%s13245_s3 + $0x3c0] sm:$0xff]  }
0x1244   :  { %8716 = vmatpush3.bf16.msra.mxu0 %v12635_v7 }
0x1245   :  { %8717 = vmatprep.subr.bf16.mxu0 %v12641_v16 }
0x1248   :  { %8718 = vmatpush3.bf16.msra.mxu0 %v12649_v8 }
0x1249   :  { %8737 = vmatprep.subr.bf16.mxu0 %v12655_v55 }
0x124b   :  { %5459 = vmatmul.mubr.bf16.vlgmr.msra.gmra.mrb[156].mxu0 %v5377_v58 }
0x124c   :  { %8738 = vmatpush3.bf16.msra.mxu0 %v12661_v12  ;;  %5682 = vmatprep.mubr.bf16.mxu0 %v5640_v37 }
0x124d   :  { %8739 = vmatprep.subr.bf16.mxu0 %v12667_v40 }
0x124f   :  { %v5500_v54 = vpop.f32.mrb[152].mxu1 }
0x1250   :  { %8740 = vmatpush3.bf16.msra.mxu0 %v12673_v3  ;;  %v9568_v25 = vpop.f32.mrb[153].mxu1 }
0x1251   :  { %8741 = vmatprep.subr.bf16.mxu0 %v12679_v6  ;;  %v5503_v38 = vpop.f32.mrb[154].mxu1 }
0x1252   :  { %v9569_v15 = vpop.f32.mrb[155].mxu1 }
0x1254   :  { %8742 = vmatpush3.bf16.msra.mxu0 %v12685_v32 }
0x1255   :  { %8743 = vmatprep.subr.bf16.mxu0 %v12691_v13 }
0x1258   :  { %8744 = vmatpush3.bf16.msra.mxu0 %v12697_v33 }
0x1259   :  { %8745 = vmatprep.subr.bf16.mxu0 %v12703_v29 }
0x125c   :  { %8746 = vmatpush3.bf16.msra.mxu0 %v12709_v26 }
0x125d   :  { %8747 = vmatprep.subr.bf16.mxu0 %v12715_v50 }
0x1260   :  { %8748 = vmatpush3.bf16.msra.mxu0 %v12721_v22 }
0x1261   :  { %8749 = vmatprep.subr.bf16.mxu0 %v12727_v27 }
0x1264   :  { %8750 = vmatpush3.bf16.msra.mxu0 %v12733_v2 }
0x1265   :  { %8751 = vmatprep.subr.bf16.mxu0 %v12739_v4 }
0x1268   :  { %8752 = vmatpush3.bf16.msra.mxu0 %v12745_v9 }
0x1269   :  { %9586 = vmatprep.subr.bf16.mxu0 %v10142_v36 }
0x126b   :  { %5683 = vmatmul.mubr.bf16.vlgmr.msra.gmra.mrb[160].mxu0 %v5626_v63 }
0x126c   :  { %9587 = vmatpush3.bf16.msra.mxu0 %v12782_v28  ;;  %9594 = vmatprep.mubr.msk.bf16.mxu0 %vm10143_vm0, %v10142_v36 }
0x126d   :  { %9588 = vmatprep.subr.bf16.mxu0 %v10142_v36 }
0x1270   :  { %9589 = vmatpush3.bf16.msra.mxu0 %v12791_v30 }
0x1271   :  { %9590 = vmatprep.subr.bf16.mxu0 %v10142_v36 }
0x1274   :  { %9591 = vmatpush3.bf16.msra.mxu0 %v12799_v45 }
0x1275   :  { %9592 = vmatprep.subr.bf16.mxu0 %v10142_v36 }
0x1278   :  { %9593 = vmatpush3.bf16.msra.mxu0 %v12806_v43 }
0x1279   :  { %9598 = vmatprep.subr.bf16.mxu0 %v10142_v36 }
0x127b   :  { %9595 = vmatmul.mubr.msk.bf16.vlgmr.msra.gmra.mrb[164].mxu0 %vm368_vm1, %v5633_v46 }
0x127c   :  { %9610 = vmatprep.mubr.msk.bf16.mxu0 %vm10143_vm0, %v10142_v36  ;;  %9599 = vmatpush3.bf16.msra.mxu0 %v9927_v24 }
0x127d   :  { %9600 = vmatprep.subr.bf16.mxu0 %v10142_v36 }
0x12fe   :  { %v5330_v58 = vpop.f32.mrb[152].mxu0 }
0x12ff   :  { %v12815_v47 = vadd.f32 %v5330_v58, %v12551_v17  ;;  %v9556_v60 = vpop.f32.mrb[153].mxu0  ;;  %v5641_v17 = vcombine.high %v5626_v63, %v5626_v63  ;;  %v9930_v58 = vld [vmem:[%s13245_s3 + $0x3d8] sm:$0xff]  }
0x1300   :  { %v5333_v20 = vpop.f32.mrb[154].mxu0  ;;  %v9931_v60 = vld [vmem:[%s13245_s3 + $0x3e0] sm:$0xff]  }
0x1301   :  { %v9557_v19 = vpop.f32.mrb[155].mxu0 }
0x131e   :  { %v8719_v23 = vpop.f32.mrb[156].mxu0 }
0x131f   :  { %v8720_v59 = vpop.f32.mrb[157].mxu0 }
0x1320   :  { %v8721_v52 = vadd.f32 %v8720_v59, %v8719_v23  ;;  %v8722_v5 = vpop.f32.mrb[158].mxu0 }
0x1321   :  { %v8723_v25 = vpop.f32.mrb[159].mxu0 }
0x1322   :  { %v5461_v38 = vadd.f32 %v8721_v52, %v5421_v62  ;;  %v9932_v62 = vld [vmem:[%s13245_s3 + $0x3e8] sm:$0xff]  }
0x1323   :  { %v7523_v52 = vld [vmem:[%s13242_s0 + $0x69] sm:$0x1f] }
0x1324   :  { %v5501_v15 = vadd.f32 %v5500_v54, %v5461_v38  ;;  %v9928_v54 = vld [vmem:[%s13245_s3 + $0x3c8] sm:$0xff]   ;;  %v5875_v5 = vrot.slane %v7523_v52, %v10382_v39 }
0x1325   :  { %9601 = vmatpush3.bf16.msra.mxu0 %v9928_v54 }
0x1326   :  { %v5506_v61 = vmax.f32 %v5501_v15, 0.0  ;;  %9602 = vmatprep.subr.bf16.mxu0 %v10142_v36  ;;  %v5883_v25 = vcombine.high %v5875_v5, %v5875_v5  ;;  %v5890_v15 = vrot.slane %v5875_v5, %v10382_v39 }
0x1328   :  { %v5507_v49 = vpack.c.bf16 %v5506_v61, %v5506_v61  ;;  %v5904_v38 = vrot.slane %v5883_v25, %v10382_v39  ;;  %v5868_v61 = vcombine.high %v7523_v52, %v7523_v52  ;;  %v9936_v25 = vld [vmem:[%s13245_s3 + $0x400] sm:$0xff]  }
0x1329   :  { %9603 = vmatpush3.bf16.msra.mxu0 %v9929_v51 }
0x132a   :  { %9583 = vmatmul.mubr.msk.bf16.vlgmr.msra.gmra.mrb[156].mxu1 %vm726_vm2, %v5507_v49  ;;  %9604 = vmatprep.subr.bf16.mxu0 %v10142_v36  ;;  %v5906_v52 = vcombine.high %v5904_v38, %v5904_v38 }
0x132b   :  { %8760 = vmatpush3.bf16.msra.mxu1 %v12563_v56  ;;  %5722 = vmatprep.mubr.bf16.mxu1 %v5642_v48  ;;  %v5882_v48 = vrot.slane %v5868_v61, %v10382_v39 }
0x132c   :  { %8761 = vmatprep.subr.bf16.mxu1 %v12569_v11 }
0x132d   :  { %9605 = vmatpush3.bf16.msra.mxu0 %v9930_v58  ;;  %v5897_v49 = vrot.slane %v5882_v48, %v10382_v39 }
0x132e   :  { %9606 = vmatprep.subr.bf16.mxu0 %v10142_v36 }
0x132f   :  { %8762 = vmatpush3.bf16.msra.mxu1 %v12575_v57 }
0x1330   :  { %8763 = vmatprep.subr.bf16.mxu1 %v12581_v44 }
0x1331   :  { %9607 = vmatpush3.bf16.msra.mxu0 %v9931_v60 }
0x1332   :  { %9608 = vmatprep.subr.bf16.mxu0 %v10142_v36 }
0x1333   :  { %8764 = vmatpush3.bf16.msra.mxu1 %v12587_v41 }
0x1334   :  { %8765 = vmatprep.subr.bf16.mxu1 %v12593_v31 }
0x1335   :  { %9609 = vmatpush3.bf16.msra.mxu0 %v9932_v62 }
0x1336   :  { %8815 = vmatprep.subr.bf16.mxu0 %v12523_v21 }
0x1337   :  { %8766 = vmatpush3.bf16.msra.mxu1 %v12599_v14 }
0x1338   :  { %8767 = vmatprep.subr.bf16.mxu1 %v12605_v42 }
0x133b   :  { %8768 = vmatpush3.bf16.msra.mxu1 %v12611_v0 }
0x133c   :  { %8769 = vmatprep.subr.bf16.mxu1 %v12617_v18 }
0x133e   :  { %v8753_v37 = vpop.f32.mrb[160].mxu0 }
0x133f   :  { %8770 = vmatpush3.bf16.msra.mxu1 %v12623_v1  ;;  %v8754_v63 = vpop.f32.mrb[161].mxu0 }
0x1340   :  { %8771 = vmatprep.subr.bf16.mxu1 %v12629_v34  ;;  %v8755_v53 = vadd.f32 %v8754_v63, %v8753_v37  ;;  %v8756_v10 = vpop.f32.mrb[162].mxu0 }
0x1341   :  { %v8757_v46 = vpop.f32.mrb[163].mxu0 }
0x1342   :  { %v5685_v46 = vadd.f32 %v12556_v35, %v8755_v53  ;;  %v9934_v53 = vld [vmem:[%s13245_s3 + $0x3f0] sm:$0xff]  }
0x1343   :  { %8772 = vmatpush3.bf16.msra.mxu1 %v12635_v7 }
0x1344   :  { %8773 = vmatprep.subr.bf16.mxu1 %v12641_v16 }
0x1347   :  { %8774 = vmatpush3.bf16.msra.mxu1 %v12649_v8 }
0x1348   :  { %8793 = vmatprep.subr.bf16.mxu1 %v12655_v55 }
0x134a   :  { %5723 = vmatmul.mubr.bf16.vlgmr.msra.gmra.mrb[160].mxu1 %v5641_v17 }
0x134b   :  { %8794 = vmatpush3.bf16.msra.mxu1 %v12661_v12  ;;  %5946 = vmatprep.mubr.bf16.mxu1 %v5904_v38 }
0x134c   :  { %8795 = vmatprep.subr.bf16.mxu1 %v12667_v40 }
0x134e   :  { %v5764_v20 = vpop.f32.mrb[164].mxu0 }
0x134f   :  { %8796 = vmatpush3.bf16.msra.mxu1 %v12673_v3  ;;  %v9596_v19 = vpop.f32.mrb[165].mxu0 }
0x1350   :  { %8797 = vmatprep.subr.bf16.mxu1 %v12679_v6  ;;  %v5767_v23 = vpop.f32.mrb[166].mxu0 }
0x1351   :  { %v9597_v59 = vpop.f32.mrb[167].mxu0 }
0x1353   :  { %8798 = vmatpush3.bf16.msra.mxu1 %v12685_v32 }
0x1354   :  { %8799 = vmatprep.subr.bf16.mxu1 %v12691_v13 }
0x1357   :  { %8800 = vmatpush3.bf16.msra.mxu1 %v12697_v33 }
0x1358   :  { %8801 = vmatprep.subr.bf16.mxu1 %v12703_v29 }
0x135b   :  { %8802 = vmatpush3.bf16.msra.mxu1 %v12709_v26 }
0x135c   :  { %8803 = vmatprep.subr.bf16.mxu1 %v12715_v50 }
0x135f   :  { %8804 = vmatpush3.bf16.msra.mxu1 %v12721_v22 }
0x1360   :  { %8805 = vmatprep.subr.bf16.mxu1 %v12727_v27 }
0x1363   :  { %8806 = vmatpush3.bf16.msra.mxu1 %v12733_v2 }
0x1364   :  { %8807 = vmatprep.subr.bf16.mxu1 %v12739_v4 }
0x1367   :  { %8808 = vmatpush3.bf16.msra.mxu1 %v12745_v9 }
0x1368   :  { %9614 = vmatprep.subr.bf16.mxu1 %v10142_v36 }
0x136a   :  { %5947 = vmatmul.mubr.bf16.vlgmr.msra.gmra.mrb[164].mxu1 %v5890_v15 }
0x136b   :  { %9615 = vmatpush3.bf16.msra.mxu1 %v12782_v28  ;;  %9622 = vmatprep.mubr.msk.bf16.mxu1 %vm10143_vm0, %v10142_v36 }
0x136c   :  { %9616 = vmatprep.subr.bf16.mxu1 %v10142_v36 }
0x136f   :  { %9617 = vmatpush3.bf16.msra.mxu1 %v12791_v30 }
0x1370   :  { %9618 = vmatprep.subr.bf16.mxu1 %v10142_v36 }
0x1373   :  { %9619 = vmatpush3.bf16.msra.mxu1 %v12799_v45 }
0x1374   :  { %9620 = vmatprep.subr.bf16.mxu1 %v10142_v36 }
0x1377   :  { %9621 = vmatpush3.bf16.msra.mxu1 %v12806_v43 }
0x1378   :  { %9626 = vmatprep.subr.bf16.mxu1 %v10142_v36 }
0x137a   :  { %9623 = vmatmul.mubr.msk.bf16.vlgmr.msra.gmra.mrb[168].mxu1 %vm368_vm1, %v5897_v49 }
0x137b   :  { %9638 = vmatprep.mubr.msk.bf16.mxu1 %vm10143_vm0, %v10142_v36  ;;  %9627 = vmatpush3.bf16.msra.mxu1 %v9934_v53 }
0x137c   :  { %9628 = vmatprep.subr.bf16.mxu1 %v10142_v36 }
0x13fd   :  { %v5594_v17 = vpop.f32.mrb[156].mxu1 }
0x13fe   :  { %v12897_v24 = vadd.f32 %v5594_v17, %v12815_v47  ;;  %v9584_v54 = vpop.f32.mrb[157].mxu1  ;;  %v5905_v47 = vcombine.high %v5890_v15, %v5890_v15  ;;  %v9937_v17 = vld [vmem:[%s13245_s3 + $0x408] sm:$0xff]  }
0x13ff   :  { %v5597_v51 = vpop.f32.mrb[158].mxu1  ;;  %v9938_v54 = vld [vmem:[%s13245_s3 + $0x410] sm:$0xff]  }
0x1400   :  { %v9585_v37 = vpop.f32.mrb[159].mxu1 }
0x141d   :  { %v8775_v63 = vpop.f32.mrb[160].mxu1 }
0x141e   :  { %v8776_v10 = vpop.f32.mrb[161].mxu1 }
0x141f   :  { %v8777_v58 = vadd.f32 %v8776_v10, %v8775_v63  ;;  %v8778_v60 = vpop.f32.mrb[162].mxu1 }
0x1420   :  { %v8779_v19 = vpop.f32.mrb[163].mxu1 }
0x1421   :  { %v5725_v23 = vadd.f32 %v8777_v58, %v5685_v46  ;;  %v9939_v46 = vld [vmem:[%s13245_s3 + $0x418] sm:$0xff]   ;;  %v7544_v58 = vld [vmem:[%s13242_s0 + $0x6e] sm:$0x1f] }
0x1422   :  { %v6139_v60 = vrot.slane %v7544_v58, %v10382_v39 }
0x1423   :  { %v5765_v59 = vadd.f32 %v5764_v20, %v5725_v23  ;;  %v9935_v20 = vld [vmem:[%s13245_s3 + $0x3f8] sm:$0xff]  }
0x1424   :  { %9629 = vmatpush3.bf16.msra.mxu1 %v9935_v20  ;;  %v6147_v19 = vcombine.high %v6139_v60, %v6139_v60 }
0x1425   :  { %v5770_v62 = vmax.f32 %v5765_v59, 0.0  ;;  %9630 = vmatprep.subr.bf16.mxu1 %v10142_v36  ;;  %v6154_v59 = vrot.slane %v6139_v60, %v10382_v39 }
0x1426   :  { %v6168_v23 = vrot.slane %v6147_v19, %v10382_v39  ;;  %v9943_v19 = vld [vmem:[%s13245_s3 + $0x430] sm:$0xff]  }
0x1427   :  { %v5771_v5 = vpack.c.bf16 %v5770_v62, %v5770_v62  ;;  %v6132_v62 = vcombine.high %v7544_v58, %v7544_v58 }
0x1428   :  { %9631 = vmatpush3.bf16.msra.mxu1 %v9936_v25  ;;  %v6170_v58 = vcombine.high %v6168_v23, %v6168_v23 }
0x1429   :  { %9611 = vmatmul.mubr.msk.bf16.vlgmr.msra.gmra.mrb[168].mxu0 %vm726_vm2, %v5771_v5  ;;  %9632 = vmatprep.subr.bf16.mxu1 %v10142_v36 }
0x142a   :  { %8816 = vmatpush3.bf16.msra.mxu0 %v12563_v56  ;;  %5986 = vmatprep.mubr.bf16.mxu0 %v5906_v52  ;;  %v6146_v52 = vrot.slane %v6132_v62, %v10382_v39 }
0x142b   :  { %8817 = vmatprep.subr.bf16.mxu0 %v12569_v11 }
0x142c   :  { %9633 = vmatpush3.bf16.msra.mxu1 %v9937_v17  ;;  %v6161_v5 = vrot.slane %v6146_v52, %v10382_v39 }
0x142d   :  { %9634 = vmatprep.subr.bf16.mxu1 %v10142_v36 }
0x142e   :  { %8818 = vmatpush3.bf16.msra.mxu0 %v12575_v57 }
0x142f   :  { %8819 = vmatprep.subr.bf16.mxu0 %v12581_v44 }
0x1430   :  { %9635 = vmatpush3.bf16.msra.mxu1 %v9938_v54 }
0x1431   :  { %9636 = vmatprep.subr.bf16.mxu1 %v10142_v36 }
0x1432   :  { %8820 = vmatpush3.bf16.msra.mxu0 %v12587_v41 }
0x1433   :  { %8821 = vmatprep.subr.bf16.mxu0 %v12593_v31 }
0x1434   :  { %9637 = vmatpush3.bf16.msra.mxu1 %v9939_v46 }
0x1435   :  { %8871 = vmatprep.subr.bf16.mxu1 %v12523_v21 }
0x1436   :  { %8822 = vmatpush3.bf16.msra.mxu0 %v12599_v14 }
0x1437   :  { %8823 = vmatprep.subr.bf16.mxu0 %v12605_v42 }
0x143a   :  { %8824 = vmatpush3.bf16.msra.mxu0 %v12611_v0 }
0x143b   :  { %8825 = vmatprep.subr.bf16.mxu0 %v12617_v18 }
0x143d   :  { %v8809_v38 = vpop.f32.mrb[164].mxu1 }
0x143e   :  { %8826 = vmatpush3.bf16.msra.mxu0 %v12623_v1  ;;  %v8810_v15 = vpop.f32.mrb[165].mxu1 }
0x143f   :  { %8827 = vmatprep.subr.bf16.mxu0 %v12629_v34  ;;  %v8811_v61 = vadd.f32 %v8810_v15, %v8809_v38  ;;  %v8812_v48 = vpop.f32.mrb[166].mxu1 }
0x1440   :  { %v8813_v49 = vpop.f32.mrb[167].mxu1 }
0x1441   :  { %v5949_v49 = vadd.f32 %v12556_v35, %v8811_v61  ;;  %v9941_v61 = vld [vmem:[%s13245_s3 + $0x420] sm:$0xff]  }
0x1442   :  { %8828 = vmatpush3.bf16.msra.mxu0 %v12635_v7 }
0x1443   :  { %8829 = vmatprep.subr.bf16.mxu0 %v12641_v16 }
0x1446   :  { %8830 = vmatpush3.bf16.msra.mxu0 %v12649_v8 }
0x1447   :  { %8849 = vmatprep.subr.bf16.mxu0 %v12655_v55 }
0x1449   :  { %5987 = vmatmul.mubr.bf16.vlgmr.msra.gmra.mrb[172].mxu0 %v5905_v47 }
0x144a   :  { %8850 = vmatpush3.bf16.msra.mxu0 %v12661_v12  ;;  %6210 = vmatprep.mubr.bf16.mxu0 %v6168_v23 }
0x144b   :  { %8851 = vmatprep.subr.bf16.mxu0 %v12667_v40 }
0x144d   :  { %v6028_v51 = vpop.f32.mrb[168].mxu1 }
0x144e   :  { %8852 = vmatpush3.bf16.msra.mxu0 %v12673_v3  ;;  %v9624_v37 = vpop.f32.mrb[169].mxu1 }
0x144f   :  { %8853 = vmatprep.subr.bf16.mxu0 %v12679_v6  ;;  %v6031_v63 = vpop.f32.mrb[170].mxu1 }
0x1450   :  { %v9625_v10 = vpop.f32.mrb[171].mxu1 }
0x1452   :  { %8854 = vmatpush3.bf16.msra.mxu0 %v12685_v32 }
0x1453   :  { %8855 = vmatprep.subr.bf16.mxu0 %v12691_v13 }
0x1456   :  { %8856 = vmatpush3.bf16.msra.mxu0 %v12697_v33 }
0x1457   :  { %8857 = vmatprep.subr.bf16.mxu0 %v12703_v29 }
0x145a   :  { %8858 = vmatpush3.bf16.msra.mxu0 %v12709_v26 }
0x145b   :  { %8859 = vmatprep.subr.bf16.mxu0 %v12715_v50 }
0x145e   :  { %8860 = vmatpush3.bf16.msra.mxu0 %v12721_v22 }
0x145f   :  { %8861 = vmatprep.subr.bf16.mxu0 %v12727_v27 }
0x1462   :  { %8862 = vmatpush3.bf16.msra.mxu0 %v12733_v2 }
0x1463   :  { %8863 = vmatprep.subr.bf16.mxu0 %v12739_v4 }
0x1466   :  { %8864 = vmatpush3.bf16.msra.mxu0 %v12745_v9 }
0x1467   :  { %9642 = vmatprep.subr.bf16.mxu0 %v10142_v36 }
0x1469   :  { %6211 = vmatmul.mubr.bf16.vlgmr.msra.gmra.mrb[176].mxu0 %v6154_v59 }
0x146a   :  { %9643 = vmatpush3.bf16.msra.mxu0 %v12782_v28  ;;  %9650 = vmatprep.mubr.msk.bf16.mxu0 %vm10143_vm0, %v10142_v36 }
0x146b   :  { %9644 = vmatprep.subr.bf16.mxu0 %v10142_v36 }
0x146e   :  { %9645 = vmatpush3.bf16.msra.mxu0 %v12791_v30 }
0x146f   :  { %9646 = vmatprep.subr.bf16.mxu0 %v10142_v36 }
0x1472   :  { %9647 = vmatpush3.bf16.msra.mxu0 %v12799_v45 }
0x1473   :  { %9648 = vmatprep.subr.bf16.mxu0 %v10142_v36 }
0x1476   :  { %9649 = vmatpush3.bf16.msra.mxu0 %v12806_v43 }
0x1477   :  { %9654 = vmatprep.subr.bf16.mxu0 %v10142_v36 }
0x1479   :  { %9651 = vmatmul.mubr.msk.bf16.vlgmr.msra.gmra.mrb[180].mxu0 %vm368_vm1, %v6161_v5 }
0x147a   :  { %9666 = vmatprep.mubr.msk.bf16.mxu0 %vm10143_vm0, %v10142_v36  ;;  %9655 = vmatpush3.bf16.msra.mxu0 %v9941_v61 }
0x147b   :  { %9656 = vmatprep.subr.bf16.mxu0 %v10142_v36 }
0x14fc   :  { %v5858_v47 = vpop.f32.mrb[168].mxu0 }
0x14fd   :  { %v12979_v53 = vadd.f32 %v5858_v47, %v12897_v24  ;;  %v9612_v20 = vpop.f32.mrb[169].mxu0  ;;  %v6169_v24 = vcombine.high %v6154_v59, %v6154_v59  ;;  %v9944_v47 = vld [vmem:[%s13245_s3 + $0x438] sm:$0xff]  }
0x14fe   :  { %v5861_v25 = vpop.f32.mrb[170].mxu0  ;;  %v9945_v20 = vld [vmem:[%s13245_s3 + $0x440] sm:$0xff]  }
0x14ff   :  { %v9613_v38 = vpop.f32.mrb[171].mxu0 }
0x151c   :  { %v8831_v15 = vpop.f32.mrb[172].mxu0 }
0x151d   :  { %v8832_v48 = vpop.f32.mrb[173].mxu0 }
0x151e   :  { %v8833_v17 = vadd.f32 %v8832_v48, %v8831_v15  ;;  %v8834_v54 = vpop.f32.mrb[174].mxu0 }
0x151f   :  { %v8835_v37 = vpop.f32.mrb[175].mxu0 }
0x1520   :  { %v5989_v63 = vadd.f32 %v8833_v17, %v5949_v49  ;;  %v9946_v49 = vld [vmem:[%s13245_s3 + $0x448] sm:$0xff]   ;;  %v7565_v17 = vld [vmem:[%s13242_s0 + $0x73] sm:$0x1f] }
0x1521   :  { %v6403_v54 = vrot.slane %v7565_v17, %v10382_v39 }
0x1522   :  { %v6029_v10 = vadd.f32 %v6028_v51, %v5989_v63  ;;  %v9942_v51 = vld [vmem:[%s13245_s3 + $0x428] sm:$0xff]  }
0x1523   :  { %9657 = vmatpush3.bf16.msra.mxu0 %v9942_v51  ;;  %v6411_v37 = vcombine.high %v6403_v54, %v6403_v54 }
0x1524   :  { %v6034_v46 = vmax.f32 %v6029_v10, 0.0  ;;  %9658 = vmatprep.subr.bf16.mxu0 %v10142_v36  ;;  %v6418_v10 = vrot.slane %v6403_v54, %v10382_v39 }
0x1525   :  { %v6432_v63 = vrot.slane %v6411_v37, %v10382_v39 }
0x1526   :  { %v6035_v60 = vpack.c.bf16 %v6034_v46, %v6034_v46  ;;  %v6396_v46 = vcombine.high %v7565_v17, %v7565_v17 }
0x1527   :  { %9659 = vmatpush3.bf16.msra.mxu0 %v9943_v19  ;;  %v6434_v17 = vcombine.high %v6432_v63, %v6432_v63 }
0x1528   :  { %9639 = vmatmul.mubr.msk.bf16.vlgmr.msra.gmra.mrb[172].mxu1 %vm726_vm2, %v6035_v60  ;;  %9660 = vmatprep.subr.bf16.mxu0 %v10142_v36 }
0x1529   :  { %8872 = vmatpush3.bf16.msra.mxu1 %v12563_v56  ;;  %6250 = vmatprep.mubr.bf16.mxu1 %v6170_v58  ;;  %v6410_v58 = vrot.slane %v6396_v46, %v10382_v39 }
0x152a   :  { %8873 = vmatprep.subr.bf16.mxu1 %v12569_v11 }
0x152b   :  { %9661 = vmatpush3.bf16.msra.mxu0 %v9944_v47  ;;  %v6425_v60 = vrot.slane %v6410_v58, %v10382_v39 }
0x152c   :  { %9662 = vmatprep.subr.bf16.mxu0 %v10142_v36 }
0x152d   :  { %8874 = vmatpush3.bf16.msra.mxu1 %v12575_v57 }
0x152e   :  { %8875 = vmatprep.subr.bf16.mxu1 %v12581_v44 }
0x152f   :  { %9663 = vmatpush3.bf16.msra.mxu0 %v9945_v20 }
0x1530   :  { %9664 = vmatprep.subr.bf16.mxu0 %v10142_v36 }
0x1531   :  { %8876 = vmatpush3.bf16.msra.mxu1 %v12587_v41 }
0x1532   :  { %8877 = vmatprep.subr.bf16.mxu1 %v12593_v31 }
0x1533   :  { %9665 = vmatpush3.bf16.msra.mxu0 %v9946_v49 }
0x1534   :  { %8927 = vmatprep.subr.bf16.mxu0 %v12523_v21 }
0x1535   :  { %8878 = vmatpush3.bf16.msra.mxu1 %v12599_v14 }
0x1536   :  { %8879 = vmatprep.subr.bf16.mxu1 %v12605_v42 }
0x1539   :  { %8880 = vmatpush3.bf16.msra.mxu1 %v12611_v0 }
0x153a   :  { %8881 = vmatprep.subr.bf16.mxu1 %v12617_v18 }
0x153c   :  { %v8865_v23 = vpop.f32.mrb[176].mxu0 }
0x153d   :  { %8882 = vmatpush3.bf16.msra.mxu1 %v12623_v1  ;;  %v8866_v59 = vpop.f32.mrb[177].mxu0 }
0x153e   :  { %8883 = vmatprep.subr.bf16.mxu1 %v12629_v34  ;;  %v8867_v62 = vadd.f32 %v8866_v59, %v8865_v23  ;;  %v8868_v52 = vpop.f32.mrb[178].mxu0 }
0x153f   :  { %v8869_v5 = vpop.f32.mrb[179].mxu0 }
0x1540   :  { %v6213_v5 = vadd.f32 %v12556_v35, %v8867_v62 }
0x1541   :  { %8884 = vmatpush3.bf16.msra.mxu1 %v12635_v7 }
0x1542   :  { %8885 = vmatprep.subr.bf16.mxu1 %v12641_v16 }
0x1545   :  { %8886 = vmatpush3.bf16.msra.mxu1 %v12649_v8 }
0x1546   :  { %8905 = vmatprep.subr.bf16.mxu1 %v12655_v55 }
0x1548   :  { %6251 = vmatmul.mubr.bf16.vlgmr.msra.gmra.mrb[176].mxu1 %v6169_v24 }
0x1549   :  { %8906 = vmatpush3.bf16.msra.mxu1 %v12661_v12  ;;  %6474 = vmatprep.mubr.bf16.mxu1 %v6432_v63 }
0x154a   :  { %8907 = vmatprep.subr.bf16.mxu1 %v12667_v40 }
0x154c   :  { %v6292_v25 = vpop.f32.mrb[180].mxu0 }
0x154d   :  { %8908 = vmatpush3.bf16.msra.mxu1 %v12673_v3  ;;  %v9652_v38 = vpop.f32.mrb[181].mxu0 }
0x154e   :  { %8909 = vmatprep.subr.bf16.mxu1 %v12679_v6  ;;  %v6295_v15 = vpop.f32.mrb[182].mxu0 }
0x154f   :  { %v9653_v48 = vpop.f32.mrb[183].mxu0 }
0x1551   :  { %8910 = vmatpush3.bf16.msra.mxu1 %v12685_v32 }
0x1552   :  { %8911 = vmatprep.subr.bf16.mxu1 %v12691_v13 }
0x1555   :  { %8912 = vmatpush3.bf16.msra.mxu1 %v12697_v33 }
0x1556   :  { %8913 = vmatprep.subr.bf16.mxu1 %v12703_v29 }
0x1559   :  { %8914 = vmatpush3.bf16.msra.mxu1 %v12709_v26 }
0x155a   :  { %8915 = vmatprep.subr.bf16.mxu1 %v12715_v50 }
0x155d   :  { %8916 = vmatpush3.bf16.msra.mxu1 %v12721_v22 }
0x155e   :  { %8917 = vmatprep.subr.bf16.mxu1 %v12727_v27 }
0x1561   :  { %8918 = vmatpush3.bf16.msra.mxu1 %v12733_v2 }
0x1562   :  { %8919 = vmatprep.subr.bf16.mxu1 %v12739_v4 }
0x1565   :  { %8920 = vmatpush3.bf16.msra.mxu1 %v12745_v9 }
0x1566   :  { %9670 = vmatprep.subr.bf16.mxu1 %v10142_v36 }
0x1568   :  { %6475 = vmatmul.mubr.bf16.vlgmr.msra.gmra.mrb[180].mxu1 %v6418_v10 }
0x1569   :  { %9671 = vmatpush3.bf16.msra.mxu1 %v12782_v28  ;;  %9678 = vmatprep.mubr.msk.bf16.mxu1 %vm10143_vm0, %v10142_v36 }
0x156a   :  { %9672 = vmatprep.subr.bf16.mxu1 %v10142_v36 }
0x156d   :  { %9673 = vmatpush3.bf16.msra.mxu1 %v12791_v30 }
0x156e   :  { %9674 = vmatprep.subr.bf16.mxu1 %v10142_v36 }
0x1571   :  { %9675 = vmatpush3.bf16.msra.mxu1 %v12799_v45 }
0x1572   :  { %9676 = vmatprep.subr.bf16.mxu1 %v10142_v36 }
0x1575   :  { %9677 = vmatpush3.bf16.msra.mxu1 %v12806_v43 }
0x1576   :  { %9682 = vmatprep.subr.bf16.mxu1 %v10142_v36 }
0x1578   :  { %9679 = vmatmul.mubr.msk.bf16.vlgmr.msra.gmra.mrb[184].mxu1 %vm368_vm1, %v6425_v60 }
0x1579   :  { %9694 = vmatprep.mubr.msk.bf16.mxu1 %vm10143_vm0, %v10142_v36 }
0x15fb   :  { %v6122_v24 = vpop.f32.mrb[172].mxu1 }
0x15fc   :  { %v13061_v61 = vadd.f32 %v6122_v24, %v12979_v53  ;;  %v9640_v51 = vpop.f32.mrb[173].mxu1  ;;  %v6433_v53 = vcombine.high %v6418_v10, %v6418_v10 }
0x15fd   :  { %v6125_v19 = vpop.f32.mrb[174].mxu1 }
0x15fe   :  { %v9641_v23 = vpop.f32.mrb[175].mxu1 }
0x161b   :  { %v8887_v59 = vpop.f32.mrb[176].mxu1 }
0x161c   :  { %v8888_v52 = vpop.f32.mrb[177].mxu1 }
0x161d   :  { %v8889_v47 = vadd.f32 %v8888_v52, %v8887_v59  ;;  %v8890_v20 = vpop.f32.mrb[178].mxu1 }
0x161e   :  { %v8891_v38 = vpop.f32.mrb[179].mxu1 }
0x161f   :  { %v6253_v15 = vadd.f32 %v8889_v47, %v6213_v5  ;;  %v9962_v38 = vld [vmem:[%s13247_s5 + $0x8] sm:$0xff]  }
0x1621   :  { %v6293_v48 = vadd.f32 %v6292_v25, %v6253_v15  ;;  %v9963_v15 = vld [vmem:[%s13247_s5 + $0x10] sm:$0xff]  }
0x1623   :  { %v6298_v49 = vmax.f32 %v6293_v48, 0.0  ;;  %v9964_v48 = vld [vmem:[%s13247_s5 + $0x18] sm:$0xff]  }
0x1625   :  { %v6299_v54 = vpack.c.bf16 %v6298_v49, %v6298_v49  ;;  %v9965_v49 = vld [vmem:[%s13247_s5 + $0x20] sm:$0xff]  }
0x1627   :  { %9667 = vmatmul.mubr.msk.bf16.vlgmr.msra.gmra.mrb[184].mxu0 %vm726_vm2, %v6299_v54 }
0x1628   :  { %8928 = vmatpush3.bf16.msra.mxu0 %v12563_v56  ;;  %6514 = vmatprep.mubr.bf16.mxu0 %v6434_v17  ;;  %v9966_v17 = vld [vmem:[%s13247_s5 + $0x28] sm:$0xff]  }
0x1629   :  { %8929 = vmatprep.subr.bf16.mxu0 %v12569_v11 }
0x162c   :  { %8930 = vmatpush3.bf16.msra.mxu0 %v12575_v57 }
0x162d   :  { %8931 = vmatprep.subr.bf16.mxu0 %v12581_v44 }
0x1630   :  { %8932 = vmatpush3.bf16.msra.mxu0 %v12587_v41 }
0x1631   :  { %8933 = vmatprep.subr.bf16.mxu0 %v12593_v31 }
0x1634   :  { %8934 = vmatpush3.bf16.msra.mxu0 %v12599_v14 }
0x1635   :  { %8935 = vmatprep.subr.bf16.mxu0 %v12605_v42 }
0x1638   :  { %8936 = vmatpush3.bf16.msra.mxu0 %v12611_v0 }
0x1639   :  { %8937 = vmatprep.subr.bf16.mxu0 %v12617_v18 }
0x163c   :  { %8938 = vmatpush3.bf16.msra.mxu0 %v12623_v1 }
0x163d   :  { %8939 = vmatprep.subr.bf16.mxu0 %v12629_v34 }
0x1640   :  { %8940 = vmatpush3.bf16.msra.mxu0 %v12635_v7 }
0x1641   :  { %8941 = vmatprep.subr.bf16.mxu0 %v12641_v16 }
0x1644   :  { %8942 = vmatpush3.bf16.msra.mxu0 %v12649_v8 }
0x1645   :  { %8961 = vmatprep.subr.bf16.mxu0 %v12655_v55  ;;  %v9948_v55 = vld [vmem:[%s13245_s3 + $0x450] sm:$0xff]  }
0x1646   :  { %9683 = vmatpush3.bf16.msra.mxu1 %v9948_v55 }
0x1647   :  { %6515 = vmatmul.mubr.bf16.vlgmr.msra.gmra.mrb[188].mxu0 %v6433_v53  ;;  %9684 = vmatprep.subr.bf16.mxu1 %v10142_v36 }
0x1648   :  { %8962 = vmatpush3.bf16.msra.mxu0 %v12661_v12  ;;  %v9949_v12 = vld [vmem:[%s13245_s3 + $0x458] sm:$0xff]  }
0x1649   :  { %8963 = vmatprep.subr.bf16.mxu0 %v12667_v40  ;;  %v9950_v40 = vld [vmem:[%s13245_s3 + $0x460] sm:$0xff]  }
0x164a   :  { %9685 = vmatpush3.bf16.msra.mxu1 %v9949_v12 }
0x164b   :  { %9686 = vmatprep.subr.bf16.mxu1 %v10142_v36 }
0x164c   :  { %8964 = vmatpush3.bf16.msra.mxu0 %v12673_v3  ;;  %v8921_v3 = vpop.f32.mrb[180].mxu1 }
0x164d   :  { %8965 = vmatprep.subr.bf16.mxu0 %v12679_v6  ;;  %v8922_v6 = vpop.f32.mrb[181].mxu1 }
0x164e   :  { %9687 = vmatpush3.bf16.msra.mxu1 %v9950_v40 }
0x164f   :  { %9688 = vmatprep.subr.bf16.mxu1 %v10142_v36 }
0x1650   :  { %8966 = vmatpush3.bf16.msra.mxu0 %v12685_v32  ;;  %v8923_v32 = vadd.f32 %v8922_v6, %v8921_v3 }
0x1651   :  { %8967 = vmatprep.subr.bf16.mxu0 %v12691_v13  ;;  %v8924_v13 = vpop.f32.mrb[182].mxu1 }
0x1654   :  { %8968 = vmatpush3.bf16.msra.mxu0 %v12697_v33  ;;  %v8925_v33 = vpop.f32.mrb[183].mxu1 }
0x1655   :  { %8969 = vmatprep.subr.bf16.mxu0 %v12703_v29  ;;  %v9951_v29 = vld [vmem:[%s13245_s3 + $0x468] sm:$0xff]  }
0x1656   :  { %9689 = vmatpush3.bf16.msra.mxu1 %v9951_v29 }
0x1657   :  { %9690 = vmatprep.subr.bf16.mxu1 %v10142_v36 }
0x1658   :  { %8970 = vmatpush3.bf16.msra.mxu0 %v12709_v26  ;;  %v9952_v26 = vld [vmem:[%s13245_s3 + $0x470] sm:$0xff]  }
0x1659   :  { %8971 = vmatprep.subr.bf16.mxu0 %v12715_v50  ;;  %v6556_v50 = vpop.f32.mrb[184].mxu1 }
0x165a   :  { %9691 = vmatpush3.bf16.msra.mxu1 %v9952_v26 }
0x165b   :  { %9692 = vmatprep.subr.bf16.mxu1 %v10142_v36 }
0x165c   :  { %8972 = vmatpush3.bf16.msra.mxu0 %v12721_v22  ;;  %v9680_v22 = vpop.f32.mrb[185].mxu1 }
0x165d   :  { %8973 = vmatprep.subr.bf16.mxu0 %v12727_v27  ;;  %v6559_v27 = vpop.f32.mrb[186].mxu1 }
0x1660   :  { %8974 = vmatpush3.bf16.msra.mxu0 %v12733_v2  ;;  %v9681_v2 = vpop.f32.mrb[187].mxu1 }
0x1661   :  { %8975 = vmatprep.subr.bf16.mxu0 %v12739_v4  ;;  %v9953_v4 = vld [vmem:[%s13245_s3 + $0x478] sm:$0xff]  }
0x1662   :  { %9693 = vmatpush3.bf16.msra.mxu1 %v9953_v4  ;;  %v9967_v4 = vld [vmem:[%s13247_s5 + $0x30] sm:$0xff]  }
0x1663   :  { %8983 = vmatprep.subr.bf16.mxu1 %v12523_v21 }
0x1664   :  { %8976 = vmatpush3.bf16.msra.mxu0 %v12745_v9  ;;  %v7586_v9 = vld [vmem:[%s13242_s0 + $0x78] sm:$0x1f] }
0x1665   :  { %9698 = vmatprep.subr.bf16.mxu0 %v10142_v36  ;;  %v6667_v62 = vrot.slane %v7586_v9, %v10382_v39  ;;  %v6660_v21 = vcombine.high %v7586_v9, %v7586_v9  ;;  %v9968_v9 = vld [vmem:[%s13247_s5 + $0x38] sm:$0xff]  }
0x1667   :  { %v6675_v25 = vcombine.high %v6667_v62, %v6667_v62  ;;  %v6682_v63 = vrot.slane %v6667_v62, %v10382_v39  ;;  %v6674_v10 = vrot.slane %v6660_v21, %v10382_v39 }
0x1669   :  { %v6696_v37 = vrot.slane %v6675_v25, %v10382_v39  ;;  %v7607_v25 = vld [vmem:[%s13246_s4] ss:$0 sm:$0xff] }
0x166b   :  { %6738 = vmatprep.mubr.bf16.mxu0 %v6696_v37  ;;  %v6698_v47 = vcombine.high %v6696_v37, %v6696_v37 }
0x166c   :  { %6739 = vmatmul.mubr.bf16.vlgmr.msra.gmra.mrb[192].mxu0 %v6682_v63 }
0x166d   :  { %9699 = vmatpush3.bf16.msra.mxu0 %v12782_v28  ;;  %9706 = vmatprep.mubr.msk.bf16.mxu0 %vm10143_vm0, %v10142_v36  ;;  %v6689_v28 = vrot.slane %v6674_v10, %v10382_v39 }
0x166e   :  { %9700 = vmatprep.subr.bf16.mxu0 %v10142_v36 }
0x1671   :  { %9701 = vmatpush3.bf16.msra.mxu0 %v12791_v30 }
0x1672   :  { %9702 = vmatprep.subr.bf16.mxu0 %v10142_v36 }
0x1675   :  { %9703 = vmatpush3.bf16.msra.mxu0 %v12799_v45 }
0x1676   :  { %9704 = vmatprep.subr.bf16.mxu0 %v10142_v36 }
0x1679   :  { %9705 = vmatpush3.bf16.msra.mxu0 %v12806_v43  ;;  %v6477_v43 = vadd.f32 %v12556_v35, %v8923_v32  ;;  %v6697_v35 = vcombine.high %v6682_v63, %v6682_v63  ;;  %v10116_v32 = vld [vmem:[%s13244_s2] ss:$0 sm:$0xff] }
0x167a   :  { %9710 = vmatprep.subr.bf16.mxu0 %v10142_v36 }
0x167c   :  { %9707 = vmatmul.mubr.msk.bf16.vlgmr.msra.gmra.mrb[196].mxu0 %vm368_vm1, %v6689_v28 }
0x167d   :  { %9722 = vmatprep.mubr.msk.bf16.mxu0 %vm10143_vm0, %v10142_v36 }
0x16fa   :  { %v6386_v30 = vpop.f32.mrb[184].mxu0 }
0x16fb   :  { %v13143_v46 = vadd.f32 %v6386_v30, %v13061_v61  ;;  %v9668_v58 = vpop.f32.mrb[185].mxu0  ;;  %v9961_v61 = vld [vmem:[%s13247_s5] sm:$0xff]   ;;  %s7050_s5 = sshll.u32 %s10144_s20, 4  ;;  %s7051_s5 = int_to_ptr.vmem [resolvable:$true] %s7050_s5 }
0x16fc   :  { %v6389_v60 = vpop.f32.mrb[186].mxu0  ;;  %s10117_s4 = scalar_lea.vmem %s7051_s5, 32  ;;  %p10122_p1 = scmp.lt.s32.totalorder %s7051_s5, %s7051_s5 }
0x16fd   :  { %v9669_v45 = vpop.f32.mrb[187].mxu0  ;;  %p10118_p0 = scmp.ne.s32.totalorder %s7051_s5, %s10117_s4  ;;  %p10123_p2 = scmp.lt.s32.totalorder %s10117_s4, %s10117_s4 }
0x16ff   :  { %p10124_p3 = por %p10123_p2, %p10122_p1 }
0x1701   :  { %p10125_p4 = pnand %p10124_p3, %p10118_p0 }
0x171a   :  { %v8943_v24 = vpop.f32.mrb[188].mxu0 }
0x171b   :  { %v8944_v51 = vpop.f32.mrb[189].mxu0 }
0x171c   :  { %v8945_v19 = vadd.f32 %v8944_v51, %v8943_v24  ;;  %v8946_v39 = vpop.f32.mrb[190].mxu0 }
0x171d   :  { %v8947_v23 = vpop.f32.mrb[191].mxu0 }
0x171e   :  { %v6517_v59 = vadd.f32 %v8945_v19, %v6477_v43 }
0x1720   :  { %v6557_v52 = vadd.f32 %v6556_v50, %v6517_v59 }
0x1722   :  { %v6562_v5 = vmax.f32 %v6557_v52, 0.0 }
0x1724   :  { %v6563_v20 = vpack.c.bf16 %v6562_v5, %v6562_v5 }
0x1726   :  { %9695 = vmatmul.mubr.msk.bf16.vlgmr.msra.gmra.mrb[188].mxu1 %vm726_vm2, %v6563_v20 }
0x1727   :  { %8984 = vmatpush3.bf16.msra.mxu1 %v12563_v56  ;;  %6778 = vmatprep.mubr.bf16.mxu1 %v6698_v47  ;;  %v9955_v56 = vld [vmem:[%s13245_s3 + $0x480] sm:$0xff]  }
0x1728   :  { %8985 = vmatprep.subr.bf16.mxu1 %v12569_v11  ;;  %9711 = vmatpush3.bf16.msra.mxu0 %v9955_v56  ;;  %v9956_v11 = vld [vmem:[%s13245_s3 + $0x488] sm:$0xff]  }
0x1729   :  { %9712 = vmatprep.subr.bf16.mxu0 %v10142_v36 }
0x172b   :  { %8986 = vmatpush3.bf16.msra.mxu1 %v12575_v57  ;;  %v9957_v57 = vld [vmem:[%s13245_s3 + $0x490] sm:$0xff]  }
0x172c   :  { %8987 = vmatprep.subr.bf16.mxu1 %v12581_v44  ;;  %9713 = vmatpush3.bf16.msra.mxu0 %v9956_v11 }
0x172d   :  { %9714 = vmatprep.subr.bf16.mxu0 %v10142_v36 }
0x172f   :  { %8988 = vmatpush3.bf16.msra.mxu1 %v12587_v41 }
0x1730   :  { %8989 = vmatprep.subr.bf16.mxu1 %v12593_v31  ;;  %9715 = vmatpush3.bf16.msra.mxu0 %v9957_v57 }
0x1731   :  { %9716 = vmatprep.subr.bf16.mxu0 %v10142_v36 }
0x1733   :  { %8990 = vmatpush3.bf16.msra.mxu1 %v12599_v14 }
0x1734   :  { %8991 = vmatprep.subr.bf16.mxu1 %v12605_v42 }
0x1737   :  { %8992 = vmatpush3.bf16.msra.mxu1 %v12611_v0  ;;  %v9958_v0 = vld [vmem:[%s13245_s3 + $0x498] sm:$0xff]  }
0x1738   :  { %8993 = vmatprep.subr.bf16.mxu1 %v12617_v18  ;;  %9717 = vmatpush3.bf16.msra.mxu0 %v9958_v0 }
0x1739   :  { %9718 = vmatprep.subr.bf16.mxu0 %v10142_v36 }
0x173b   :  { %8994 = vmatpush3.bf16.msra.mxu1 %v12623_v1  ;;  %v9959_v1 = vld [vmem:[%s13245_s3 + $0x4a0] sm:$0xff]  }
0x173c   :  { %8995 = vmatprep.subr.bf16.mxu1 %v12629_v34  ;;  %9719 = vmatpush3.bf16.msra.mxu0 %v9959_v1 }
0x173d   :  { %9720 = vmatprep.subr.bf16.mxu0 %v10142_v36 }
0x173f   :  { %8996 = vmatpush3.bf16.msra.mxu1 %v12635_v7  ;;  %v8977_v44 = vpop.f32.mrb[192].mxu0 }
0x1740   :  { %8997 = vmatprep.subr.bf16.mxu1 %v12641_v16  ;;  %v8978_v41 = vpop.f32.mrb[193].mxu0 }
0x1741   :  { %v8979_v31 = vadd.f32 %v8978_v41, %v8977_v44  ;;  %v8980_v14 = vpop.f32.mrb[194].mxu0 }
0x1742   :  { %v8981_v42 = vpop.f32.mrb[195].mxu0 }
0x1743   :  { %8998 = vmatpush3.bf16.msra.mxu1 %v12649_v8  ;;  %v9960_v8 = vld [vmem:[%s13245_s3 + $0x4a8] sm:$0xff]   ;;  %v6741_v13 = vadd.f32 %v10116_v32, %v8979_v31 }
0x1744   :  { %9726 = vmatprep.subr.bf16.mxu1 %v10142_v36  ;;  %9721 = vmatpush3.bf16.msra.mxu0 %v9960_v8 }
0x1746   :  { %6779 = vmatmul.mubr.bf16.vlgmr.msra.gmra.mrb[192].mxu1 %v6697_v35 }
0x1747   :  { %9742 = vmatprep.mubr.msk.bf16.mxu1 %vm10143_vm0, %v10142_v36  ;;  %9727 = vmatpush3.bf16.msra.mxu1 %v9961_v61 }
0x1748   :  { %9728 = vmatprep.subr.bf16.mxu1 %v10142_v36 }
0x174b   :  { %9729 = vmatpush3.bf16.msra.mxu1 %v9962_v38 }
0x174c   :  { %9730 = vmatprep.subr.bf16.mxu1 %v10142_v36 }
0x174f   :  { %v6820_v18 = vpop.f32.mrb[196].mxu0  ;;  %9731 = vmatpush3.bf16.msra.mxu1 %v9963_v15 }
0x1750   :  { %v9708_v34 = vpop.f32.mrb[197].mxu0  ;;  %9732 = vmatprep.subr.bf16.mxu1 %v10142_v36 }
0x1751   :  { %v6823_v7 = vpop.f32.mrb[198].mxu0 }
0x1752   :  { %v9709_v16 = vpop.f32.mrb[199].mxu0 }
0x1753   :  { %9733 = vmatpush3.bf16.msra.mxu1 %v9964_v48 }
0x1754   :  { %9734 = vmatprep.subr.bf16.mxu1 %v10142_v36 }
0x1757   :  { %9735 = vmatpush3.bf16.msra.mxu1 %v9965_v49 }
0x1758   :  { %9736 = vmatprep.subr.bf16.mxu1 %v10142_v36 }
0x175b   :  { %9737 = vmatpush3.bf16.msra.mxu1 %v9966_v17 }
0x175c   :  { %9738 = vmatprep.subr.bf16.mxu1 %v10142_v36 }
0x175f   :  { %9739 = vmatpush3.bf16.msra.mxu1 %v9967_v4 }
0x1760   :  { %9740 = vmatprep.subr.bf16.mxu1 %v10142_v36  ;;  %v7608_v36 = vld [vmem:[%s13248_s6] ss:$0 sm:$0xff] }
0x1763   :  { %9741 = vmatpush3.bf16.msra.mxu1 %v9968_v9 }
0x17f9   :  { %v6650_v54 = vpop.f32.mrb[188].mxu1 }
0x17fa   :  { %v6656_v53 = vadd.f32 %v6650_v54, %v13143_v46  ;;  %v9696_v55 = vpop.f32.mrb[189].mxu1 }
0x17fb   :  { %v6653_v12 = vpop.f32.mrb[190].mxu1 }
0x17fc   :  { %v9697_v40 = vpop.f32.mrb[191].mxu1 }
0x1819   :  { %v8999_v3 = vpop.f32.mrb[192].mxu1 }
0x181a   :  { %v9000_v6 = vpop.f32.mrb[193].mxu1 }
0x181b   :  { %v9001_v33 = vadd.f32 %v9000_v6, %v8999_v3  ;;  %v9002_v29 = vpop.f32.mrb[194].mxu1 }
0x181c   :  { %v9003_v26 = vpop.f32.mrb[195].mxu1 }
0x181d   :  { %v6781_v50 = vadd.f32 %v9001_v33, %v6741_v13 }
0x181f   :  { %v6821_v22 = vadd.f32 %v6820_v18, %v6781_v50 }
0x1821   :  { %v6826_v27 = vmax.f32 %v6821_v22, 0.0 }
0x1823   :  { %v6827_v2 = vpack.c.bf16 %v6826_v27, %v6826_v27 }
0x1825   :  { %9723 = vmatmul.mubr.msk.bf16.vlgmr.msra.gmra.mrb[200].mxu0 %vm726_vm2, %v6827_v2 }
0x18f8   :  { %v6914_v62 = vpop.f32.mrb[200].mxu0 }
0x18f9   :  { %v6920_v37 = vadd.f32 %v6914_v62, %v6656_v53  ;;  %v9724_v63 = vpop.f32.mrb[201].mxu0 }
0x18fa   :  { %v6917_v21 = vpop.f32.mrb[202].mxu0 }
0x18fb   :  { %v6928_v10 = vadd.f32 %v7607_v25, %v6920_v37  ;;  %v9725_v28 = vpop.f32.mrb[203].mxu0 }
0x18fd   :  { %v6929_v30 = vmax.f32 %v6928_v10, 0.0 }
0x18ff   :  { %v6930_v46 = vpack.c.bf16 %v6929_v30, %v6929_v30 }
0x1901   :  { %9743 = vmatmul.mubr.bf16.vlgmr.msra.gmra.mrb[196].mxu1 %v6930_v46 }
0x19d4   :  { %v7036_v58 = vpop.f32.mrb[196].mxu1 }
0x19d5   :  { %v7037_v60 = vadd.f32 %v7608_v36, %v7036_v58  ;;  %v9744_v45 = vpop.f32.mrb[197].mxu1 }
0x19d6   :  { %v7039_v24 = vpop.f32.mrb[198].mxu1 }
0x19d7   :  { %v9745_v51 = vpop.f32.mrb[199].mxu1  ;;  %7043 = vst.msk [vmem:[#allocation2] sm:$0x3] %vm7042_vm3, %v7037_v60 }
0x19d8   :  { %10128 = shalt.err (!%p10125_p4)
}
0x19d9   :  { %s10129_s6 = scalar_lea.hbm %s13249_s7, 32 }
0x19da   :  { %p10130_p5 = scmp.ne.s32.totalorder %s13249_s7, %s10129_s6  ;;  %p10133_p6 = scmp.lt.u32.totalorder %s10129_s6, %s13249_s7 }
0x19dc   :  { %p10135_p7 = pnand %p10133_p6, %p10130_p5 }
0x19de   :  { %10138 = shalt.err (!%p10135_p7)
}
0x19df   :  { %7053 = dma.vmem_to_hbm [thread:$0]  %s7051_s5, 32, %s13249_s7, [#allocation3]  }
0x19e0   :  { %10139 = dma.done.wait [#allocation3], 32  }
0x19e1   :  { %10140 = vsyncadd [#allocation3], 4294967264 }
0x19e2   :  { %7057 = vsyncpa [#allocation3], 1 }

</bundles_post_ra>
